<compile_context>
chip_gen: v5e
topology: v5e:2x2
jax: 0.10.0
libtpu: 0.0.40
codegen_flags: <defaults>
</compile_context>

<pallas_src>
import functools

import jax
import jax.numpy as jnp
from jax import lax
from jax.experimental import pallas as pl
from jax.experimental.pallas import tpu as pltpu

BN_EPS = 1e-5
_STAGES = [(64, 1), (128, 2), (256, 2), (512, 2)]  # (out_channels, first stride)


def _round_up(x, m):
    return (x + m - 1) // m * m


def _k_plan(K):
    """Return (Kp, tk): padded K extent and K tile size."""
    if K <= 1024:
        Kp = _round_up(K, 16)           # single full-extent K block
        return Kp, Kp
    if K % 256 == 0:
        return K, 256
    if K % 128 == 0:
        return K, 128
    Kp = _round_up(K, 256)
    return Kp, 256


def _m_plan(M, tm_max=256):
    Mp = _round_up(max(M, 16), 16)
    tm = min(tm_max, Mp)
    Mp = _round_up(Mp, tm)
    return Mp, tm


# ----------------------------------------------------------------------------
# Fused matmul + BN-affine + (optional residual) + ReLU Pallas kernel
# ----------------------------------------------------------------------------
def _epilogue(acc, scale_ref, shift_ref, res_ref, relu):
    out = acc * scale_ref[...] + shift_ref[...]
    if res_ref is not None:
        out = out + res_ref[...]
    if relu:
        out = jnp.maximum(out, 0.0)
    return out


def _mm_affine_kernel(*refs, relu, has_res, nk):
    if has_res:
        a_ref, b_ref, scale_ref, shift_ref, res_ref, o_ref = refs
    else:
        a_ref, b_ref, scale_ref, shift_ref, o_ref = refs
        res_ref = None

    part = jnp.dot(a_ref[...], b_ref[...], preferred_element_type=jnp.float32)

    if nk == 1:
        o_ref[...] = _epilogue(part, scale_ref, shift_ref, res_ref, relu)
    else:
        k = pl.program_id(1)

        @pl.when(k == 0)
        def _():
            o_ref[...] = part

        @pl.when(jnp.logical_and(k > 0, k < nk - 1))
        def _():
            o_ref[...] += part

        @pl.when(k == nk - 1)
        def _():
            o_ref[...] = _epilogue(o_ref[...] + part, scale_ref, shift_ref,
                                   res_ref, relu)


def matmul_affine(a, b_p, scale_p, shift_p, residual=None, relu=False):
    """out = maybe_relu((a @ b) * scale + shift [+ residual]), fused in Pallas.

    a:       (M, K)  float (cast to bf16 here)
    b_p:     (Kp, N) bf16, pre-padded/reshaped weight (from prepare_params)
    scale_p: (1, N)  f32
    shift_p: (1, N)  f32
    """
    M, K = a.shape
    Kp, tk = _k_plan(K)
    assert b_p.shape[0] == Kp, (b_p.shape, K, Kp)
    N = b_p.shape[1]
    Mp, tm = _m_plan(M)
    nk = Kp // tk

    a_p = a.astype(jnp.bfloat16)
    if (Mp, Kp) != (M, K):
        a_p = jnp.pad(a_p, ((0, Mp - M), (0, Kp - K)))

    has_res = residual is not None
    inputs = [a_p, b_p, scale_p, shift_p]
    in_specs = [
        pl.BlockSpec((tm, tk), lambda m, k: (m, k)),
        pl.BlockSpec((tk, N), lambda m, k: (k, 0)),
        pl.BlockSpec((1, N), lambda m, k: (0, 0)),
        pl.BlockSpec((1, N), lambda m, k: (0, 0)),
    ]
    if has_res:
        res_p = residual.astype(jnp.float32)
        if Mp != M:
            res_p = jnp.pad(res_p, ((0, Mp - M), (0, 0)))
        inputs.append(res_p)
        in_specs.append(pl.BlockSpec((tm, N), lambda m, k: (m, 0)))

    out = pl.pallas_call(
        functools.partial(_mm_affine_kernel, relu=relu, has_res=has_res, nk=nk),
        out_shape=jax.ShapeDtypeStruct((Mp, N), jnp.float32),
        grid_spec=pltpu.PrefetchScalarGridSpec(
            num_scalar_prefetch=0,
            grid=(Mp // tm, nk),
            in_specs=in_specs,
            out_specs=pl.BlockSpec((tm, N), lambda m, k: (m, 0)),
        ),
        compiler_params=pltpu.CompilerParams(
            dimension_semantics=("parallel", "arbitrary"),
            vmem_limit_bytes=48 * 1024 * 1024,
        ),
    )(*inputs)
    return out[:M]


# ----------------------------------------------------------------------------
# Convolution = im2col (bf16, JAX glue) + fused Pallas matmul
# ----------------------------------------------------------------------------
def _im2col(x, kh, kw, stride, pad):
    """x: (N,H,W,C) f32 -> bf16 patches (N*OH*OW, kh*kw*C), plus (N,OH,OW)."""
    n, h, w, c = x.shape
    x = x.astype(jnp.bfloat16)
    if pad:
        x = jnp.pad(x, ((0, 0), (pad, pad), (pad, pad), (0, 0)))
    hp, wp = h + 2 * pad, w + 2 * pad
    oh = (hp - kh) // stride + 1
    ow = (wp - kw) // stride + 1
    if kh == 1 and kw == 1:
        patches = x[:, ::stride, ::stride, :]
    else:
        cols = [x[:, i:i + stride * oh:stride, j:j + stride * ow:stride, :]
                for i in range(kh) for j in range(kw)]
        patches = jnp.concatenate(cols, axis=-1)
    return patches.reshape(n * oh * ow, kh * kw * c), (n, oh, ow)


def conv_bn(x, folded, kh, kw, stride, pad, relu, residual=None):
    """Conv2d(bias=False) + BatchNorm(eval) [+ residual] [+ ReLU], one Pallas call."""
    cout = folded['scale'].shape[1]
    patches, (n, oh, ow) = _im2col(x, kh, kw, stride, pad)
    res = None if residual is None else residual.reshape(n * oh * ow, cout)
    out = matmul_affine(patches, folded['w'], folded['scale'], folded['shift'],
                        residual=res, relu=relu)
    return out.reshape(n, oh, ow, cout)


def maxpool_3x3_s2_p1(x):
    return lax.reduce_window(
        x, -jnp.inf, lax.max,
        window_dimensions=(1, 3, 3, 1),
        window_strides=(1, 2, 2, 1),
        padding=((0, 0), (1, 1), (1, 1), (0, 0)))


def residual_block(x, blk, stride):
    if 'sc' in blk:
        shortcut = conv_bn(x, blk['sc'], 1, 1, stride=stride, pad=0, relu=False)
    else:
        shortcut = x
    out = conv_bn(x, blk['conv1'], 3, 3, stride=stride, pad=1, relu=True)
    # conv2 + bn2 + residual add + final ReLU fused in one Pallas call
    out = conv_bn(out, blk['conv2'], 3, 3, stride=1, pad=1, relu=True,
                  residual=shortcut)
    return out


# ----------------------------------------------------------------------------
# Parameter init (raw, PyTorch-shaped) and one-time folding for the kernel
# ----------------------------------------------------------------------------
def _conv_w(key, kh, kw, cin, cout):
    return jax.random.normal(key, (kh, kw, cin, cout), jnp.float32) * 0.05


def _bn_params(key, c):
    k1, k2, k3, k4 = jax.random.split(key, 4)
    return dict(
        gamma=1.0 + 0.1 * jax.random.normal(k1, (c,), jnp.float32),
        beta=0.1 * jax.random.normal(k2, (c,), jnp.float32),
        mean=0.1 * jax.random.normal(k3, (c,), jnp.float32),
        var=1.0 + 0.1 * jax.random.uniform(k4, (c,), jnp.float32),
    )


def init_params(key, num_classes=4):
    keys = iter(jax.random.split(key, 128))
    params = {'conv1_w': _conv_w(next(keys), 7, 7, 3, 64),
              'bn1': _bn_params(next(keys), 64)}
    in_c = 64
    layers = []
    for out_c, first_stride in _STAGES:
        blocks = []
        for bi in range(2):
            s = first_stride if bi == 0 else 1
            blk = {
                'conv1_w': _conv_w(next(keys), 3, 3, in_c, out_c),
                'bn1': _bn_params(next(keys), out_c),
                'conv2_w': _conv_w(next(keys), 3, 3, out_c, out_c),
                'bn2': _bn_params(next(keys), out_c),
            }
            if s != 1 or in_c != out_c:
                blk['sc_w'] = _conv_w(next(keys), 1, 1, in_c, out_c)
                blk['sc_bn'] = _bn_params(next(keys), out_c)
            blocks.append(blk)
            in_c = out_c
        layers.append(blocks)
    params['layers'] = layers
    params['fc_w'] = jax.random.normal(next(keys), (512, num_classes),
                                       jnp.float32) * 0.05
    params['fc_b'] = 0.1 * jax.random.normal(next(keys), (num_classes,),
                                             jnp.float32)
    return params


def _fold_conv(w, bn):
    """Fold conv weight + eval-mode BN into a padded bf16 matmul weight + affine."""
    kh, kw, cin, cout = w.shape
    K = kh * kw * cin
    Kp, _ = _k_plan(K)
    w_mat = w.reshape(K, cout).astype(jnp.float32)
    if Kp != K:
        w_mat = jnp.pad(w_mat, ((0, Kp - K), (0, 0)))
    scale = bn['gamma'] / jnp.sqrt(bn['var'] + BN_EPS)
    shift = bn['beta'] - bn['mean'] * scale
    return {
        'w': w_mat.astype(jnp.bfloat16),
        'scale': scale.reshape(1, cout).astype(jnp.float32),
        'shift': shift.reshape(1, cout).astype(jnp.float32),
    }


def prepare_params(params):
    fp = {'stem': _fold_conv(params['conv1_w'], params['bn1']),
          'fc_w': params['fc_w'], 'fc_b': params['fc_b'], 'layers': []}
    for blocks in params['layers']:
        fblocks = []
        for blk in blocks:
            fblk = {'conv1': _fold_conv(blk['conv1_w'], blk['bn1']),
                    'conv2': _fold_conv(blk['conv2_w'], blk['bn2'])}
            if 'sc_w' in blk:
                fblk['sc'] = _fold_conv(blk['sc_w'], blk['sc_bn'])
            fblocks.append(fblk)
        fp['layers'].append(fblocks)
    return fp


# ----------------------------------------------------------------------------
# Full forward pass
# ----------------------------------------------------------------------------
@jax.jit
def alzheimer_resnet_forward(x_nchw, fp):
    x = jnp.transpose(x_nchw, (0, 2, 3, 1)).astype(jnp.float32)  # NCHW -> NHWC
    # stem: conv7x7 s2 p3 + bn + relu, then maxpool 3x3 s2 p1
    x = conv_bn(x, fp['stem'], 7, 7, stride=2, pad=3, relu=True)
    x = maxpool_3x3_s2_p1(x)
    # residual stages (strides are static architecture facts)
    for fblocks, (_, first_stride) in zip(fp['layers'], _STAGES):
        for bi, fblk in enumerate(fblocks):
            s = first_stride if bi == 0 else 1
            x = residual_block(x, fblk, s)
    # adaptive avg pool to (1,1) == global mean over H,W; then flatten
    feat = jnp.mean(x, axis=(1, 2))  # (N, 512)
    # TODO(synk): final 512 x num_classes FC left to XLA; a Pallas MXU tile at
    # this shape would waste >95% of the work.
    logits = feat @ fp['fc_w'] + fp['fc_b']
    return logits


if __name__ == "__main__":
    key = jax.random.PRNGKey(0)
    pkey, xkey = jax.random.split(key)
    params = init_params(pkey, num_classes=4)
    folded = prepare_params(params)           # one-time weight/BN folding
    # small input consistent with the module: NCHW, 3-channel image
    x = jax.random.normal(xkey, (2, 3, 32, 32), jnp.float32)
    logits = alzheimer_resnet_forward(x, folded)
    jax.block_until_ready(logits)
    assert logits.shape == (2, 4), logits.shape
    assert bool(jnp.all(jnp.isfinite(logits)))
    print("KERNEL_OK")
</pallas_src>

<mosaic_0001>
module attributes {stable_mosaic.version = 11 : i64} {
  func.func @_mm_affine_kernel(%arg0: i32, %arg1: i32, %arg2: memref<256x160xbf16, #tpu.memory_space<vmem>>, %arg3: memref<160x64xbf16, #tpu.memory_space<vmem>>, %arg4: memref<1x64xf32, #tpu.memory_space<vmem>>, %arg5: memref<1x64xf32, #tpu.memory_space<vmem>>, %arg6: memref<256x64xf32, #tpu.memory_space<vmem>>) attributes {dimension_semantics = [#tpu.dimension_semantics<parallel>, #tpu.dimension_semantics<arbitrary>], iteration_bounds = array<i64: 2, 1>, scalar_prefetch = 0 : i64, scratch_operands = 0 : i64, tpu.core_type = #tpu.core_type<tc>, window_params = [{transform_indices = @transform_0, window_bounds = array<i64: 256, 160>}, {transform_indices = @transform_1, window_bounds = array<i64: 160, 64>}, {pipeline_mode = #tpu.pipeline_mode<synchronous>, transform_indices = @transform_2, window_bounds = array<i64: 1, 64>}, {pipeline_mode = #tpu.pipeline_mode<synchronous>, transform_indices = @transform_3, window_bounds = array<i64: 1, 64>}, {transform_indices = @transform_4, window_bounds = array<i64: 256, 64>}]} {
    %c0 = arith.constant 0 : index
    %c0_0 = arith.constant 0 : index
    %0 = vector.load %arg2[%c0, %c0_0] : memref<256x160xbf16, #tpu.memory_space<vmem>>, vector<256x160xbf16>
    %c0_1 = arith.constant 0 : index
    %c0_2 = arith.constant 0 : index
    %1 = vector.load %arg3[%c0_1, %c0_2] : memref<160x64xbf16, #tpu.memory_space<vmem>>, vector<160x64xbf16>
    %cst = arith.constant dense<0.000000e+00> : vector<256x64xf32>
    %2 = tpu.matmul %0, %1, %cst {dimension_numbers = #tpu.dot_dimension_numbers<[1], [0], [0], [1], [0, 0, 1, 1], [], []>} : vector<256x160xbf16>, vector<160x64xbf16>, vector<256x64xf32> -> vector<256x64xf32>
    %c0_3 = arith.constant 0 : index
    %c0_4 = arith.constant 0 : index
    %3 = vector.load %arg4[%c0_3, %c0_4] : memref<1x64xf32, #tpu.memory_space<vmem>>, vector<1x64xf32>
    %4 = vector.broadcast %3 : vector<1x64xf32> to vector<256x64xf32>
    %5 = arith.mulf %2, %4 : vector<256x64xf32>
    %c0_5 = arith.constant 0 : index
    %c0_6 = arith.constant 0 : index
    %6 = vector.load %arg5[%c0_5, %c0_6] : memref<1x64xf32, #tpu.memory_space<vmem>>, vector<1x64xf32>
    %7 = vector.broadcast %6 : vector<1x64xf32> to vector<256x64xf32>
    %8 = arith.addf %5, %7 : vector<256x64xf32>
    %cst_7 = arith.constant 0.000000e+00 : f32
    %9 = vector.broadcast %cst_7 : f32 to vector<256x64xf32>
    %10 = arith.maximumf %8, %9 : vector<256x64xf32>
    %c0_8 = arith.constant 0 : index
    %c0_9 = arith.constant 0 : index
    %11 = vector.load %arg6[%c0_8, %c0_9] : memref<256x64xf32, #tpu.memory_space<vmem>>, vector<256x64xf32>
    tpu.vector_store %arg6[%c0_8, %c0_9], %10 {strides = array<i32>} : memref<256x64xf32, #tpu.memory_space<vmem>>, vector<256x64xf32>,
    return
  }
  func.func @transform_0(%arg0: i32, %arg1: i32) -> (i32, i32) {
    %c0_i32 = arith.constant 0 : i32
    return %arg0, %arg1 : i32, i32
  }
  func.func @transform_1(%arg0: i32, %arg1: i32) -> (i32, i32) {
    %c0_i32 = arith.constant 0 : i32
    %c0_i32_0 = arith.constant 0 : i32
    return %arg1, %c0_i32 : i32, i32
  }
  func.func @transform_2(%arg0: i32, %arg1: i32) -> (i32, i32) {
    %c0_i32 = arith.constant 0 : i32
    %c0_i32_0 = arith.constant 0 : i32
    %c0_i32_1 = arith.constant 0 : i32
    return %c0_i32, %c0_i32_0 : i32, i32
  }
  func.func @transform_3(%arg0: i32, %arg1: i32) -> (i32, i32) {
    %c0_i32 = arith.constant 0 : i32
    %c0_i32_0 = arith.constant 0 : i32
    %c0_i32_1 = arith.constant 0 : i32
    return %c0_i32, %c0_i32_0 : i32, i32
  }
  func.func @transform_4(%arg0: i32, %arg1: i32) -> (i32, i32) {
    %c0_i32 = arith.constant 0 : i32
    %c0_i32_0 = arith.constant 0 : i32
    return %arg0, %c0_i32 : i32, i32
  }
}

module attributes {stable_mosaic.version = 11 : i64} {
  func.func @_mm_affine_kernel(%arg0: i32, %arg1: i32, %arg2: memref<128x576xbf16, #tpu.memory_space<vmem>>, %arg3: memref<576x64xbf16, #tpu.memory_space<vmem>>, %arg4: memref<1x64xf32, #tpu.memory_space<vmem>>, %arg5: memref<1x64xf32, #tpu.memory_space<vmem>>, %arg6: memref<128x64xf32, #tpu.memory_space<vmem>>) attributes {dimension_semantics = [#tpu.dimension_semantics<parallel>, #tpu.dimension_semantics<arbitrary>], iteration_bounds = array<i64: 1, 1>, scalar_prefetch = 0 : i64, scratch_operands = 0 : i64, tpu.core_type = #tpu.core_type<tc>, window_params = [{transform_indices = @transform_0, window_bounds = array<i64: 128, 576>}, {transform_indices = @transform_1, window_bounds = array<i64: 576, 64>}, {pipeline_mode = #tpu.pipeline_mode<synchronous>, transform_indices = @transform_2, window_bounds = array<i64: 1, 64>}, {pipeline_mode = #tpu.pipeline_mode<synchronous>, transform_indices = @transform_3, window_bounds = array<i64: 1, 64>}, {transform_indices = @transform_4, window_bounds = array<i64: 128, 64>}]} {
    %c0 = arith.constant 0 : index
    %c0_0 = arith.constant 0 : index
    %0 = vector.load %arg2[%c0, %c0_0] : memref<128x576xbf16, #tpu.memory_space<vmem>>, vector<128x576xbf16>
    %c0_1 = arith.constant 0 : index
    %c0_2 = arith.constant 0 : index
    %1 = vector.load %arg3[%c0_1, %c0_2] : memref<576x64xbf16, #tpu.memory_space<vmem>>, vector<576x64xbf16>
    %cst = arith.constant dense<0.000000e+00> : vector<128x64xf32>
    %2 = tpu.matmul %0, %1, %cst {dimension_numbers = #tpu.dot_dimension_numbers<[1], [0], [0], [1], [0, 0, 1, 1], [], []>} : vector<128x576xbf16>, vector<576x64xbf16>, vector<128x64xf32> -> vector<128x64xf32>
    %c0_3 = arith.constant 0 : index
    %c0_4 = arith.constant 0 : index
    %3 = vector.load %arg4[%c0_3, %c0_4] : memref<1x64xf32, #tpu.memory_space<vmem>>, vector<1x64xf32>
    %4 = vector.broadcast %3 : vector<1x64xf32> to vector<128x64xf32>
    %5 = arith.mulf %2, %4 : vector<128x64xf32>
    %c0_5 = arith.constant 0 : index
    %c0_6 = arith.constant 0 : index
    %6 = vector.load %arg5[%c0_5, %c0_6] : memref<1x64xf32, #tpu.memory_space<vmem>>, vector<1x64xf32>
    %7 = vector.broadcast %6 : vector<1x64xf32> to vector<128x64xf32>
    %8 = arith.addf %5, %7 : vector<128x64xf32>
    %cst_7 = arith.constant 0.000000e+00 : f32
    %9 = vector.broadcast %cst_7 : f32 to vector<128x64xf32>
    %10 = arith.maximumf %8, %9 : vector<128x64xf32>
    %c0_8 = arith.constant 0 : index
    %c0_9 = arith.constant 0 : index
    %11 = vector.load %arg6[%c0_8, %c0_9] : memref<128x64xf32, #tpu.memory_space<vmem>>, vector<128x64xf32>
    tpu.vector_store %arg6[%c0_8, %c0_9], %10 {strides = array<i32>} : memref<128x64xf32, #tpu.memory_space<vmem>>, vector<128x64xf32>,
    return
  }
  func.func @transform_0(%arg0: i32, %arg1: i32) -> (i32, i32) {
    %c0_i32 = arith.constant 0 : i32
    return %arg0, %arg1 : i32, i32
  }
  func.func @transform_1(%arg0: i32, %arg1: i32) -> (i32, i32) {
    %c0_i32 = arith.constant 0 : i32
    %c0_i32_0 = arith.constant 0 : i32
    return %arg1, %c0_i32 : i32, i32
  }
  func.func @transform_2(%arg0: i32, %arg1: i32) -> (i32, i32) {
    %c0_i32 = arith.constant 0 : i32
    %c0_i32_0 = arith.constant 0 : i32
    %c0_i32_1 = arith.constant 0 : i32
    return %c0_i32, %c0_i32_0 : i32, i32
  }
  func.func @transform_3(%arg0: i32, %arg1: i32) -> (i32, i32) {
    %c0_i32 = arith.constant 0 : i32
    %c0_i32_0 = arith.constant 0 : i32
    %c0_i32_1 = arith.constant 0 : i32
    return %c0_i32, %c0_i32_0 : i32, i32
  }
  func.func @transform_4(%arg0: i32, %arg1: i32) -> (i32, i32) {
    %c0_i32 = arith.constant 0 : i32
    %c0_i32_0 = arith.constant 0 : i32
    return %arg0, %c0_i32 : i32, i32
  }
}

module attributes {stable_mosaic.version = 11 : i64} {
  func.func @_mm_affine_kernel(%arg0: i32, %arg1: i32, %arg2: memref<128x576xbf16, #tpu.memory_space<vmem>>, %arg3: memref<576x64xbf16, #tpu.memory_space<vmem>>, %arg4: memref<1x64xf32, #tpu.memory_space<vmem>>, %arg5: memref<1x64xf32, #tpu.memory_space<vmem>>, %arg6: memref<128x64xf32, #tpu.memory_space<vmem>>, %arg7: memref<128x64xf32, #tpu.memory_space<vmem>>) attributes {dimension_semantics = [#tpu.dimension_semantics<parallel>, #tpu.dimension_semantics<arbitrary>], iteration_bounds = array<i64: 1, 1>, scalar_prefetch = 0 : i64, scratch_operands = 0 : i64, tpu.core_type = #tpu.core_type<tc>, window_params = [{transform_indices = @transform_0, window_bounds = array<i64: 128, 576>}, {transform_indices = @transform_1, window_bounds = array<i64: 576, 64>}, {pipeline_mode = #tpu.pipeline_mode<synchronous>, transform_indices = @transform_2, window_bounds = array<i64: 1, 64>}, {pipeline_mode = #tpu.pipeline_mode<synchronous>, transform_indices = @transform_3, window_bounds = array<i64: 1, 64>}, {transform_indices = @transform_4, window_bounds = array<i64: 128, 64>}, {transform_indices = @transform_5, window_bounds = array<i64: 128, 64>}]} {
    %c0 = arith.constant 0 : index
    %c0_0 = arith.constant 0 : index
    %0 = vector.load %arg2[%c0, %c0_0] : memref<128x576xbf16, #tpu.memory_space<vmem>>, vector<128x576xbf16>
    %c0_1 = arith.constant 0 : index
    %c0_2 = arith.constant 0 : index
    %1 = vector.load %arg3[%c0_1, %c0_2] : memref<576x64xbf16, #tpu.memory_space<vmem>>, vector<576x64xbf16>
    %cst = arith.constant dense<0.000000e+00> : vector<128x64xf32>
    %2 = tpu.matmul %0, %1, %cst {dimension_numbers = #tpu.dot_dimension_numbers<[1], [0], [0], [1], [0, 0, 1, 1], [], []>} : vector<128x576xbf16>, vector<576x64xbf16>, vector<128x64xf32> -> vector<128x64xf32>
    %c0_3 = arith.constant 0 : index
    %c0_4 = arith.constant 0 : index
    %3 = vector.load %arg4[%c0_3, %c0_4] : memref<1x64xf32, #tpu.memory_space<vmem>>, vector<1x64xf32>
    %4 = vector.broadcast %3 : vector<1x64xf32> to vector<128x64xf32>
    %5 = arith.mulf %2, %4 : vector<128x64xf32>
    %c0_5 = arith.constant 0 : index
    %c0_6 = arith.constant 0 : index
    %6 = vector.load %arg5[%c0_5, %c0_6] : memref<1x64xf32, #tpu.memory_space<vmem>>, vector<1x64xf32>
    %7 = vector.broadcast %6 : vector<1x64xf32> to vector<128x64xf32>
    %8 = arith.addf %5, %7 : vector<128x64xf32>
    %c0_7 = arith.constant 0 : index
    %c0_8 = arith.constant 0 : index
    %9 = vector.load %arg6[%c0_7, %c0_8] : memref<128x64xf32, #tpu.memory_space<vmem>>, vector<128x64xf32>
    %10 = arith.addf %8, %9 : vector<128x64xf32>
    %cst_9 = arith.constant 0.000000e+00 : f32
    %11 = vector.broadcast %cst_9 : f32 to vector<128x64xf32>
    %12 = arith.maximumf %10, %11 : vector<128x64xf32>
    %c0_10 = arith.constant 0 : index
    %c0_11 = arith.constant 0 : index
    %13 = vector.load %arg7[%c0_10, %c0_11] : memref<128x64xf32, #tpu.memory_space<vmem>>, vector<128x64xf32>
    tpu.vector_store %arg7[%c0_10, %c0_11], %12 {strides = array<i32>} : memref<128x64xf32, #tpu.memory_space<vmem>>, vector<128x64xf32>,
    return
  }
  func.func @transform_0(%arg0: i32, %arg1: i32) -> (i32, i32) {
    %c0_i32 = arith.constant 0 : i32
    return %arg0, %arg1 : i32, i32
  }
  func.func @transform_1(%arg0: i32, %arg1: i32) -> (i32, i32) {
    %c0_i32 = arith.constant 0 : i32
    %c0_i32_0 = arith.constant 0 : i32
    return %arg1, %c0_i32 : i32, i32
  }
  func.func @transform_2(%arg0: i32, %arg1: i32) -> (i32, i32) {
    %c0_i32 = arith.constant 0 : i32
    %c0_i32_0 = arith.constant 0 : i32
    %c0_i32_1 = arith.constant 0 : i32
    return %c0_i32, %c0_i32_0 : i32, i32
  }
  func.func @transform_3(%arg0: i32, %arg1: i32) -> (i32, i32) {
    %c0_i32 = arith.constant 0 : i32
    %c0_i32_0 = arith.constant 0 : i32
    %c0_i32_1 = arith.constant 0 : i32
    return %c0_i32, %c0_i32_0 : i32, i32
  }
  func.func @transform_4(%arg0: i32, %arg1: i32) -> (i32, i32) {
    %c0_i32 = arith.constant 0 : i32
    %c0_i32_0 = arith.constant 0 : i32
    return %arg0, %c0_i32 : i32, i32
  }
  func.func @transform_5(%arg0: i32, %arg1: i32) -> (i32, i32) {
    %c0_i32 = arith.constant 0 : i32
    %c0_i32_0 = arith.constant 0 : i32
    return %arg0, %c0_i32 : i32, i32
  }
}

module attributes {stable_mosaic.version = 11 : i64} {
  func.func @_mm_affine_kernel(%arg0: i32, %arg1: i32, %arg2: memref<128x576xbf16, #tpu.memory_space<vmem>>, %arg3: memref<576x64xbf16, #tpu.memory_space<vmem>>, %arg4: memref<1x64xf32, #tpu.memory_space<vmem>>, %arg5: memref<1x64xf32, #tpu.memory_space<vmem>>, %arg6: memref<128x64xf32, #tpu.memory_space<vmem>>) attributes {dimension_semantics = [#tpu.dimension_semantics<parallel>, #tpu.dimension_semantics<arbitrary>], iteration_bounds = array<i64: 1, 1>, scalar_prefetch = 0 : i64, scratch_operands = 0 : i64, tpu.core_type = #tpu.core_type<tc>, window_params = [{transform_indices = @transform_0, window_bounds = array<i64: 128, 576>}, {transform_indices = @transform_1, window_bounds = array<i64: 576, 64>}, {pipeline_mode = #tpu.pipeline_mode<synchronous>, transform_indices = @transform_2, window_bounds = array<i64: 1, 64>}, {pipeline_mode = #tpu.pipeline_mode<synchronous>, transform_indices = @transform_3, window_bounds = array<i64: 1, 64>}, {transform_indices = @transform_4, window_bounds = array<i64: 128, 64>}]} {
    %c0 = arith.constant 0 : index
    %c0_0 = arith.constant 0 : index
    %0 = vector.load %arg2[%c0, %c0_0] : memref<128x576xbf16, #tpu.memory_space<vmem>>, vector<128x576xbf16>
    %c0_1 = arith.constant 0 : index
    %c0_2 = arith.constant 0 : index
    %1 = vector.load %arg3[%c0_1, %c0_2] : memref<576x64xbf16, #tpu.memory_space<vmem>>, vector<576x64xbf16>
    %cst = arith.constant dense<0.000000e+00> : vector<128x64xf32>
    %2 = tpu.matmul %0, %1, %cst {dimension_numbers = #tpu.dot_dimension_numbers<[1], [0], [0], [1], [0, 0, 1, 1], [], []>} : vector<128x576xbf16>, vector<576x64xbf16>, vector<128x64xf32> -> vector<128x64xf32>
    %c0_3 = arith.constant 0 : index
    %c0_4 = arith.constant 0 : index
    %3 = vector.load %arg4[%c0_3, %c0_4] : memref<1x64xf32, #tpu.memory_space<vmem>>, vector<1x64xf32>
    %4 = vector.broadcast %3 : vector<1x64xf32> to vector<128x64xf32>
    %5 = arith.mulf %2, %4 : vector<128x64xf32>
    %c0_5 = arith.constant 0 : index
    %c0_6 = arith.constant 0 : index
    %6 = vector.load %arg5[%c0_5, %c0_6] : memref<1x64xf32, #tpu.memory_space<vmem>>, vector<1x64xf32>
    %7 = vector.broadcast %6 : vector<1x64xf32> to vector<128x64xf32>
    %8 = arith.addf %5, %7 : vector<128x64xf32>
    %cst_7 = arith.constant 0.000000e+00 : f32
    %9 = vector.broadcast %cst_7 : f32 to vector<128x64xf32>
    %10 = arith.maximumf %8, %9 : vector<128x64xf32>
    %c0_8 = arith.constant 0 : index
    %c0_9 = arith.constant 0 : index
    %11 = vector.load %arg6[%c0_8, %c0_9] : memref<128x64xf32, #tpu.memory_space<vmem>>, vector<128x64xf32>
    tpu.vector_store %arg6[%c0_8, %c0_9], %10 {strides = array<i32>} : memref<128x64xf32, #tpu.memory_space<vmem>>, vector<128x64xf32>,
    return
  }
  func.func @transform_0(%arg0: i32, %arg1: i32) -> (i32, i32) {
    %c0_i32 = arith.constant 0 : i32
    return %arg0, %arg1 : i32, i32
  }
  func.func @transform_1(%arg0: i32, %arg1: i32) -> (i32, i32) {
    %c0_i32 = arith.constant 0 : i32
    %c0_i32_0 = arith.constant 0 : i32
    return %arg1, %c0_i32 : i32, i32
  }
  func.func @transform_2(%arg0: i32, %arg1: i32) -> (i32, i32) {
    %c0_i32 = arith.constant 0 : i32
    %c0_i32_0 = arith.constant 0 : i32
    %c0_i32_1 = arith.constant 0 : i32
    return %c0_i32, %c0_i32_0 : i32, i32
  }
  func.func @transform_3(%arg0: i32, %arg1: i32) -> (i32, i32) {
    %c0_i32 = arith.constant 0 : i32
    %c0_i32_0 = arith.constant 0 : i32
    %c0_i32_1 = arith.constant 0 : i32
    return %c0_i32, %c0_i32_0 : i32, i32
  }
  func.func @transform_4(%arg0: i32, %arg1: i32) -> (i32, i32) {
    %c0_i32 = arith.constant 0 : i32
    %c0_i32_0 = arith.constant 0 : i32
    return %arg0, %c0_i32 : i32, i32
  }
}

module attributes {stable_mosaic.version = 11 : i64} {
  func.func @_mm_affine_kernel(%arg0: i32, %arg1: i32, %arg2: memref<128x576xbf16, #tpu.memory_space<vmem>>, %arg3: memref<576x64xbf16, #tpu.memory_space<vmem>>, %arg4: memref<1x64xf32, #tpu.memory_space<vmem>>, %arg5: memref<1x64xf32, #tpu.memory_space<vmem>>, %arg6: memref<128x64xf32, #tpu.memory_space<vmem>>, %arg7: memref<128x64xf32, #tpu.memory_space<vmem>>) attributes {dimension_semantics = [#tpu.dimension_semantics<parallel>, #tpu.dimension_semantics<arbitrary>], iteration_bounds = array<i64: 1, 1>, scalar_prefetch = 0 : i64, scratch_operands = 0 : i64, tpu.core_type = #tpu.core_type<tc>, window_params = [{transform_indices = @transform_0, window_bounds = array<i64: 128, 576>}, {transform_indices = @transform_1, window_bounds = array<i64: 576, 64>}, {pipeline_mode = #tpu.pipeline_mode<synchronous>, transform_indices = @transform_2, window_bounds = array<i64: 1, 64>}, {pipeline_mode = #tpu.pipeline_mode<synchronous>, transform_indices = @transform_3, window_bounds = array<i64: 1, 64>}, {transform_indices = @transform_4, window_bounds = array<i64: 128, 64>}, {transform_indices = @transform_5, window_bounds = array<i64: 128, 64>}]} {
    %c0 = arith.constant 0 : index
    %c0_0 = arith.constant 0 : index
    %0 = vector.load %arg2[%c0, %c0_0] : memref<128x576xbf16, #tpu.memory_space<vmem>>, vector<128x576xbf16>
    %c0_1 = arith.constant 0 : index
    %c0_2 = arith.constant 0 : index
    %1 = vector.load %arg3[%c0_1, %c0_2] : memref<576x64xbf16, #tpu.memory_space<vmem>>, vector<576x64xbf16>
    %cst = arith.constant dense<0.000000e+00> : vector<128x64xf32>
    %2 = tpu.matmul %0, %1, %cst {dimension_numbers = #tpu.dot_dimension_numbers<[1], [0], [0], [1], [0, 0, 1, 1], [], []>} : vector<128x576xbf16>, vector<576x64xbf16>, vector<128x64xf32> -> vector<128x64xf32>
    %c0_3 = arith.constant 0 : index
    %c0_4 = arith.constant 0 : index
    %3 = vector.load %arg4[%c0_3, %c0_4] : memref<1x64xf32, #tpu.memory_space<vmem>>, vector<1x64xf32>
    %4 = vector.broadcast %3 : vector<1x64xf32> to vector<128x64xf32>
    %5 = arith.mulf %2, %4 : vector<128x64xf32>
    %c0_5 = arith.constant 0 : index
    %c0_6 = arith.constant 0 : index
    %6 = vector.load %arg5[%c0_5, %c0_6] : memref<1x64xf32, #tpu.memory_space<vmem>>, vector<1x64xf32>
    %7 = vector.broadcast %6 : vector<1x64xf32> to vector<128x64xf32>
    %8 = arith.addf %5, %7 : vector<128x64xf32>
    %c0_7 = arith.constant 0 : index
    %c0_8 = arith.constant 0 : index
    %9 = vector.load %arg6[%c0_7, %c0_8] : memref<128x64xf32, #tpu.memory_space<vmem>>, vector<128x64xf32>
    %10 = arith.addf %8, %9 : vector<128x64xf32>
    %cst_9 = arith.constant 0.000000e+00 : f32
    %11 = vector.broadcast %cst_9 : f32 to vector<128x64xf32>
    %12 = arith.maximumf %10, %11 : vector<128x64xf32>
    %c0_10 = arith.constant 0 : index
    %c0_11 = arith.constant 0 : index
    %13 = vector.load %arg7[%c0_10, %c0_11] : memref<128x64xf32, #tpu.memory_space<vmem>>, vector<128x64xf32>
    tpu.vector_store %arg7[%c0_10, %c0_11], %12 {strides = array<i32>} : memref<128x64xf32, #tpu.memory_space<vmem>>, vector<128x64xf32>,
    return
  }
  func.func @transform_0(%arg0: i32, %arg1: i32) -> (i32, i32) {
    %c0_i32 = arith.constant 0 : i32
    return %arg0, %arg1 : i32, i32
  }
  func.func @transform_1(%arg0: i32, %arg1: i32) -> (i32, i32) {
    %c0_i32 = arith.constant 0 : i32
    %c0_i32_0 = arith.constant 0 : i32
    return %arg1, %c0_i32 : i32, i32
  }
  func.func @transform_2(%arg0: i32, %arg1: i32) -> (i32, i32) {
    %c0_i32 = arith.constant 0 : i32
    %c0_i32_0 = arith.constant 0 : i32
    %c0_i32_1 = arith.constant 0 : i32
    return %c0_i32, %c0_i32_0 : i32, i32
  }
  func.func @transform_3(%arg0: i32, %arg1: i32) -> (i32, i32) {
    %c0_i32 = arith.constant 0 : i32
    %c0_i32_0 = arith.constant 0 : i32
    %c0_i32_1 = arith.constant 0 : i32
    return %c0_i32, %c0_i32_0 : i32, i32
  }
  func.func @transform_4(%arg0: i32, %arg1: i32) -> (i32, i32) {
    %c0_i32 = arith.constant 0 : i32
    %c0_i32_0 = arith.constant 0 : i32
    return %arg0, %c0_i32 : i32, i32
  }
  func.func @transform_5(%arg0: i32, %arg1: i32) -> (i32, i32) {
    %c0_i32 = arith.constant 0 : i32
    %c0_i32_0 = arith.constant 0 : i32
    return %arg0, %c0_i32 : i32, i32
  }
}

module attributes {stable_mosaic.version = 11 : i64} {
  func.func @_mm_affine_kernel(%arg0: i32, %arg1: i32, %arg2: memref<32x576xbf16, #tpu.memory_space<vmem>>, %arg3: memref<576x128xbf16, #tpu.memory_space<vmem>>, %arg4: memref<1x128xf32, #tpu.memory_space<vmem>>, %arg5: memref<1x128xf32, #tpu.memory_space<vmem>>, %arg6: memref<32x128xf32, #tpu.memory_space<vmem>>) attributes {dimension_semantics = [#tpu.dimension_semantics<parallel>, #tpu.dimension_semantics<arbitrary>], iteration_bounds = array<i64: 1, 1>, scalar_prefetch = 0 : i64, scratch_operands = 0 : i64, tpu.core_type = #tpu.core_type<tc>, window_params = [{transform_indices = @transform_0, window_bounds = array<i64: 32, 576>}, {transform_indices = @transform_1, window_bounds = array<i64: 576, 128>}, {pipeline_mode = #tpu.pipeline_mode<synchronous>, transform_indices = @transform_2, window_bounds = array<i64: 1, 128>}, {pipeline_mode = #tpu.pipeline_mode<synchronous>, transform_indices = @transform_3, window_bounds = array<i64: 1, 128>}, {transform_indices = @transform_4, window_bounds = array<i64: 32, 128>}]} {
    %c0 = arith.constant 0 : index
    %c0_0 = arith.constant 0 : index
    %0 = vector.load %arg2[%c0, %c0_0] : memref<32x576xbf16, #tpu.memory_space<vmem>>, vector<32x576xbf16>
    %c0_1 = arith.constant 0 : index
    %c0_2 = arith.constant 0 : index
    %1 = vector.load %arg3[%c0_1, %c0_2] : memref<576x128xbf16, #tpu.memory_space<vmem>>, vector<576x128xbf16>
    %cst = arith.constant dense<0.000000e+00> : vector<32x128xf32>
    %2 = tpu.matmul %0, %1, %cst {dimension_numbers = #tpu.dot_dimension_numbers<[1], [0], [0], [1], [0, 0, 1, 1], [], []>} : vector<32x576xbf16>, vector<576x128xbf16>, vector<32x128xf32> -> vector<32x128xf32>
    %c0_3 = arith.constant 0 : index
    %c0_4 = arith.constant 0 : index
    %3 = vector.load %arg4[%c0_3, %c0_4] : memref<1x128xf32, #tpu.memory_space<vmem>>, vector<1x128xf32>
    %4 = vector.broadcast %3 : vector<1x128xf32> to vector<32x128xf32>
    %5 = arith.mulf %2, %4 : vector<32x128xf32>
    %c0_5 = arith.constant 0 : index
    %c0_6 = arith.constant 0 : index
    %6 = vector.load %arg5[%c0_5, %c0_6] : memref<1x128xf32, #tpu.memory_space<vmem>>, vector<1x128xf32>
    %7 = vector.broadcast %6 : vector<1x128xf32> to vector<32x128xf32>
    %8 = arith.addf %5, %7 : vector<32x128xf32>
    %cst_7 = arith.constant 0.000000e+00 : f32
    %9 = vector.broadcast %cst_7 : f32 to vector<32x128xf32>
    %10 = arith.maximumf %8, %9 : vector<32x128xf32>
    %c0_8 = arith.constant 0 : index
    %c0_9 = arith.constant 0 : index
    %11 = vector.load %arg6[%c0_8, %c0_9] : memref<32x128xf32, #tpu.memory_space<vmem>>, vector<32x128xf32>
    tpu.vector_store %arg6[%c0_8, %c0_9], %10 {strides = array<i32>} : memref<32x128xf32, #tpu.memory_space<vmem>>, vector<32x128xf32>,
    return
  }
  func.func @transform_0(%arg0: i32, %arg1: i32) -> (i32, i32) {
    %c0_i32 = arith.constant 0 : i32
    return %arg0, %arg1 : i32, i32
  }
  func.func @transform_1(%arg0: i32, %arg1: i32) -> (i32, i32) {
    %c0_i32 = arith.constant 0 : i32
    %c0_i32_0 = arith.constant 0 : i32
    return %arg1, %c0_i32 : i32, i32
  }
  func.func @transform_2(%arg0: i32, %arg1: i32) -> (i32, i32) {
    %c0_i32 = arith.constant 0 : i32
    %c0_i32_0 = arith.constant 0 : i32
    %c0_i32_1 = arith.constant 0 : i32
    return %c0_i32, %c0_i32_0 : i32, i32
  }
  func.func @transform_3(%arg0: i32, %arg1: i32) -> (i32, i32) {
    %c0_i32 = arith.constant 0 : i32
    %c0_i32_0 = arith.constant 0 : i32
    %c0_i32_1 = arith.constant 0 : i32
    return %c0_i32, %c0_i32_0 : i32, i32
  }
  func.func @transform_4(%arg0: i32, %arg1: i32) -> (i32, i32) {
    %c0_i32 = arith.constant 0 : i32
    %c0_i32_0 = arith.constant 0 : i32
    return %arg0, %c0_i32 : i32, i32
  }
}

module attributes {stable_mosaic.version = 11 : i64} {
  func.func @_mm_affine_kernel(%arg0: i32, %arg1: i32, %arg2: memref<32x64xbf16, #tpu.memory_space<vmem>>, %arg3: memref<64x128xbf16, #tpu.memory_space<vmem>>, %arg4: memref<1x128xf32, #tpu.memory_space<vmem>>, %arg5: memref<1x128xf32, #tpu.memory_space<vmem>>, %arg6: memref<32x128xf32, #tpu.memory_space<vmem>>) attributes {dimension_semantics = [#tpu.dimension_semantics<parallel>, #tpu.dimension_semantics<arbitrary>], iteration_bounds = array<i64: 1, 1>, scalar_prefetch = 0 : i64, scratch_operands = 0 : i64, tpu.core_type = #tpu.core_type<tc>, window_params = [{transform_indices = @transform_0, window_bounds = array<i64: 32, 64>}, {transform_indices = @transform_1, window_bounds = array<i64: 64, 128>}, {pipeline_mode = #tpu.pipeline_mode<synchronous>, transform_indices = @transform_2, window_bounds = array<i64: 1, 128>}, {pipeline_mode = #tpu.pipeline_mode<synchronous>, transform_indices = @transform_3, window_bounds = array<i64: 1, 128>}, {transform_indices = @transform_4, window_bounds = array<i64: 32, 128>}]} {
    %c0 = arith.constant 0 : index
    %c0_0 = arith.constant 0 : index
    %0 = vector.load %arg2[%c0, %c0_0] : memref<32x64xbf16, #tpu.memory_space<vmem>>, vector<32x64xbf16>
    %c0_1 = arith.constant 0 : index
    %c0_2 = arith.constant 0 : index
    %1 = vector.load %arg3[%c0_1, %c0_2] : memref<64x128xbf16, #tpu.memory_space<vmem>>, vector<64x128xbf16>
    %cst = arith.constant dense<0.000000e+00> : vector<32x128xf32>
    %2 = tpu.matmul %0, %1, %cst {dimension_numbers = #tpu.dot_dimension_numbers<[1], [0], [0], [1], [0, 0, 1, 1], [], []>} : vector<32x64xbf16>, vector<64x128xbf16>, vector<32x128xf32> -> vector<32x128xf32>
    %c0_3 = arith.constant 0 : index
    %c0_4 = arith.constant 0 : index
    %3 = vector.load %arg4[%c0_3, %c0_4] : memref<1x128xf32, #tpu.memory_space<vmem>>, vector<1x128xf32>
    %4 = vector.broadcast %3 : vector<1x128xf32> to vector<32x128xf32>
    %5 = arith.mulf %2, %4 : vector<32x128xf32>
    %c0_5 = arith.constant 0 : index
    %c0_6 = arith.constant 0 : index
    %6 = vector.load %arg5[%c0_5, %c0_6] : memref<1x128xf32, #tpu.memory_space<vmem>>, vector<1x128xf32>
    %7 = vector.broadcast %6 : vector<1x128xf32> to vector<32x128xf32>
    %8 = arith.addf %5, %7 : vector<32x128xf32>
    %c0_7 = arith.constant 0 : index
    %c0_8 = arith.constant 0 : index
    %9 = vector.load %arg6[%c0_7, %c0_8] : memref<32x128xf32, #tpu.memory_space<vmem>>, vector<32x128xf32>
    tpu.vector_store %arg6[%c0_7, %c0_8], %8 {strides = array<i32>} : memref<32x128xf32, #tpu.memory_space<vmem>>, vector<32x128xf32>,
    return
  }
  func.func @transform_0(%arg0: i32, %arg1: i32) -> (i32, i32) {
    %c0_i32 = arith.constant 0 : i32
    return %arg0, %arg1 : i32, i32
  }
  func.func @transform_1(%arg0: i32, %arg1: i32) -> (i32, i32) {
    %c0_i32 = arith.constant 0 : i32
    %c0_i32_0 = arith.constant 0 : i32
    return %arg1, %c0_i32 : i32, i32
  }
  func.func @transform_2(%arg0: i32, %arg1: i32) -> (i32, i32) {
    %c0_i32 = arith.constant 0 : i32
    %c0_i32_0 = arith.constant 0 : i32
    %c0_i32_1 = arith.constant 0 : i32
    return %c0_i32, %c0_i32_0 : i32, i32
  }
  func.func @transform_3(%arg0: i32, %arg1: i32) -> (i32, i32) {
    %c0_i32 = arith.constant 0 : i32
    %c0_i32_0 = arith.constant 0 : i32
    %c0_i32_1 = arith.constant 0 : i32
    return %c0_i32, %c0_i32_0 : i32, i32
  }
  func.func @transform_4(%arg0: i32, %arg1: i32) -> (i32, i32) {
    %c0_i32 = arith.constant 0 : i32
    %c0_i32_0 = arith.constant 0 : i32
    return %arg0, %c0_i32 : i32, i32
  }
}

module attributes {stable_mosaic.version = 11 : i64} {
  func.func @_mm_affine_kernel(%arg0: i32, %arg1: i32, %arg2: memref<32x128xbf16, #tpu.memory_space<vmem>>, %arg3: memref<128x128xbf16, #tpu.memory_space<vmem>>, %arg4: memref<1x128xf32, #tpu.memory_space<vmem>>, %arg5: memref<1x128xf32, #tpu.memory_space<vmem>>, %arg6: memref<32x128xf32, #tpu.memory_space<vmem>>) attributes {dimension_semantics = [#tpu.dimension_semantics<parallel>, #tpu.dimension_semantics<arbitrary>], iteration_bounds = array<i64: 1, 9>, scalar_prefetch = 0 : i64, scratch_operands = 0 : i64, tpu.core_type = #tpu.core_type<tc>, window_params = [{transform_indices = @transform_0, window_bounds = array<i64: 32, 128>}, {transform_indices = @transform_1, window_bounds = array<i64: 128, 128>}, {pipeline_mode = #tpu.pipeline_mode<synchronous>, transform_indices = @transform_2, window_bounds = array<i64: 1, 128>}, {pipeline_mode = #tpu.pipeline_mode<synchronous>, transform_indices = @transform_3, window_bounds = array<i64: 1, 128>}, {transform_indices = @transform_4, window_bounds = array<i64: 32, 128>}]} {
    %c0 = arith.constant 0 : index
    %c0_0 = arith.constant 0 : index
    %0 = vector.load %arg2[%c0, %c0_0] : memref<32x128xbf16, #tpu.memory_space<vmem>>, vector<32x128xbf16>
    %c0_1 = arith.constant 0 : index
    %c0_2 = arith.constant 0 : index
    %1 = vector.load %arg3[%c0_1, %c0_2] : memref<128x128xbf16, #tpu.memory_space<vmem>>, vector<128x128xbf16>
    %cst = arith.constant dense<0.000000e+00> : vector<32x128xf32>
    %2 = tpu.matmul %0, %1, %cst {dimension_numbers = #tpu.dot_dimension_numbers<[1], [0], [0], [1], [0, 0, 1, 1], [], []>} : vector<32x128xbf16>, vector<128x128xbf16>, vector<32x128xf32> -> vector<32x128xf32>
    %c0_i32 = arith.constant 0 : i32
    %3 = arith.cmpi eq, %arg1, %c0_i32 : i32
    %4 = arith.extui %3 : i1 to i32
    %c0_i32_3 = arith.constant 0 : i32
    %5 = arith.cmpi ne, %4, %c0_i32_3 : i32
    scf.if %5 {
      %c0_8 = arith.constant 0 : index
      %c0_9 = arith.constant 0 : index
      %14 = vector.load %arg6[%c0_8, %c0_9] : memref<32x128xf32, #tpu.memory_space<vmem>>, vector<32x128xf32>
      tpu.vector_store %arg6[%c0_8, %c0_9], %2 {strides = array<i32>} : memref<32x128xf32, #tpu.memory_space<vmem>>, vector<32x128xf32>,
    } else {
    }
    %c0_i32_4 = arith.constant 0 : i32
    %6 = arith.cmpi sgt, %arg1, %c0_i32_4 : i32
    %c8_i32 = arith.constant 8 : i32
    %7 = arith.cmpi slt, %arg1, %c8_i32 : i32
    %8 = arith.andi %6, %7 : i1
    %9 = arith.extui %8 : i1 to i32
    %c0_i32_5 = arith.constant 0 : i32
    %10 = arith.cmpi ne, %9, %c0_i32_5 : i32
    scf.if %10 {
      %c0_8 = arith.constant 0 : index
      %c0_9 = arith.constant 0 : index
      %14 = vector.load %arg6[%c0_8, %c0_9] : memref<32x128xf32, #tpu.memory_space<vmem>>, vector<32x128xf32>
      %15 = arith.addf %14, %2 : vector<32x128xf32>
      %c0_10 = arith.constant 0 : index
      %c0_11 = arith.constant 0 : index
      %16 = vector.load %arg6[%c0_10, %c0_11] : memref<32x128xf32, #tpu.memory_space<vmem>>, vector<32x128xf32>
      tpu.vector_store %arg6[%c0_10, %c0_11], %15 {strides = array<i32>} : memref<32x128xf32, #tpu.memory_space<vmem>>, vector<32x128xf32>,
    } else {
    }
    %c8_i32_6 = arith.constant 8 : i32
    %11 = arith.cmpi eq, %arg1, %c8_i32_6 : i32
    %12 = arith.extui %11 : i1 to i32
    %c0_i32_7 = arith.constant 0 : i32
    %13 = arith.cmpi ne, %12, %c0_i32_7 : i32
    scf.if %13 {
      %c0_8 = arith.constant 0 : index
      %c0_9 = arith.constant 0 : index
      %14 = vector.load %arg6[%c0_8, %c0_9] : memref<32x128xf32, #tpu.memory_space<vmem>>, vector<32x128xf32>
      %15 = arith.addf %14, %2 : vector<32x128xf32>
      %c0_10 = arith.constant 0 : index
      %c0_11 = arith.constant 0 : index
      %16 = vector.load %arg4[%c0_10, %c0_11] : memref<1x128xf32, #tpu.memory_space<vmem>>, vector<1x128xf32>
      %17 = vector.broadcast %16 : vector<1x128xf32> to vector<32x128xf32>
      %18 = arith.mulf %15, %17 : vector<32x128xf32>
      %c0_12 = arith.constant 0 : index
      %c0_13 = arith.constant 0 : index
      %19 = vector.load %arg5[%c0_12, %c0_13] : memref<1x128xf32, #tpu.memory_space<vmem>>, vector<1x128xf32>
      %20 = vector.broadcast %19 : vector<1x128xf32> to vector<32x128xf32>
      %21 = arith.addf %18, %20 : vector<32x128xf32>
      %cst_14 = arith.constant 0.000000e+00 : f32
      %22 = vector.broadcast %cst_14 : f32 to vector<32x128xf32>
      %23 = arith.maximumf %21, %22 : vector<32x128xf32>
      %c0_15 = arith.constant 0 : index
      %c0_16 = arith.constant 0 : index
      %24 = vector.load %arg6[%c0_15, %c0_16] : memref<32x128xf32, #tpu.memory_space<vmem>>, vector<32x128xf32>
      tpu.vector_store %arg6[%c0_15, %c0_16], %23 {strides = array<i32>} : memref<32x128xf32, #tpu.memory_space<vmem>>, vector<32x128xf32>,
    } else {
    }
    return
  }
  func.func @transform_0(%arg0: i32, %arg1: i32) -> (i32, i32) {
    %c0_i32 = arith.constant 0 : i32
    return %arg0, %arg1 : i32, i32
  }
  func.func @transform_1(%arg0: i32, %arg1: i32) -> (i32, i32) {
    %c0_i32 = arith.constant 0 : i32
    %c0_i32_0 = arith.constant 0 : i32
    return %arg1, %c0_i32 : i32, i32
  }
  func.func @transform_2(%arg0: i32, %arg1: i32) -> (i32, i32) {
    %c0_i32 = arith.constant 0 : i32
    %c0_i32_0 = arith.constant 0 : i32
    %c0_i32_1 = arith.constant 0 : i32
    return %c0_i32, %c0_i32_0 : i32, i32
  }
  func.func @transform_3(%arg0: i32, %arg1: i32) -> (i32, i32) {
    %c0_i32 = arith.constant 0 : i32
    %c0_i32_0 = arith.constant 0 : i32
    %c0_i32_1 = arith.constant 0 : i32
    return %c0_i32, %c0_i32_0 : i32, i32
  }
  func.func @transform_4(%arg0: i32, %arg1: i32) -> (i32, i32) {
    %c0_i32 = arith.constant 0 : i32
    %c0_i32_0 = arith.constant 0 : i32
    return %arg0, %c0_i32 : i32, i32
  }
}

module attributes {stable_mosaic.version = 11 : i64} {
  func.func @_mm_affine_kernel(%arg0: i32, %arg1: i32, %arg2: memref<32x128xbf16, #tpu.memory_space<vmem>>, %arg3: memref<128x128xbf16, #tpu.memory_space<vmem>>, %arg4: memref<1x128xf32, #tpu.memory_space<vmem>>, %arg5: memref<1x128xf32, #tpu.memory_space<vmem>>, %arg6: memref<32x128xf32, #tpu.memory_space<vmem>>, %arg7: memref<32x128xf32, #tpu.memory_space<vmem>>) attributes {dimension_semantics = [#tpu.dimension_semantics<parallel>, #tpu.dimension_semantics<arbitrary>], iteration_bounds = array<i64: 1, 9>, scalar_prefetch = 0 : i64, scratch_operands = 0 : i64, tpu.core_type = #tpu.core_type<tc>, window_params = [{transform_indices = @transform_0, window_bounds = array<i64: 32, 128>}, {transform_indices = @transform_1, window_bounds = array<i64: 128, 128>}, {pipeline_mode = #tpu.pipeline_mode<synchronous>, transform_indices = @transform_2, window_bounds = array<i64: 1, 128>}, {pipeline_mode = #tpu.pipeline_mode<synchronous>, transform_indices = @transform_3, window_bounds = array<i64: 1, 128>}, {transform_indices = @transform_4, window_bounds = array<i64: 32, 128>}, {transform_indices = @transform_5, window_bounds = array<i64: 32, 128>}]} {
    %c0 = arith.constant 0 : index
    %c0_0 = arith.constant 0 : index
    %0 = vector.load %arg2[%c0, %c0_0] : memref<32x128xbf16, #tpu.memory_space<vmem>>, vector<32x128xbf16>
    %c0_1 = arith.constant 0 : index
    %c0_2 = arith.constant 0 : index
    %1 = vector.load %arg3[%c0_1, %c0_2] : memref<128x128xbf16, #tpu.memory_space<vmem>>, vector<128x128xbf16>
    %cst = arith.constant dense<0.000000e+00> : vector<32x128xf32>
    %2 = tpu.matmul %0, %1, %cst {dimension_numbers = #tpu.dot_dimension_numbers<[1], [0], [0], [1], [0, 0, 1, 1], [], []>} : vector<32x128xbf16>, vector<128x128xbf16>, vector<32x128xf32> -> vector<32x128xf32>
    %c0_i32 = arith.constant 0 : i32
    %3 = arith.cmpi eq, %arg1, %c0_i32 : i32
    %4 = arith.extui %3 : i1 to i32
    %c0_i32_3 = arith.constant 0 : i32
    %5 = arith.cmpi ne, %4, %c0_i32_3 : i32
    scf.if %5 {
      %c0_8 = arith.constant 0 : index
      %c0_9 = arith.constant 0 : index
      %14 = vector.load %arg7[%c0_8, %c0_9] : memref<32x128xf32, #tpu.memory_space<vmem>>, vector<32x128xf32>
      tpu.vector_store %arg7[%c0_8, %c0_9], %2 {strides = array<i32>} : memref<32x128xf32, #tpu.memory_space<vmem>>, vector<32x128xf32>,
    } else {
    }
    %c0_i32_4 = arith.constant 0 : i32
    %6 = arith.cmpi sgt, %arg1, %c0_i32_4 : i32
    %c8_i32 = arith.constant 8 : i32
    %7 = arith.cmpi slt, %arg1, %c8_i32 : i32
    %8 = arith.andi %6, %7 : i1
    %9 = arith.extui %8 : i1 to i32
    %c0_i32_5 = arith.constant 0 : i32
    %10 = arith.cmpi ne, %9, %c0_i32_5 : i32
    scf.if %10 {
      %c0_8 = arith.constant 0 : index
      %c0_9 = arith.constant 0 : index
      %14 = vector.load %arg7[%c0_8, %c0_9] : memref<32x128xf32, #tpu.memory_space<vmem>>, vector<32x128xf32>
      %15 = arith.addf %14, %2 : vector<32x128xf32>
      %c0_10 = arith.constant 0 : index
      %c0_11 = arith.constant 0 : index
      %16 = vector.load %arg7[%c0_10, %c0_11] : memref<32x128xf32, #tpu.memory_space<vmem>>, vector<32x128xf32>
      tpu.vector_store %arg7[%c0_10, %c0_11], %15 {strides = array<i32>} : memref<32x128xf32, #tpu.memory_space<vmem>>, vector<32x128xf32>,
    } else {
    }
    %c8_i32_6 = arith.constant 8 : i32
    %11 = arith.cmpi eq, %arg1, %c8_i32_6 : i32
    %12 = arith.extui %11 : i1 to i32
    %c0_i32_7 = arith.constant 0 : i32
    %13 = arith.cmpi ne, %12, %c0_i32_7 : i32
    scf.if %13 {
      %c0_8 = arith.constant 0 : index
      %c0_9 = arith.constant 0 : index
      %14 = vector.load %arg7[%c0_8, %c0_9] : memref<32x128xf32, #tpu.memory_space<vmem>>, vector<32x128xf32>
      %15 = arith.addf %14, %2 : vector<32x128xf32>
      %c0_10 = arith.constant 0 : index
      %c0_11 = arith.constant 0 : index
      %16 = vector.load %arg4[%c0_10, %c0_11] : memref<1x128xf32, #tpu.memory_space<vmem>>, vector<1x128xf32>
      %17 = vector.broadcast %16 : vector<1x128xf32> to vector<32x128xf32>
      %18 = arith.mulf %15, %17 : vector<32x128xf32>
      %c0_12 = arith.constant 0 : index
      %c0_13 = arith.constant 0 : index
      %19 = vector.load %arg5[%c0_12, %c0_13] : memref<1x128xf32, #tpu.memory_space<vmem>>, vector<1x128xf32>
      %20 = vector.broadcast %19 : vector<1x128xf32> to vector<32x128xf32>
      %21 = arith.addf %18, %20 : vector<32x128xf32>
      %c0_14 = arith.constant 0 : index
      %c0_15 = arith.constant 0 : index
      %22 = vector.load %arg6[%c0_14, %c0_15] : memref<32x128xf32, #tpu.memory_space<vmem>>, vector<32x128xf32>
      %23 = arith.addf %21, %22 : vector<32x128xf32>
      %cst_16 = arith.constant 0.000000e+00 : f32
      %24 = vector.broadcast %cst_16 : f32 to vector<32x128xf32>
      %25 = arith.maximumf %23, %24 : vector<32x128xf32>
      %c0_17 = arith.constant 0 : index
      %c0_18 = arith.constant 0 : index
      %26 = vector.load %arg7[%c0_17, %c0_18] : memref<32x128xf32, #tpu.memory_space<vmem>>, vector<32x128xf32>
      tpu.vector_store %arg7[%c0_17, %c0_18], %25 {strides = array<i32>} : memref<32x128xf32, #tpu.memory_space<vmem>>, vector<32x128xf32>,
    } else {
    }
    return
  }
  func.func @transform_0(%arg0: i32, %arg1: i32) -> (i32, i32) {
    %c0_i32 = arith.constant 0 : i32
    return %arg0, %arg1 : i32, i32
  }
  func.func @transform_1(%arg0: i32, %arg1: i32) -> (i32, i32) {
    %c0_i32 = arith.constant 0 : i32
    %c0_i32_0 = arith.constant 0 : i32
    return %arg1, %c0_i32 : i32, i32
  }
  func.func @transform_2(%arg0: i32, %arg1: i32) -> (i32, i32) {
    %c0_i32 = arith.constant 0 : i32
    %c0_i32_0 = arith.constant 0 : i32
    %c0_i32_1 = arith.constant 0 : i32
    return %c0_i32, %c0_i32_0 : i32, i32
  }
  func.func @transform_3(%arg0: i32, %arg1: i32) -> (i32, i32) {
    %c0_i32 = arith.constant 0 : i32
    %c0_i32_0 = arith.constant 0 : i32
    %c0_i32_1 = arith.constant 0 : i32
    return %c0_i32, %c0_i32_0 : i32, i32
  }
  func.func @transform_4(%arg0: i32, %arg1: i32) -> (i32, i32) {
    %c0_i32 = arith.constant 0 : i32
    %c0_i32_0 = arith.constant 0 : i32
    return %arg0, %c0_i32 : i32, i32
  }
  func.func @transform_5(%arg0: i32, %arg1: i32) -> (i32, i32) {
    %c0_i32 = arith.constant 0 : i32
    %c0_i32_0 = arith.constant 0 : i32
    return %arg0, %c0_i32 : i32, i32
  }
}

module attributes {stable_mosaic.version = 11 : i64} {
  func.func @_mm_affine_kernel(%arg0: i32, %arg1: i32, %arg2: memref<16x128xbf16, #tpu.memory_space<vmem>>, %arg3: memref<128x256xbf16, #tpu.memory_space<vmem>>, %arg4: memref<1x256xf32, #tpu.memory_space<vmem>>, %arg5: memref<1x256xf32, #tpu.memory_space<vmem>>, %arg6: memref<16x256xf32, #tpu.memory_space<vmem>>) attributes {dimension_semantics = [#tpu.dimension_semantics<parallel>, #tpu.dimension_semantics<arbitrary>], iteration_bounds = array<i64: 1, 9>, scalar_prefetch = 0 : i64, scratch_operands = 0 : i64, tpu.core_type = #tpu.core_type<tc>, window_params = [{transform_indices = @transform_0, window_bounds = array<i64: 16, 128>}, {transform_indices = @transform_1, window_bounds = array<i64: 128, 256>}, {pipeline_mode = #tpu.pipeline_mode<synchronous>, transform_indices = @transform_2, window_bounds = array<i64: 1, 256>}, {pipeline_mode = #tpu.pipeline_mode<synchronous>, transform_indices = @transform_3, window_bounds = array<i64: 1, 256>}, {transform_indices = @transform_4, window_bounds = array<i64: 16, 256>}]} {
    %c0 = arith.constant 0 : index
    %c0_0 = arith.constant 0 : index
    %0 = vector.load %arg2[%c0, %c0_0] : memref<16x128xbf16, #tpu.memory_space<vmem>>, vector<16x128xbf16>
    %c0_1 = arith.constant 0 : index
    %c0_2 = arith.constant 0 : index
    %1 = vector.load %arg3[%c0_1, %c0_2] : memref<128x256xbf16, #tpu.memory_space<vmem>>, vector<128x256xbf16>
    %cst = arith.constant dense<0.000000e+00> : vector<16x256xf32>
    %2 = tpu.matmul %0, %1, %cst {dimension_numbers = #tpu.dot_dimension_numbers<[1], [0], [0], [1], [0, 0, 1, 1], [], []>} : vector<16x128xbf16>, vector<128x256xbf16>, vector<16x256xf32> -> vector<16x256xf32>
    %c0_i32 = arith.constant 0 : i32
    %3 = arith.cmpi eq, %arg1, %c0_i32 : i32
    %4 = arith.extui %3 : i1 to i32
    %c0_i32_3 = arith.constant 0 : i32
    %5 = arith.cmpi ne, %4, %c0_i32_3 : i32
    scf.if %5 {
      %c0_8 = arith.constant 0 : index
      %c0_9 = arith.constant 0 : index
      %14 = vector.load %arg6[%c0_8, %c0_9] : memref<16x256xf32, #tpu.memory_space<vmem>>, vector<16x256xf32>
      tpu.vector_store %arg6[%c0_8, %c0_9], %2 {strides = array<i32>} : memref<16x256xf32, #tpu.memory_space<vmem>>, vector<16x256xf32>,
    } else {
    }
    %c0_i32_4 = arith.constant 0 : i32
    %6 = arith.cmpi sgt, %arg1, %c0_i32_4 : i32
    %c8_i32 = arith.constant 8 : i32
    %7 = arith.cmpi slt, %arg1, %c8_i32 : i32
    %8 = arith.andi %6, %7 : i1
    %9 = arith.extui %8 : i1 to i32
    %c0_i32_5 = arith.constant 0 : i32
    %10 = arith.cmpi ne, %9, %c0_i32_5 : i32
    scf.if %10 {
      %c0_8 = arith.constant 0 : index
      %c0_9 = arith.constant 0 : index
      %14 = vector.load %arg6[%c0_8, %c0_9] : memref<16x256xf32, #tpu.memory_space<vmem>>, vector<16x256xf32>
      %15 = arith.addf %14, %2 : vector<16x256xf32>
      %c0_10 = arith.constant 0 : index
      %c0_11 = arith.constant 0 : index
      %16 = vector.load %arg6[%c0_10, %c0_11] : memref<16x256xf32, #tpu.memory_space<vmem>>, vector<16x256xf32>
      tpu.vector_store %arg6[%c0_10, %c0_11], %15 {strides = array<i32>} : memref<16x256xf32, #tpu.memory_space<vmem>>, vector<16x256xf32>,
    } else {
    }
    %c8_i32_6 = arith.constant 8 : i32
    %11 = arith.cmpi eq, %arg1, %c8_i32_6 : i32
    %12 = arith.extui %11 : i1 to i32
    %c0_i32_7 = arith.constant 0 : i32
    %13 = arith.cmpi ne, %12, %c0_i32_7 : i32
    scf.if %13 {
      %c0_8 = arith.constant 0 : index
      %c0_9 = arith.constant 0 : index
      %14 = vector.load %arg6[%c0_8, %c0_9] : memref<16x256xf32, #tpu.memory_space<vmem>>, vector<16x256xf32>
      %15 = arith.addf %14, %2 : vector<16x256xf32>
      %c0_10 = arith.constant 0 : index
      %c0_11 = arith.constant 0 : index
      %16 = vector.load %arg4[%c0_10, %c0_11] : memref<1x256xf32, #tpu.memory_space<vmem>>, vector<1x256xf32>
      %17 = vector.broadcast %16 : vector<1x256xf32> to vector<16x256xf32>
      %18 = arith.mulf %15, %17 : vector<16x256xf32>
      %c0_12 = arith.constant 0 : index
      %c0_13 = arith.constant 0 : index
      %19 = vector.load %arg5[%c0_12, %c0_13] : memref<1x256xf32, #tpu.memory_space<vmem>>, vector<1x256xf32>
      %20 = vector.broadcast %19 : vector<1x256xf32> to vector<16x256xf32>
      %21 = arith.addf %18, %20 : vector<16x256xf32>
      %cst_14 = arith.constant 0.000000e+00 : f32
      %22 = vector.broadcast %cst_14 : f32 to vector<16x256xf32>
      %23 = arith.maximumf %21, %22 : vector<16x256xf32>
      %c0_15 = arith.constant 0 : index
      %c0_16 = arith.constant 0 : index
      %24 = vector.load %arg6[%c0_15, %c0_16] : memref<16x256xf32, #tpu.memory_space<vmem>>, vector<16x256xf32>
      tpu.vector_store %arg6[%c0_15, %c0_16], %23 {strides = array<i32>} : memref<16x256xf32, #tpu.memory_space<vmem>>, vector<16x256xf32>,
    } else {
    }
    return
  }
  func.func @transform_0(%arg0: i32, %arg1: i32) -> (i32, i32) {
    %c0_i32 = arith.constant 0 : i32
    return %arg0, %arg1 : i32, i32
  }
  func.func @transform_1(%arg0: i32, %arg1: i32) -> (i32, i32) {
    %c0_i32 = arith.constant 0 : i32
    %c0_i32_0 = arith.constant 0 : i32
    return %arg1, %c0_i32 : i32, i32
  }
  func.func @transform_2(%arg0: i32, %arg1: i32) -> (i32, i32) {
    %c0_i32 = arith.constant 0 : i32
    %c0_i32_0 = arith.constant 0 : i32
    %c0_i32_1 = arith.constant 0 : i32
    return %c0_i32, %c0_i32_0 : i32, i32
  }
  func.func @transform_3(%arg0: i32, %arg1: i32) -> (i32, i32) {
    %c0_i32 = arith.constant 0 : i32
    %c0_i32_0 = arith.constant 0 : i32
    %c0_i32_1 = arith.constant 0 : i32
    return %c0_i32, %c0_i32_0 : i32, i32
  }
  func.func @transform_4(%arg0: i32, %arg1: i32) -> (i32, i32) {
    %c0_i32 = arith.constant 0 : i32
    %c0_i32_0 = arith.constant 0 : i32
    return %arg0, %c0_i32 : i32, i32
  }
}

module attributes {stable_mosaic.version = 11 : i64} {
  func.func @_mm_affine_kernel(%arg0: i32, %arg1: i32, %arg2: memref<16x128xbf16, #tpu.memory_space<vmem>>, %arg3: memref<128x256xbf16, #tpu.memory_space<vmem>>, %arg4: memref<1x256xf32, #tpu.memory_space<vmem>>, %arg5: memref<1x256xf32, #tpu.memory_space<vmem>>, %arg6: memref<16x256xf32, #tpu.memory_space<vmem>>) attributes {dimension_semantics = [#tpu.dimension_semantics<parallel>, #tpu.dimension_semantics<arbitrary>], iteration_bounds = array<i64: 1, 1>, scalar_prefetch = 0 : i64, scratch_operands = 0 : i64, tpu.core_type = #tpu.core_type<tc>, window_params = [{transform_indices = @transform_0, window_bounds = array<i64: 16, 128>}, {transform_indices = @transform_1, window_bounds = array<i64: 128, 256>}, {pipeline_mode = #tpu.pipeline_mode<synchronous>, transform_indices = @transform_2, window_bounds = array<i64: 1, 256>}, {pipeline_mode = #tpu.pipeline_mode<synchronous>, transform_indices = @transform_3, window_bounds = array<i64: 1, 256>}, {transform_indices = @transform_4, window_bounds = array<i64: 16, 256>}]} {
    %c0 = arith.constant 0 : index
    %c0_0 = arith.constant 0 : index
    %0 = vector.load %arg2[%c0, %c0_0] : memref<16x128xbf16, #tpu.memory_space<vmem>>, vector<16x128xbf16>
    %c0_1 = arith.constant 0 : index
    %c0_2 = arith.constant 0 : index
    %1 = vector.load %arg3[%c0_1, %c0_2] : memref<128x256xbf16, #tpu.memory_space<vmem>>, vector<128x256xbf16>
    %cst = arith.constant dense<0.000000e+00> : vector<16x256xf32>
    %2 = tpu.matmul %0, %1, %cst {dimension_numbers = #tpu.dot_dimension_numbers<[1], [0], [0], [1], [0, 0, 1, 1], [], []>} : vector<16x128xbf16>, vector<128x256xbf16>, vector<16x256xf32> -> vector<16x256xf32>
    %c0_3 = arith.constant 0 : index
    %c0_4 = arith.constant 0 : index
    %3 = vector.load %arg4[%c0_3, %c0_4] : memref<1x256xf32, #tpu.memory_space<vmem>>, vector<1x256xf32>
    %4 = vector.broadcast %3 : vector<1x256xf32> to vector<16x256xf32>
    %5 = arith.mulf %2, %4 : vector<16x256xf32>
    %c0_5 = arith.constant 0 : index
    %c0_6 = arith.constant 0 : index
    %6 = vector.load %arg5[%c0_5, %c0_6] : memref<1x256xf32, #tpu.memory_space<vmem>>, vector<1x256xf32>
    %7 = vector.broadcast %6 : vector<1x256xf32> to vector<16x256xf32>
    %8 = arith.addf %5, %7 : vector<16x256xf32>
    %c0_7 = arith.constant 0 : index
    %c0_8 = arith.constant 0 : index
    %9 = vector.load %arg6[%c0_7, %c0_8] : memref<16x256xf32, #tpu.memory_space<vmem>>, vector<16x256xf32>
    tpu.vector_store %arg6[%c0_7, %c0_8], %8 {strides = array<i32>} : memref<16x256xf32, #tpu.memory_space<vmem>>, vector<16x256xf32>,
    return
  }
  func.func @transform_0(%arg0: i32, %arg1: i32) -> (i32, i32) {
    %c0_i32 = arith.constant 0 : i32
    return %arg0, %arg1 : i32, i32
  }
  func.func @transform_1(%arg0: i32, %arg1: i32) -> (i32, i32) {
    %c0_i32 = arith.constant 0 : i32
    %c0_i32_0 = arith.constant 0 : i32
    return %arg1, %c0_i32 : i32, i32
  }
  func.func @transform_2(%arg0: i32, %arg1: i32) -> (i32, i32) {
    %c0_i32 = arith.constant 0 : i32
    %c0_i32_0 = arith.constant 0 : i32
    %c0_i32_1 = arith.constant 0 : i32
    return %c0_i32, %c0_i32_0 : i32, i32
  }
  func.func @transform_3(%arg0: i32, %arg1: i32) -> (i32, i32) {
    %c0_i32 = arith.constant 0 : i32
    %c0_i32_0 = arith.constant 0 : i32
    %c0_i32_1 = arith.constant 0 : i32
    return %c0_i32, %c0_i32_0 : i32, i32
  }
  func.func @transform_4(%arg0: i32, %arg1: i32) -> (i32, i32) {
    %c0_i32 = arith.constant 0 : i32
    %c0_i32_0 = arith.constant 0 : i32
    return %arg0, %c0_i32 : i32, i32
  }
}

module attributes {stable_mosaic.version = 11 : i64} {
  func.func @_mm_affine_kernel(%arg0: i32, %arg1: i32, %arg2: memref<16x256xbf16, #tpu.memory_space<vmem>>, %arg3: memref<256x256xbf16, #tpu.memory_space<vmem>>, %arg4: memref<1x256xf32, #tpu.memory_space<vmem>>, %arg5: memref<1x256xf32, #tpu.memory_space<vmem>>, %arg6: memref<16x256xf32, #tpu.memory_space<vmem>>, %arg7: memref<16x256xf32, #tpu.memory_space<vmem>>) attributes {dimension_semantics = [#tpu.dimension_semantics<parallel>, #tpu.dimension_semantics<arbitrary>], iteration_bounds = array<i64: 1, 9>, scalar_prefetch = 0 : i64, scratch_operands = 0 : i64, tpu.core_type = #tpu.core_type<tc>, window_params = [{transform_indices = @transform_0, window_bounds = array<i64: 16, 256>}, {transform_indices = @transform_1, window_bounds = array<i64: 256, 256>}, {pipeline_mode = #tpu.pipeline_mode<synchronous>, transform_indices = @transform_2, window_bounds = array<i64: 1, 256>}, {pipeline_mode = #tpu.pipeline_mode<synchronous>, transform_indices = @transform_3, window_bounds = array<i64: 1, 256>}, {transform_indices = @transform_4, window_bounds = array<i64: 16, 256>}, {transform_indices = @transform_5, window_bounds = array<i64: 16, 256>}]} {
    %c0 = arith.constant 0 : index
    %c0_0 = arith.constant 0 : index
    %0 = vector.load %arg2[%c0, %c0_0] : memref<16x256xbf16, #tpu.memory_space<vmem>>, vector<16x256xbf16>
    %c0_1 = arith.constant 0 : index
    %c0_2 = arith.constant 0 : index
    %1 = vector.load %arg3[%c0_1, %c0_2] : memref<256x256xbf16, #tpu.memory_space<vmem>>, vector<256x256xbf16>
    %cst = arith.constant dense<0.000000e+00> : vector<16x256xf32>
    %2 = tpu.matmul %0, %1, %cst {dimension_numbers = #tpu.dot_dimension_numbers<[1], [0], [0], [1], [0, 0, 1, 1], [], []>} : vector<16x256xbf16>, vector<256x256xbf16>, vector<16x256xf32> -> vector<16x256xf32>
    %c0_i32 = arith.constant 0 : i32
    %3 = arith.cmpi eq, %arg1, %c0_i32 : i32
    %4 = arith.extui %3 : i1 to i32
    %c0_i32_3 = arith.constant 0 : i32
    %5 = arith.cmpi ne, %4, %c0_i32_3 : i32
    scf.if %5 {
      %c0_8 = arith.constant 0 : index
      %c0_9 = arith.constant 0 : index
      %14 = vector.load %arg7[%c0_8, %c0_9] : memref<16x256xf32, #tpu.memory_space<vmem>>, vector<16x256xf32>
      tpu.vector_store %arg7[%c0_8, %c0_9], %2 {strides = array<i32>} : memref<16x256xf32, #tpu.memory_space<vmem>>, vector<16x256xf32>,
    } else {
    }
    %c0_i32_4 = arith.constant 0 : i32
    %6 = arith.cmpi sgt, %arg1, %c0_i32_4 : i32
    %c8_i32 = arith.constant 8 : i32
    %7 = arith.cmpi slt, %arg1, %c8_i32 : i32
    %8 = arith.andi %6, %7 : i1
    %9 = arith.extui %8 : i1 to i32
    %c0_i32_5 = arith.constant 0 : i32
    %10 = arith.cmpi ne, %9, %c0_i32_5 : i32
    scf.if %10 {
      %c0_8 = arith.constant 0 : index
      %c0_9 = arith.constant 0 : index
      %14 = vector.load %arg7[%c0_8, %c0_9] : memref<16x256xf32, #tpu.memory_space<vmem>>, vector<16x256xf32>
      %15 = arith.addf %14, %2 : vector<16x256xf32>
      %c0_10 = arith.constant 0 : index
      %c0_11 = arith.constant 0 : index
      %16 = vector.load %arg7[%c0_10, %c0_11] : memref<16x256xf32, #tpu.memory_space<vmem>>, vector<16x256xf32>
      tpu.vector_store %arg7[%c0_10, %c0_11], %15 {strides = array<i32>} : memref<16x256xf32, #tpu.memory_space<vmem>>, vector<16x256xf32>,
    } else {
    }
    %c8_i32_6 = arith.constant 8 : i32
    %11 = arith.cmpi eq, %arg1, %c8_i32_6 : i32
    %12 = arith.extui %11 : i1 to i32
    %c0_i32_7 = arith.constant 0 : i32
    %13 = arith.cmpi ne, %12, %c0_i32_7 : i32
    scf.if %13 {
      %c0_8 = arith.constant 0 : index
      %c0_9 = arith.constant 0 : index
      %14 = vector.load %arg7[%c0_8, %c0_9] : memref<16x256xf32, #tpu.memory_space<vmem>>, vector<16x256xf32>
      %15 = arith.addf %14, %2 : vector<16x256xf32>
      %c0_10 = arith.constant 0 : index
      %c0_11 = arith.constant 0 : index
      %16 = vector.load %arg4[%c0_10, %c0_11] : memref<1x256xf32, #tpu.memory_space<vmem>>, vector<1x256xf32>
      %17 = vector.broadcast %16 : vector<1x256xf32> to vector<16x256xf32>
      %18 = arith.mulf %15, %17 : vector<16x256xf32>
      %c0_12 = arith.constant 0 : index
      %c0_13 = arith.constant 0 : index
      %19 = vector.load %arg5[%c0_12, %c0_13] : memref<1x256xf32, #tpu.memory_space<vmem>>, vector<1x256xf32>
      %20 = vector.broadcast %19 : vector<1x256xf32> to vector<16x256xf32>
      %21 = arith.addf %18, %20 : vector<16x256xf32>
      %c0_14 = arith.constant 0 : index
      %c0_15 = arith.constant 0 : index
      %22 = vector.load %arg6[%c0_14, %c0_15] : memref<16x256xf32, #tpu.memory_space<vmem>>, vector<16x256xf32>
      %23 = arith.addf %21, %22 : vector<16x256xf32>
      %cst_16 = arith.constant 0.000000e+00 : f32
      %24 = vector.broadcast %cst_16 : f32 to vector<16x256xf32>
      %25 = arith.maximumf %23, %24 : vector<16x256xf32>
      %c0_17 = arith.constant 0 : index
      %c0_18 = arith.constant 0 : index
      %26 = vector.load %arg7[%c0_17, %c0_18] : memref<16x256xf32, #tpu.memory_space<vmem>>, vector<16x256xf32>
      tpu.vector_store %arg7[%c0_17, %c0_18], %25 {strides = array<i32>} : memref<16x256xf32, #tpu.memory_space<vmem>>, vector<16x256xf32>,
    } else {
    }
    return
  }
  func.func @transform_0(%arg0: i32, %arg1: i32) -> (i32, i32) {
    %c0_i32 = arith.constant 0 : i32
    return %arg0, %arg1 : i32, i32
  }
  func.func @transform_1(%arg0: i32, %arg1: i32) -> (i32, i32) {
    %c0_i32 = arith.constant 0 : i32
    %c0_i32_0 = arith.constant 0 : i32
    return %arg1, %c0_i32 : i32, i32
  }
  func.func @transform_2(%arg0: i32, %arg1: i32) -> (i32, i32) {
    %c0_i32 = arith.constant 0 : i32
    %c0_i32_0 = arith.constant 0 : i32
    %c0_i32_1 = arith.constant 0 : i32
    return %c0_i32, %c0_i32_0 : i32, i32
  }
  func.func @transform_3(%arg0: i32, %arg1: i32) -> (i32, i32) {
    %c0_i32 = arith.constant 0 : i32
    %c0_i32_0 = arith.constant 0 : i32
    %c0_i32_1 = arith.constant 0 : i32
    return %c0_i32, %c0_i32_0 : i32, i32
  }
  func.func @transform_4(%arg0: i32, %arg1: i32) -> (i32, i32) {
    %c0_i32 = arith.constant 0 : i32
    %c0_i32_0 = arith.constant 0 : i32
    return %arg0, %c0_i32 : i32, i32
  }
  func.func @transform_5(%arg0: i32, %arg1: i32) -> (i32, i32) {
    %c0_i32 = arith.constant 0 : i32
    %c0_i32_0 = arith.constant 0 : i32
    return %arg0, %c0_i32 : i32, i32
  }
}

module attributes {stable_mosaic.version = 11 : i64} {
  func.func @_mm_affine_kernel(%arg0: i32, %arg1: i32, %arg2: memref<16x256xbf16, #tpu.memory_space<vmem>>, %arg3: memref<256x256xbf16, #tpu.memory_space<vmem>>, %arg4: memref<1x256xf32, #tpu.memory_space<vmem>>, %arg5: memref<1x256xf32, #tpu.memory_space<vmem>>, %arg6: memref<16x256xf32, #tpu.memory_space<vmem>>) attributes {dimension_semantics = [#tpu.dimension_semantics<parallel>, #tpu.dimension_semantics<arbitrary>], iteration_bounds = array<i64: 1, 9>, scalar_prefetch = 0 : i64, scratch_operands = 0 : i64, tpu.core_type = #tpu.core_type<tc>, window_params = [{transform_indices = @transform_0, window_bounds = array<i64: 16, 256>}, {transform_indices = @transform_1, window_bounds = array<i64: 256, 256>}, {pipeline_mode = #tpu.pipeline_mode<synchronous>, transform_indices = @transform_2, window_bounds = array<i64: 1, 256>}, {pipeline_mode = #tpu.pipeline_mode<synchronous>, transform_indices = @transform_3, window_bounds = array<i64: 1, 256>}, {transform_indices = @transform_4, window_bounds = array<i64: 16, 256>}]} {
    %c0 = arith.constant 0 : index
    %c0_0 = arith.constant 0 : index
    %0 = vector.load %arg2[%c0, %c0_0] : memref<16x256xbf16, #tpu.memory_space<vmem>>, vector<16x256xbf16>
    %c0_1 = arith.constant 0 : index
    %c0_2 = arith.constant 0 : index
    %1 = vector.load %arg3[%c0_1, %c0_2] : memref<256x256xbf16, #tpu.memory_space<vmem>>, vector<256x256xbf16>
    %cst = arith.constant dense<0.000000e+00> : vector<16x256xf32>
    %2 = tpu.matmul %0, %1, %cst {dimension_numbers = #tpu.dot_dimension_numbers<[1], [0], [0], [1], [0, 0, 1, 1], [], []>} : vector<16x256xbf16>, vector<256x256xbf16>, vector<16x256xf32> -> vector<16x256xf32>
    %c0_i32 = arith.constant 0 : i32
    %3 = arith.cmpi eq, %arg1, %c0_i32 : i32
    %4 = arith.extui %3 : i1 to i32
    %c0_i32_3 = arith.constant 0 : i32
    %5 = arith.cmpi ne, %4, %c0_i32_3 : i32
    scf.if %5 {
      %c0_8 = arith.constant 0 : index
      %c0_9 = arith.constant 0 : index
      %14 = vector.load %arg6[%c0_8, %c0_9] : memref<16x256xf32, #tpu.memory_space<vmem>>, vector<16x256xf32>
      tpu.vector_store %arg6[%c0_8, %c0_9], %2 {strides = array<i32>} : memref<16x256xf32, #tpu.memory_space<vmem>>, vector<16x256xf32>,
    } else {
    }
    %c0_i32_4 = arith.constant 0 : i32
    %6 = arith.cmpi sgt, %arg1, %c0_i32_4 : i32
    %c8_i32 = arith.constant 8 : i32
    %7 = arith.cmpi slt, %arg1, %c8_i32 : i32
    %8 = arith.andi %6, %7 : i1
    %9 = arith.extui %8 : i1 to i32
    %c0_i32_5 = arith.constant 0 : i32
    %10 = arith.cmpi ne, %9, %c0_i32_5 : i32
    scf.if %10 {
      %c0_8 = arith.constant 0 : index
      %c0_9 = arith.constant 0 : index
      %14 = vector.load %arg6[%c0_8, %c0_9] : memref<16x256xf32, #tpu.memory_space<vmem>>, vector<16x256xf32>
      %15 = arith.addf %14, %2 : vector<16x256xf32>
      %c0_10 = arith.constant 0 : index
      %c0_11 = arith.constant 0 : index
      %16 = vector.load %arg6[%c0_10, %c0_11] : memref<16x256xf32, #tpu.memory_space<vmem>>, vector<16x256xf32>
      tpu.vector_store %arg6[%c0_10, %c0_11], %15 {strides = array<i32>} : memref<16x256xf32, #tpu.memory_space<vmem>>, vector<16x256xf32>,
    } else {
    }
    %c8_i32_6 = arith.constant 8 : i32
    %11 = arith.cmpi eq, %arg1, %c8_i32_6 : i32
    %12 = arith.extui %11 : i1 to i32
    %c0_i32_7 = arith.constant 0 : i32
    %13 = arith.cmpi ne, %12, %c0_i32_7 : i32
    scf.if %13 {
      %c0_8 = arith.constant 0 : index
      %c0_9 = arith.constant 0 : index
      %14 = vector.load %arg6[%c0_8, %c0_9] : memref<16x256xf32, #tpu.memory_space<vmem>>, vector<16x256xf32>
      %15 = arith.addf %14, %2 : vector<16x256xf32>
      %c0_10 = arith.constant 0 : index
      %c0_11 = arith.constant 0 : index
      %16 = vector.load %arg4[%c0_10, %c0_11] : memref<1x256xf32, #tpu.memory_space<vmem>>, vector<1x256xf32>
      %17 = vector.broadcast %16 : vector<1x256xf32> to vector<16x256xf32>
      %18 = arith.mulf %15, %17 : vector<16x256xf32>
      %c0_12 = arith.constant 0 : index
      %c0_13 = arith.constant 0 : index
      %19 = vector.load %arg5[%c0_12, %c0_13] : memref<1x256xf32, #tpu.memory_space<vmem>>, vector<1x256xf32>
      %20 = vector.broadcast %19 : vector<1x256xf32> to vector<16x256xf32>
      %21 = arith.addf %18, %20 : vector<16x256xf32>
      %cst_14 = arith.constant 0.000000e+00 : f32
      %22 = vector.broadcast %cst_14 : f32 to vector<16x256xf32>
      %23 = arith.maximumf %21, %22 : vector<16x256xf32>
      %c0_15 = arith.constant 0 : index
      %c0_16 = arith.constant 0 : index
      %24 = vector.load %arg6[%c0_15, %c0_16] : memref<16x256xf32, #tpu.memory_space<vmem>>, vector<16x256xf32>
      tpu.vector_store %arg6[%c0_15, %c0_16], %23 {strides = array<i32>} : memref<16x256xf32, #tpu.memory_space<vmem>>, vector<16x256xf32>,
    } else {
    }
    return
  }
  func.func @transform_0(%arg0: i32, %arg1: i32) -> (i32, i32) {
    %c0_i32 = arith.constant 0 : i32
    return %arg0, %arg1 : i32, i32
  }
  func.func @transform_1(%arg0: i32, %arg1: i32) -> (i32, i32) {
    %c0_i32 = arith.constant 0 : i32
    %c0_i32_0 = arith.constant 0 : i32
    return %arg1, %c0_i32 : i32, i32
  }
  func.func @transform_2(%arg0: i32, %arg1: i32) -> (i32, i32) {
    %c0_i32 = arith.constant 0 : i32
    %c0_i32_0 = arith.constant 0 : i32
    %c0_i32_1 = arith.constant 0 : i32
    return %c0_i32, %c0_i32_0 : i32, i32
  }
  func.func @transform_3(%arg0: i32, %arg1: i32) -> (i32, i32) {
    %c0_i32 = arith.constant 0 : i32
    %c0_i32_0 = arith.constant 0 : i32
    %c0_i32_1 = arith.constant 0 : i32
    return %c0_i32, %c0_i32_0 : i32, i32
  }
  func.func @transform_4(%arg0: i32, %arg1: i32) -> (i32, i32) {
    %c0_i32 = arith.constant 0 : i32
    %c0_i32_0 = arith.constant 0 : i32
    return %arg0, %c0_i32 : i32, i32
  }
}

module attributes {stable_mosaic.version = 11 : i64} {
  func.func @_mm_affine_kernel(%arg0: i32, %arg1: i32, %arg2: memref<16x256xbf16, #tpu.memory_space<vmem>>, %arg3: memref<256x512xbf16, #tpu.memory_space<vmem>>, %arg4: memref<1x512xf32, #tpu.memory_space<vmem>>, %arg5: memref<1x512xf32, #tpu.memory_space<vmem>>, %arg6: memref<16x512xf32, #tpu.memory_space<vmem>>) attributes {dimension_semantics = [#tpu.dimension_semantics<parallel>, #tpu.dimension_semantics<arbitrary>], iteration_bounds = array<i64: 1, 9>, scalar_prefetch = 0 : i64, scratch_operands = 0 : i64, tpu.core_type = #tpu.core_type<tc>, window_params = [{transform_indices = @transform_0, window_bounds = array<i64: 16, 256>}, {transform_indices = @transform_1, window_bounds = array<i64: 256, 512>}, {pipeline_mode = #tpu.pipeline_mode<synchronous>, transform_indices = @transform_2, window_bounds = array<i64: 1, 512>}, {pipeline_mode = #tpu.pipeline_mode<synchronous>, transform_indices = @transform_3, window_bounds = array<i64: 1, 512>}, {transform_indices = @transform_4, window_bounds = array<i64: 16, 512>}]} {
    %c0 = arith.constant 0 : index
    %c0_0 = arith.constant 0 : index
    %0 = vector.load %arg2[%c0, %c0_0] : memref<16x256xbf16, #tpu.memory_space<vmem>>, vector<16x256xbf16>
    %c0_1 = arith.constant 0 : index
    %c0_2 = arith.constant 0 : index
    %1 = vector.load %arg3[%c0_1, %c0_2] : memref<256x512xbf16, #tpu.memory_space<vmem>>, vector<256x512xbf16>
    %cst = arith.constant dense<0.000000e+00> : vector<16x512xf32>
    %2 = tpu.matmul %0, %1, %cst {dimension_numbers = #tpu.dot_dimension_numbers<[1], [0], [0], [1], [0, 0, 1, 1], [], []>} : vector<16x256xbf16>, vector<256x512xbf16>, vector<16x512xf32> -> vector<16x512xf32>
    %c0_i32 = arith.constant 0 : i32
    %3 = arith.cmpi eq, %arg1, %c0_i32 : i32
    %4 = arith.extui %3 : i1 to i32
    %c0_i32_3 = arith.constant 0 : i32
    %5 = arith.cmpi ne, %4, %c0_i32_3 : i32
    scf.if %5 {
      %c0_8 = arith.constant 0 : index
      %c0_9 = arith.constant 0 : index
      %14 = vector.load %arg6[%c0_8, %c0_9] : memref<16x512xf32, #tpu.memory_space<vmem>>, vector<16x512xf32>
      tpu.vector_store %arg6[%c0_8, %c0_9], %2 {strides = array<i32>} : memref<16x512xf32, #tpu.memory_space<vmem>>, vector<16x512xf32>,
    } else {
    }
    %c0_i32_4 = arith.constant 0 : i32
    %6 = arith.cmpi sgt, %arg1, %c0_i32_4 : i32
    %c8_i32 = arith.constant 8 : i32
    %7 = arith.cmpi slt, %arg1, %c8_i32 : i32
    %8 = arith.andi %6, %7 : i1
    %9 = arith.extui %8 : i1 to i32
    %c0_i32_5 = arith.constant 0 : i32
    %10 = arith.cmpi ne, %9, %c0_i32_5 : i32
    scf.if %10 {
      %c0_8 = arith.constant 0 : index
      %c0_9 = arith.constant 0 : index
      %14 = vector.load %arg6[%c0_8, %c0_9] : memref<16x512xf32, #tpu.memory_space<vmem>>, vector<16x512xf32>
      %15 = arith.addf %14, %2 : vector<16x512xf32>
      %c0_10 = arith.constant 0 : index
      %c0_11 = arith.constant 0 : index
      %16 = vector.load %arg6[%c0_10, %c0_11] : memref<16x512xf32, #tpu.memory_space<vmem>>, vector<16x512xf32>
      tpu.vector_store %arg6[%c0_10, %c0_11], %15 {strides = array<i32>} : memref<16x512xf32, #tpu.memory_space<vmem>>, vector<16x512xf32>,
    } else {
    }
    %c8_i32_6 = arith.constant 8 : i32
    %11 = arith.cmpi eq, %arg1, %c8_i32_6 : i32
    %12 = arith.extui %11 : i1 to i32
    %c0_i32_7 = arith.constant 0 : i32
    %13 = arith.cmpi ne, %12, %c0_i32_7 : i32
    scf.if %13 {
      %c0_8 = arith.constant 0 : index
      %c0_9 = arith.constant 0 : index
      %14 = vector.load %arg6[%c0_8, %c0_9] : memref<16x512xf32, #tpu.memory_space<vmem>>, vector<16x512xf32>
      %15 = arith.addf %14, %2 : vector<16x512xf32>
      %c0_10 = arith.constant 0 : index
      %c0_11 = arith.constant 0 : index
      %16 = vector.load %arg4[%c0_10, %c0_11] : memref<1x512xf32, #tpu.memory_space<vmem>>, vector<1x512xf32>
      %17 = vector.broadcast %16 : vector<1x512xf32> to vector<16x512xf32>
      %18 = arith.mulf %15, %17 : vector<16x512xf32>
      %c0_12 = arith.constant 0 : index
      %c0_13 = arith.constant 0 : index
      %19 = vector.load %arg5[%c0_12, %c0_13] : memref<1x512xf32, #tpu.memory_space<vmem>>, vector<1x512xf32>
      %20 = vector.broadcast %19 : vector<1x512xf32> to vector<16x512xf32>
      %21 = arith.addf %18, %20 : vector<16x512xf32>
      %cst_14 = arith.constant 0.000000e+00 : f32
      %22 = vector.broadcast %cst_14 : f32 to vector<16x512xf32>
      %23 = arith.maximumf %21, %22 : vector<16x512xf32>
      %c0_15 = arith.constant 0 : index
      %c0_16 = arith.constant 0 : index
      %24 = vector.load %arg6[%c0_15, %c0_16] : memref<16x512xf32, #tpu.memory_space<vmem>>, vector<16x512xf32>
      tpu.vector_store %arg6[%c0_15, %c0_16], %23 {strides = array<i32>} : memref<16x512xf32, #tpu.memory_space<vmem>>, vector<16x512xf32>,
    } else {
    }
    return
  }
  func.func @transform_0(%arg0: i32, %arg1: i32) -> (i32, i32) {
    %c0_i32 = arith.constant 0 : i32
    return %arg0, %arg1 : i32, i32
  }
  func.func @transform_1(%arg0: i32, %arg1: i32) -> (i32, i32) {
    %c0_i32 = arith.constant 0 : i32
    %c0_i32_0 = arith.constant 0 : i32
    return %arg1, %c0_i32 : i32, i32
  }
  func.func @transform_2(%arg0: i32, %arg1: i32) -> (i32, i32) {
    %c0_i32 = arith.constant 0 : i32
    %c0_i32_0 = arith.constant 0 : i32
    %c0_i32_1 = arith.constant 0 : i32
    return %c0_i32, %c0_i32_0 : i32, i32
  }
  func.func @transform_3(%arg0: i32, %arg1: i32) -> (i32, i32) {
    %c0_i32 = arith.constant 0 : i32
    %c0_i32_0 = arith.constant 0 : i32
    %c0_i32_1 = arith.constant 0 : i32
    return %c0_i32, %c0_i32_0 : i32, i32
  }
  func.func @transform_4(%arg0: i32, %arg1: i32) -> (i32, i32) {
    %c0_i32 = arith.constant 0 : i32
    %c0_i32_0 = arith.constant 0 : i32
    return %arg0, %c0_i32 : i32, i32
  }
}

module attributes {stable_mosaic.version = 11 : i64} {
  func.func @_mm_affine_kernel(%arg0: i32, %arg1: i32, %arg2: memref<16x256xbf16, #tpu.memory_space<vmem>>, %arg3: memref<256x512xbf16, #tpu.memory_space<vmem>>, %arg4: memref<1x512xf32, #tpu.memory_space<vmem>>, %arg5: memref<1x512xf32, #tpu.memory_space<vmem>>, %arg6: memref<16x512xf32, #tpu.memory_space<vmem>>) attributes {dimension_semantics = [#tpu.dimension_semantics<parallel>, #tpu.dimension_semantics<arbitrary>], iteration_bounds = array<i64: 1, 1>, scalar_prefetch = 0 : i64, scratch_operands = 0 : i64, tpu.core_type = #tpu.core_type<tc>, window_params = [{transform_indices = @transform_0, window_bounds = array<i64: 16, 256>}, {transform_indices = @transform_1, window_bounds = array<i64: 256, 512>}, {pipeline_mode = #tpu.pipeline_mode<synchronous>, transform_indices = @transform_2, window_bounds = array<i64: 1, 512>}, {pipeline_mode = #tpu.pipeline_mode<synchronous>, transform_indices = @transform_3, window_bounds = array<i64: 1, 512>}, {transform_indices = @transform_4, window_bounds = array<i64: 16, 512>}]} {
    %c0 = arith.constant 0 : index
    %c0_0 = arith.constant 0 : index
    %0 = vector.load %arg2[%c0, %c0_0] : memref<16x256xbf16, #tpu.memory_space<vmem>>, vector<16x256xbf16>
    %c0_1 = arith.constant 0 : index
    %c0_2 = arith.constant 0 : index
    %1 = vector.load %arg3[%c0_1, %c0_2] : memref<256x512xbf16, #tpu.memory_space<vmem>>, vector<256x512xbf16>
    %cst = arith.constant dense<0.000000e+00> : vector<16x512xf32>
    %2 = tpu.matmul %0, %1, %cst {dimension_numbers = #tpu.dot_dimension_numbers<[1], [0], [0], [1], [0, 0, 1, 1], [], []>} : vector<16x256xbf16>, vector<256x512xbf16>, vector<16x512xf32> -> vector<16x512xf32>
    %c0_3 = arith.constant 0 : index
    %c0_4 = arith.constant 0 : index
    %3 = vector.load %arg4[%c0_3, %c0_4] : memref<1x512xf32, #tpu.memory_space<vmem>>, vector<1x512xf32>
    %4 = vector.broadcast %3 : vector<1x512xf32> to vector<16x512xf32>
    %5 = arith.mulf %2, %4 : vector<16x512xf32>
    %c0_5 = arith.constant 0 : index
    %c0_6 = arith.constant 0 : index
    %6 = vector.load %arg5[%c0_5, %c0_6] : memref<1x512xf32, #tpu.memory_space<vmem>>, vector<1x512xf32>
    %7 = vector.broadcast %6 : vector<1x512xf32> to vector<16x512xf32>
    %8 = arith.addf %5, %7 : vector<16x512xf32>
    %c0_7 = arith.constant 0 : index
    %c0_8 = arith.constant 0 : index
    %9 = vector.load %arg6[%c0_7, %c0_8] : memref<16x512xf32, #tpu.memory_space<vmem>>, vector<16x512xf32>
    tpu.vector_store %arg6[%c0_7, %c0_8], %8 {strides = array<i32>} : memref<16x512xf32, #tpu.memory_space<vmem>>, vector<16x512xf32>,
    return
  }
  func.func @transform_0(%arg0: i32, %arg1: i32) -> (i32, i32) {
    %c0_i32 = arith.constant 0 : i32
    return %arg0, %arg1 : i32, i32
  }
  func.func @transform_1(%arg0: i32, %arg1: i32) -> (i32, i32) {
    %c0_i32 = arith.constant 0 : i32
    %c0_i32_0 = arith.constant 0 : i32
    return %arg1, %c0_i32 : i32, i32
  }
  func.func @transform_2(%arg0: i32, %arg1: i32) -> (i32, i32) {
    %c0_i32 = arith.constant 0 : i32
    %c0_i32_0 = arith.constant 0 : i32
    %c0_i32_1 = arith.constant 0 : i32
    return %c0_i32, %c0_i32_0 : i32, i32
  }
  func.func @transform_3(%arg0: i32, %arg1: i32) -> (i32, i32) {
    %c0_i32 = arith.constant 0 : i32
    %c0_i32_0 = arith.constant 0 : i32
    %c0_i32_1 = arith.constant 0 : i32
    return %c0_i32, %c0_i32_0 : i32, i32
  }
  func.func @transform_4(%arg0: i32, %arg1: i32) -> (i32, i32) {
    %c0_i32 = arith.constant 0 : i32
    %c0_i32_0 = arith.constant 0 : i32
    return %arg0, %c0_i32 : i32, i32
  }
}

module attributes {stable_mosaic.version = 11 : i64} {
  func.func @_mm_affine_kernel(%arg0: i32, %arg1: i32, %arg2: memref<16x256xbf16, #tpu.memory_space<vmem>>, %arg3: memref<256x512xbf16, #tpu.memory_space<vmem>>, %arg4: memref<1x512xf32, #tpu.memory_space<vmem>>, %arg5: memref<1x512xf32, #tpu.memory_space<vmem>>, %arg6: memref<16x512xf32, #tpu.memory_space<vmem>>, %arg7: memref<16x512xf32, #tpu.memory_space<vmem>>) attributes {dimension_semantics = [#tpu.dimension_semantics<parallel>, #tpu.dimension_semantics<arbitrary>], iteration_bounds = array<i64: 1, 18>, scalar_prefetch = 0 : i64, scratch_operands = 0 : i64, tpu.core_type = #tpu.core_type<tc>, window_params = [{transform_indices = @transform_0, window_bounds = array<i64: 16, 256>}, {transform_indices = @transform_1, window_bounds = array<i64: 256, 512>}, {pipeline_mode = #tpu.pipeline_mode<synchronous>, transform_indices = @transform_2, window_bounds = array<i64: 1, 512>}, {pipeline_mode = #tpu.pipeline_mode<synchronous>, transform_indices = @transform_3, window_bounds = array<i64: 1, 512>}, {transform_indices = @transform_4, window_bounds = array<i64: 16, 512>}, {transform_indices = @transform_5, window_bounds = array<i64: 16, 512>}]} {
    %c0 = arith.constant 0 : index
    %c0_0 = arith.constant 0 : index
    %0 = vector.load %arg2[%c0, %c0_0] : memref<16x256xbf16, #tpu.memory_space<vmem>>, vector<16x256xbf16>
    %c0_1 = arith.constant 0 : index
    %c0_2 = arith.constant 0 : index
    %1 = vector.load %arg3[%c0_1, %c0_2] : memref<256x512xbf16, #tpu.memory_space<vmem>>, vector<256x512xbf16>
    %cst = arith.constant dense<0.000000e+00> : vector<16x512xf32>
    %2 = tpu.matmul %0, %1, %cst {dimension_numbers = #tpu.dot_dimension_numbers<[1], [0], [0], [1], [0, 0, 1, 1], [], []>} : vector<16x256xbf16>, vector<256x512xbf16>, vector<16x512xf32> -> vector<16x512xf32>
    %c0_i32 = arith.constant 0 : i32
    %3 = arith.cmpi eq, %arg1, %c0_i32 : i32
    %4 = arith.extui %3 : i1 to i32
    %c0_i32_3 = arith.constant 0 : i32
    %5 = arith.cmpi ne, %4, %c0_i32_3 : i32
    scf.if %5 {
      %c0_8 = arith.constant 0 : index
      %c0_9 = arith.constant 0 : index
      %14 = vector.load %arg7[%c0_8, %c0_9] : memref<16x512xf32, #tpu.memory_space<vmem>>, vector<16x512xf32>
      tpu.vector_store %arg7[%c0_8, %c0_9], %2 {strides = array<i32>} : memref<16x512xf32, #tpu.memory_space<vmem>>, vector<16x512xf32>,
    } else {
    }
    %c0_i32_4 = arith.constant 0 : i32
    %6 = arith.cmpi sgt, %arg1, %c0_i32_4 : i32
    %c17_i32 = arith.constant 17 : i32
    %7 = arith.cmpi slt, %arg1, %c17_i32 : i32
    %8 = arith.andi %6, %7 : i1
    %9 = arith.extui %8 : i1 to i32
    %c0_i32_5 = arith.constant 0 : i32
    %10 = arith.cmpi ne, %9, %c0_i32_5 : i32
    scf.if %10 {
      %c0_8 = arith.constant 0 : index
      %c0_9 = arith.constant 0 : index
      %14 = vector.load %arg7[%c0_8, %c0_9] : memref<16x512xf32, #tpu.memory_space<vmem>>, vector<16x512xf32>
      %15 = arith.addf %14, %2 : vector<16x512xf32>
      %c0_10 = arith.constant 0 : index
      %c0_11 = arith.constant 0 : index
      %16 = vector.load %arg7[%c0_10, %c0_11] : memref<16x512xf32, #tpu.memory_space<vmem>>, vector<16x512xf32>
      tpu.vector_store %arg7[%c0_10, %c0_11], %15 {strides = array<i32>} : memref<16x512xf32, #tpu.memory_space<vmem>>, vector<16x512xf32>,
    } else {
    }
    %c17_i32_6 = arith.constant 17 : i32
    %11 = arith.cmpi eq, %arg1, %c17_i32_6 : i32
    %12 = arith.extui %11 : i1 to i32
    %c0_i32_7 = arith.constant 0 : i32
    %13 = arith.cmpi ne, %12, %c0_i32_7 : i32
    scf.if %13 {
      %c0_8 = arith.constant 0 : index
      %c0_9 = arith.constant 0 : index
      %14 = vector.load %arg7[%c0_8, %c0_9] : memref<16x512xf32, #tpu.memory_space<vmem>>, vector<16x512xf32>
      %15 = arith.addf %14, %2 : vector<16x512xf32>
      %c0_10 = arith.constant 0 : index
      %c0_11 = arith.constant 0 : index
      %16 = vector.load %arg4[%c0_10, %c0_11] : memref<1x512xf32, #tpu.memory_space<vmem>>, vector<1x512xf32>
      %17 = vector.broadcast %16 : vector<1x512xf32> to vector<16x512xf32>
      %18 = arith.mulf %15, %17 : vector<16x512xf32>
      %c0_12 = arith.constant 0 : index
      %c0_13 = arith.constant 0 : index
      %19 = vector.load %arg5[%c0_12, %c0_13] : memref<1x512xf32, #tpu.memory_space<vmem>>, vector<1x512xf32>
      %20 = vector.broadcast %19 : vector<1x512xf32> to vector<16x512xf32>
      %21 = arith.addf %18, %20 : vector<16x512xf32>
      %c0_14 = arith.constant 0 : index
      %c0_15 = arith.constant 0 : index
      %22 = vector.load %arg6[%c0_14, %c0_15] : memref<16x512xf32, #tpu.memory_space<vmem>>, vector<16x512xf32>
      %23 = arith.addf %21, %22 : vector<16x512xf32>
      %cst_16 = arith.constant 0.000000e+00 : f32
      %24 = vector.broadcast %cst_16 : f32 to vector<16x512xf32>
      %25 = arith.maximumf %23, %24 : vector<16x512xf32>
      %c0_17 = arith.constant 0 : index
      %c0_18 = arith.constant 0 : index
      %26 = vector.load %arg7[%c0_17, %c0_18] : memref<16x512xf32, #tpu.memory_space<vmem>>, vector<16x512xf32>
      tpu.vector_store %arg7[%c0_17, %c0_18], %25 {strides = array<i32>} : memref<16x512xf32, #tpu.memory_space<vmem>>, vector<16x512xf32>,
    } else {
    }
    return
  }
  func.func @transform_0(%arg0: i32, %arg1: i32) -> (i32, i32) {
    %c0_i32 = arith.constant 0 : i32
    return %arg0, %arg1 : i32, i32
  }
  func.func @transform_1(%arg0: i32, %arg1: i32) -> (i32, i32) {
    %c0_i32 = arith.constant 0 : i32
    %c0_i32_0 = arith.constant 0 : i32
    return %arg1, %c0_i32 : i32, i32
  }
  func.func @transform_2(%arg0: i32, %arg1: i32) -> (i32, i32) {
    %c0_i32 = arith.constant 0 : i32
    %c0_i32_0 = arith.constant 0 : i32
    %c0_i32_1 = arith.constant 0 : i32
    return %c0_i32, %c0_i32_0 : i32, i32
  }
  func.func @transform_3(%arg0: i32, %arg1: i32) -> (i32, i32) {
    %c0_i32 = arith.constant 0 : i32
    %c0_i32_0 = arith.constant 0 : i32
    %c0_i32_1 = arith.constant 0 : i32
    return %c0_i32, %c0_i32_0 : i32, i32
  }
  func.func @transform_4(%arg0: i32, %arg1: i32) -> (i32, i32) {
    %c0_i32 = arith.constant 0 : i32
    %c0_i32_0 = arith.constant 0 : i32
    return %arg0, %c0_i32 : i32, i32
  }
  func.func @transform_5(%arg0: i32, %arg1: i32) -> (i32, i32) {
    %c0_i32 = arith.constant 0 : i32
    %c0_i32_0 = arith.constant 0 : i32
    return %arg0, %c0_i32 : i32, i32
  }
}

module attributes {stable_mosaic.version = 11 : i64} {
  func.func @_mm_affine_kernel(%arg0: i32, %arg1: i32, %arg2: memref<16x256xbf16, #tpu.memory_space<vmem>>, %arg3: memref<256x512xbf16, #tpu.memory_space<vmem>>, %arg4: memref<1x512xf32, #tpu.memory_space<vmem>>, %arg5: memref<1x512xf32, #tpu.memory_space<vmem>>, %arg6: memref<16x512xf32, #tpu.memory_space<vmem>>) attributes {dimension_semantics = [#tpu.dimension_semantics<parallel>, #tpu.dimension_semantics<arbitrary>], iteration_bounds = array<i64: 1, 18>, scalar_prefetch = 0 : i64, scratch_operands = 0 : i64, tpu.core_type = #tpu.core_type<tc>, window_params = [{transform_indices = @transform_0, window_bounds = array<i64: 16, 256>}, {transform_indices = @transform_1, window_bounds = array<i64: 256, 512>}, {pipeline_mode = #tpu.pipeline_mode<synchronous>, transform_indices = @transform_2, window_bounds = array<i64: 1, 512>}, {pipeline_mode = #tpu.pipeline_mode<synchronous>, transform_indices = @transform_3, window_bounds = array<i64: 1, 512>}, {transform_indices = @transform_4, window_bounds = array<i64: 16, 512>}]} {
    %c0 = arith.constant 0 : index
    %c0_0 = arith.constant 0 : index
    %0 = vector.load %arg2[%c0, %c0_0] : memref<16x256xbf16, #tpu.memory_space<vmem>>, vector<16x256xbf16>
    %c0_1 = arith.constant 0 : index
    %c0_2 = arith.constant 0 : index
    %1 = vector.load %arg3[%c0_1, %c0_2] : memref<256x512xbf16, #tpu.memory_space<vmem>>, vector<256x512xbf16>
    %cst = arith.constant dense<0.000000e+00> : vector<16x512xf32>
    %2 = tpu.matmul %0, %1, %cst {dimension_numbers = #tpu.dot_dimension_numbers<[1], [0], [0], [1], [0, 0, 1, 1], [], []>} : vector<16x256xbf16>, vector<256x512xbf16>, vector<16x512xf32> -> vector<16x512xf32>
    %c0_i32 = arith.constant 0 : i32
    %3 = arith.cmpi eq, %arg1, %c0_i32 : i32
    %4 = arith.extui %3 : i1 to i32
    %c0_i32_3 = arith.constant 0 : i32
    %5 = arith.cmpi ne, %4, %c0_i32_3 : i32
    scf.if %5 {
      %c0_8 = arith.constant 0 : index
      %c0_9 = arith.constant 0 : index
      %14 = vector.load %arg6[%c0_8, %c0_9] : memref<16x512xf32, #tpu.memory_space<vmem>>, vector<16x512xf32>
      tpu.vector_store %arg6[%c0_8, %c0_9], %2 {strides = array<i32>} : memref<16x512xf32, #tpu.memory_space<vmem>>, vector<16x512xf32>,
    } else {
    }
    %c0_i32_4 = arith.constant 0 : i32
    %6 = arith.cmpi sgt, %arg1, %c0_i32_4 : i32
    %c17_i32 = arith.constant 17 : i32
    %7 = arith.cmpi slt, %arg1, %c17_i32 : i32
    %8 = arith.andi %6, %7 : i1
    %9 = arith.extui %8 : i1 to i32
    %c0_i32_5 = arith.constant 0 : i32
    %10 = arith.cmpi ne, %9, %c0_i32_5 : i32
    scf.if %10 {
      %c0_8 = arith.constant 0 : index
      %c0_9 = arith.constant 0 : index
      %14 = vector.load %arg6[%c0_8, %c0_9] : memref<16x512xf32, #tpu.memory_space<vmem>>, vector<16x512xf32>
      %15 = arith.addf %14, %2 : vector<16x512xf32>
      %c0_10 = arith.constant 0 : index
      %c0_11 = arith.constant 0 : index
      %16 = vector.load %arg6[%c0_10, %c0_11] : memref<16x512xf32, #tpu.memory_space<vmem>>, vector<16x512xf32>
      tpu.vector_store %arg6[%c0_10, %c0_11], %15 {strides = array<i32>} : memref<16x512xf32, #tpu.memory_space<vmem>>, vector<16x512xf32>,
    } else {
    }
    %c17_i32_6 = arith.constant 17 : i32
    %11 = arith.cmpi eq, %arg1, %c17_i32_6 : i32
    %12 = arith.extui %11 : i1 to i32
    %c0_i32_7 = arith.constant 0 : i32
    %13 = arith.cmpi ne, %12, %c0_i32_7 : i32
    scf.if %13 {
      %c0_8 = arith.constant 0 : index
      %c0_9 = arith.constant 0 : index
      %14 = vector.load %arg6[%c0_8, %c0_9] : memref<16x512xf32, #tpu.memory_space<vmem>>, vector<16x512xf32>
      %15 = arith.addf %14, %2 : vector<16x512xf32>
      %c0_10 = arith.constant 0 : index
      %c0_11 = arith.constant 0 : index
      %16 = vector.load %arg4[%c0_10, %c0_11] : memref<1x512xf32, #tpu.memory_space<vmem>>, vector<1x512xf32>
      %17 = vector.broadcast %16 : vector<1x512xf32> to vector<16x512xf32>
      %18 = arith.mulf %15, %17 : vector<16x512xf32>
      %c0_12 = arith.constant 0 : index
      %c0_13 = arith.constant 0 : index
      %19 = vector.load %arg5[%c0_12, %c0_13] : memref<1x512xf32, #tpu.memory_space<vmem>>, vector<1x512xf32>
      %20 = vector.broadcast %19 : vector<1x512xf32> to vector<16x512xf32>
      %21 = arith.addf %18, %20 : vector<16x512xf32>
      %cst_14 = arith.constant 0.000000e+00 : f32
      %22 = vector.broadcast %cst_14 : f32 to vector<16x512xf32>
      %23 = arith.maximumf %21, %22 : vector<16x512xf32>
      %c0_15 = arith.constant 0 : index
      %c0_16 = arith.constant 0 : index
      %24 = vector.load %arg6[%c0_15, %c0_16] : memref<16x512xf32, #tpu.memory_space<vmem>>, vector<16x512xf32>
      tpu.vector_store %arg6[%c0_15, %c0_16], %23 {strides = array<i32>} : memref<16x512xf32, #tpu.memory_space<vmem>>, vector<16x512xf32>,
    } else {
    }
    return
  }
  func.func @transform_0(%arg0: i32, %arg1: i32) -> (i32, i32) {
    %c0_i32 = arith.constant 0 : i32
    return %arg0, %arg1 : i32, i32
  }
  func.func @transform_1(%arg0: i32, %arg1: i32) -> (i32, i32) {
    %c0_i32 = arith.constant 0 : i32
    %c0_i32_0 = arith.constant 0 : i32
    return %arg1, %c0_i32 : i32, i32
  }
  func.func @transform_2(%arg0: i32, %arg1: i32) -> (i32, i32) {
    %c0_i32 = arith.constant 0 : i32
    %c0_i32_0 = arith.constant 0 : i32
    %c0_i32_1 = arith.constant 0 : i32
    return %c0_i32, %c0_i32_0 : i32, i32
  }
  func.func @transform_3(%arg0: i32, %arg1: i32) -> (i32, i32) {
    %c0_i32 = arith.constant 0 : i32
    %c0_i32_0 = arith.constant 0 : i32
    %c0_i32_1 = arith.constant 0 : i32
    return %c0_i32, %c0_i32_0 : i32, i32
  }
  func.func @transform_4(%arg0: i32, %arg1: i32) -> (i32, i32) {
    %c0_i32 = arith.constant 0 : i32
    %c0_i32_0 = arith.constant 0 : i32
    return %arg0, %c0_i32 : i32, i32
  }
}

module attributes {stable_mosaic.version = 11 : i64} {
  func.func @_mm_affine_kernel(%arg0: i32, %arg1: i32, %arg2: memref<16x256xbf16, #tpu.memory_space<vmem>>, %arg3: memref<256x512xbf16, #tpu.memory_space<vmem>>, %arg4: memref<1x512xf32, #tpu.memory_space<vmem>>, %arg5: memref<1x512xf32, #tpu.memory_space<vmem>>, %arg6: memref<16x512xf32, #tpu.memory_space<vmem>>, %arg7: memref<16x512xf32, #tpu.memory_space<vmem>>) attributes {dimension_semantics = [#tpu.dimension_semantics<parallel>, #tpu.dimension_semantics<arbitrary>], iteration_bounds = array<i64: 1, 18>, scalar_prefetch = 0 : i64, scratch_operands = 0 : i64, tpu.core_type = #tpu.core_type<tc>, window_params = [{transform_indices = @transform_0, window_bounds = array<i64: 16, 256>}, {transform_indices = @transform_1, window_bounds = array<i64: 256, 512>}, {pipeline_mode = #tpu.pipeline_mode<synchronous>, transform_indices = @transform_2, window_bounds = array<i64: 1, 512>}, {pipeline_mode = #tpu.pipeline_mode<synchronous>, transform_indices = @transform_3, window_bounds = array<i64: 1, 512>}, {transform_indices = @transform_4, window_bounds = array<i64: 16, 512>}, {transform_indices = @transform_5, window_bounds = array<i64: 16, 512>}]} {
    %c0 = arith.constant 0 : index
    %c0_0 = arith.constant 0 : index
    %0 = vector.load %arg2[%c0, %c0_0] : memref<16x256xbf16, #tpu.memory_space<vmem>>, vector<16x256xbf16>
    %c0_1 = arith.constant 0 : index
    %c0_2 = arith.constant 0 : index
    %1 = vector.load %arg3[%c0_1, %c0_2] : memref<256x512xbf16, #tpu.memory_space<vmem>>, vector<256x512xbf16>
    %cst = arith.constant dense<0.000000e+00> : vector<16x512xf32>
    %2 = tpu.matmul %0, %1, %cst {dimension_numbers = #tpu.dot_dimension_numbers<[1], [0], [0], [1], [0, 0, 1, 1], [], []>} : vector<16x256xbf16>, vector<256x512xbf16>, vector<16x512xf32> -> vector<16x512xf32>
    %c0_i32 = arith.constant 0 : i32
    %3 = arith.cmpi eq, %arg1, %c0_i32 : i32
    %4 = arith.extui %3 : i1 to i32
    %c0_i32_3 = arith.constant 0 : i32
    %5 = arith.cmpi ne, %4, %c0_i32_3 : i32
    scf.if %5 {
      %c0_8 = arith.constant 0 : index
      %c0_9 = arith.constant 0 : index
      %14 = vector.load %arg7[%c0_8, %c0_9] : memref<16x512xf32, #tpu.memory_space<vmem>>, vector<16x512xf32>
      tpu.vector_store %arg7[%c0_8, %c0_9], %2 {strides = array<i32>} : memref<16x512xf32, #tpu.memory_space<vmem>>, vector<16x512xf32>,
    } else {
    }
    %c0_i32_4 = arith.constant 0 : i32
    %6 = arith.cmpi sgt, %arg1, %c0_i32_4 : i32
    %c17_i32 = arith.constant 17 : i32
    %7 = arith.cmpi slt, %arg1, %c17_i32 : i32
    %8 = arith.andi %6, %7 : i1
    %9 = arith.extui %8 : i1 to i32
    %c0_i32_5 = arith.constant 0 : i32
    %10 = arith.cmpi ne, %9, %c0_i32_5 : i32
    scf.if %10 {
      %c0_8 = arith.constant 0 : index
      %c0_9 = arith.constant 0 : index
      %14 = vector.load %arg7[%c0_8, %c0_9] : memref<16x512xf32, #tpu.memory_space<vmem>>, vector<16x512xf32>
      %15 = arith.addf %14, %2 : vector<16x512xf32>
      %c0_10 = arith.constant 0 : index
      %c0_11 = arith.constant 0 : index
      %16 = vector.load %arg7[%c0_10, %c0_11] : memref<16x512xf32, #tpu.memory_space<vmem>>, vector<16x512xf32>
      tpu.vector_store %arg7[%c0_10, %c0_11], %15 {strides = array<i32>} : memref<16x512xf32, #tpu.memory_space<vmem>>, vector<16x512xf32>,
    } else {
    }
    %c17_i32_6 = arith.constant 17 : i32
    %11 = arith.cmpi eq, %arg1, %c17_i32_6 : i32
    %12 = arith.extui %11 : i1 to i32
    %c0_i32_7 = arith.constant 0 : i32
    %13 = arith.cmpi ne, %12, %c0_i32_7 : i32
    scf.if %13 {
      %c0_8 = arith.constant 0 : index
      %c0_9 = arith.constant 0 : index
      %14 = vector.load %arg7[%c0_8, %c0_9] : memref<16x512xf32, #tpu.memory_space<vmem>>, vector<16x512xf32>
      %15 = arith.addf %14, %2 : vector<16x512xf32>
      %c0_10 = arith.constant 0 : index
      %c0_11 = arith.constant 0 : index
      %16 = vector.load %arg4[%c0_10, %c0_11] : memref<1x512xf32, #tpu.memory_space<vmem>>, vector<1x512xf32>
      %17 = vector.broadcast %16 : vector<1x512xf32> to vector<16x512xf32>
      %18 = arith.mulf %15, %17 : vector<16x512xf32>
      %c0_12 = arith.constant 0 : index
      %c0_13 = arith.constant 0 : index
      %19 = vector.load %arg5[%c0_12, %c0_13] : memref<1x512xf32, #tpu.memory_space<vmem>>, vector<1x512xf32>
      %20 = vector.broadcast %19 : vector<1x512xf32> to vector<16x512xf32>
      %21 = arith.addf %18, %20 : vector<16x512xf32>
      %c0_14 = arith.constant 0 : index
      %c0_15 = arith.constant 0 : index
      %22 = vector.load %arg6[%c0_14, %c0_15] : memref<16x512xf32, #tpu.memory_space<vmem>>, vector<16x512xf32>
      %23 = arith.addf %21, %22 : vector<16x512xf32>
      %cst_16 = arith.constant 0.000000e+00 : f32
      %24 = vector.broadcast %cst_16 : f32 to vector<16x512xf32>
      %25 = arith.maximumf %23, %24 : vector<16x512xf32>
      %c0_17 = arith.constant 0 : index
      %c0_18 = arith.constant 0 : index
      %26 = vector.load %arg7[%c0_17, %c0_18] : memref<16x512xf32, #tpu.memory_space<vmem>>, vector<16x512xf32>
      tpu.vector_store %arg7[%c0_17, %c0_18], %25 {strides = array<i32>} : memref<16x512xf32, #tpu.memory_space<vmem>>, vector<16x512xf32>,
    } else {
    }
    return
  }
  func.func @transform_0(%arg0: i32, %arg1: i32) -> (i32, i32) {
    %c0_i32 = arith.constant 0 : i32
    return %arg0, %arg1 : i32, i32
  }
  func.func @transform_1(%arg0: i32, %arg1: i32) -> (i32, i32) {
    %c0_i32 = arith.constant 0 : i32
    %c0_i32_0 = arith.constant 0 : i32
    return %arg1, %c0_i32 : i32, i32
  }
  func.func @transform_2(%arg0: i32, %arg1: i32) -> (i32, i32) {
    %c0_i32 = arith.constant 0 : i32
    %c0_i32_0 = arith.constant 0 : i32
    %c0_i32_1 = arith.constant 0 : i32
    return %c0_i32, %c0_i32_0 : i32, i32
  }
  func.func @transform_3(%arg0: i32, %arg1: i32) -> (i32, i32) {
    %c0_i32 = arith.constant 0 : i32
    %c0_i32_0 = arith.constant 0 : i32
    %c0_i32_1 = arith.constant 0 : i32
    return %c0_i32, %c0_i32_0 : i32, i32
  }
  func.func @transform_4(%arg0: i32, %arg1: i32) -> (i32, i32) {
    %c0_i32 = arith.constant 0 : i32
    %c0_i32_0 = arith.constant 0 : i32
    return %arg0, %c0_i32 : i32, i32
  }
  func.func @transform_5(%arg0: i32, %arg1: i32) -> (i32, i32) {
    %c0_i32 = arith.constant 0 : i32
    %c0_i32_0 = arith.constant 0 : i32
    return %arg0, %c0_i32 : i32, i32
  }
}

</mosaic_0001>

<bundles_post_ra>
// kernel: alzheimer_resnet_forward.20
= control target key start
LH: loop header
LB: loop body
LE: loop exit
PB: predicated region body
PF: predicated region fallthrough
CT: control target
= control target key end

     0   :  { %s1286_s15 = smov 0   ;;  %s1288_s16 = smov 0   ;;  %s1584_s0 = inlined_call_operand.vmem [shape: bf16[512,160], index: 0, kind: input, shape index: {}]   ;;  %s1585_s1 = inlined_call_operand.vmem [shape: bf16[160,64], index: 1, kind: input, shape index: {}]   ;;  %s1586_s2 = inlined_call_operand.vmem [shape: f32[1,64], index: 2, kind: input, shape index: {}]   ;;  %s1587_s3 = inlined_call_operand.vmem [shape: f32[1,64], index: 3, kind: input, shape index: {}]   ;;  %s1588_s4 = inlined_call_operand.vmem [shape: f32[512,64], index: 4, kind: output, shape index: {}]  }
   0x1   :  { %s1290_s17 = smov 0  }
   0x2 LB: > { %s26_s18 = sadd.s32 1, %s1255_s16  ;;  %p966_p0 = scmp.ge.s32.totalorder %s1259_s17, 1  ;;  %s1259_s17 = sphi %s1290_s17, %s14_s17   ;;  %s1255_s16 = sphi %s1288_s16, %s1590_s16   ;;  %s1251_s15 = sphi %s1286_s15, %s1589_s15  }
   0x3   : > { %p28_p1 = scmp.ge.s32.totalorder %s26_s18, 2  ;;  %p194_p2 = scmp.lt.s32.totalorder %s1259_s17, 3 }
   0x5   : > { %s1592_s18 = smov (%p28_p1, %s26_s18), 0  ;;  %p195_p3 = pnand %p966_p0, %p194_p2 }
   0x6   : > { %s967_s23 = sshll.u32 (!%p195_p3), %s1251_s15, 5 }
   0x7   : > { %198 = sbr.rel (%p195_p3) target bundleno = 306 (0x132), region = 36  ;;  %p232_p4 = scmp.lt.s32.totalorder (!%p195_p3), %s967_s23, 63 }
   0xc   : > { %v1198_v0 = vld [vmem:[%s1585_s1 + $0x38] sm:$0xff]  ;;  %v1200_v1 = vld [vmem:[%s1585_s1 + $0x48] sm:$0xff]  ;;  %v1197_v2 = vld [vmem:[%s1585_s1 + $0x30] sm:$0xff]  ;;  %s1594_s23 = smov (!%p232_p4, %s967_s23), 63  ;;  %vm511_vm0 = vcmask 261120   ;;  %vm842_vm1 = vcmask 523264  }
   0xd   : > { %560 = vmatpush.bf16.msra.mxu0 %v1198_v0  ;;  %1201 = vmatpush.bf16.msra.mxu2 %v1198_v0  ;;  %v1199_v3 = vld [vmem:[%s1585_s1 + $0x40] sm:$0xff]  ;;  %s1158_s28 = sshll.u32 %s1594_s23, 3  ;;  %v1196_v4 = vld [vmem:[%s1585_s1 + $0x28] sm:$0xff]  ;;  %v1194_v12 = vld [vmem:[%s1585_s1 + $0x18] sm:$0xff] }
   0xe   : > { %655 = vmatpush.bf16.msra.mxu1 %v1200_v1  ;;  %1209 = vmatpush.bf16.msra.mxu3 %v1200_v1  ;;  %s1324_s5 = scalar_lea.vmem %s1584_s0, %s1158_s28  ;;  %v1195_v8 = vld [vmem:[%s1585_s1 + $0x20] sm:$0xff]  ;;  %v1193_v13 = vld [vmem:[%s1585_s1 + $0x10] sm:$0xff]  ;;  %v1192_v17 = vld [vmem:[%s1585_s1 + $0x8] sm:$0xff]  ;;  %s1441_s29 = scalar_lea.vmem %s1588_s4, %s1158_s28 }
   0xf   : > { %v1159_v5 = vld [vmem:[%s1324_s5 + $0x4] sm:$0xf]  ;;  %v976_v6 = vld [vmem:[%s1324_s5 + $0x8] sm:$0xf0]  ;;  %v1177_v9 = vld [vmem:[%s1324_s5 + $0x94] sm:$0xf] }
  0x10   : > { %v979_v7 = vor.u32 %v1159_v5, %v976_v6  ;;  %v1048_v10 = vld [vmem:[%s1324_s5 + $0x98] sm:$0xf0]  ;;  %v1161_v14 = vld [vmem:[%s1324_s5 + $0x14] sm:$0xf]  ;;  %v1179_v18 = vld [vmem:[%s1324_s5 + $0xa4] sm:$0xf] }
  0x11   : > { %561 = vmatpush.bf16.msra.mxu0 %v1197_v2  ;;  %1202 = vmatpush.bf16.msra.mxu2 %v1197_v2  ;;  %v1051_v11 = vor.u32 %v1177_v9, %v1048_v10  ;;  %v984_v15 = vld [vmem:[%s1324_s5 + $0x18] sm:$0xf0]  ;;  %v1056_v19 = vld [vmem:[%s1324_s5 + $0xa8] sm:$0xf0]  ;;  %v1191_v21 = vld [vmem:[%s1585_s1] sm:$0xff] }
  0x12   : > { %656 = vmatpush.bf16.msra.mxu1 %v1199_v3  ;;  %1210 = vmatpush.bf16.msra.mxu3 %v1199_v3  ;;  %v987_v16 = vor.u32 %v1161_v14, %v984_v15  ;;  %v1059_v20 = vor.u32 %v1179_v18, %v1056_v19  ;;  %v974_v22 = vld [vmem:[%s1324_s5] sm:$0xf]  ;;  %v1160_v23 = vld [vmem:[%s1324_s5 + $0x4] sm:$0xf0]  ;;  %v1163_v28 = vld [vmem:[%s1324_s5 + $0x24] sm:$0xf] }
  0x13   : > { %v1038_v24 = vld [vmem:[%s1324_s5 + $0x80] sm:$0xf]  ;;  %v1176_v25 = vld [vmem:[%s1324_s5 + $0x84] sm:$0xf0]  ;;  %v975_v26 = vor.u32 %v1160_v23, %v974_v22  ;;  %v992_v29 = vld [vmem:[%s1324_s5 + $0x28] sm:$0xf0] }
  0x14   : > { %v1039_v27 = vor.u32 %v1176_v25, %v1038_v24  ;;  %v995_v30 = vor.u32 %v1163_v28, %v992_v29  ;;  %v1181_v31 = vld [vmem:[%s1324_s5 + $0xb4] sm:$0xf]  ;;  %v1064_v32 = vld [vmem:[%s1324_s5 + $0xb8] sm:$0xf0]  ;;  %v982_v34 = vld [vmem:[%s1324_s5 + $0x10] sm:$0xf] }
  0x15   : > { %1140 = vmatmul.msk.bf16.vlgmr.msra.gmra.mxu1 %vm511_vm0, %v979_v7  ;;  %562 = vmatpush.bf16.msra.mxu0 %v1196_v4  ;;  %v1067_v33 = vor.u32 %v1181_v31, %v1064_v32  ;;  %v1162_v35 = vld [vmem:[%s1324_s5 + $0x14] sm:$0xf0]  ;;  %v1046_v36 = vld [vmem:[%s1324_s5 + $0x90] sm:$0xf]  ;;  %v1165_v40 = vld [vmem:[%s1324_s5 + $0x34] sm:$0xf] }
  0x16   : > { %1203 = vmatpush.bf16.msra.mxu2 %v1196_v4  ;;  %1149 = vmatmul.msk.bf16.vlgmr.msra.gmra.mxu3 %vm511_vm0, %v1051_v11  ;;  %v1178_v37 = vld [vmem:[%s1324_s5 + $0x94] sm:$0xf0]  ;;  %v983_v38 = vor.u32 %v1162_v35, %v982_v34  ;;  %v1000_v41 = vld [vmem:[%s1324_s5 + $0x38] sm:$0xf0]  ;;  %v1183_v43 = vld [vmem:[%s1324_s5 + $0xc4] sm:$0xf] }
  0x17   : > { %v1047_v39 = vor.u32 %v1178_v37, %v1046_v36  ;;  %v1003_v42 = vor.u32 %v1165_v40, %v1000_v41  ;;  %v1072_v44 = vld [vmem:[%s1324_s5 + $0xc8] sm:$0xf0]  ;;  %v990_v46 = vld [vmem:[%s1324_s5 + $0x20] sm:$0xf]  ;;  %v1164_v47 = vld [vmem:[%s1324_s5 + $0x24] sm:$0xf0] }
  0x18   : > { %v1075_v45 = vor.u32 %v1183_v43, %v1072_v44  ;;  %v1054_v48 = vld [vmem:[%s1324_s5 + $0xa0] sm:$0xf]  ;;  %v1180_v49 = vld [vmem:[%s1324_s5 + $0xa4] sm:$0xf0]  ;;  %v991_v50 = vor.u32 %v1164_v47, %v990_v46  ;;  %v1167_v52 = vld [vmem:[%s1324_s5 + $0x44] sm:$0xf] }
  0x19   : > { %563 = vmatpush.bf16.msra.mxu0 %v1195_v8  ;;  %v1055_v51 = vor.u32 %v1180_v49, %v1054_v48  ;;  %v1008_v53 = vld [vmem:[%s1324_s5 + $0x48] sm:$0xf0]  ;;  %v1185_v55 = vld [vmem:[%s1324_s5 + $0xd4] sm:$0xf]  ;;  %v1080_v56 = vld [vmem:[%s1324_s5 + $0xd8] sm:$0xf0] }
  0x1a   : > { %1204 = vmatpush.bf16.msra.mxu2 %v1195_v8  ;;  %v1011_v54 = vor.u32 %v1167_v52, %v1008_v53  ;;  %v1083_v57 = vor.u32 %v1185_v55, %v1080_v56  ;;  %v998_v58 = vld [vmem:[%s1324_s5 + $0x30] sm:$0xf]  ;;  %v1166_v59 = vld [vmem:[%s1324_s5 + $0x34] sm:$0xf0]  ;;  %v1169_v0 = vld [vmem:[%s1324_s5 + $0x54] sm:$0xf] }
  0x1b   : > { %v1062_v60 = vld [vmem:[%s1324_s5 + $0xb0] sm:$0xf]  ;;  %v1182_v61 = vld [vmem:[%s1324_s5 + $0xb4] sm:$0xf0]  ;;  %v999_v62 = vor.u32 %v1166_v59, %v998_v58  ;;  %v1016_v1 = vld [vmem:[%s1324_s5 + $0x58] sm:$0xf0] }
  0x1c   : > { %v1063_v63 = vor.u32 %v1182_v61, %v1062_v60  ;;  %v1019_v2 = vor.u32 %v1169_v0, %v1016_v1  ;;  %v1187_v3 = vld [vmem:[%s1324_s5 + $0xe4] sm:$0xf]  ;;  %v1088_v4 = vld [vmem:[%s1324_s5 + $0xe8] sm:$0xf0]  ;;  %v1006_v6 = vld [vmem:[%s1324_s5 + $0x40] sm:$0xf] }
  0x1d   : > { %564 = vmatpush.bf16.msra.mxu0 %v1194_v12  ;;  %v1091_v5 = vor.u32 %v1187_v3, %v1088_v4  ;;  %v1168_v7 = vld [vmem:[%s1324_s5 + $0x44] sm:$0xf0]  ;;  %v1070_v8 = vld [vmem:[%s1324_s5 + $0xc0] sm:$0xf]  ;;  %v1189_v15 = vld [vmem:[%s1324_s5 + $0xf4] sm:$0xf] }
  0x1e   : > { %1205 = vmatpush.bf16.msra.mxu2 %v1194_v12  ;;  %v1184_v9 = vld [vmem:[%s1324_s5 + $0xc4] sm:$0xf0]  ;;  %v1007_v10 = vor.u32 %v1168_v7, %v1006_v6  ;;  %v1171_v12 = vld [vmem:[%s1324_s5 + $0x64] sm:$0xf]  ;;  %v1014_v18 = vld [vmem:[%s1324_s5 + $0x50] sm:$0xf] }
  0x1f   : > { %v1071_v11 = vor.u32 %v1184_v9, %v1070_v8  ;;  %v1170_v19 = vld [vmem:[%s1324_s5 + $0x54] sm:$0xf0]  ;;  %v1173_v24 = vld [vmem:[%s1324_s5 + $0x74] sm:$0xf]  ;;  %v1032_v25 = vld [vmem:[%s1324_s5 + $0x78] sm:$0xf0] }
  0x20   : > { %v1015_v22 = vor.u32 %v1170_v19, %v1014_v18  ;;  %v1172_v28 = vld [vmem:[%s1324_s5 + $0x64] sm:$0xf0]  ;;  %v1086_v29 = vld [vmem:[%s1324_s5 + $0xe0] sm:$0xf]  ;;  %v1040_v34 = vld [vmem:[%s1324_s5 + $0x88] sm:$0xf0] }
  0x21   : > { %565 = vmatpush.bf16.msra.mxu0 %v1193_v13  ;;  %v1030_v37 = vld [vmem:[%s1324_s5 + $0x70] sm:$0xf]  ;;  %v1190_v40 = vld [vmem:[%s1324_s5 + $0xf4] sm:$0xf0]  ;;  %v1427_v46 = vld [vmem:[%s1586_s2] ss:$0 sm:$0xff] }
  0x22   : > { %1206 = vmatpush.bf16.msra.mxu2 %v1193_v13  ;;  %v1024_v13 = vld [vmem:[%s1324_s5 + $0x68] sm:$0xf0]  ;;  %v1432_v49 = vld [vmem:[%s1587_s3] ss:$0 sm:$0xff] }
  0x23   : > { %v1027_v14 = vor.u32 %v1171_v12, %v1024_v13 }
  0x25   : > { %1141 = vmatmul.msk.bf16.gmra.mxu1 %vm511_vm0, %v987_v16  ;;  %566 = vmatpush.bf16.msra.mxu0 %v1192_v17  ;;  %v1096_v16 = vld [vmem:[%s1324_s5 + $0xf8] sm:$0xf0] }
  0x26   : > { %1207 = vmatpush.bf16.msra.mxu2 %v1192_v17  ;;  %1150 = vmatmul.msk.bf16.gmra.mxu3 %vm511_vm0, %v1059_v20  ;;  %v1099_v17 = vor.u32 %v1189_v15, %v1096_v16  ;;  %v1078_v20 = vld [vmem:[%s1324_s5 + $0xd0] sm:$0xf] }
  0x29   : > { %567 = vmatpush.bf16.msra.mxu0 %v1191_v21 }
  0x2a   : > { %1208 = vmatpush.bf16.msra.mxu2 %v1191_v21  ;;  %v1186_v21 = vld [vmem:[%s1324_s5 + $0xd4] sm:$0xf0] }
  0x2b   : > { %v1079_v23 = vor.u32 %v1186_v21, %v1078_v20 }
  0x2c   : > { %568 = vmatmul.bf16.vlgmr.msra.gmra.mxu0 %v975_v26  ;;  %v1035_v26 = vor.u32 %v1173_v24, %v1032_v25 }
  0x2d   : > { %608 = vmatmul.bf16.vlgmr.msra.gmra.mxu2 %v1039_v27  ;;  %v1022_v27 = vld [vmem:[%s1324_s5 + $0x60] sm:$0xf] }
  0x2e   : > { %v1023_v31 = vor.u32 %v1172_v28, %v1022_v27 }
  0x35   : > { %1142 = vmatmul.msk.bf16.gmra.mxu1 %vm511_vm0, %v995_v30  ;;  %v1188_v30 = vld [vmem:[%s1324_s5 + $0xe4] sm:$0xf0] }
  0x36   : > { %1151 = vmatmul.msk.bf16.gmra.mxu3 %vm511_vm0, %v1067_v33  ;;  %v1087_v32 = vor.u32 %v1188_v30, %v1086_v29  ;;  %v1175_v33 = vld [vmem:[%s1324_s5 + $0x84] sm:$0xf] }
  0x37   : > { %v1043_v35 = vor.u32 %v1175_v33, %v1040_v34 }
  0x3c   : > { %573 = vmatmul.bf16.gmra.mxu0 %v983_v38  ;;  %v1174_v38 = vld [vmem:[%s1324_s5 + $0x74] sm:$0xf0] }
  0x3d   : > { %613 = vmatmul.bf16.gmra.mxu2 %v1047_v39  ;;  %v1094_v39 = vld [vmem:[%s1324_s5 + $0xf0] sm:$0xf]  ;;  %v1031_v41 = vor.u32 %v1174_v38, %v1030_v37 }
  0x45   : > { %1143 = vmatmul.msk.bf16.gmra.mxu1 %vm511_vm0, %v1003_v42  ;;  %v1095_v42 = vor.u32 %v1190_v40, %v1094_v39 }
  0x46   : > { %1152 = vmatmul.msk.bf16.gmra.mxu3 %vm511_vm0, %v1075_v45 }
  0x4c   : > { %578 = vmatmul.bf16.gmra.mxu0 %v991_v50 }
  0x4d   : > { %618 = vmatmul.bf16.gmra.mxu2 %v1055_v51 }
  0x55   : > { %1144 = vmatmul.msk.bf16.gmra.mxu1 %vm511_vm0, %v1011_v54 }
  0x56   : > { %1153 = vmatmul.msk.bf16.gmra.mxu3 %vm511_vm0, %v1083_v57 }
  0x5c   : > { %583 = vmatmul.bf16.gmra.mxu0 %v999_v62 }
  0x5d   : > { %623 = vmatmul.bf16.gmra.mxu2 %v1063_v63 }
  0x65   : > { %1145 = vmatmul.msk.bf16.gmra.mxu1 %vm511_vm0, %v1019_v2 }
  0x66   : > { %1154 = vmatmul.msk.bf16.gmra.mxu3 %vm511_vm0, %v1091_v5 }
  0x6c   : > { %588 = vmatmul.bf16.gmra.mxu0 %v1007_v10 }
  0x6d   : > { %628 = vmatmul.bf16.gmra.mxu2 %v1071_v11 }
  0x75   : > { %1146 = vmatmul.msk.bf16.gmra.mxu1 %vm511_vm0, %v1027_v14 }
  0x76   : > { %1155 = vmatmul.msk.bf16.gmra.mxu3 %vm511_vm0, %v1099_v17 }
  0x7c   : > { %593 = vmatmul.bf16.gmra.mxu0 %v1015_v22 }
  0x7d   : > { %633 = vmatmul.bf16.gmra.mxu2 %v1079_v23 }
  0x85   : > { %1147 = vmatmul.msk.bf16.gmra.mxu1 %vm511_vm0, %v1035_v26 }
  0x8c   : > { %598 = vmatmul.bf16.gmra.mxu0 %v1023_v31 }
  0x8d   : > { %638 = vmatmul.bf16.gmra.mxu2 %v1087_v32 }
  0x92   : > { %v658_v36 = vpop.f32.mrf.mxu1 }
  0x95   : > { %1148 = vmatmul.msk.bf16.gmra.mxu1 %vm511_vm0, %v1043_v35 }
  0x99   : > { %v703_v45 = vpop.f32.mrf.mxu3 }
  0x9a   : > { %v660_v43 = vpop.f32.mrf.mxu1 }
  0x9c   : > { %603 = vmatmul.bf16.gmra.mxu0 %v1031_v41 }
  0x9d   : > { %643 = vmatmul.bf16.gmra.mxu2 %v1095_v42 }
  0xa1   : > { %v705_v55 = vpop.f32.mrf.mxu3 }
  0xa2   : > { %v663_v44 = vpop.f32.mrf.mxu1 }
  0xa9   : > { %v569_v47 = vpop.f32.mrf.mxu0  ;;  %v708_v2 = vpop.f32.mrf.mxu3 }
  0xaa   : > { %v659_v48 = vadd.f32 %v658_v36, %v569_v47  ;;  %v665_v50 = vpop.f32.mrf.mxu1 }
  0xac   : > { %v742_v51 = vmul.f32 %v1427_v46, %v659_v48 }
  0xae   : > { %v778_v52 = vadd.f32 %v1432_v49, %v742_v51 }
  0xb0   : > { %v810_v53 = vmax.f32 %v778_v52, 0.0  ;;  %v1443_v54 = vpop.f32.mrf.mxu2 }
  0xb1   : > { %v571_v56 = vpop.f32.mrf.mxu0  ;;  %v710_v13 = vpop.f32.mrf.mxu3 }
  0xb2   : > { %843 = vst.msk [vmem:[%s1441_s29] sm:$0xff] %vm842_vm1, %v810_v53  ;;  %v661_v57 = vadd.f32 %v660_v43, %v571_v56  ;;  %v668_v58 = vpop.f32.mrf.mxu1 }
  0xb4   : > { %v743_v59 = vmul.f32 %v1427_v46, %v661_v57 }
  0xb6   : > { %v779_v60 = vadd.f32 %v1432_v49, %v743_v59 }
  0xb8   : > { %v811_v61 = vmax.f32 %v779_v60, 0.0  ;;  %v1449_v62 = vpop.f32.mrf.mxu2 }
  0xb9   : > { %v574_v63 = vpop.f32.mrf.mxu0  ;;  %v713_v27 = vpop.f32.mrf.mxu3 }
  0xba   : > { %844 = vst.msk [vmem:[%s1441_s29 + $0x8] sm:$0xff] %vm842_vm1, %v811_v61  ;;  %v664_v0 = vadd.f32 %v663_v44, %v574_v63  ;;  %v670_v1 = vpop.f32.mrf.mxu1 }
  0xbc   : > { %v744_v3 = vmul.f32 %v1427_v46, %v664_v0 }
  0xbe   : > { %v780_v4 = vadd.f32 %v1432_v49, %v744_v3 }
  0xc0   : > { %v812_v5 = vmax.f32 %v780_v4, 0.0  ;;  %v614_v6 = vpop.f32.mrf.mxu2 }
  0xc1   : > { %v704_v7 = vadd.f32 %v703_v45, %v614_v6  ;;  %v576_v8 = vpop.f32.mrf.mxu0  ;;  %v715_v42 = vpop.f32.mrf.mxu3 }
  0xc2   : > { %845 = vst.msk [vmem:[%s1441_s29 + $0x10] sm:$0xff] %vm842_vm1, %v812_v5  ;;  %v666_v9 = vadd.f32 %v665_v50, %v576_v8  ;;  %v673_v10 = vpop.f32.mrf.mxu1 }
  0xc3   : > { %v760_v11 = vmul.f32 %v1427_v46, %v704_v7 }
  0xc4   : > { %v745_v12 = vmul.f32 %v1427_v46, %v666_v9 }
  0xc5   : > { %v796_v14 = vadd.f32 %v1432_v49, %v760_v11 }
  0xc6   : > { %v781_v15 = vadd.f32 %v1432_v49, %v745_v12 }
  0xc7   : > { %v828_v16 = vmax.f32 %v796_v14, 0.0 }
  0xc8   : > { %v813_v17 = vmax.f32 %v781_v15, 0.0  ;;  %v616_v18 = vpop.f32.mrf.mxu2 }
  0xc9   : > { %861 = vst.msk [vmem:[%s1441_s29 + $0x90] sm:$0xff] %vm842_vm1, %v828_v16  ;;  %v706_v19 = vadd.f32 %v705_v55, %v616_v18  ;;  %v579_v20 = vpop.f32.mrf.mxu0  ;;  %v718_v61 = vpop.f32.mrf.mxu3 }
  0xca   : > { %846 = vst.msk [vmem:[%s1441_s29 + $0x18] sm:$0xff] %vm842_vm1, %v813_v17  ;;  %v669_v21 = vadd.f32 %v668_v58, %v579_v20  ;;  %v675_v22 = vpop.f32.mrf.mxu1 }
  0xcb   : > { %v761_v23 = vmul.f32 %v1427_v46, %v706_v19 }
  0xcc   : > { %v746_v24 = vmul.f32 %v1427_v46, %v669_v21 }
  0xcd   : > { %v797_v25 = vadd.f32 %v1432_v49, %v761_v23 }
  0xce   : > { %v782_v26 = vadd.f32 %v1432_v49, %v746_v24 }
  0xcf   : > { %v829_v28 = vmax.f32 %v797_v25, 0.0 }
  0xd0   : > { %v814_v29 = vmax.f32 %v782_v26, 0.0  ;;  %v619_v30 = vpop.f32.mrf.mxu2 }
  0xd1   : > { %862 = vst.msk [vmem:[%s1441_s29 + $0x98] sm:$0xff] %vm842_vm1, %v829_v28  ;;  %v709_v31 = vadd.f32 %v708_v2, %v619_v30  ;;  %v581_v32 = vpop.f32.mrf.mxu0  ;;  %v720_v12 = vpop.f32.mrf.mxu3 }
  0xd2   : > { %847 = vst.msk [vmem:[%s1441_s29 + $0x20] sm:$0xff] %vm842_vm1, %v814_v29  ;;  %v671_v33 = vadd.f32 %v670_v1, %v581_v32  ;;  %v678_v34 = vpop.f32.mrf.mxu1 }
  0xd3   : > { %v762_v35 = vmul.f32 %v1427_v46, %v709_v31 }
  0xd4   : > { %v747_v36 = vmul.f32 %v1427_v46, %v671_v33 }
  0xd5   : > { %v798_v37 = vadd.f32 %v1432_v49, %v762_v35 }
  0xd6   : > { %v783_v38 = vadd.f32 %v1432_v49, %v747_v36 }
  0xd7   : > { %v830_v39 = vmax.f32 %v798_v37, 0.0 }
  0xd8   : > { %v815_v40 = vmax.f32 %v783_v38, 0.0  ;;  %v621_v41 = vpop.f32.mrf.mxu2 }
  0xd9   : > { %863 = vst.msk [vmem:[%s1441_s29 + $0xa0] sm:$0xff] %vm842_vm1, %v830_v39  ;;  %v711_v43 = vadd.f32 %v710_v13, %v621_v41  ;;  %v584_v44 = vpop.f32.mrf.mxu0  ;;  %v723_v26 = vpop.f32.mrf.mxu3 }
  0xda   : > { %848 = vst.msk [vmem:[%s1441_s29 + $0x28] sm:$0xff] %vm842_vm1, %v815_v40  ;;  %v674_v45 = vadd.f32 %v673_v10, %v584_v44  ;;  %v680_v47 = vpop.f32.mrf.mxu1 }
  0xdb   : > { %v763_v48 = vmul.f32 %v1427_v46, %v711_v43 }
  0xdc   : > { %v748_v50 = vmul.f32 %v1427_v46, %v674_v45 }
  0xdd   : > { %v799_v51 = vadd.f32 %v1432_v49, %v763_v48 }
  0xde   : > { %v784_v52 = vadd.f32 %v1432_v49, %v748_v50 }
  0xdf   : > { %v831_v53 = vmax.f32 %v799_v51, 0.0 }
  0xe0   : > { %v816_v55 = vmax.f32 %v784_v52, 0.0  ;;  %v624_v56 = vpop.f32.mrf.mxu2 }
  0xe1   : > { %864 = vst.msk [vmem:[%s1441_s29 + $0xa8] sm:$0xff] %vm842_vm1, %v831_v53  ;;  %v714_v57 = vadd.f32 %v713_v27, %v624_v56  ;;  %v586_v58 = vpop.f32.mrf.mxu0  ;;  %v725_v41 = vpop.f32.mrf.mxu3 }
  0xe2   : > { %849 = vst.msk [vmem:[%s1441_s29 + $0x30] sm:$0xff] %vm842_vm1, %v816_v55  ;;  %v676_v59 = vadd.f32 %v675_v22, %v586_v58  ;;  %v683_v60 = vpop.f32.mrf.mxu1 }
  0xe3   : > { %v764_v63 = vmul.f32 %v1427_v46, %v714_v57 }
  0xe4   : > { %v749_v0 = vmul.f32 %v1427_v46, %v676_v59 }
  0xe5   : > { %v800_v1 = vadd.f32 %v1432_v49, %v764_v63 }
  0xe6   : > { %v785_v2 = vadd.f32 %v1432_v49, %v749_v0 }
  0xe7   : > { %v832_v3 = vmax.f32 %v800_v1, 0.0 }
  0xe8   : > { %v817_v4 = vmax.f32 %v785_v2, 0.0  ;;  %v626_v5 = vpop.f32.mrf.mxu2 }
  0xe9   : > { %865 = vst.msk [vmem:[%s1441_s29 + $0xb0] sm:$0xff] %vm842_vm1, %v832_v3  ;;  %v716_v6 = vadd.f32 %v715_v42, %v626_v5  ;;  %v589_v7 = vpop.f32.mrf.mxu0  ;;  %v728_v58 = vpop.f32.mrf.mxu3 }
  0xea   : > { %850 = vst.msk [vmem:[%s1441_s29 + $0x38] sm:$0xff] %vm842_vm1, %v817_v4  ;;  %v679_v8 = vadd.f32 %v678_v34, %v589_v7  ;;  %v685_v9 = vpop.f32.mrf.mxu1 }
  0xeb   : > { %v765_v10 = vmul.f32 %v1427_v46, %v716_v6 }
  0xec   : > { %v750_v11 = vmul.f32 %v1427_v46, %v679_v8 }
  0xed   : > { %v801_v13 = vadd.f32 %v1432_v49, %v765_v10 }
  0xee   : > { %v786_v14 = vadd.f32 %v1432_v49, %v750_v11 }
  0xef   : > { %v833_v15 = vmax.f32 %v801_v13, 0.0 }
  0xf0   : > { %v818_v16 = vmax.f32 %v786_v14, 0.0  ;;  %v629_v17 = vpop.f32.mrf.mxu2 }
  0xf1   : > { %866 = vst.msk [vmem:[%s1441_s29 + $0xb8] sm:$0xff] %vm842_vm1, %v833_v15  ;;  %v719_v18 = vadd.f32 %v718_v61, %v629_v17  ;;  %v591_v19 = vpop.f32.mrf.mxu0  ;;  %v730_v11 = vpop.f32.mrf.mxu3 }
  0xf2   : > { %851 = vst.msk [vmem:[%s1441_s29 + $0x40] sm:$0xff] %vm842_vm1, %v818_v16  ;;  %v681_v20 = vadd.f32 %v680_v47, %v591_v19  ;;  %v688_v21 = vpop.f32.mrf.mxu1 }
  0xf3   : > { %v766_v22 = vmul.f32 %v1427_v46, %v719_v18 }
  0xf4   : > { %v751_v23 = vmul.f32 %v1427_v46, %v681_v20 }
  0xf5   : > { %v802_v24 = vadd.f32 %v1432_v49, %v766_v22 }
  0xf6   : > { %v787_v25 = vadd.f32 %v1432_v49, %v751_v23 }
  0xf7   : > { %v834_v27 = vmax.f32 %v802_v24, 0.0 }
  0xf8   : > { %v819_v28 = vmax.f32 %v787_v25, 0.0  ;;  %v631_v29 = vpop.f32.mrf.mxu2 }
  0xf9   : > { %867 = vst.msk [vmem:[%s1441_s29 + $0xc0] sm:$0xff] %vm842_vm1, %v834_v27  ;;  %v721_v30 = vadd.f32 %v720_v12, %v631_v29  ;;  %v594_v31 = vpop.f32.mrf.mxu0  ;;  %v733_v29 = vpop.f32.mrf.mxu3 }
  0xfa   : > { %852 = vst.msk [vmem:[%s1441_s29 + $0x48] sm:$0xff] %vm842_vm1, %v819_v28  ;;  %v684_v32 = vadd.f32 %v683_v60, %v594_v31  ;;  %v690_v33 = vpop.f32.mrf.mxu1 }
  0xfb   : > { %v767_v34 = vmul.f32 %v1427_v46, %v721_v30 }
  0xfc   : > { %v752_v35 = vmul.f32 %v1427_v46, %v684_v32 }
  0xfd   : > { %v803_v36 = vadd.f32 %v1432_v49, %v767_v34 }
  0xfe   : > { %v788_v37 = vadd.f32 %v1432_v49, %v752_v35 }
  0xff   : > { %v835_v38 = vmax.f32 %v803_v36, 0.0 }
 0x100   : > { %v820_v39 = vmax.f32 %v788_v37, 0.0  ;;  %v634_v40 = vpop.f32.mrf.mxu2 }
 0x101   : > { %868 = vst.msk [vmem:[%s1441_s29 + $0xc8] sm:$0xff] %vm842_vm1, %v835_v38  ;;  %v724_v42 = vadd.f32 %v723_v26, %v634_v40  ;;  %v596_v43 = vpop.f32.mrf.mxu0 }
 0x102   : > { %853 = vst.msk [vmem:[%s1441_s29 + $0x50] sm:$0xff] %vm842_vm1, %v820_v39  ;;  %v686_v44 = vadd.f32 %v685_v9, %v596_v43  ;;  %v693_v45 = vpop.f32.mrf.mxu1  ;;  %v735_v43 = vpop.f32.mrf.mxu3 }
 0x103   : > { %v768_v47 = vmul.f32 %v1427_v46, %v724_v42 }
 0x104   : > { %v753_v48 = vmul.f32 %v1427_v46, %v686_v44 }
 0x105   : > { %v804_v50 = vadd.f32 %v1432_v49, %v768_v47 }
 0x106   : > { %v789_v51 = vadd.f32 %v1432_v49, %v753_v48 }
 0x107   : > { %v836_v52 = vmax.f32 %v804_v50, 0.0 }
 0x108   : > { %v821_v53 = vmax.f32 %v789_v51, 0.0  ;;  %v636_v55 = vpop.f32.mrf.mxu2 }
 0x109   : > { %869 = vst.msk [vmem:[%s1441_s29 + $0xd0] sm:$0xff] %vm842_vm1, %v836_v52  ;;  %v726_v56 = vadd.f32 %v725_v41, %v636_v55  ;;  %v599_v57 = vpop.f32.mrf.mxu0 }
 0x10a   : > { %854 = vst.msk [vmem:[%s1441_s29 + $0x58] sm:$0xff] %vm842_vm1, %v821_v53  ;;  %v689_v59 = vadd.f32 %v688_v21, %v599_v57  ;;  %v695_v60 = vpop.f32.mrf.mxu1 }
 0x10b   : > { %v769_v61 = vmul.f32 %v1427_v46, %v726_v56 }
 0x10c   : > { %v754_v63 = vmul.f32 %v1427_v46, %v689_v59 }
 0x10d   : > { %v805_v0 = vadd.f32 %v1432_v49, %v769_v61 }
 0x10e   : > { %v790_v1 = vadd.f32 %v1432_v49, %v754_v63 }
 0x10f   : > { %v837_v2 = vmax.f32 %v805_v0, 0.0 }
 0x110   : > { %v822_v3 = vmax.f32 %v790_v1, 0.0  ;;  %v639_v4 = vpop.f32.mrf.mxu2 }
 0x111   : > { %870 = vst.msk [vmem:[%s1441_s29 + $0xd8] sm:$0xff] %vm842_vm1, %v837_v2  ;;  %v729_v5 = vadd.f32 %v728_v58, %v639_v4  ;;  %v601_v6 = vpop.f32.mrf.mxu0 }
 0x112   : > { %855 = vst.msk [vmem:[%s1441_s29 + $0x60] sm:$0xff] %vm842_vm1, %v822_v3  ;;  %v691_v7 = vadd.f32 %v690_v33, %v601_v6  ;;  %v698_v8 = vpop.f32.mrf.mxu1 }
 0x113   : > { %v770_v9 = vmul.f32 %v1427_v46, %v729_v5  ;;  %v699_v10 = vadd.f32 %v698_v8, %v1443_v54 }
 0x114   : > { %v755_v12 = vmul.f32 %v1427_v46, %v691_v7 }
 0x115   : > { %v806_v13 = vadd.f32 %v1432_v49, %v770_v9  ;;  %v758_v14 = vmul.f32 %v1427_v46, %v699_v10 }
 0x116   : > { %v791_v15 = vadd.f32 %v1432_v49, %v755_v12 }
 0x117   : > { %v838_v16 = vmax.f32 %v806_v13, 0.0  ;;  %v794_v17 = vadd.f32 %v1432_v49, %v758_v14 }
 0x118   : > { %v823_v18 = vmax.f32 %v791_v15, 0.0  ;;  %v641_v19 = vpop.f32.mrf.mxu2 }
 0x119   : > { %871 = vst.msk [vmem:[%s1441_s29 + $0xe0] sm:$0xff] %vm842_vm1, %v838_v16  ;;  %v826_v20 = vmax.f32 %v794_v17, 0.0  ;;  %v731_v21 = vadd.f32 %v730_v11, %v641_v19  ;;  %v604_v54 = vpop.f32.mrf.mxu0 }
 0x11a   : > { %856 = vst.msk [vmem:[%s1441_s29 + $0x68] sm:$0xff] %vm842_vm1, %v823_v18  ;;  %v694_v22 = vadd.f32 %v693_v45, %v604_v54  ;;  %v700_v23 = vpop.f32.mrf.mxu1 }
 0x11b   : > { %859 = vst.msk [vmem:[%s1441_s29 + $0x80] sm:$0xff] %vm842_vm1, %v826_v20  ;;  %v771_v24 = vmul.f32 %v1427_v46, %v731_v21  ;;  %v701_v25 = vadd.f32 %v700_v23, %v1449_v62 }
 0x11c   : > { %v756_v26 = vmul.f32 %v1427_v46, %v694_v22 }
 0x11d   : > { %v807_v27 = vadd.f32 %v1432_v49, %v771_v24  ;;  %v759_v28 = vmul.f32 %v1427_v46, %v701_v25 }
 0x11e   : > { %v792_v30 = vadd.f32 %v1432_v49, %v756_v26 }
 0x11f   : > { %v839_v31 = vmax.f32 %v807_v27, 0.0  ;;  %v795_v32 = vadd.f32 %v1432_v49, %v759_v28 }
 0x120   : > { %v824_v33 = vmax.f32 %v792_v30, 0.0  ;;  %v644_v34 = vpop.f32.mrf.mxu2 }
 0x121   : > { %872 = vst.msk [vmem:[%s1441_s29 + $0xe8] sm:$0xff] %vm842_vm1, %v839_v31  ;;  %v827_v35 = vmax.f32 %v795_v32, 0.0  ;;  %v734_v62 = vadd.f32 %v733_v29, %v644_v34  ;;  %v606_v36 = vpop.f32.mrf.mxu0 }
 0x122   : > { %857 = vst.msk [vmem:[%s1441_s29 + $0x70] sm:$0xff] %vm842_vm1, %v824_v33  ;;  %v696_v37 = vadd.f32 %v695_v60, %v606_v36 }
 0x123   : > { %860 = vst.msk [vmem:[%s1441_s29 + $0x88] sm:$0xff] %vm842_vm1, %v827_v35  ;;  %v772_v38 = vmul.f32 %v1427_v46, %v734_v62 }
 0x124   : > { %v757_v39 = vmul.f32 %v1427_v46, %v696_v37 }
 0x125   : > { %v808_v40 = vadd.f32 %v1432_v49, %v772_v38 }
 0x126   : > { %v793_v41 = vadd.f32 %v1432_v49, %v757_v39 }
 0x127   : > { %v840_v42 = vmax.f32 %v808_v40, 0.0 }
 0x128   : > { %v825_v44 = vmax.f32 %v793_v41, 0.0  ;;  %v646_v45 = vpop.f32.mrf.mxu2 }
 0x129   : > { %873 = vst.msk [vmem:[%s1441_s29 + $0xf0] sm:$0xff] %vm842_vm1, %v840_v42  ;;  %v736_v47 = vadd.f32 %v735_v43, %v646_v45 }
 0x12a   : > { %858 = vst.msk [vmem:[%s1441_s29 + $0x78] sm:$0xff] %vm842_vm1, %v825_v44 }
 0x12b   : > { %v773_v48 = vmul.f32 %v1427_v46, %v736_v47 }
 0x12d   : > { %v809_v50 = vadd.f32 %v1432_v49, %v773_v48 }
 0x12f   : > { %v841_v51 = vmax.f32 %v809_v50, 0.0 }
 0x131   : > { %874 = vst.msk [vmem:[%s1441_s29 + $0xf8] sm:$0xff] %vm842_vm1, %v841_v51 }
 0x132 PF: > { %s14_s17 = sadd.s32 1, %s1259_s17   ;;  %s1589_s15 = smov %s1255_s16 }
 0x133   : > { %p11_p5 = scmp.ge.s32.totalorder %s14_s17, 4   ;;  %s1590_s16 = smov %s1592_s18 }
 0x135   :  { %13 = sbr.rel (!%p11_p5) target bundleno = 2 (0x2), region = 69 }

// kernel: alzheimer_resnet_forward.21
= control target key start
LH: loop header
LB: loop body
LE: loop exit
PB: predicated region body
PF: predicated region fallthrough
CT: control target
= control target key end

     0   :  { %vm554_vm0 = vcmask 523264   ;;  %s1837_s1 = inlined_call_operand.vmem [shape: bf16[576,64], index: 1, kind: input, shape index: {}]   ;;  %s1838_s0 = inlined_call_operand.vmem [shape: bf16[128,576], index: 0, kind: input, shape index: {}]   ;;  %s1839_s2 = inlined_call_operand.vmem [shape: f32[1,64], index: 2, kind: input, shape index: {}]   ;;  %s1840_s3 = inlined_call_operand.vmem [shape: f32[1,64], index: 3, kind: input, shape index: {}]   ;;  %s1841_s4 = inlined_call_operand.vmem [shape: f32[128,64], index: 4, kind: output, shape index: {}]  }
   0x1   :  { %v1259_v0 = vld [vmem:[%s1837_s1 + $0x38] sm:$0xff]  ;;  %v1258_v1 = vld [vmem:[%s1837_s1 + $0x30] sm:$0xff]  ;;  %v1257_v2 = vld [vmem:[%s1837_s1 + $0x28] sm:$0xff] }
   0x2   :  { %1288 = vmatpush.bf16.msra.mxu1 %v1259_v0  ;;  %1289 = vmatpush.bf16.msra.mxu2 %v1259_v0  ;;  %v1256_v3 = vld [vmem:[%s1837_s1 + $0x20] sm:$0xff]  ;;  %v1255_v4 = vld [vmem:[%s1837_s1 + $0x18] sm:$0xff]  ;;  %v1254_v5 = vld [vmem:[%s1837_s1 + $0x10] sm:$0xff] }
   0x3   :  { %1290 = vmatpush.bf16.msra.mxu3 %v1259_v0  ;;  %579 = vmatpush.bf16.msra.mxu0 %v1259_v0  ;;  %v1253_v6 = vld [vmem:[%s1837_s1 + $0x8] sm:$0xff]  ;;  %v1252_v7 = vld [vmem:[%s1837_s1] sm:$0xff]  ;;  %v942_v8 = vld [vmem:[%s1838_s0 + $0x50] sm:$0xf] }
   0x4   :  { %v1224_v9 = vld [vmem:[%s1838_s0 + $0x60] sm:$0xf0]  ;;  %v982_v10 = vld [vmem:[%s1838_s0 + $0xa0] sm:$0xf]  ;;  %v1234_v11 = vld [vmem:[%s1838_s0 + $0xb0] sm:$0xf0] }
   0x5   :  { %v1022_v12 = vld [vmem:[%s1838_s0 + $0xf0] sm:$0xf]  ;;  %v1244_v13 = vld [vmem:[%s1838_s0 + $0x100] sm:$0xf0]  ;;  %v902_v14 = vld [vmem:[%s1838_s0] sm:$0xf]  ;;  %v943_v18 = vor.u32 %v1224_v9, %v942_v8  ;;  %v983_v19 = vor.u32 %v1234_v11, %v982_v10 }
   0x6   :  { %1291 = vmatpush.bf16.msra.mxu1 %v1258_v1  ;;  %1292 = vmatpush.bf16.msra.mxu2 %v1258_v1  ;;  %v1214_v15 = vld [vmem:[%s1838_s0 + $0x10] sm:$0xf0]  ;;  %v1275_v16 = vld [vmem:[%s1837_s1 + $0xb8] sm:$0xff]  ;;  %v1023_v20 = vor.u32 %v1244_v13, %v1022_v12  ;;  %v1273_v28 = vld [vmem:[%s1837_s1 + $0xa8] sm:$0xff] }
   0x7   :  { %1293 = vmatpush.bf16.msra.mxu3 %v1258_v1  ;;  %580 = vmatpush.bf16.msra.mxu0 %v1258_v1  ;;  %v1267_v17 = vld [vmem:[%s1837_s1 + $0x78] sm:$0xff]  ;;  %v903_v21 = vor.u32 %v1214_v15, %v902_v14  ;;  %v1274_v24 = vld [vmem:[%s1837_s1 + $0xb0] sm:$0xff]  ;;  %v1265_v29 = vld [vmem:[%s1837_s1 + $0x68] sm:$0xff] }
   0x8   :  { %v1283_v22 = vld [vmem:[%s1837_s1 + $0xf8] sm:$0xff]  ;;  %v1266_v25 = vld [vmem:[%s1837_s1 + $0x70] sm:$0xff]  ;;  %v1281_v30 = vld [vmem:[%s1837_s1 + $0xe8] sm:$0xff] }
   0x9   :  { %v1287_v23 = vld [vmem:[%s1837_s1 + $0x118] sm:$0xff]  ;;  %v1282_v26 = vld [vmem:[%s1837_s1 + $0xf0] sm:$0xff]  ;;  %v1285_v31 = vld [vmem:[%s1837_s1 + $0x108] sm:$0xff] }
   0xa   :  { %1294 = vmatpush.bf16.msra.mxu1 %v1257_v2  ;;  %1295 = vmatpush.bf16.msra.mxu2 %v1257_v2  ;;  %v1286_v27 = vld [vmem:[%s1837_s1 + $0x110] sm:$0xff]  ;;  %v1272_v32 = vld [vmem:[%s1837_s1 + $0xa0] sm:$0xff]  ;;  %v962_v35 = vld [vmem:[%s1838_s0 + $0x78] sm:$0xf] }
   0xb   :  { %1296 = vmatpush.bf16.msra.mxu3 %v1257_v2  ;;  %581 = vmatpush.bf16.msra.mxu0 %v1257_v2  ;;  %v1264_v33 = vld [vmem:[%s1837_s1 + $0x60] sm:$0xff]  ;;  %v1229_v36 = vld [vmem:[%s1838_s0 + $0x88] sm:$0xf0]  ;;  %v1002_v37 = vld [vmem:[%s1838_s0 + $0xc8] sm:$0xf] }
   0xc   :  { %v1280_v34 = vld [vmem:[%s1837_s1 + $0xe0] sm:$0xff]  ;;  %v1239_v38 = vld [vmem:[%s1838_s0 + $0xd8] sm:$0xf0]  ;;  %v1042_v39 = vld [vmem:[%s1838_s0 + $0x118] sm:$0xf]  ;;  %v963_v46 = vor.u32 %v1229_v36, %v962_v35 }
   0xd   :  { %v1249_v40 = vld [vmem:[%s1838_s0 + $0x128] sm:$0xf0]  ;;  %v922_v41 = vld [vmem:[%s1838_s0 + $0x28] sm:$0xf]  ;;  %v1219_v42 = vld [vmem:[%s1838_s0 + $0x38] sm:$0xf0]  ;;  %v1003_v47 = vor.u32 %v1239_v38, %v1002_v37 }
   0xe   :  { %1297 = vmatpush.bf16.msra.mxu1 %v1256_v3  ;;  %1298 = vmatpush.bf16.msra.mxu2 %v1256_v3  ;;  %v1284_v43 = vld [vmem:[%s1837_s1 + $0x100] sm:$0xff]  ;;  %v1271_v44 = vld [vmem:[%s1837_s1 + $0x98] sm:$0xff]  ;;  %v1043_v48 = vor.u32 %v1249_v40, %v1042_v39  ;;  %v923_v49 = vor.u32 %v1219_v42, %v922_v41  ;;  %v1270_v51 = vld [vmem:[%s1837_s1 + $0x90] sm:$0xff] }
   0xf   :  { %1299 = vmatpush.bf16.msra.mxu3 %v1256_v3  ;;  %582 = vmatpush.bf16.msra.mxu0 %v1256_v3  ;;  %v1263_v45 = vld [vmem:[%s1837_s1 + $0x58] sm:$0xff]  ;;  %v1262_v52 = vld [vmem:[%s1837_s1 + $0x50] sm:$0xff]  ;;  %v1269_v54 = vld [vmem:[%s1837_s1 + $0x88] sm:$0xff] }
  0x10   :  { %v1279_v50 = vld [vmem:[%s1837_s1 + $0xd8] sm:$0xff]  ;;  %v1278_v53 = vld [vmem:[%s1837_s1 + $0xd0] sm:$0xff]  ;;  %v1261_v55 = vld [vmem:[%s1837_s1 + $0x48] sm:$0xff] }
  0x11   :  { %v1277_v56 = vld [vmem:[%s1837_s1 + $0xc8] sm:$0xff]  ;;  %v1268_v57 = vld [vmem:[%s1837_s1 + $0x80] sm:$0xff]  ;;  %v904_v61 = vld [vmem:[%s1838_s0 + $0x14] sm:$0xf0] }
  0x12   :  { %1300 = vmatpush.bf16.msra.mxu1 %v1255_v4  ;;  %1301 = vmatpush.bf16.msra.mxu2 %v1255_v4  ;;  %v1260_v58 = vld [vmem:[%s1837_s1 + $0x40] sm:$0xff]  ;;  %v910_v62 = vld [vmem:[%s1838_s0 + $0x8] sm:$0xf]  ;;  %v1215_v63 = vld [vmem:[%s1838_s0 + $0x18] sm:$0xf0] }
  0x13   :  { %1302 = vmatpush.bf16.msra.mxu3 %v1255_v4  ;;  %583 = vmatpush.bf16.msra.mxu0 %v1255_v4  ;;  %v1276_v59 = vld [vmem:[%s1837_s1 + $0xc0] sm:$0xff]  ;;  %v1213_v0 = vld [vmem:[%s1838_s0 + $0xc] sm:$0xf]  ;;  %v918_v2 = vld [vmem:[%s1838_s0 + $0x10] sm:$0xf] }
  0x14   :  { %v1212_v60 = vld [vmem:[%s1838_s0 + $0x4] sm:$0xf]  ;;  %v912_v1 = vld [vmem:[%s1838_s0 + $0x1c] sm:$0xf0]  ;;  %v1217_v8 = vld [vmem:[%s1838_s0 + $0x2c] sm:$0xf] }
  0x15   :  { %v1216_v3 = vld [vmem:[%s1838_s0 + $0x20] sm:$0xf0]  ;;  %v907_v4 = vor.u32 %v1212_v60, %v904_v61  ;;  %v924_v9 = vld [vmem:[%s1838_s0 + $0x3c] sm:$0xf0]  ;;  %v930_v10 = vld [vmem:[%s1838_s0 + $0x30] sm:$0xf] }
  0x16   :  { %1303 = vmatpush.bf16.msra.mxu1 %v1254_v5  ;;  %1304 = vmatpush.bf16.msra.mxu2 %v1254_v5  ;;  %v1220_v11 = vld [vmem:[%s1838_s0 + $0x40] sm:$0xf0]  ;;  %v1218_v12 = vld [vmem:[%s1838_s0 + $0x34] sm:$0xf]  ;;  %v932_v13 = vld [vmem:[%s1838_s0 + $0x44] sm:$0xf0] }
  0x17   :  { %1305 = vmatpush.bf16.msra.mxu3 %v1254_v5  ;;  %584 = vmatpush.bf16.msra.mxu0 %v1254_v5  ;;  %v911_v5 = vor.u32 %v1215_v63, %v910_v62  ;;  %v938_v14 = vld [vmem:[%s1838_s0 + $0x38] sm:$0xf]  ;;  %v1221_v15 = vld [vmem:[%s1838_s0 + $0x48] sm:$0xf0]  ;;  %v1230_v35 = vld [vmem:[%s1838_s0 + $0x90] sm:$0xf0] }
  0x18   :  { %v1228_v36 = vld [vmem:[%s1838_s0 + $0x84] sm:$0xf]  ;;  %v972_v37 = vld [vmem:[%s1838_s0 + $0x94] sm:$0xf0]  ;;  %v978_v38 = vld [vmem:[%s1838_s0 + $0x88] sm:$0xf] }
  0x19   :  { %v1231_v39 = vld [vmem:[%s1838_s0 + $0x98] sm:$0xf0]  ;;  %v975_v42 = vor.u32 %v1228_v36, %v972_v37  ;;  %v1238_v60 = vld [vmem:[%s1838_s0 + $0xd4] sm:$0xf]  ;;  %v1012_v61 = vld [vmem:[%s1838_s0 + $0xe4] sm:$0xf0] }
  0x1a   :  { %1306 = vmatpush.bf16.msra.mxu1 %v1253_v6  ;;  %1307 = vmatpush.bf16.msra.mxu2 %v1253_v6  ;;  %v1018_v62 = vld [vmem:[%s1838_s0 + $0xd8] sm:$0xf]  ;;  %v1241_v63 = vld [vmem:[%s1838_s0 + $0xe8] sm:$0xf0] }
  0x1b   :  { %1308 = vmatpush.bf16.msra.mxu3 %v1253_v6  ;;  %585 = vmatpush.bf16.msra.mxu0 %v1253_v6  ;;  %v915_v6 = vor.u32 %v1213_v0, %v912_v1 }
  0x1e   :  { %1309 = vmatpush.bf16.msra.mxu1 %v1252_v7  ;;  %1310 = vmatpush.bf16.msra.mxu2 %v1252_v7 }
  0x1f   :  { %1311 = vmatpush.bf16.msra.mxu3 %v1252_v7  ;;  %586 = vmatpush.bf16.msra.mxu0 %v1252_v7  ;;  %v919_v7 = vor.u32 %v1216_v3, %v918_v2  ;;  %v1015_v2 = vor.u32 %v1238_v60, %v1012_v61  ;;  %v1019_v3 = vor.u32 %v1241_v63, %v1018_v62 }
  0x21   :  { %597 = vmatmul.bf16.vlgmr.msra.gmra.mxu1 %v943_v18  ;;  %607 = vmatmul.bf16.vlgmr.msra.gmra.mxu2 %v983_v19  ;;  %v935_v18 = vor.u32 %v1218_v12, %v932_v13  ;;  %v939_v19 = vor.u32 %v1221_v15, %v938_v14 }
  0x22   :  { %677 = vmatpush.bf16.msrb.mxu2 %v1275_v16  ;;  %628 = vmatpush.bf16.msrb.mxu1 %v1267_v17  ;;  %v927_v16 = vor.u32 %v1217_v8, %v924_v9  ;;  %v931_v17 = vor.u32 %v1220_v11, %v930_v10  ;;  %v1243_v8 = vld [vmem:[%s1838_s0 + $0xfc] sm:$0xf]  ;;  %v1032_v9 = vld [vmem:[%s1838_s0 + $0x10c] sm:$0xf0]  ;;  %v1038_v10 = vld [vmem:[%s1838_s0 + $0x100] sm:$0xf] }
  0x23   :  { %617 = vmatmul.bf16.vlgmr.msra.gmra.mxu3 %v1023_v20  ;;  %587 = vmatmul.bf16.vlgmr.msra.gmra.mxu0 %v903_v21  ;;  %v1222_v20 = vld [vmem:[%s1838_s0 + $0x54] sm:$0xf]  ;;  %v944_v21 = vld [vmem:[%s1838_s0 + $0x64] sm:$0xf0]  ;;  %v1035_v15 = vor.u32 %v1243_v8, %v1032_v9 }
  0x24   :  { %726 = vmatpush.bf16.msrb.mxu3 %v1283_v22  ;;  %779 = vmatpush.bf16.msrb.mxu0 %v1287_v23  ;;  %v950_v22 = vld [vmem:[%s1838_s0 + $0x58] sm:$0xf]  ;;  %v1225_v23 = vld [vmem:[%s1838_s0 + $0x68] sm:$0xf0]  ;;  %v1246_v11 = vld [vmem:[%s1838_s0 + $0x110] sm:$0xf0] }
  0x26   :  { %678 = vmatpush.bf16.msrb.mxu2 %v1274_v24  ;;  %629 = vmatpush.bf16.msrb.mxu1 %v1266_v25  ;;  %v1223_v24 = vld [vmem:[%s1838_s0 + $0x5c] sm:$0xf]  ;;  %v952_v25 = vld [vmem:[%s1838_s0 + $0x6c] sm:$0xf0] }
  0x28   :  { %727 = vmatpush.bf16.msrb.mxu3 %v1282_v26  ;;  %780 = vmatpush.bf16.msrb.mxu0 %v1286_v27  ;;  %v958_v26 = vld [vmem:[%s1838_s0 + $0x60] sm:$0xf]  ;;  %v1226_v27 = vld [vmem:[%s1838_s0 + $0x70] sm:$0xf0] }
  0x2a   :  { %679 = vmatpush.bf16.msrb.mxu2 %v1273_v28  ;;  %630 = vmatpush.bf16.msrb.mxu1 %v1265_v29  ;;  %v947_v28 = vor.u32 %v1222_v20, %v944_v21  ;;  %v951_v29 = vor.u32 %v1225_v23, %v950_v22  ;;  %v1247_v22 = vld [vmem:[%s1838_s0 + $0x11c] sm:$0xf]  ;;  %v1044_v23 = vld [vmem:[%s1838_s0 + $0x12c] sm:$0xf0] }
  0x2c   :  { %728 = vmatpush.bf16.msrb.mxu3 %v1281_v30  ;;  %781 = vmatpush.bf16.msrb.mxu0 %v1285_v31  ;;  %v955_v30 = vor.u32 %v1223_v24, %v952_v25  ;;  %v959_v31 = vor.u32 %v1226_v27, %v958_v26  ;;  %v1050_v24 = vld [vmem:[%s1838_s0 + $0x120] sm:$0xf]  ;;  %v1250_v25 = vld [vmem:[%s1838_s0 + $0x130] sm:$0xf0]  ;;  %v1248_v26 = vld [vmem:[%s1838_s0 + $0x124] sm:$0xf] }
  0x2d   :  { %v1052_v27 = vld [vmem:[%s1838_s0 + $0x134] sm:$0xf0] }
  0x2e   :  { %680 = vmatpush.bf16.msrb.mxu2 %v1272_v32  ;;  %631 = vmatpush.bf16.msrb.mxu1 %v1264_v33  ;;  %v1227_v32 = vld [vmem:[%s1838_s0 + $0x7c] sm:$0xf]  ;;  %v964_v33 = vld [vmem:[%s1838_s0 + $0x8c] sm:$0xf0] }
  0x2f   :  { %v967_v40 = vor.u32 %v1227_v32, %v964_v33  ;;  %v1047_v32 = vor.u32 %v1247_v22, %v1044_v23  ;;  %v1051_v33 = vor.u32 %v1250_v25, %v1050_v24 }
  0x30   :  { %729 = vmatpush.bf16.msrb.mxu3 %v1280_v34  ;;  %782 = vmatpush.bf16.msrb.mxu0 %v1284_v43  ;;  %v970_v34 = vld [vmem:[%s1838_s0 + $0x80] sm:$0xf]  ;;  %v979_v43 = vor.u32 %v1231_v39, %v978_v38 }
  0x31   :  { %602 = vmatmul.bf16.gmra.mxu1 %v963_v46  ;;  %612 = vmatmul.bf16.gmra.mxu2 %v1003_v47  ;;  %v971_v41 = vor.u32 %v1230_v35, %v970_v34  ;;  %v990_v46 = vld [vmem:[%s1838_s0 + $0xa8] sm:$0xf]  ;;  %v1235_v47 = vld [vmem:[%s1838_s0 + $0xb8] sm:$0xf0]  ;;  %v1055_v35 = vor.u32 %v1248_v26, %v1052_v27 }
  0x32   :  { %681 = vmatpush.bf16.msrb.mxu2 %v1271_v44  ;;  %632 = vmatpush.bf16.msrb.mxu1 %v1263_v45  ;;  %v1232_v44 = vld [vmem:[%s1838_s0 + $0xa4] sm:$0xf]  ;;  %v984_v45 = vld [vmem:[%s1838_s0 + $0xb4] sm:$0xf0] }
  0x33   :  { %622 = vmatmul.bf16.gmra.mxu3 %v1043_v48  ;;  %592 = vmatmul.bf16.gmra.mxu0 %v923_v49  ;;  %v1233_v48 = vld [vmem:[%s1838_s0 + $0xac] sm:$0xf]  ;;  %v992_v49 = vld [vmem:[%s1838_s0 + $0xbc] sm:$0xf0] }
  0x34   :  { %730 = vmatpush.bf16.msrb.mxu3 %v1279_v50  ;;  %v998_v50 = vld [vmem:[%s1838_s0 + $0xb0] sm:$0xf] }
  0x36   :  { %682 = vmatpush.bf16.msrb.mxu2 %v1270_v51  ;;  %633 = vmatpush.bf16.msrb.mxu1 %v1262_v52  ;;  %v1236_v51 = vld [vmem:[%s1838_s0 + $0xc0] sm:$0xf0]  ;;  %v987_v52 = vor.u32 %v1232_v44, %v984_v45 }
  0x38   :  { %731 = vmatpush.bf16.msrb.mxu3 %v1278_v53  ;;  %v991_v53 = vor.u32 %v1235_v47, %v990_v46 }
  0x3a   :  { %683 = vmatpush.bf16.msrb.mxu2 %v1269_v54  ;;  %634 = vmatpush.bf16.msrb.mxu1 %v1261_v55  ;;  %v995_v54 = vor.u32 %v1233_v48, %v992_v49  ;;  %v999_v55 = vor.u32 %v1236_v51, %v998_v50 }
  0x3c   :  { %732 = vmatpush.bf16.msrb.mxu3 %v1277_v56  ;;  %v1237_v56 = vld [vmem:[%s1838_s0 + $0xcc] sm:$0xf] }
  0x3e   :  { %684 = vmatpush.bf16.msrb.mxu2 %v1268_v57  ;;  %635 = vmatpush.bf16.msrb.mxu1 %v1260_v58  ;;  %v1004_v57 = vld [vmem:[%s1838_s0 + $0xdc] sm:$0xf0]  ;;  %v1010_v58 = vld [vmem:[%s1838_s0 + $0xd0] sm:$0xf] }
  0x3f   :  { %v1007_v0 = vor.u32 %v1237_v56, %v1004_v57 }
  0x40   :  { %733 = vmatpush.bf16.msrb.mxu3 %v1276_v59  ;;  %v1240_v59 = vld [vmem:[%s1838_s0 + $0xe0] sm:$0xf0] }
  0x41   :  { %636 = vmatmul.bf16.vlgmr.msrb.gmra.mxu1 %v907_v4  ;;  %685 = vmatmul.bf16.vlgmr.msrb.gmra.mxu2 %v911_v5  ;;  %v1011_v1 = vor.u32 %v1240_v59, %v1010_v58  ;;  %v1242_v4 = vld [vmem:[%s1838_s0 + $0xf4] sm:$0xf]  ;;  %v1024_v5 = vld [vmem:[%s1838_s0 + $0x104] sm:$0xf0] }
  0x42   :  { %v1027_v12 = vor.u32 %v1242_v4, %v1024_v5 }
  0x43   :  { %734 = vmatmul.bf16.vlgmr.msrb.gmra.mxu3 %v915_v6  ;;  %1204 = vmatmul.msk.bf16.vlgmr.msrb.gmra.mxu0 %vm554_vm0, %v919_v7  ;;  %v1030_v6 = vld [vmem:[%s1838_s0 + $0xf8] sm:$0xf]  ;;  %v1245_v7 = vld [vmem:[%s1838_s0 + $0x108] sm:$0xf0] }
  0x44   :  { %v1031_v13 = vor.u32 %v1245_v7, %v1030_v6 }
  0x51   :  { %641 = vmatmul.bf16.gmra.mxu1 %v927_v16  ;;  %690 = vmatmul.bf16.gmra.mxu2 %v931_v17  ;;  %v1039_v16 = vor.u32 %v1246_v11, %v1038_v10 }
  0x53   :  { %739 = vmatmul.bf16.gmra.mxu3 %v935_v18  ;;  %1205 = vmatmul.msk.bf16.gmra.mxu0 %vm554_vm0, %v939_v19 }
  0x61   :  { %646 = vmatmul.bf16.gmra.mxu1 %v947_v28  ;;  %695 = vmatmul.bf16.gmra.mxu2 %v951_v29  ;;  %v1058_v28 = vld [vmem:[%s1838_s0 + $0x128] sm:$0xf]  ;;  %v1251_v29 = vld [vmem:[%s1838_s0 + $0x138] sm:$0xf0] }
  0x62   :  { %v1059_v36 = vor.u32 %v1251_v29, %v1058_v28 }
  0x63   :  { %744 = vmatmul.bf16.gmra.mxu3 %v955_v30  ;;  %1206 = vmatmul.msk.bf16.gmra.mxu0 %vm554_vm0, %v959_v31 }
  0x71   :  { %651 = vmatmul.bf16.gmra.mxu1 %v967_v40  ;;  %700 = vmatmul.bf16.gmra.mxu2 %v971_v41 }
  0x73   :  { %749 = vmatmul.bf16.gmra.mxu3 %v975_v42  ;;  %1207 = vmatmul.msk.bf16.gmra.mxu0 %vm554_vm0, %v979_v43 }
  0x81   :  { %656 = vmatmul.bf16.gmra.mxu1 %v987_v52  ;;  %705 = vmatmul.bf16.gmra.mxu2 %v991_v53  ;;  %v1722_v52 = vld [vmem:[%s1839_s2] ss:$0 sm:$0xff] }
  0x83   :  { %754 = vmatmul.bf16.gmra.mxu3 %v995_v54  ;;  %1208 = vmatmul.msk.bf16.gmra.mxu0 %vm554_vm0, %v999_v55  ;;  %v1727_v55 = vld [vmem:[%s1840_s3] ss:$0 sm:$0xff] }
  0x91   :  { %661 = vmatmul.bf16.gmra.mxu1 %v1007_v0  ;;  %710 = vmatmul.bf16.gmra.mxu2 %v1011_v1 }
  0x93   :  { %759 = vmatmul.bf16.gmra.mxu3 %v1015_v2  ;;  %1209 = vmatmul.msk.bf16.gmra.mxu0 %vm554_vm0, %v1019_v3 }
  0x9e   :  { %v1669_v14 = vpop.f32.mrf.mxu1 }
  0xa0   :  { %v588_v17 = vpop.f32.mrf.mxu0 }
  0xa1   :  { %666 = vmatmul.bf16.gmra.mxu1 %v1027_v12  ;;  %715 = vmatmul.bf16.gmra.mxu2 %v1031_v13 }
  0xa3   :  { %764 = vmatmul.bf16.gmra.mxu3 %v1035_v15  ;;  %1210 = vmatmul.msk.bf16.gmra.mxu0 %vm554_vm0, %v1039_v16 }
  0xa4   :  { %v1672_v18 = vpop.f32.mrf.mxu2 }
  0xa6   :  { %v1674_v19 = vpop.f32.mrf.mxu3  ;;  %v1676_v20 = vpop.f32.mrf.mxu1 }
  0xa8   :  { %v590_v21 = vpop.f32.mrf.mxu0 }
  0xac   :  { %v1702_v30 = vpop.f32.mrf.mxu2 }
  0xae   :  { %v1704_v31 = vpop.f32.mrf.mxu3  ;;  %v1706_v34 = vpop.f32.mrf.mxu1 }
  0xb0   :  { %v593_v37 = vpop.f32.mrf.mxu0 }
  0xb1   :  { %671 = vmatmul.bf16.gmra.mxu1 %v1047_v32  ;;  %720 = vmatmul.bf16.gmra.mxu2 %v1051_v33 }
  0xb3   :  { %769 = vmatmul.bf16.gmra.mxu3 %v1055_v35  ;;  %1211 = vmatmul.msk.bf16.gmra.mxu0 %vm554_vm0, %v1059_v36 }
  0xb4   :  { %v1709_v38 = vpop.f32.mrf.mxu2 }
  0xb6   :  { %v1711_v39 = vpop.f32.mrf.mxu3  ;;  %v1713_v40 = vpop.f32.mrf.mxu1 }
  0xb8   :  { %v595_v41 = vpop.f32.mrf.mxu0 }
  0xbc   :  { %v1715_v42 = vpop.f32.mrf.mxu2 }
  0xbe   :  { %v1717_v43 = vpop.f32.mrf.mxu3  ;;  %v637_v44 = vpop.f32.mrf.mxu1 }
  0xbf   :  { %v638_v46 = vadd.f32 %v637_v44, %v588_v17 }
  0xc0   :  { %v784_v45 = vpop.f32.mrf.mxu0 }
  0xc4   :  { %v686_v47 = vpop.f32.mrf.mxu2 }
  0xc5   :  { %v687_v48 = vadd.f32 %v686_v47, %v638_v46 }
  0xc6   :  { %v735_v49 = vpop.f32.mrf.mxu3  ;;  %v639_v50 = vpop.f32.mrf.mxu1 }
  0xc7   :  { %v736_v51 = vadd.f32 %v735_v49, %v687_v48  ;;  %v640_v57 = vadd.f32 %v639_v50, %v590_v21 }
  0xc8   :  { %v786_v53 = vpop.f32.mrf.mxu0 }
  0xc9   :  { %v785_v54 = vadd.f32 %v784_v45, %v736_v51 }
  0xcb   :  { %v828_v56 = vmul.f32 %v1722_v52, %v785_v54 }
  0xcc   :  { %v688_v58 = vpop.f32.mrf.mxu2 }
  0xcd   :  { %v848_v59 = vadd.f32 %v1727_v55, %v828_v56  ;;  %v689_v60 = vadd.f32 %v688_v58, %v640_v57 }
  0xce   :  { %v737_v61 = vpop.f32.mrf.mxu3  ;;  %v642_v62 = vpop.f32.mrf.mxu1 }
  0xcf   :  { %v864_v63 = vmax.f32 %v848_v59, 0.0  ;;  %v738_v0 = vadd.f32 %v737_v61, %v689_v60  ;;  %v643_v4 = vadd.f32 %v642_v62, %v593_v37 }
  0xd0   :  { %v789_v1 = vpop.f32.mrf.mxu0 }
  0xd1   :  { %880 = vst.msk [vmem:[%s1841_s4] sm:$0xff] %vm554_vm0, %v864_v63  ;;  %v787_v2 = vadd.f32 %v786_v53, %v738_v0 }
  0xd3   :  { %v829_v3 = vmul.f32 %v1722_v52, %v787_v2 }
  0xd4   :  { %v691_v5 = vpop.f32.mrf.mxu2 }
  0xd5   :  { %v849_v6 = vadd.f32 %v1727_v55, %v829_v3  ;;  %v692_v7 = vadd.f32 %v691_v5, %v643_v4 }
  0xd6   :  { %v740_v8 = vpop.f32.mrf.mxu3  ;;  %v644_v9 = vpop.f32.mrf.mxu1 }
  0xd7   :  { %v865_v10 = vmax.f32 %v849_v6, 0.0  ;;  %v741_v11 = vadd.f32 %v740_v8, %v692_v7  ;;  %v645_v16 = vadd.f32 %v644_v9, %v595_v41 }
  0xd8   :  { %v791_v12 = vpop.f32.mrf.mxu0 }
  0xd9   :  { %881 = vst.msk [vmem:[%s1841_s4 + $0x8] sm:$0xff] %vm554_vm0, %v865_v10  ;;  %v790_v13 = vadd.f32 %v789_v1, %v741_v11 }
  0xdb   :  { %v830_v15 = vmul.f32 %v1722_v52, %v790_v13 }
  0xdc   :  { %v693_v17 = vpop.f32.mrf.mxu2 }
  0xdd   :  { %v850_v21 = vadd.f32 %v1727_v55, %v830_v15  ;;  %v694_v22 = vadd.f32 %v693_v17, %v645_v16 }
  0xde   :  { %v742_v23 = vpop.f32.mrf.mxu3  ;;  %v647_v24 = vpop.f32.mrf.mxu1 }
  0xdf   :  { %v866_v25 = vmax.f32 %v850_v21, 0.0  ;;  %v743_v26 = vadd.f32 %v742_v23, %v694_v22  ;;  %v648_v32 = vadd.f32 %v647_v24, %v1669_v14 }
  0xe0   :  { %v794_v27 = vpop.f32.mrf.mxu0 }
  0xe1   :  { %882 = vst.msk [vmem:[%s1841_s4 + $0x10] sm:$0xff] %vm554_vm0, %v866_v25  ;;  %v792_v28 = vadd.f32 %v791_v12, %v743_v26 }
  0xe3   :  { %v831_v29 = vmul.f32 %v1722_v52, %v792_v28 }
  0xe4   :  { %v696_v33 = vpop.f32.mrf.mxu2 }
  0xe5   :  { %v851_v35 = vadd.f32 %v1727_v55, %v831_v29  ;;  %v697_v36 = vadd.f32 %v696_v33, %v648_v32 }
  0xe6   :  { %v745_v37 = vpop.f32.mrf.mxu3  ;;  %v649_v41 = vpop.f32.mrf.mxu1 }
  0xe7   :  { %v867_v44 = vmax.f32 %v851_v35, 0.0  ;;  %v746_v45 = vadd.f32 %v745_v37, %v697_v36  ;;  %v650_v49 = vadd.f32 %v649_v41, %v1676_v20 }
  0xe8   :  { %v796_v46 = vpop.f32.mrf.mxu0 }
  0xe9   :  { %883 = vst.msk [vmem:[%s1841_s4 + $0x18] sm:$0xff] %vm554_vm0, %v867_v44  ;;  %v795_v47 = vadd.f32 %v794_v27, %v746_v45 }
  0xeb   :  { %v832_v48 = vmul.f32 %v1722_v52, %v795_v47 }
  0xec   :  { %v698_v14 = vpop.f32.mrf.mxu2 }
  0xed   :  { %v852_v50 = vadd.f32 %v1727_v55, %v832_v48  ;;  %v699_v51 = vadd.f32 %v698_v14, %v650_v49 }
  0xee   :  { %v747_v53 = vpop.f32.mrf.mxu3  ;;  %v652_v54 = vpop.f32.mrf.mxu1 }
  0xef   :  { %v868_v56 = vmax.f32 %v852_v50, 0.0  ;;  %v748_v57 = vadd.f32 %v747_v53, %v699_v51  ;;  %v653_v61 = vadd.f32 %v652_v54, %v1706_v34 }
  0xf0   :  { %v799_v58 = vpop.f32.mrf.mxu0 }
  0xf1   :  { %884 = vst.msk [vmem:[%s1841_s4 + $0x20] sm:$0xff] %vm554_vm0, %v868_v56  ;;  %v797_v59 = vadd.f32 %v796_v46, %v748_v57 }
  0xf3   :  { %v833_v60 = vmul.f32 %v1722_v52, %v797_v59 }
  0xf4   :  { %v701_v20 = vpop.f32.mrf.mxu2 }
  0xf5   :  { %v853_v62 = vadd.f32 %v1727_v55, %v833_v60  ;;  %v702_v63 = vadd.f32 %v701_v20, %v653_v61 }
  0xf6   :  { %v750_v0 = vpop.f32.mrf.mxu3  ;;  %v654_v1 = vpop.f32.mrf.mxu1 }
  0xf7   :  { %v869_v2 = vmax.f32 %v853_v62, 0.0  ;;  %v751_v3 = vadd.f32 %v750_v0, %v702_v63  ;;  %v655_v7 = vadd.f32 %v654_v1, %v1713_v40 }
  0xf8   :  { %v801_v4 = vpop.f32.mrf.mxu0 }
  0xf9   :  { %885 = vst.msk [vmem:[%s1841_s4 + $0x28] sm:$0xff] %vm554_vm0, %v869_v2  ;;  %v800_v5 = vadd.f32 %v799_v58, %v751_v3 }
  0xfb   :  { %v834_v6 = vmul.f32 %v1722_v52, %v800_v5 }
  0xfc   :  { %v703_v34 = vpop.f32.mrf.mxu2 }
  0xfd   :  { %v854_v8 = vadd.f32 %v1727_v55, %v834_v6  ;;  %v704_v9 = vadd.f32 %v703_v34, %v655_v7 }
  0xfe   :  { %v752_v10 = vpop.f32.mrf.mxu3  ;;  %v657_v11 = vpop.f32.mrf.mxu1 }
  0xff   :  { %v870_v12 = vmax.f32 %v854_v8, 0.0  ;;  %v753_v13 = vadd.f32 %v752_v10, %v704_v9  ;;  %v658_v21 = vadd.f32 %v657_v11, %v1672_v18 }
 0x100   :  { %v804_v15 = vpop.f32.mrf.mxu0 }
 0x101   :  { %886 = vst.msk [vmem:[%s1841_s4 + $0x30] sm:$0xff] %vm554_vm0, %v870_v12  ;;  %v802_v16 = vadd.f32 %v801_v4, %v753_v13 }
 0x103   :  { %v835_v17 = vmul.f32 %v1722_v52, %v802_v16 }
 0x104   :  { %v706_v40 = vpop.f32.mrf.mxu2 }
 0x105   :  { %v855_v22 = vadd.f32 %v1727_v55, %v835_v17  ;;  %v707_v23 = vadd.f32 %v706_v40, %v658_v21 }
 0x106   :  { %v755_v24 = vpop.f32.mrf.mxu3  ;;  %v659_v25 = vpop.f32.mrf.mxu1 }
 0x107   :  { %v871_v26 = vmax.f32 %v855_v22, 0.0  ;;  %v756_v27 = vadd.f32 %v755_v24, %v707_v23  ;;  %v660_v33 = vadd.f32 %v659_v25, %v1702_v30 }
 0x108   :  { %v806_v28 = vpop.f32.mrf.mxu0 }
 0x109   :  { %887 = vst.msk [vmem:[%s1841_s4 + $0x38] sm:$0xff] %vm554_vm0, %v871_v26  ;;  %v805_v29 = vadd.f32 %v804_v15, %v756_v27 }
 0x10b   :  { %v836_v32 = vmul.f32 %v1722_v52, %v805_v29 }
 0x10c   :  { %v708_v18 = vpop.f32.mrf.mxu2 }
 0x10d   :  { %v856_v35 = vadd.f32 %v1727_v55, %v836_v32  ;;  %v709_v36 = vadd.f32 %v708_v18, %v660_v33 }
 0x10e   :  { %v757_v37 = vpop.f32.mrf.mxu3  ;;  %v662_v41 = vpop.f32.mrf.mxu1 }
 0x10f   :  { %v872_v44 = vmax.f32 %v856_v35, 0.0  ;;  %v758_v45 = vadd.f32 %v757_v37, %v709_v36  ;;  %v663_v49 = vadd.f32 %v662_v41, %v1709_v38 }
 0x110   :  { %v809_v46 = vpop.f32.mrf.mxu0 }
 0x111   :  { %888 = vst.msk [vmem:[%s1841_s4 + $0x40] sm:$0xff] %vm554_vm0, %v872_v44  ;;  %v807_v47 = vadd.f32 %v806_v28, %v758_v45 }
 0x113   :  { %v837_v48 = vmul.f32 %v1722_v52, %v807_v47 }
 0x114   :  { %v711_v30 = vpop.f32.mrf.mxu2 }
 0x115   :  { %v857_v14 = vadd.f32 %v1727_v55, %v837_v48  ;;  %v712_v50 = vadd.f32 %v711_v30, %v663_v49 }
 0x116   :  { %v760_v51 = vpop.f32.mrf.mxu3  ;;  %v664_v53 = vpop.f32.mrf.mxu1 }
 0x117   :  { %v873_v54 = vmax.f32 %v857_v14, 0.0  ;;  %v761_v56 = vadd.f32 %v760_v51, %v712_v50  ;;  %v665_v60 = vadd.f32 %v664_v53, %v1715_v42 }
 0x118   :  { %v811_v57 = vpop.f32.mrf.mxu0 }
 0x119   :  { %889 = vst.msk [vmem:[%s1841_s4 + $0x48] sm:$0xff] %vm554_vm0, %v873_v54  ;;  %v810_v58 = vadd.f32 %v809_v46, %v761_v56 }
 0x11b   :  { %v838_v59 = vmul.f32 %v1722_v52, %v810_v58 }
 0x11c   :  { %v713_v38 = vpop.f32.mrf.mxu2 }
 0x11d   :  { %v858_v61 = vadd.f32 %v1727_v55, %v838_v59  ;;  %v714_v20 = vadd.f32 %v713_v38, %v665_v60 }
 0x11e   :  { %v762_v62 = vpop.f32.mrf.mxu3  ;;  %v667_v63 = vpop.f32.mrf.mxu1 }
 0x11f   :  { %v874_v0 = vmax.f32 %v858_v61, 0.0  ;;  %v763_v1 = vadd.f32 %v762_v62, %v714_v20  ;;  %v668_v5 = vadd.f32 %v667_v63, %v1674_v19 }
 0x120   :  { %v814_v3 = vpop.f32.mrf.mxu0 }
 0x121   :  { %890 = vst.msk [vmem:[%s1841_s4 + $0x50] sm:$0xff] %vm554_vm0, %v874_v0  ;;  %v812_v2 = vadd.f32 %v811_v57, %v763_v1 }
 0x123   :  { %v839_v4 = vmul.f32 %v1722_v52, %v812_v2 }
 0x124   :  { %v716_v42 = vpop.f32.mrf.mxu2 }
 0x125   :  { %v859_v6 = vadd.f32 %v1727_v55, %v839_v4  ;;  %v717_v7 = vadd.f32 %v716_v42, %v668_v5 }
 0x126   :  { %v765_v34 = vpop.f32.mrf.mxu3  ;;  %v669_v8 = vpop.f32.mrf.mxu1 }
 0x127   :  { %v875_v9 = vmax.f32 %v859_v6, 0.0  ;;  %v766_v10 = vadd.f32 %v765_v34, %v717_v7  ;;  %v670_v13 = vadd.f32 %v669_v8, %v1704_v31 }
 0x128   :  { %v816_v15 = vpop.f32.mrf.mxu0 }
 0x129   :  { %891 = vst.msk [vmem:[%s1841_s4 + $0x58] sm:$0xff] %vm554_vm0, %v875_v9  ;;  %v815_v11 = vadd.f32 %v814_v3, %v766_v10 }
 0x12b   :  { %v840_v12 = vmul.f32 %v1722_v52, %v815_v11 }
 0x12c   :  { %v718_v19 = vpop.f32.mrf.mxu2 }
 0x12d   :  { %v860_v16 = vadd.f32 %v1727_v55, %v840_v12  ;;  %v719_v17 = vadd.f32 %v718_v19, %v670_v13 }
 0x12e   :  { %v767_v21 = vpop.f32.mrf.mxu3  ;;  %v672_v40 = vpop.f32.mrf.mxu1 }
 0x12f   :  { %v876_v22 = vmax.f32 %v860_v16, 0.0  ;;  %v768_v23 = vadd.f32 %v767_v21, %v719_v17  ;;  %v673_v26 = vadd.f32 %v672_v40, %v1711_v39 }
 0x130   :  { %v819_v32 = vpop.f32.mrf.mxu0 }
 0x131   :  { %892 = vst.msk [vmem:[%s1841_s4 + $0x60] sm:$0xff] %vm554_vm0, %v876_v22  ;;  %v817_v24 = vadd.f32 %v816_v15, %v768_v23 }
 0x133   :  { %v841_v25 = vmul.f32 %v1722_v52, %v817_v24 }
 0x134   :  { %v721_v31 = vpop.f32.mrf.mxu2 }
 0x135   :  { %v861_v27 = vadd.f32 %v1727_v55, %v841_v25  ;;  %v722_v28 = vadd.f32 %v721_v31, %v673_v26 }
 0x136   :  { %v770_v29 = vpop.f32.mrf.mxu3  ;;  %v674_v35 = vpop.f32.mrf.mxu1 }
 0x137   :  { %v877_v33 = vmax.f32 %v861_v27, 0.0  ;;  %v771_v18 = vadd.f32 %v770_v29, %v722_v28  ;;  %v675_v41 = vadd.f32 %v674_v35, %v1717_v43 }
 0x138   :  { %v821_v49 = vpop.f32.mrf.mxu0 }
 0x139   :  { %893 = vst.msk [vmem:[%s1841_s4 + $0x68] sm:$0xff] %vm554_vm0, %v877_v33  ;;  %v820_v36 = vadd.f32 %v819_v32, %v771_v18 }
 0x13b   :  { %v842_v37 = vmul.f32 %v1722_v52, %v820_v36 }
 0x13c   :  { %v723_v39 = vpop.f32.mrf.mxu2 }
 0x13d   :  { %v862_v44 = vadd.f32 %v1727_v55, %v842_v37  ;;  %v724_v45 = vadd.f32 %v723_v39, %v675_v41 }
 0x13e   :  { %v772_v46 = vpop.f32.mrf.mxu3 }
 0x13f   :  { %v878_v47 = vmax.f32 %v862_v44, 0.0  ;;  %v773_v48 = vadd.f32 %v772_v46, %v724_v45 }
 0x141   :  { %894 = vst.msk [vmem:[%s1841_s4 + $0x70] sm:$0xff] %vm554_vm0, %v878_v47  ;;  %v822_v30 = vadd.f32 %v821_v49, %v773_v48 }
 0x143   :  { %v843_v14 = vmul.f32 %v1722_v52, %v822_v30 }
 0x145   :  { %v863_v50 = vadd.f32 %v1727_v55, %v843_v14 }
 0x147   :  { %v879_v51 = vmax.f32 %v863_v50, 0.0 }
 0x149   :  { %895 = vst.msk [vmem:[%s1841_s4 + $0x78] sm:$0xff] %vm554_vm0, %v879_v51 }

// kernel: alzheimer_resnet_forward.22
= control target key start
LH: loop header
LB: loop body
LE: loop exit
PB: predicated region body
PF: predicated region fallthrough
CT: control target
= control target key end

     0   :  { %vm557_vm0 = vcmask 523264   ;;  %s1925_s1 = inlined_call_operand.vmem [shape: bf16[576,64], index: 1, kind: input, shape index: {}]   ;;  %s1926_s0 = inlined_call_operand.vmem [shape: bf16[128,576], index: 0, kind: input, shape index: {}]   ;;  %s1927_s2 = inlined_call_operand.vmem [shape: f32[1,64], index: 2, kind: input, shape index: {}]   ;;  %s1928_s3 = inlined_call_operand.vmem [shape: f32[1,64], index: 3, kind: input, shape index: {}]   ;;  %s1929_s4 = inlined_call_operand.vmem [shape: f32[128,64], index: 4, kind: input, shape index: {}]   ;;  %s1930_s5 = inlined_call_operand.vmem [shape: f32[128,64], index: 5, kind: output, shape index: {}]  }
   0x1   :  { %v1294_v0 = vld [vmem:[%s1925_s1 + $0x38] sm:$0xff]  ;;  %v1293_v1 = vld [vmem:[%s1925_s1 + $0x30] sm:$0xff]  ;;  %v1292_v2 = vld [vmem:[%s1925_s1 + $0x28] sm:$0xff] }
   0x2   :  { %1323 = vmatpush.bf16.msra.mxu1 %v1294_v0  ;;  %1324 = vmatpush.bf16.msra.mxu2 %v1294_v0  ;;  %v1291_v3 = vld [vmem:[%s1925_s1 + $0x20] sm:$0xff]  ;;  %v1290_v4 = vld [vmem:[%s1925_s1 + $0x18] sm:$0xff]  ;;  %v1289_v5 = vld [vmem:[%s1925_s1 + $0x10] sm:$0xff] }
   0x3   :  { %1325 = vmatpush.bf16.msra.mxu3 %v1294_v0  ;;  %582 = vmatpush.bf16.msra.mxu0 %v1294_v0  ;;  %v1288_v6 = vld [vmem:[%s1925_s1 + $0x8] sm:$0xff]  ;;  %v1287_v7 = vld [vmem:[%s1925_s1] sm:$0xff]  ;;  %v977_v8 = vld [vmem:[%s1926_s0 + $0x50] sm:$0xf] }
   0x4   :  { %v1259_v9 = vld [vmem:[%s1926_s0 + $0x60] sm:$0xf0]  ;;  %v1017_v10 = vld [vmem:[%s1926_s0 + $0xa0] sm:$0xf]  ;;  %v1269_v11 = vld [vmem:[%s1926_s0 + $0xb0] sm:$0xf0] }
   0x5   :  { %v1057_v12 = vld [vmem:[%s1926_s0 + $0xf0] sm:$0xf]  ;;  %v1279_v13 = vld [vmem:[%s1926_s0 + $0x100] sm:$0xf0]  ;;  %v937_v14 = vld [vmem:[%s1926_s0] sm:$0xf]  ;;  %v978_v18 = vor.u32 %v1259_v9, %v977_v8  ;;  %v1018_v19 = vor.u32 %v1269_v11, %v1017_v10 }
   0x6   :  { %1326 = vmatpush.bf16.msra.mxu1 %v1293_v1  ;;  %1327 = vmatpush.bf16.msra.mxu2 %v1293_v1  ;;  %v1249_v15 = vld [vmem:[%s1926_s0 + $0x10] sm:$0xf0]  ;;  %v1310_v16 = vld [vmem:[%s1925_s1 + $0xb8] sm:$0xff]  ;;  %v1058_v20 = vor.u32 %v1279_v13, %v1057_v12  ;;  %v1308_v28 = vld [vmem:[%s1925_s1 + $0xa8] sm:$0xff] }
   0x7   :  { %1328 = vmatpush.bf16.msra.mxu3 %v1293_v1  ;;  %583 = vmatpush.bf16.msra.mxu0 %v1293_v1  ;;  %v1302_v17 = vld [vmem:[%s1925_s1 + $0x78] sm:$0xff]  ;;  %v938_v21 = vor.u32 %v1249_v15, %v937_v14  ;;  %v1309_v24 = vld [vmem:[%s1925_s1 + $0xb0] sm:$0xff]  ;;  %v1300_v29 = vld [vmem:[%s1925_s1 + $0x68] sm:$0xff] }
   0x8   :  { %v1318_v22 = vld [vmem:[%s1925_s1 + $0xf8] sm:$0xff]  ;;  %v1301_v25 = vld [vmem:[%s1925_s1 + $0x70] sm:$0xff]  ;;  %v1316_v30 = vld [vmem:[%s1925_s1 + $0xe8] sm:$0xff] }
   0x9   :  { %v1322_v23 = vld [vmem:[%s1925_s1 + $0x118] sm:$0xff]  ;;  %v1317_v26 = vld [vmem:[%s1925_s1 + $0xf0] sm:$0xff]  ;;  %v1320_v31 = vld [vmem:[%s1925_s1 + $0x108] sm:$0xff] }
   0xa   :  { %1329 = vmatpush.bf16.msra.mxu1 %v1292_v2  ;;  %1330 = vmatpush.bf16.msra.mxu2 %v1292_v2  ;;  %v1321_v27 = vld [vmem:[%s1925_s1 + $0x110] sm:$0xff]  ;;  %v1307_v32 = vld [vmem:[%s1925_s1 + $0xa0] sm:$0xff]  ;;  %v997_v35 = vld [vmem:[%s1926_s0 + $0x78] sm:$0xf] }
   0xb   :  { %1331 = vmatpush.bf16.msra.mxu3 %v1292_v2  ;;  %584 = vmatpush.bf16.msra.mxu0 %v1292_v2  ;;  %v1299_v33 = vld [vmem:[%s1925_s1 + $0x60] sm:$0xff]  ;;  %v1264_v36 = vld [vmem:[%s1926_s0 + $0x88] sm:$0xf0]  ;;  %v1037_v37 = vld [vmem:[%s1926_s0 + $0xc8] sm:$0xf] }
   0xc   :  { %v1315_v34 = vld [vmem:[%s1925_s1 + $0xe0] sm:$0xff]  ;;  %v1274_v38 = vld [vmem:[%s1926_s0 + $0xd8] sm:$0xf0]  ;;  %v1077_v39 = vld [vmem:[%s1926_s0 + $0x118] sm:$0xf]  ;;  %v998_v46 = vor.u32 %v1264_v36, %v997_v35 }
   0xd   :  { %v1284_v40 = vld [vmem:[%s1926_s0 + $0x128] sm:$0xf0]  ;;  %v957_v41 = vld [vmem:[%s1926_s0 + $0x28] sm:$0xf]  ;;  %v1254_v42 = vld [vmem:[%s1926_s0 + $0x38] sm:$0xf0]  ;;  %v1038_v47 = vor.u32 %v1274_v38, %v1037_v37 }
   0xe   :  { %1332 = vmatpush.bf16.msra.mxu1 %v1291_v3  ;;  %1333 = vmatpush.bf16.msra.mxu2 %v1291_v3  ;;  %v1319_v43 = vld [vmem:[%s1925_s1 + $0x100] sm:$0xff]  ;;  %v1306_v44 = vld [vmem:[%s1925_s1 + $0x98] sm:$0xff]  ;;  %v1078_v48 = vor.u32 %v1284_v40, %v1077_v39  ;;  %v958_v49 = vor.u32 %v1254_v42, %v957_v41  ;;  %v1305_v51 = vld [vmem:[%s1925_s1 + $0x90] sm:$0xff] }
   0xf   :  { %1334 = vmatpush.bf16.msra.mxu3 %v1291_v3  ;;  %585 = vmatpush.bf16.msra.mxu0 %v1291_v3  ;;  %v1298_v45 = vld [vmem:[%s1925_s1 + $0x58] sm:$0xff]  ;;  %v1297_v52 = vld [vmem:[%s1925_s1 + $0x50] sm:$0xff]  ;;  %v1304_v54 = vld [vmem:[%s1925_s1 + $0x88] sm:$0xff] }
  0x10   :  { %v1314_v50 = vld [vmem:[%s1925_s1 + $0xd8] sm:$0xff]  ;;  %v1313_v53 = vld [vmem:[%s1925_s1 + $0xd0] sm:$0xff]  ;;  %v1296_v55 = vld [vmem:[%s1925_s1 + $0x48] sm:$0xff] }
  0x11   :  { %v1312_v56 = vld [vmem:[%s1925_s1 + $0xc8] sm:$0xff]  ;;  %v1303_v57 = vld [vmem:[%s1925_s1 + $0x80] sm:$0xff]  ;;  %v939_v61 = vld [vmem:[%s1926_s0 + $0x14] sm:$0xf0] }
  0x12   :  { %1335 = vmatpush.bf16.msra.mxu1 %v1290_v4  ;;  %1336 = vmatpush.bf16.msra.mxu2 %v1290_v4  ;;  %v1295_v58 = vld [vmem:[%s1925_s1 + $0x40] sm:$0xff]  ;;  %v945_v62 = vld [vmem:[%s1926_s0 + $0x8] sm:$0xf]  ;;  %v1250_v63 = vld [vmem:[%s1926_s0 + $0x18] sm:$0xf0] }
  0x13   :  { %1337 = vmatpush.bf16.msra.mxu3 %v1290_v4  ;;  %586 = vmatpush.bf16.msra.mxu0 %v1290_v4  ;;  %v1311_v59 = vld [vmem:[%s1925_s1 + $0xc0] sm:$0xff]  ;;  %v1248_v0 = vld [vmem:[%s1926_s0 + $0xc] sm:$0xf]  ;;  %v953_v2 = vld [vmem:[%s1926_s0 + $0x10] sm:$0xf] }
  0x14   :  { %v1247_v60 = vld [vmem:[%s1926_s0 + $0x4] sm:$0xf]  ;;  %v947_v1 = vld [vmem:[%s1926_s0 + $0x1c] sm:$0xf0]  ;;  %v1252_v8 = vld [vmem:[%s1926_s0 + $0x2c] sm:$0xf] }
  0x15   :  { %v1251_v3 = vld [vmem:[%s1926_s0 + $0x20] sm:$0xf0]  ;;  %v942_v4 = vor.u32 %v1247_v60, %v939_v61  ;;  %v959_v9 = vld [vmem:[%s1926_s0 + $0x3c] sm:$0xf0]  ;;  %v965_v10 = vld [vmem:[%s1926_s0 + $0x30] sm:$0xf] }
  0x16   :  { %1338 = vmatpush.bf16.msra.mxu1 %v1289_v5  ;;  %1339 = vmatpush.bf16.msra.mxu2 %v1289_v5  ;;  %v1255_v11 = vld [vmem:[%s1926_s0 + $0x40] sm:$0xf0]  ;;  %v1253_v12 = vld [vmem:[%s1926_s0 + $0x34] sm:$0xf]  ;;  %v967_v13 = vld [vmem:[%s1926_s0 + $0x44] sm:$0xf0] }
  0x17   :  { %1340 = vmatpush.bf16.msra.mxu3 %v1289_v5  ;;  %587 = vmatpush.bf16.msra.mxu0 %v1289_v5  ;;  %v946_v5 = vor.u32 %v1250_v63, %v945_v62  ;;  %v973_v14 = vld [vmem:[%s1926_s0 + $0x38] sm:$0xf]  ;;  %v1256_v15 = vld [vmem:[%s1926_s0 + $0x48] sm:$0xf0]  ;;  %v1265_v35 = vld [vmem:[%s1926_s0 + $0x90] sm:$0xf0] }
  0x18   :  { %v1263_v36 = vld [vmem:[%s1926_s0 + $0x84] sm:$0xf]  ;;  %v1007_v37 = vld [vmem:[%s1926_s0 + $0x94] sm:$0xf0]  ;;  %v1013_v38 = vld [vmem:[%s1926_s0 + $0x88] sm:$0xf] }
  0x19   :  { %v1266_v39 = vld [vmem:[%s1926_s0 + $0x98] sm:$0xf0]  ;;  %v1010_v42 = vor.u32 %v1263_v36, %v1007_v37  ;;  %v1273_v60 = vld [vmem:[%s1926_s0 + $0xd4] sm:$0xf]  ;;  %v1047_v61 = vld [vmem:[%s1926_s0 + $0xe4] sm:$0xf0] }
  0x1a   :  { %1341 = vmatpush.bf16.msra.mxu1 %v1288_v6  ;;  %1342 = vmatpush.bf16.msra.mxu2 %v1288_v6  ;;  %v1053_v62 = vld [vmem:[%s1926_s0 + $0xd8] sm:$0xf]  ;;  %v1276_v63 = vld [vmem:[%s1926_s0 + $0xe8] sm:$0xf0] }
  0x1b   :  { %1343 = vmatpush.bf16.msra.mxu3 %v1288_v6  ;;  %588 = vmatpush.bf16.msra.mxu0 %v1288_v6  ;;  %v950_v6 = vor.u32 %v1248_v0, %v947_v1 }
  0x1e   :  { %1344 = vmatpush.bf16.msra.mxu1 %v1287_v7  ;;  %1345 = vmatpush.bf16.msra.mxu2 %v1287_v7 }
  0x1f   :  { %1346 = vmatpush.bf16.msra.mxu3 %v1287_v7  ;;  %589 = vmatpush.bf16.msra.mxu0 %v1287_v7  ;;  %v954_v7 = vor.u32 %v1251_v3, %v953_v2  ;;  %v1050_v2 = vor.u32 %v1273_v60, %v1047_v61  ;;  %v1054_v3 = vor.u32 %v1276_v63, %v1053_v62 }
  0x21   :  { %600 = vmatmul.bf16.vlgmr.msra.gmra.mxu1 %v978_v18  ;;  %610 = vmatmul.bf16.vlgmr.msra.gmra.mxu2 %v1018_v19  ;;  %v970_v18 = vor.u32 %v1253_v12, %v967_v13  ;;  %v974_v19 = vor.u32 %v1256_v15, %v973_v14 }
  0x22   :  { %680 = vmatpush.bf16.msrb.mxu2 %v1310_v16  ;;  %631 = vmatpush.bf16.msrb.mxu1 %v1302_v17  ;;  %v962_v16 = vor.u32 %v1252_v8, %v959_v9  ;;  %v966_v17 = vor.u32 %v1255_v11, %v965_v10  ;;  %v1278_v8 = vld [vmem:[%s1926_s0 + $0xfc] sm:$0xf]  ;;  %v1067_v9 = vld [vmem:[%s1926_s0 + $0x10c] sm:$0xf0]  ;;  %v1073_v10 = vld [vmem:[%s1926_s0 + $0x100] sm:$0xf] }
  0x23   :  { %620 = vmatmul.bf16.vlgmr.msra.gmra.mxu3 %v1058_v20  ;;  %590 = vmatmul.bf16.vlgmr.msra.gmra.mxu0 %v938_v21  ;;  %v1257_v20 = vld [vmem:[%s1926_s0 + $0x54] sm:$0xf]  ;;  %v979_v21 = vld [vmem:[%s1926_s0 + $0x64] sm:$0xf0]  ;;  %v1070_v15 = vor.u32 %v1278_v8, %v1067_v9 }
  0x24   :  { %729 = vmatpush.bf16.msrb.mxu3 %v1318_v22  ;;  %782 = vmatpush.bf16.msrb.mxu0 %v1322_v23  ;;  %v985_v22 = vld [vmem:[%s1926_s0 + $0x58] sm:$0xf]  ;;  %v1260_v23 = vld [vmem:[%s1926_s0 + $0x68] sm:$0xf0]  ;;  %v1281_v11 = vld [vmem:[%s1926_s0 + $0x110] sm:$0xf0] }
  0x26   :  { %681 = vmatpush.bf16.msrb.mxu2 %v1309_v24  ;;  %632 = vmatpush.bf16.msrb.mxu1 %v1301_v25  ;;  %v1258_v24 = vld [vmem:[%s1926_s0 + $0x5c] sm:$0xf]  ;;  %v987_v25 = vld [vmem:[%s1926_s0 + $0x6c] sm:$0xf0] }
  0x28   :  { %730 = vmatpush.bf16.msrb.mxu3 %v1317_v26  ;;  %783 = vmatpush.bf16.msrb.mxu0 %v1321_v27  ;;  %v993_v26 = vld [vmem:[%s1926_s0 + $0x60] sm:$0xf]  ;;  %v1261_v27 = vld [vmem:[%s1926_s0 + $0x70] sm:$0xf0] }
  0x2a   :  { %682 = vmatpush.bf16.msrb.mxu2 %v1308_v28  ;;  %633 = vmatpush.bf16.msrb.mxu1 %v1300_v29  ;;  %v982_v28 = vor.u32 %v1257_v20, %v979_v21  ;;  %v986_v29 = vor.u32 %v1260_v23, %v985_v22  ;;  %v1282_v22 = vld [vmem:[%s1926_s0 + $0x11c] sm:$0xf]  ;;  %v1079_v23 = vld [vmem:[%s1926_s0 + $0x12c] sm:$0xf0] }
  0x2c   :  { %731 = vmatpush.bf16.msrb.mxu3 %v1316_v30  ;;  %784 = vmatpush.bf16.msrb.mxu0 %v1320_v31  ;;  %v990_v30 = vor.u32 %v1258_v24, %v987_v25  ;;  %v994_v31 = vor.u32 %v1261_v27, %v993_v26  ;;  %v1085_v24 = vld [vmem:[%s1926_s0 + $0x120] sm:$0xf]  ;;  %v1285_v25 = vld [vmem:[%s1926_s0 + $0x130] sm:$0xf0]  ;;  %v1283_v26 = vld [vmem:[%s1926_s0 + $0x124] sm:$0xf] }
  0x2d   :  { %v1087_v27 = vld [vmem:[%s1926_s0 + $0x134] sm:$0xf0] }
  0x2e   :  { %683 = vmatpush.bf16.msrb.mxu2 %v1307_v32  ;;  %634 = vmatpush.bf16.msrb.mxu1 %v1299_v33  ;;  %v1262_v32 = vld [vmem:[%s1926_s0 + $0x7c] sm:$0xf]  ;;  %v999_v33 = vld [vmem:[%s1926_s0 + $0x8c] sm:$0xf0] }
  0x2f   :  { %v1002_v40 = vor.u32 %v1262_v32, %v999_v33  ;;  %v1082_v32 = vor.u32 %v1282_v22, %v1079_v23  ;;  %v1086_v33 = vor.u32 %v1285_v25, %v1085_v24  ;;  %v869_v24 = vld [vmem:[%s1929_s4 + $0x10] sm:$0xff] }
  0x30   :  { %732 = vmatpush.bf16.msrb.mxu3 %v1315_v34  ;;  %785 = vmatpush.bf16.msrb.mxu0 %v1319_v43  ;;  %v1005_v34 = vld [vmem:[%s1926_s0 + $0x80] sm:$0xf]  ;;  %v1014_v43 = vor.u32 %v1266_v39, %v1013_v38 }
  0x31   :  { %605 = vmatmul.bf16.gmra.mxu1 %v998_v46  ;;  %615 = vmatmul.bf16.gmra.mxu2 %v1038_v47  ;;  %v1006_v41 = vor.u32 %v1265_v35, %v1005_v34  ;;  %v1025_v46 = vld [vmem:[%s1926_s0 + $0xa8] sm:$0xf]  ;;  %v1270_v47 = vld [vmem:[%s1926_s0 + $0xb8] sm:$0xf0]  ;;  %v1090_v35 = vor.u32 %v1283_v26, %v1087_v27 }
  0x32   :  { %684 = vmatpush.bf16.msrb.mxu2 %v1306_v44  ;;  %635 = vmatpush.bf16.msrb.mxu1 %v1298_v45  ;;  %v1267_v44 = vld [vmem:[%s1926_s0 + $0xa4] sm:$0xf]  ;;  %v1019_v45 = vld [vmem:[%s1926_s0 + $0xb4] sm:$0xf0] }
  0x33   :  { %625 = vmatmul.bf16.gmra.mxu3 %v1078_v48  ;;  %595 = vmatmul.bf16.gmra.mxu0 %v958_v49  ;;  %v1268_v48 = vld [vmem:[%s1926_s0 + $0xac] sm:$0xf]  ;;  %v1027_v49 = vld [vmem:[%s1926_s0 + $0xbc] sm:$0xf0] }
  0x34   :  { %733 = vmatpush.bf16.msrb.mxu3 %v1314_v50  ;;  %v1033_v50 = vld [vmem:[%s1926_s0 + $0xb0] sm:$0xf] }
  0x36   :  { %685 = vmatpush.bf16.msrb.mxu2 %v1305_v51  ;;  %636 = vmatpush.bf16.msrb.mxu1 %v1297_v52  ;;  %v1271_v51 = vld [vmem:[%s1926_s0 + $0xc0] sm:$0xf0]  ;;  %v1022_v52 = vor.u32 %v1267_v44, %v1019_v45 }
  0x38   :  { %734 = vmatpush.bf16.msrb.mxu3 %v1313_v53  ;;  %v1026_v53 = vor.u32 %v1270_v47, %v1025_v46 }
  0x3a   :  { %686 = vmatpush.bf16.msrb.mxu2 %v1304_v54  ;;  %637 = vmatpush.bf16.msrb.mxu1 %v1296_v55  ;;  %v1030_v54 = vor.u32 %v1268_v48, %v1027_v49  ;;  %v1034_v55 = vor.u32 %v1271_v51, %v1033_v50 }
  0x3c   :  { %735 = vmatpush.bf16.msrb.mxu3 %v1312_v56  ;;  %v1272_v56 = vld [vmem:[%s1926_s0 + $0xcc] sm:$0xf] }
  0x3e   :  { %687 = vmatpush.bf16.msrb.mxu2 %v1303_v57  ;;  %638 = vmatpush.bf16.msrb.mxu1 %v1295_v58  ;;  %v1039_v57 = vld [vmem:[%s1926_s0 + $0xdc] sm:$0xf0]  ;;  %v1045_v58 = vld [vmem:[%s1926_s0 + $0xd0] sm:$0xf] }
  0x3f   :  { %v1042_v0 = vor.u32 %v1272_v56, %v1039_v57 }
  0x40   :  { %736 = vmatpush.bf16.msrb.mxu3 %v1311_v59  ;;  %v1275_v59 = vld [vmem:[%s1926_s0 + $0xe0] sm:$0xf0] }
  0x41   :  { %639 = vmatmul.bf16.vlgmr.msrb.gmra.mxu1 %v942_v4  ;;  %688 = vmatmul.bf16.vlgmr.msrb.gmra.mxu2 %v946_v5  ;;  %v1046_v1 = vor.u32 %v1275_v59, %v1045_v58  ;;  %v1277_v4 = vld [vmem:[%s1926_s0 + $0xf4] sm:$0xf]  ;;  %v1059_v5 = vld [vmem:[%s1926_s0 + $0x104] sm:$0xf0]  ;;  %v867_v58 = vld [vmem:[%s1929_s4] sm:$0xff] }
  0x42   :  { %v1062_v12 = vor.u32 %v1277_v4, %v1059_v5 }
  0x43   :  { %737 = vmatmul.bf16.vlgmr.msrb.gmra.mxu3 %v950_v6  ;;  %1239 = vmatmul.msk.bf16.vlgmr.msrb.gmra.mxu0 %vm557_vm0, %v954_v7  ;;  %v1065_v6 = vld [vmem:[%s1926_s0 + $0xf8] sm:$0xf]  ;;  %v1280_v7 = vld [vmem:[%s1926_s0 + $0x108] sm:$0xf0] }
  0x44   :  { %v1066_v13 = vor.u32 %v1280_v7, %v1065_v6  ;;  %v868_v7 = vld [vmem:[%s1929_s4 + $0x8] sm:$0xff] }
  0x51   :  { %644 = vmatmul.bf16.gmra.mxu1 %v962_v16  ;;  %693 = vmatmul.bf16.gmra.mxu2 %v966_v17  ;;  %v1074_v16 = vor.u32 %v1281_v11, %v1073_v10 }
  0x53   :  { %742 = vmatmul.bf16.gmra.mxu3 %v970_v18  ;;  %1240 = vmatmul.msk.bf16.gmra.mxu0 %vm557_vm0, %v974_v19 }
  0x61   :  { %649 = vmatmul.bf16.gmra.mxu1 %v982_v28  ;;  %698 = vmatmul.bf16.gmra.mxu2 %v986_v29  ;;  %v1093_v28 = vld [vmem:[%s1926_s0 + $0x128] sm:$0xf]  ;;  %v1286_v29 = vld [vmem:[%s1926_s0 + $0x138] sm:$0xf0] }
  0x62   :  { %v1094_v36 = vor.u32 %v1286_v29, %v1093_v28 }
  0x63   :  { %747 = vmatmul.bf16.gmra.mxu3 %v990_v30  ;;  %1241 = vmatmul.msk.bf16.gmra.mxu0 %vm557_vm0, %v994_v31 }
  0x71   :  { %654 = vmatmul.bf16.gmra.mxu1 %v1002_v40  ;;  %703 = vmatmul.bf16.gmra.mxu2 %v1006_v41 }
  0x73   :  { %752 = vmatmul.bf16.gmra.mxu3 %v1010_v42  ;;  %1242 = vmatmul.msk.bf16.gmra.mxu0 %vm557_vm0, %v1014_v43 }
  0x81   :  { %659 = vmatmul.bf16.gmra.mxu1 %v1022_v52  ;;  %708 = vmatmul.bf16.gmra.mxu2 %v1026_v53  ;;  %v1762_v52 = vld [vmem:[%s1927_s2] ss:$0 sm:$0xff] }
  0x83   :  { %757 = vmatmul.bf16.gmra.mxu3 %v1030_v54  ;;  %1243 = vmatmul.msk.bf16.gmra.mxu0 %vm557_vm0, %v1034_v55  ;;  %v1767_v55 = vld [vmem:[%s1928_s3] ss:$0 sm:$0xff] }
  0x91   :  { %664 = vmatmul.bf16.gmra.mxu1 %v1042_v0  ;;  %713 = vmatmul.bf16.gmra.mxu2 %v1046_v1 }
  0x93   :  { %762 = vmatmul.bf16.gmra.mxu3 %v1050_v2  ;;  %1244 = vmatmul.msk.bf16.gmra.mxu0 %vm557_vm0, %v1054_v3 }
  0x9e   :  { %v1709_v14 = vpop.f32.mrf.mxu1 }
  0xa0   :  { %v591_v17 = vpop.f32.mrf.mxu0 }
  0xa1   :  { %669 = vmatmul.bf16.gmra.mxu1 %v1062_v12  ;;  %718 = vmatmul.bf16.gmra.mxu2 %v1066_v13 }
  0xa3   :  { %767 = vmatmul.bf16.gmra.mxu3 %v1070_v15  ;;  %1245 = vmatmul.msk.bf16.gmra.mxu0 %vm557_vm0, %v1074_v16 }
  0xa4   :  { %v1712_v18 = vpop.f32.mrf.mxu2 }
  0xa6   :  { %v1714_v19 = vpop.f32.mrf.mxu3  ;;  %v1716_v20 = vpop.f32.mrf.mxu1 }
  0xa8   :  { %v593_v21 = vpop.f32.mrf.mxu0 }
  0xac   :  { %v1742_v30 = vpop.f32.mrf.mxu2 }
  0xae   :  { %v1744_v31 = vpop.f32.mrf.mxu3  ;;  %v1746_v34 = vpop.f32.mrf.mxu1 }
  0xb0   :  { %v596_v37 = vpop.f32.mrf.mxu0 }
  0xb1   :  { %674 = vmatmul.bf16.gmra.mxu1 %v1082_v32  ;;  %723 = vmatmul.bf16.gmra.mxu2 %v1086_v33 }
  0xb3   :  { %772 = vmatmul.bf16.gmra.mxu3 %v1090_v35  ;;  %1246 = vmatmul.msk.bf16.gmra.mxu0 %vm557_vm0, %v1094_v36 }
  0xb4   :  { %v1749_v38 = vpop.f32.mrf.mxu2 }
  0xb6   :  { %v1751_v39 = vpop.f32.mrf.mxu3  ;;  %v1753_v40 = vpop.f32.mrf.mxu1 }
  0xb8   :  { %v598_v41 = vpop.f32.mrf.mxu0 }
  0xbc   :  { %v1755_v42 = vpop.f32.mrf.mxu2 }
  0xbe   :  { %v1757_v43 = vpop.f32.mrf.mxu3  ;;  %v640_v44 = vpop.f32.mrf.mxu1 }
  0xbf   :  { %v641_v46 = vadd.f32 %v640_v44, %v591_v17 }
  0xc0   :  { %v787_v45 = vpop.f32.mrf.mxu0 }
  0xc4   :  { %v689_v47 = vpop.f32.mrf.mxu2 }
  0xc5   :  { %v690_v48 = vadd.f32 %v689_v47, %v641_v46 }
  0xc6   :  { %v738_v49 = vpop.f32.mrf.mxu3  ;;  %v642_v50 = vpop.f32.mrf.mxu1 }
  0xc7   :  { %v739_v51 = vadd.f32 %v738_v49, %v690_v48  ;;  %v643_v57 = vadd.f32 %v642_v50, %v593_v21 }
  0xc8   :  { %v789_v53 = vpop.f32.mrf.mxu0 }
  0xc9   :  { %v788_v54 = vadd.f32 %v787_v45, %v739_v51  ;;  %v870_v45 = vld [vmem:[%s1929_s4 + $0x18] sm:$0xff] }
  0xcb   :  { %v831_v56 = vmul.f32 %v1762_v52, %v788_v54 }
  0xcc   :  { %v691_v59 = vpop.f32.mrf.mxu2 }
  0xcd   :  { %v851_v60 = vadd.f32 %v1767_v55, %v831_v56  ;;  %v692_v61 = vadd.f32 %v691_v59, %v643_v57  ;;  %v871_v59 = vld [vmem:[%s1929_s4 + $0x20] sm:$0xff] }
  0xce   :  { %v740_v62 = vpop.f32.mrf.mxu3  ;;  %v645_v63 = vpop.f32.mrf.mxu1 }
  0xcf   :  { %v883_v0 = vadd.f32 %v867_v58, %v851_v60  ;;  %v741_v1 = vadd.f32 %v740_v62, %v692_v61  ;;  %v646_v6 = vadd.f32 %v645_v63, %v596_v37 }
  0xd0   :  { %v792_v2 = vpop.f32.mrf.mxu0 }
  0xd1   :  { %v899_v3 = vmax.f32 %v883_v0, 0.0  ;;  %v790_v4 = vadd.f32 %v789_v53, %v741_v1 }
  0xd3   :  { %915 = vst.msk [vmem:[%s1930_s5] sm:$0xff] %vm557_vm0, %v899_v3  ;;  %v832_v5 = vmul.f32 %v1762_v52, %v790_v4 }
  0xd4   :  { %v694_v8 = vpop.f32.mrf.mxu2 }
  0xd5   :  { %v852_v9 = vadd.f32 %v1767_v55, %v832_v5  ;;  %v695_v10 = vadd.f32 %v694_v8, %v646_v6 }
  0xd6   :  { %v743_v11 = vpop.f32.mrf.mxu3  ;;  %v647_v12 = vpop.f32.mrf.mxu1 }
  0xd7   :  { %v884_v13 = vadd.f32 %v868_v7, %v852_v9  ;;  %v744_v15 = vadd.f32 %v743_v11, %v695_v10  ;;  %v648_v23 = vadd.f32 %v647_v12, %v598_v41  ;;  %v872_v7 = vld [vmem:[%s1929_s4 + $0x28] sm:$0xff] }
  0xd8   :  { %v794_v16 = vpop.f32.mrf.mxu0 }
  0xd9   :  { %v900_v17 = vmax.f32 %v884_v13, 0.0  ;;  %v793_v21 = vadd.f32 %v792_v2, %v744_v15 }
  0xdb   :  { %916 = vst.msk [vmem:[%s1930_s5 + $0x8] sm:$0xff] %vm557_vm0, %v900_v17  ;;  %v833_v22 = vmul.f32 %v1762_v52, %v793_v21 }
  0xdc   :  { %v696_v25 = vpop.f32.mrf.mxu2 }
  0xdd   :  { %v853_v26 = vadd.f32 %v1767_v55, %v833_v22  ;;  %v697_v27 = vadd.f32 %v696_v25, %v648_v23  ;;  %v873_v23 = vld [vmem:[%s1929_s4 + $0x30] sm:$0xff] }
  0xde   :  { %v745_v28 = vpop.f32.mrf.mxu3  ;;  %v650_v29 = vpop.f32.mrf.mxu1 }
  0xdf   :  { %v885_v32 = vadd.f32 %v869_v24, %v853_v26  ;;  %v746_v33 = vadd.f32 %v745_v28, %v697_v27  ;;  %v651_v44 = vadd.f32 %v650_v29, %v1709_v14 }
  0xe0   :  { %v797_v35 = vpop.f32.mrf.mxu0 }
  0xe1   :  { %v901_v36 = vmax.f32 %v885_v32, 0.0  ;;  %v795_v37 = vadd.f32 %v794_v16, %v746_v33 }
  0xe3   :  { %917 = vst.msk [vmem:[%s1930_s5 + $0x10] sm:$0xff] %vm557_vm0, %v901_v36  ;;  %v834_v41 = vmul.f32 %v1762_v52, %v795_v37 }
  0xe4   :  { %v699_v46 = vpop.f32.mrf.mxu2 }
  0xe5   :  { %v854_v47 = vadd.f32 %v1767_v55, %v834_v41  ;;  %v700_v48 = vadd.f32 %v699_v46, %v651_v44  ;;  %v874_v41 = vld [vmem:[%s1929_s4 + $0x38] sm:$0xff] }
  0xe6   :  { %v748_v49 = vpop.f32.mrf.mxu3  ;;  %v652_v50 = vpop.f32.mrf.mxu1 }
  0xe7   :  { %v886_v51 = vadd.f32 %v870_v45, %v854_v47  ;;  %v749_v53 = vadd.f32 %v748_v49, %v700_v48  ;;  %v653_v58 = vadd.f32 %v652_v50, %v1716_v20 }
  0xe8   :  { %v799_v54 = vpop.f32.mrf.mxu0 }
  0xe9   :  { %v902_v56 = vmax.f32 %v886_v51, 0.0  ;;  %v798_v57 = vadd.f32 %v797_v35, %v749_v53 }
  0xeb   :  { %918 = vst.msk [vmem:[%s1930_s5 + $0x18] sm:$0xff] %vm557_vm0, %v902_v56  ;;  %v835_v14 = vmul.f32 %v1762_v52, %v798_v57  ;;  %v875_v57 = vld [vmem:[%s1929_s4 + $0x40] sm:$0xff] }
  0xec   :  { %v701_v60 = vpop.f32.mrf.mxu2 }
  0xed   :  { %v855_v61 = vadd.f32 %v1767_v55, %v835_v14  ;;  %v702_v62 = vadd.f32 %v701_v60, %v653_v58 }
  0xee   :  { %v750_v63 = vpop.f32.mrf.mxu3  ;;  %v655_v0 = vpop.f32.mrf.mxu1 }
  0xef   :  { %v887_v1 = vadd.f32 %v871_v59, %v855_v61  ;;  %v751_v2 = vadd.f32 %v750_v63, %v702_v62  ;;  %v656_v6 = vadd.f32 %v655_v0, %v1746_v34 }
  0xf0   :  { %v802_v3 = vpop.f32.mrf.mxu0 }
  0xf1   :  { %v903_v4 = vmax.f32 %v887_v1, 0.0  ;;  %v800_v5 = vadd.f32 %v799_v54, %v751_v2 }
  0xf3   :  { %919 = vst.msk [vmem:[%s1930_s5 + $0x20] sm:$0xff] %vm557_vm0, %v903_v4  ;;  %v836_v20 = vmul.f32 %v1762_v52, %v800_v5  ;;  %v876_v4 = vld [vmem:[%s1929_s4 + $0x48] sm:$0xff] }
  0xf4   :  { %v704_v8 = vpop.f32.mrf.mxu2 }
  0xf5   :  { %v856_v9 = vadd.f32 %v1767_v55, %v836_v20  ;;  %v705_v10 = vadd.f32 %v704_v8, %v656_v6 }
  0xf6   :  { %v753_v11 = vpop.f32.mrf.mxu3  ;;  %v657_v12 = vpop.f32.mrf.mxu1 }
  0xf7   :  { %v888_v13 = vadd.f32 %v872_v7, %v856_v9  ;;  %v754_v15 = vadd.f32 %v753_v11, %v705_v10  ;;  %v658_v22 = vadd.f32 %v657_v12, %v1753_v40 }
  0xf8   :  { %v804_v16 = vpop.f32.mrf.mxu0 }
  0xf9   :  { %v904_v17 = vmax.f32 %v888_v13, 0.0  ;;  %v803_v21 = vadd.f32 %v802_v3, %v754_v15 }
  0xfb   :  { %920 = vst.msk [vmem:[%s1930_s5 + $0x28] sm:$0xff] %vm557_vm0, %v904_v17  ;;  %v837_v34 = vmul.f32 %v1762_v52, %v803_v21 }
  0xfc   :  { %v706_v24 = vpop.f32.mrf.mxu2 }
  0xfd   :  { %v857_v25 = vadd.f32 %v1767_v55, %v837_v34  ;;  %v707_v26 = vadd.f32 %v706_v24, %v658_v22 }
  0xfe   :  { %v755_v27 = vpop.f32.mrf.mxu3  ;;  %v660_v28 = vpop.f32.mrf.mxu1 }
  0xff   :  { %v889_v29 = vadd.f32 %v873_v23, %v857_v25  ;;  %v756_v32 = vadd.f32 %v755_v27, %v707_v26  ;;  %v661_v37 = vadd.f32 %v660_v28, %v1712_v18 }
 0x100   :  { %v807_v33 = vpop.f32.mrf.mxu0 }
 0x101   :  { %v905_v35 = vmax.f32 %v889_v29, 0.0  ;;  %v805_v36 = vadd.f32 %v804_v16, %v756_v32  ;;  %v877_v16 = vld [vmem:[%s1929_s4 + $0x50] sm:$0xff]  ;;  %v878_v32 = vld [vmem:[%s1929_s4 + $0x58] sm:$0xff] }
 0x103   :  { %921 = vst.msk [vmem:[%s1930_s5 + $0x30] sm:$0xff] %vm557_vm0, %v905_v35  ;;  %v838_v40 = vmul.f32 %v1762_v52, %v805_v36 }
 0x104   :  { %v709_v44 = vpop.f32.mrf.mxu2 }
 0x105   :  { %v858_v45 = vadd.f32 %v1767_v55, %v838_v40  ;;  %v710_v46 = vadd.f32 %v709_v44, %v661_v37 }
 0x106   :  { %v758_v47 = vpop.f32.mrf.mxu3  ;;  %v662_v48 = vpop.f32.mrf.mxu1 }
 0x107   :  { %v890_v49 = vadd.f32 %v874_v41, %v858_v45  ;;  %v759_v50 = vadd.f32 %v758_v47, %v710_v46  ;;  %v663_v56 = vadd.f32 %v662_v48, %v1742_v30  ;;  %v879_v48 = vld [vmem:[%s1929_s4 + $0x60] sm:$0xff] }
 0x108   :  { %v809_v51 = vpop.f32.mrf.mxu0 }
 0x109   :  { %v906_v53 = vmax.f32 %v890_v49, 0.0  ;;  %v808_v54 = vadd.f32 %v807_v33, %v759_v50 }
 0x10b   :  { %922 = vst.msk [vmem:[%s1930_s5 + $0x38] sm:$0xff] %vm557_vm0, %v906_v53  ;;  %v839_v18 = vmul.f32 %v1762_v52, %v808_v54 }
 0x10c   :  { %v711_v14 = vpop.f32.mrf.mxu2 }
 0x10d   :  { %v859_v58 = vadd.f32 %v1767_v55, %v839_v18  ;;  %v712_v59 = vadd.f32 %v711_v14, %v663_v56 }
 0x10e   :  { %v760_v60 = vpop.f32.mrf.mxu3  ;;  %v665_v61 = vpop.f32.mrf.mxu1 }
 0x10f   :  { %v891_v62 = vadd.f32 %v875_v57, %v859_v58  ;;  %v761_v63 = vadd.f32 %v760_v60, %v712_v59  ;;  %v666_v3 = vadd.f32 %v665_v61, %v1749_v38  ;;  %v880_v60 = vld [vmem:[%s1929_s4 + $0x68] sm:$0xff] }
 0x110   :  { %v812_v0 = vpop.f32.mrf.mxu0 }
 0x111   :  { %v907_v1 = vmax.f32 %v891_v62, 0.0  ;;  %v810_v2 = vadd.f32 %v809_v51, %v761_v63 }
 0x113   :  { %923 = vst.msk [vmem:[%s1930_s5 + $0x40] sm:$0xff] %vm557_vm0, %v907_v1  ;;  %v840_v30 = vmul.f32 %v1762_v52, %v810_v2 }
 0x114   :  { %v714_v5 = vpop.f32.mrf.mxu2 }
 0x115   :  { %v860_v20 = vadd.f32 %v1767_v55, %v840_v30  ;;  %v715_v6 = vadd.f32 %v714_v5, %v666_v3 }
 0x116   :  { %v763_v7 = vpop.f32.mrf.mxu3  ;;  %v667_v8 = vpop.f32.mrf.mxu1 }
 0x117   :  { %v892_v9 = vadd.f32 %v876_v4, %v860_v20  ;;  %v764_v10 = vadd.f32 %v763_v7, %v715_v6  ;;  %v668_v15 = vadd.f32 %v667_v8, %v1755_v42  ;;  %v881_v6 = vld [vmem:[%s1929_s4 + $0x70] sm:$0xff] }
 0x118   :  { %v814_v11 = vpop.f32.mrf.mxu0 }
 0x119   :  { %v908_v12 = vmax.f32 %v892_v9, 0.0  ;;  %v813_v13 = vadd.f32 %v812_v0, %v764_v10 }
 0x11b   :  { %924 = vst.msk [vmem:[%s1930_s5 + $0x48] sm:$0xff] %vm557_vm0, %v908_v12  ;;  %v841_v38 = vmul.f32 %v1762_v52, %v813_v13 }
 0x11c   :  { %v716_v17 = vpop.f32.mrf.mxu2 }
 0x11d   :  { %v861_v21 = vadd.f32 %v1767_v55, %v841_v38  ;;  %v717_v34 = vadd.f32 %v716_v17, %v668_v15 }
 0x11e   :  { %v765_v22 = vpop.f32.mrf.mxu3  ;;  %v670_v23 = vpop.f32.mrf.mxu1 }
 0x11f   :  { %v893_v24 = vadd.f32 %v877_v16, %v861_v21  ;;  %v766_v25 = vadd.f32 %v765_v22, %v717_v34  ;;  %v671_v29 = vadd.f32 %v670_v23, %v1714_v19  ;;  %v882_v16 = vld [vmem:[%s1929_s4 + $0x78] sm:$0xff] }
 0x120   :  { %v817_v28 = vpop.f32.mrf.mxu0 }
 0x121   :  { %v909_v26 = vmax.f32 %v893_v24, 0.0  ;;  %v815_v27 = vadd.f32 %v814_v11, %v766_v25 }
 0x123   :  { %925 = vst.msk [vmem:[%s1930_s5 + $0x50] sm:$0xff] %vm557_vm0, %v909_v26  ;;  %v842_v42 = vmul.f32 %v1762_v52, %v815_v27 }
 0x124   :  { %v719_v33 = vpop.f32.mrf.mxu2 }
 0x125   :  { %v862_v35 = vadd.f32 %v1767_v55, %v842_v42  ;;  %v720_v36 = vadd.f32 %v719_v33, %v671_v29 }
 0x126   :  { %v768_v40 = vpop.f32.mrf.mxu3  ;;  %v672_v37 = vpop.f32.mrf.mxu1 }
 0x127   :  { %v894_v41 = vadd.f32 %v878_v32, %v862_v35  ;;  %v769_v44 = vadd.f32 %v768_v40, %v720_v36  ;;  %v673_v47 = vadd.f32 %v672_v37, %v1744_v31 }
 0x128   :  { %v819_v49 = vpop.f32.mrf.mxu0 }
 0x129   :  { %v910_v45 = vmax.f32 %v894_v41, 0.0  ;;  %v818_v46 = vadd.f32 %v817_v28, %v769_v44 }
 0x12b   :  { %926 = vst.msk [vmem:[%s1930_s5 + $0x58] sm:$0xff] %vm557_vm0, %v910_v45  ;;  %v843_v19 = vmul.f32 %v1762_v52, %v818_v46 }
 0x12c   :  { %v721_v50 = vpop.f32.mrf.mxu2 }
 0x12d   :  { %v863_v51 = vadd.f32 %v1767_v55, %v843_v19  ;;  %v722_v53 = vadd.f32 %v721_v50, %v673_v47 }
 0x12e   :  { %v770_v54 = vpop.f32.mrf.mxu3  ;;  %v675_v18 = vpop.f32.mrf.mxu1 }
 0x12f   :  { %v895_v56 = vadd.f32 %v879_v48, %v863_v51  ;;  %v771_v57 = vadd.f32 %v770_v54, %v722_v53  ;;  %v676_v59 = vadd.f32 %v675_v18, %v1751_v39 }
 0x130   :  { %v822_v1 = vpop.f32.mrf.mxu0 }
 0x131   :  { %v911_v14 = vmax.f32 %v895_v56, 0.0  ;;  %v820_v58 = vadd.f32 %v819_v49, %v771_v57 }
 0x133   :  { %927 = vst.msk [vmem:[%s1930_s5 + $0x60] sm:$0xff] %vm557_vm0, %v911_v14  ;;  %v844_v31 = vmul.f32 %v1762_v52, %v820_v58 }
 0x134   :  { %v724_v61 = vpop.f32.mrf.mxu2 }
 0x135   :  { %v864_v62 = vadd.f32 %v1767_v55, %v844_v31  ;;  %v725_v63 = vadd.f32 %v724_v61, %v676_v59 }
 0x136   :  { %v773_v0 = vpop.f32.mrf.mxu3  ;;  %v677_v3 = vpop.f32.mrf.mxu1 }
 0x137   :  { %v896_v2 = vadd.f32 %v880_v60, %v864_v62  ;;  %v774_v30 = vadd.f32 %v773_v0, %v725_v63  ;;  %v678_v20 = vadd.f32 %v677_v3, %v1757_v43 }
 0x138   :  { %v824_v13 = vpop.f32.mrf.mxu0 }
 0x139   :  { %v912_v4 = vmax.f32 %v896_v2, 0.0  ;;  %v823_v5 = vadd.f32 %v822_v1, %v774_v30 }
 0x13b   :  { %928 = vst.msk [vmem:[%s1930_s5 + $0x68] sm:$0xff] %vm557_vm0, %v912_v4  ;;  %v845_v39 = vmul.f32 %v1762_v52, %v823_v5 }
 0x13c   :  { %v726_v7 = vpop.f32.mrf.mxu2 }
 0x13d   :  { %v865_v8 = vadd.f32 %v1767_v55, %v845_v39  ;;  %v727_v9 = vadd.f32 %v726_v7, %v678_v20 }
 0x13e   :  { %v775_v10 = vpop.f32.mrf.mxu3 }
 0x13f   :  { %v897_v11 = vadd.f32 %v881_v6, %v865_v8  ;;  %v776_v12 = vadd.f32 %v775_v10, %v727_v9 }
 0x141   :  { %v913_v38 = vmax.f32 %v897_v11, 0.0  ;;  %v825_v15 = vadd.f32 %v824_v13, %v776_v12 }
 0x143   :  { %929 = vst.msk [vmem:[%s1930_s5 + $0x70] sm:$0xff] %vm557_vm0, %v913_v38  ;;  %v846_v43 = vmul.f32 %v1762_v52, %v825_v15 }
 0x145   :  { %v866_v17 = vadd.f32 %v1767_v55, %v846_v43 }
 0x147   :  { %v898_v21 = vadd.f32 %v882_v16, %v866_v17 }
 0x149   :  { %v914_v34 = vmax.f32 %v898_v21, 0.0 }
 0x14b   :  { %930 = vst.msk [vmem:[%s1930_s5 + $0x78] sm:$0xff] %vm557_vm0, %v914_v34 }

// kernel: alzheimer_resnet_forward.23
= control target key start
LH: loop header
LB: loop body
LE: loop exit
PB: predicated region body
PF: predicated region fallthrough
CT: control target
= control target key end

     0   :  { %9 = vsyncpa [#allocation3], 0  ;;  %s1923_s0 = inlined_call_operand.vmem [shape: bf16[128,576], index: 0, kind: input, shape index: {}]   ;;  %s1924_s1 = inlined_call_operand.vmem [shape: bf16[576,64], index: 1, kind: input, shape index: {}]   ;;  %s1925_s2 = inlined_call_operand.hbm [shape: f32[1,64], index: 2, kind: input, shape index: {}]   ;;  %s1926_s3 = inlined_call_operand.hbm [shape: f32[1,64], index: 3, kind: input, shape index: {}]   ;;  %s1927_s4 = inlined_call_operand.vmem [shape: f32[128,64], index: 4, kind: output, shape index: {}]  }
   0x1   :  { %s20_s17 = sshll.u32 %s1925_s2, 4  ;;  %s21_s17 = int_to_ptr.hbm [resolvable:$true] %s20_s17 }
   0x2   :  { %10 = vsyncpa [#allocation5], 0  ;;  %s1398_s18 = smov [#allocation2]   ;;  %s31_s22 = sshll.u32 %s1926_s3, 4  ;;  %s32_s22 = int_to_ptr.hbm [resolvable:$true] %s31_s22 }
   0x3   :  { %s22_s19 = sshll.u32 %s1398_s18, 4  ;;  %s1399_s23 = smov [#allocation4]   ;;  %s23_s19 = int_to_ptr.vmem [resolvable:$true] %s22_s19 }
   0x4   :  { %25 = dma.hbm_to_vmem [thread:$0]  %s21_s17, 16, %s23_s19, [#allocation3]  }
   0x5   :  { %s33_s24 = sshll.u32 %s1399_s23, 4  ;;  %s34_s24 = int_to_ptr.vmem [resolvable:$true] %s33_s24 }
   0x6   :  { %36 = dma.hbm_to_vmem [thread:$0]  %s32_s22, 16, %s34_s24, [#allocation5]  }
   0x7   :  { %1394 = dma.done.wait [#allocation3], 16  }
   0x8   :  { %1395 = vsyncadd [#allocation3], 4294967280 }
   0x9   :  { %1396 = dma.done.wait [#allocation5], 16  }
   0xa   :  { %1397 = vsyncadd [#allocation5], 4294967280  ;;  %v1289_v0 = vld [vmem:[%s1924_s1 + $0x38] sm:$0xff]  ;;  %v1288_v1 = vld [vmem:[%s1924_s1 + $0x30] sm:$0xff]  ;;  %vm582_vm0 = vcmask 523264  }
   0xb   :  { %1318 = vmatpush.bf16.msra.mxu1 %v1289_v0  ;;  %1319 = vmatpush.bf16.msra.mxu2 %v1289_v0  ;;  %v1287_v2 = vld [vmem:[%s1924_s1 + $0x28] sm:$0xff]  ;;  %v1286_v3 = vld [vmem:[%s1924_s1 + $0x20] sm:$0xff]  ;;  %v1285_v4 = vld [vmem:[%s1924_s1 + $0x18] sm:$0xff] }
   0xc   :  { %1320 = vmatpush.bf16.msra.mxu3 %v1289_v0  ;;  %607 = vmatpush.bf16.msra.mxu0 %v1289_v0  ;;  %v1284_v5 = vld [vmem:[%s1924_s1 + $0x10] sm:$0xff]  ;;  %v1283_v6 = vld [vmem:[%s1924_s1 + $0x8] sm:$0xff]  ;;  %v1282_v7 = vld [vmem:[%s1924_s1] sm:$0xff] }
   0xd   :  { %v972_v8 = vld [vmem:[%s1923_s0 + $0x50] sm:$0xf]  ;;  %v1254_v9 = vld [vmem:[%s1923_s0 + $0x60] sm:$0xf0]  ;;  %v1012_v10 = vld [vmem:[%s1923_s0 + $0xa0] sm:$0xf] }
   0xe   :  { %v1264_v11 = vld [vmem:[%s1923_s0 + $0xb0] sm:$0xf0]  ;;  %v1052_v12 = vld [vmem:[%s1923_s0 + $0xf0] sm:$0xf]  ;;  %v1274_v13 = vld [vmem:[%s1923_s0 + $0x100] sm:$0xf0]  ;;  %v973_v18 = vor.u32 %v1254_v9, %v972_v8 }
   0xf   :  { %1321 = vmatpush.bf16.msra.mxu1 %v1288_v1  ;;  %1322 = vmatpush.bf16.msra.mxu2 %v1288_v1  ;;  %v932_v14 = vld [vmem:[%s1923_s0] sm:$0xf]  ;;  %v1244_v15 = vld [vmem:[%s1923_s0 + $0x10] sm:$0xf0]  ;;  %v1305_v16 = vld [vmem:[%s1924_s1 + $0xb8] sm:$0xff]  ;;  %v1013_v19 = vor.u32 %v1264_v11, %v1012_v10  ;;  %v1053_v20 = vor.u32 %v1274_v13, %v1052_v12 }
  0x10   :  { %1323 = vmatpush.bf16.msra.mxu3 %v1288_v1  ;;  %608 = vmatpush.bf16.msra.mxu0 %v1288_v1  ;;  %v1297_v17 = vld [vmem:[%s1924_s1 + $0x78] sm:$0xff]  ;;  %v933_v21 = vor.u32 %v1244_v15, %v932_v14  ;;  %v1304_v24 = vld [vmem:[%s1924_s1 + $0xb0] sm:$0xff]  ;;  %v1303_v28 = vld [vmem:[%s1924_s1 + $0xa8] sm:$0xff] }
  0x11   :  { %v1313_v22 = vld [vmem:[%s1924_s1 + $0xf8] sm:$0xff]  ;;  %v1296_v25 = vld [vmem:[%s1924_s1 + $0x70] sm:$0xff]  ;;  %v1295_v29 = vld [vmem:[%s1924_s1 + $0x68] sm:$0xff] }
  0x12   :  { %v1317_v23 = vld [vmem:[%s1924_s1 + $0x118] sm:$0xff]  ;;  %v1312_v26 = vld [vmem:[%s1924_s1 + $0xf0] sm:$0xff]  ;;  %v1311_v30 = vld [vmem:[%s1924_s1 + $0xe8] sm:$0xff] }
  0x13   :  { %1324 = vmatpush.bf16.msra.mxu1 %v1287_v2  ;;  %1325 = vmatpush.bf16.msra.mxu2 %v1287_v2  ;;  %v1316_v27 = vld [vmem:[%s1924_s1 + $0x110] sm:$0xff]  ;;  %v1315_v31 = vld [vmem:[%s1924_s1 + $0x108] sm:$0xff]  ;;  %v1302_v32 = vld [vmem:[%s1924_s1 + $0xa0] sm:$0xff] }
  0x14   :  { %1326 = vmatpush.bf16.msra.mxu3 %v1287_v2  ;;  %609 = vmatpush.bf16.msra.mxu0 %v1287_v2  ;;  %v1294_v33 = vld [vmem:[%s1924_s1 + $0x60] sm:$0xff]  ;;  %v992_v35 = vld [vmem:[%s1923_s0 + $0x78] sm:$0xf]  ;;  %v1259_v36 = vld [vmem:[%s1923_s0 + $0x88] sm:$0xf0] }
  0x15   :  { %v1310_v34 = vld [vmem:[%s1924_s1 + $0xe0] sm:$0xff]  ;;  %v1032_v37 = vld [vmem:[%s1923_s0 + $0xc8] sm:$0xf]  ;;  %v1269_v38 = vld [vmem:[%s1923_s0 + $0xd8] sm:$0xf0]  ;;  %v993_v46 = vor.u32 %v1259_v36, %v992_v35 }
  0x16   :  { %v1072_v39 = vld [vmem:[%s1923_s0 + $0x118] sm:$0xf]  ;;  %v1279_v40 = vld [vmem:[%s1923_s0 + $0x128] sm:$0xf0]  ;;  %v952_v41 = vld [vmem:[%s1923_s0 + $0x28] sm:$0xf]  ;;  %v1033_v47 = vor.u32 %v1269_v38, %v1032_v37 }
  0x17   :  { %1327 = vmatpush.bf16.msra.mxu1 %v1286_v3  ;;  %1328 = vmatpush.bf16.msra.mxu2 %v1286_v3  ;;  %v1249_v42 = vld [vmem:[%s1923_s0 + $0x38] sm:$0xf0]  ;;  %v1314_v43 = vld [vmem:[%s1924_s1 + $0x100] sm:$0xff]  ;;  %v1073_v48 = vor.u32 %v1279_v40, %v1072_v39  ;;  %v1300_v51 = vld [vmem:[%s1924_s1 + $0x90] sm:$0xff] }
  0x18   :  { %1329 = vmatpush.bf16.msra.mxu3 %v1286_v3  ;;  %610 = vmatpush.bf16.msra.mxu0 %v1286_v3  ;;  %v1301_v44 = vld [vmem:[%s1924_s1 + $0x98] sm:$0xff]  ;;  %v953_v49 = vor.u32 %v1249_v42, %v952_v41  ;;  %v1292_v52 = vld [vmem:[%s1924_s1 + $0x50] sm:$0xff]  ;;  %v1299_v54 = vld [vmem:[%s1924_s1 + $0x88] sm:$0xff] }
  0x19   :  { %v1293_v45 = vld [vmem:[%s1924_s1 + $0x58] sm:$0xff]  ;;  %v1308_v53 = vld [vmem:[%s1924_s1 + $0xd0] sm:$0xff]  ;;  %v1291_v55 = vld [vmem:[%s1924_s1 + $0x48] sm:$0xff] }
  0x1a   :  { %v1309_v50 = vld [vmem:[%s1924_s1 + $0xd8] sm:$0xff]  ;;  %v1307_v56 = vld [vmem:[%s1924_s1 + $0xc8] sm:$0xff]  ;;  %v1298_v57 = vld [vmem:[%s1924_s1 + $0x80] sm:$0xff] }
  0x1b   :  { %1330 = vmatpush.bf16.msra.mxu1 %v1285_v4  ;;  %1331 = vmatpush.bf16.msra.mxu2 %v1285_v4  ;;  %v1290_v58 = vld [vmem:[%s1924_s1 + $0x40] sm:$0xff]  ;;  %v934_v61 = vld [vmem:[%s1923_s0 + $0x14] sm:$0xf0]  ;;  %v940_v62 = vld [vmem:[%s1923_s0 + $0x8] sm:$0xf] }
  0x1c   :  { %1332 = vmatpush.bf16.msra.mxu3 %v1285_v4  ;;  %611 = vmatpush.bf16.msra.mxu0 %v1285_v4  ;;  %v1306_v59 = vld [vmem:[%s1924_s1 + $0xc0] sm:$0xff]  ;;  %v1245_v63 = vld [vmem:[%s1923_s0 + $0x18] sm:$0xf0]  ;;  %v1243_v0 = vld [vmem:[%s1923_s0 + $0xc] sm:$0xf] }
  0x1d   :  { %v1242_v60 = vld [vmem:[%s1923_s0 + $0x4] sm:$0xf]  ;;  %v942_v1 = vld [vmem:[%s1923_s0 + $0x1c] sm:$0xf0]  ;;  %v948_v2 = vld [vmem:[%s1923_s0 + $0x10] sm:$0xf] }
  0x1e   :  { %v1246_v3 = vld [vmem:[%s1923_s0 + $0x20] sm:$0xf0]  ;;  %v937_v4 = vor.u32 %v1242_v60, %v934_v61  ;;  %v1247_v8 = vld [vmem:[%s1923_s0 + $0x2c] sm:$0xf]  ;;  %v954_v9 = vld [vmem:[%s1923_s0 + $0x3c] sm:$0xf0] }
  0x1f   :  { %1333 = vmatpush.bf16.msra.mxu1 %v1284_v5  ;;  %1334 = vmatpush.bf16.msra.mxu2 %v1284_v5  ;;  %v960_v10 = vld [vmem:[%s1923_s0 + $0x30] sm:$0xf]  ;;  %v1250_v11 = vld [vmem:[%s1923_s0 + $0x40] sm:$0xf0]  ;;  %v1248_v12 = vld [vmem:[%s1923_s0 + $0x34] sm:$0xf] }
  0x20   :  { %1335 = vmatpush.bf16.msra.mxu3 %v1284_v5  ;;  %612 = vmatpush.bf16.msra.mxu0 %v1284_v5  ;;  %v941_v5 = vor.u32 %v1245_v63, %v940_v62  ;;  %v962_v13 = vld [vmem:[%s1923_s0 + $0x44] sm:$0xf0]  ;;  %v968_v14 = vld [vmem:[%s1923_s0 + $0x38] sm:$0xf]  ;;  %v1251_v15 = vld [vmem:[%s1923_s0 + $0x48] sm:$0xf0] }
  0x21   :  { %v1260_v35 = vld [vmem:[%s1923_s0 + $0x90] sm:$0xf0]  ;;  %v1258_v36 = vld [vmem:[%s1923_s0 + $0x84] sm:$0xf]  ;;  %v1002_v37 = vld [vmem:[%s1923_s0 + $0x94] sm:$0xf0] }
  0x22   :  { %v1008_v38 = vld [vmem:[%s1923_s0 + $0x88] sm:$0xf]  ;;  %v1261_v39 = vld [vmem:[%s1923_s0 + $0x98] sm:$0xf0]  ;;  %v1005_v42 = vor.u32 %v1258_v36, %v1002_v37  ;;  %v1268_v60 = vld [vmem:[%s1923_s0 + $0xd4] sm:$0xf] }
  0x23   :  { %1336 = vmatpush.bf16.msra.mxu1 %v1283_v6  ;;  %1337 = vmatpush.bf16.msra.mxu2 %v1283_v6  ;;  %v1042_v61 = vld [vmem:[%s1923_s0 + $0xe4] sm:$0xf0]  ;;  %v1048_v62 = vld [vmem:[%s1923_s0 + $0xd8] sm:$0xf]  ;;  %v1271_v63 = vld [vmem:[%s1923_s0 + $0xe8] sm:$0xf0] }
  0x24   :  { %1338 = vmatpush.bf16.msra.mxu3 %v1283_v6  ;;  %613 = vmatpush.bf16.msra.mxu0 %v1283_v6  ;;  %v945_v6 = vor.u32 %v1243_v0, %v942_v1 }
  0x27   :  { %1339 = vmatpush.bf16.msra.mxu1 %v1282_v7  ;;  %1340 = vmatpush.bf16.msra.mxu2 %v1282_v7 }
  0x28   :  { %1341 = vmatpush.bf16.msra.mxu3 %v1282_v7  ;;  %614 = vmatpush.bf16.msra.mxu0 %v1282_v7  ;;  %v949_v7 = vor.u32 %v1246_v3, %v948_v2  ;;  %v1045_v2 = vor.u32 %v1268_v60, %v1042_v61  ;;  %v1049_v3 = vor.u32 %v1271_v63, %v1048_v62 }
  0x2a   :  { %625 = vmatmul.bf16.vlgmr.msra.gmra.mxu1 %v973_v18  ;;  %635 = vmatmul.bf16.vlgmr.msra.gmra.mxu2 %v1013_v19  ;;  %v965_v18 = vor.u32 %v1248_v12, %v962_v13  ;;  %v969_v19 = vor.u32 %v1251_v15, %v968_v14 }
  0x2b   :  { %705 = vmatpush.bf16.msrb.mxu2 %v1305_v16  ;;  %656 = vmatpush.bf16.msrb.mxu1 %v1297_v17  ;;  %v957_v16 = vor.u32 %v1247_v8, %v954_v9  ;;  %v961_v17 = vor.u32 %v1250_v11, %v960_v10  ;;  %v1273_v8 = vld [vmem:[%s1923_s0 + $0xfc] sm:$0xf]  ;;  %v1062_v9 = vld [vmem:[%s1923_s0 + $0x10c] sm:$0xf0]  ;;  %v1068_v10 = vld [vmem:[%s1923_s0 + $0x100] sm:$0xf] }
  0x2c   :  { %645 = vmatmul.bf16.vlgmr.msra.gmra.mxu3 %v1053_v20  ;;  %615 = vmatmul.bf16.vlgmr.msra.gmra.mxu0 %v933_v21  ;;  %v1252_v20 = vld [vmem:[%s1923_s0 + $0x54] sm:$0xf]  ;;  %v974_v21 = vld [vmem:[%s1923_s0 + $0x64] sm:$0xf0]  ;;  %v1065_v15 = vor.u32 %v1273_v8, %v1062_v9 }
  0x2d   :  { %754 = vmatpush.bf16.msrb.mxu3 %v1313_v22  ;;  %807 = vmatpush.bf16.msrb.mxu0 %v1317_v23  ;;  %v980_v22 = vld [vmem:[%s1923_s0 + $0x58] sm:$0xf]  ;;  %v1255_v23 = vld [vmem:[%s1923_s0 + $0x68] sm:$0xf0]  ;;  %v1276_v11 = vld [vmem:[%s1923_s0 + $0x110] sm:$0xf0] }
  0x2f   :  { %706 = vmatpush.bf16.msrb.mxu2 %v1304_v24  ;;  %657 = vmatpush.bf16.msrb.mxu1 %v1296_v25  ;;  %v1253_v24 = vld [vmem:[%s1923_s0 + $0x5c] sm:$0xf]  ;;  %v982_v25 = vld [vmem:[%s1923_s0 + $0x6c] sm:$0xf0] }
  0x31   :  { %755 = vmatpush.bf16.msrb.mxu3 %v1312_v26  ;;  %808 = vmatpush.bf16.msrb.mxu0 %v1316_v27  ;;  %v988_v26 = vld [vmem:[%s1923_s0 + $0x60] sm:$0xf]  ;;  %v1256_v27 = vld [vmem:[%s1923_s0 + $0x70] sm:$0xf0] }
  0x33   :  { %707 = vmatpush.bf16.msrb.mxu2 %v1303_v28  ;;  %658 = vmatpush.bf16.msrb.mxu1 %v1295_v29  ;;  %v977_v28 = vor.u32 %v1252_v20, %v974_v21  ;;  %v981_v29 = vor.u32 %v1255_v23, %v980_v22  ;;  %v1277_v22 = vld [vmem:[%s1923_s0 + $0x11c] sm:$0xf]  ;;  %v1074_v23 = vld [vmem:[%s1923_s0 + $0x12c] sm:$0xf0] }
  0x35   :  { %756 = vmatpush.bf16.msrb.mxu3 %v1311_v30  ;;  %809 = vmatpush.bf16.msrb.mxu0 %v1315_v31  ;;  %v985_v30 = vor.u32 %v1253_v24, %v982_v25  ;;  %v989_v31 = vor.u32 %v1256_v27, %v988_v26  ;;  %v1080_v24 = vld [vmem:[%s1923_s0 + $0x120] sm:$0xf]  ;;  %v1280_v25 = vld [vmem:[%s1923_s0 + $0x130] sm:$0xf0]  ;;  %v1278_v26 = vld [vmem:[%s1923_s0 + $0x124] sm:$0xf] }
  0x36   :  { %v1082_v27 = vld [vmem:[%s1923_s0 + $0x134] sm:$0xf0] }
  0x37   :  { %708 = vmatpush.bf16.msrb.mxu2 %v1302_v32  ;;  %659 = vmatpush.bf16.msrb.mxu1 %v1294_v33  ;;  %v1257_v32 = vld [vmem:[%s1923_s0 + $0x7c] sm:$0xf]  ;;  %v994_v33 = vld [vmem:[%s1923_s0 + $0x8c] sm:$0xf0] }
  0x38   :  { %v997_v40 = vor.u32 %v1257_v32, %v994_v33  ;;  %v1077_v32 = vor.u32 %v1277_v22, %v1074_v23  ;;  %v1081_v33 = vor.u32 %v1280_v25, %v1080_v24 }
  0x39   :  { %757 = vmatpush.bf16.msrb.mxu3 %v1310_v34  ;;  %810 = vmatpush.bf16.msrb.mxu0 %v1314_v43  ;;  %v1000_v34 = vld [vmem:[%s1923_s0 + $0x80] sm:$0xf]  ;;  %v1009_v43 = vor.u32 %v1261_v39, %v1008_v38 }
  0x3a   :  { %630 = vmatmul.bf16.gmra.mxu1 %v993_v46  ;;  %640 = vmatmul.bf16.gmra.mxu2 %v1033_v47  ;;  %v1001_v41 = vor.u32 %v1260_v35, %v1000_v34  ;;  %v1020_v46 = vld [vmem:[%s1923_s0 + $0xa8] sm:$0xf]  ;;  %v1265_v47 = vld [vmem:[%s1923_s0 + $0xb8] sm:$0xf0]  ;;  %v1085_v35 = vor.u32 %v1278_v26, %v1082_v27 }
  0x3b   :  { %709 = vmatpush.bf16.msrb.mxu2 %v1301_v44  ;;  %660 = vmatpush.bf16.msrb.mxu1 %v1293_v45  ;;  %v1262_v44 = vld [vmem:[%s1923_s0 + $0xa4] sm:$0xf]  ;;  %v1014_v45 = vld [vmem:[%s1923_s0 + $0xb4] sm:$0xf0] }
  0x3c   :  { %650 = vmatmul.bf16.gmra.mxu3 %v1073_v48  ;;  %620 = vmatmul.bf16.gmra.mxu0 %v953_v49  ;;  %v1263_v48 = vld [vmem:[%s1923_s0 + $0xac] sm:$0xf]  ;;  %v1022_v49 = vld [vmem:[%s1923_s0 + $0xbc] sm:$0xf0] }
  0x3d   :  { %758 = vmatpush.bf16.msrb.mxu3 %v1309_v50  ;;  %v1028_v50 = vld [vmem:[%s1923_s0 + $0xb0] sm:$0xf] }
  0x3f   :  { %710 = vmatpush.bf16.msrb.mxu2 %v1300_v51  ;;  %661 = vmatpush.bf16.msrb.mxu1 %v1292_v52  ;;  %v1266_v51 = vld [vmem:[%s1923_s0 + $0xc0] sm:$0xf0]  ;;  %v1017_v52 = vor.u32 %v1262_v44, %v1014_v45 }
  0x41   :  { %759 = vmatpush.bf16.msrb.mxu3 %v1308_v53  ;;  %v1021_v53 = vor.u32 %v1265_v47, %v1020_v46 }
  0x43   :  { %711 = vmatpush.bf16.msrb.mxu2 %v1299_v54  ;;  %662 = vmatpush.bf16.msrb.mxu1 %v1291_v55  ;;  %v1025_v54 = vor.u32 %v1263_v48, %v1022_v49  ;;  %v1029_v55 = vor.u32 %v1266_v51, %v1028_v50 }
  0x45   :  { %760 = vmatpush.bf16.msrb.mxu3 %v1307_v56  ;;  %v1267_v56 = vld [vmem:[%s1923_s0 + $0xcc] sm:$0xf] }
  0x47   :  { %712 = vmatpush.bf16.msrb.mxu2 %v1298_v57  ;;  %663 = vmatpush.bf16.msrb.mxu1 %v1290_v58  ;;  %v1034_v57 = vld [vmem:[%s1923_s0 + $0xdc] sm:$0xf0]  ;;  %v1040_v58 = vld [vmem:[%s1923_s0 + $0xd0] sm:$0xf] }
  0x48   :  { %v1037_v0 = vor.u32 %v1267_v56, %v1034_v57 }
  0x49   :  { %761 = vmatpush.bf16.msrb.mxu3 %v1306_v59  ;;  %v1270_v59 = vld [vmem:[%s1923_s0 + $0xe0] sm:$0xf0] }
  0x4a   :  { %664 = vmatmul.bf16.vlgmr.msrb.gmra.mxu1 %v937_v4  ;;  %713 = vmatmul.bf16.vlgmr.msrb.gmra.mxu2 %v941_v5  ;;  %v1041_v1 = vor.u32 %v1270_v59, %v1040_v58  ;;  %v1272_v4 = vld [vmem:[%s1923_s0 + $0xf4] sm:$0xf]  ;;  %v1054_v5 = vld [vmem:[%s1923_s0 + $0x104] sm:$0xf0] }
  0x4b   :  { %v1057_v12 = vor.u32 %v1272_v4, %v1054_v5 }
  0x4c   :  { %762 = vmatmul.bf16.vlgmr.msrb.gmra.mxu3 %v945_v6  ;;  %1234 = vmatmul.msk.bf16.vlgmr.msrb.gmra.mxu0 %vm582_vm0, %v949_v7  ;;  %v1060_v6 = vld [vmem:[%s1923_s0 + $0xf8] sm:$0xf]  ;;  %v1275_v7 = vld [vmem:[%s1923_s0 + $0x108] sm:$0xf0] }
  0x4d   :  { %v1061_v13 = vor.u32 %v1275_v7, %v1060_v6 }
  0x5a   :  { %669 = vmatmul.bf16.gmra.mxu1 %v957_v16  ;;  %718 = vmatmul.bf16.gmra.mxu2 %v961_v17  ;;  %v1069_v16 = vor.u32 %v1276_v11, %v1068_v10 }
  0x5c   :  { %767 = vmatmul.bf16.gmra.mxu3 %v965_v18  ;;  %1235 = vmatmul.msk.bf16.gmra.mxu0 %vm582_vm0, %v969_v19 }
  0x6a   :  { %674 = vmatmul.bf16.gmra.mxu1 %v977_v28  ;;  %723 = vmatmul.bf16.gmra.mxu2 %v981_v29  ;;  %v1088_v28 = vld [vmem:[%s1923_s0 + $0x128] sm:$0xf]  ;;  %v1281_v29 = vld [vmem:[%s1923_s0 + $0x138] sm:$0xf0] }
  0x6b   :  { %v1089_v36 = vor.u32 %v1281_v29, %v1088_v28 }
  0x6c   :  { %772 = vmatmul.bf16.gmra.mxu3 %v985_v30  ;;  %1236 = vmatmul.msk.bf16.gmra.mxu0 %vm582_vm0, %v989_v31 }
  0x7a   :  { %679 = vmatmul.bf16.gmra.mxu1 %v997_v40  ;;  %728 = vmatmul.bf16.gmra.mxu2 %v1001_v41 }
  0x7c   :  { %777 = vmatmul.bf16.gmra.mxu3 %v1005_v42  ;;  %1237 = vmatmul.msk.bf16.gmra.mxu0 %vm582_vm0, %v1009_v43 }
  0x8a   :  { %684 = vmatmul.bf16.gmra.mxu1 %v1017_v52  ;;  %733 = vmatmul.bf16.gmra.mxu2 %v1021_v53  ;;  %v1811_v52 = vld [vmem:[#allocation2] ss:$0 sm:$0xff] }
  0x8c   :  { %782 = vmatmul.bf16.gmra.mxu3 %v1025_v54  ;;  %1238 = vmatmul.msk.bf16.gmra.mxu0 %vm582_vm0, %v1029_v55  ;;  %v1813_v55 = vld [vmem:[#allocation4] ss:$0 sm:$0xff] }
  0x9a   :  { %689 = vmatmul.bf16.gmra.mxu1 %v1037_v0  ;;  %738 = vmatmul.bf16.gmra.mxu2 %v1041_v1 }
  0x9c   :  { %787 = vmatmul.bf16.gmra.mxu3 %v1045_v2  ;;  %1239 = vmatmul.msk.bf16.gmra.mxu0 %vm582_vm0, %v1049_v3 }
  0xa7   :  { %v1761_v14 = vpop.f32.mrf.mxu1 }
  0xa9   :  { %v616_v17 = vpop.f32.mrf.mxu0 }
  0xaa   :  { %694 = vmatmul.bf16.gmra.mxu1 %v1057_v12  ;;  %743 = vmatmul.bf16.gmra.mxu2 %v1061_v13 }
  0xac   :  { %792 = vmatmul.bf16.gmra.mxu3 %v1065_v15  ;;  %1240 = vmatmul.msk.bf16.gmra.mxu0 %vm582_vm0, %v1069_v16 }
  0xad   :  { %v1764_v18 = vpop.f32.mrf.mxu2 }
  0xaf   :  { %v1766_v19 = vpop.f32.mrf.mxu3  ;;  %v1768_v20 = vpop.f32.mrf.mxu1 }
  0xb1   :  { %v618_v21 = vpop.f32.mrf.mxu0 }
  0xb5   :  { %v1794_v30 = vpop.f32.mrf.mxu2 }
  0xb7   :  { %v1796_v31 = vpop.f32.mrf.mxu3  ;;  %v1798_v34 = vpop.f32.mrf.mxu1 }
  0xb9   :  { %v621_v37 = vpop.f32.mrf.mxu0 }
  0xba   :  { %699 = vmatmul.bf16.gmra.mxu1 %v1077_v32  ;;  %748 = vmatmul.bf16.gmra.mxu2 %v1081_v33 }
  0xbc   :  { %797 = vmatmul.bf16.gmra.mxu3 %v1085_v35  ;;  %1241 = vmatmul.msk.bf16.gmra.mxu0 %vm582_vm0, %v1089_v36 }
  0xbd   :  { %v1801_v38 = vpop.f32.mrf.mxu2 }
  0xbf   :  { %v1803_v39 = vpop.f32.mrf.mxu3  ;;  %v1805_v40 = vpop.f32.mrf.mxu1 }
  0xc1   :  { %v623_v41 = vpop.f32.mrf.mxu0 }
  0xc5   :  { %v1807_v42 = vpop.f32.mrf.mxu2 }
  0xc7   :  { %v1809_v43 = vpop.f32.mrf.mxu3  ;;  %v665_v44 = vpop.f32.mrf.mxu1 }
  0xc8   :  { %v666_v46 = vadd.f32 %v665_v44, %v616_v17 }
  0xc9   :  { %v812_v45 = vpop.f32.mrf.mxu0 }
  0xcd   :  { %v714_v47 = vpop.f32.mrf.mxu2 }
  0xce   :  { %v715_v48 = vadd.f32 %v714_v47, %v666_v46 }
  0xcf   :  { %v763_v49 = vpop.f32.mrf.mxu3  ;;  %v667_v50 = vpop.f32.mrf.mxu1 }
  0xd0   :  { %v764_v51 = vadd.f32 %v763_v49, %v715_v48  ;;  %v668_v57 = vadd.f32 %v667_v50, %v618_v21 }
  0xd1   :  { %v814_v53 = vpop.f32.mrf.mxu0 }
  0xd2   :  { %v813_v54 = vadd.f32 %v812_v45, %v764_v51 }
  0xd4   :  { %v856_v56 = vmul.f32 %v1811_v52, %v813_v54 }
  0xd5   :  { %v716_v58 = vpop.f32.mrf.mxu2 }
  0xd6   :  { %v876_v59 = vadd.f32 %v1813_v55, %v856_v56  ;;  %v717_v60 = vadd.f32 %v716_v58, %v668_v57 }
  0xd7   :  { %v765_v61 = vpop.f32.mrf.mxu3  ;;  %v670_v62 = vpop.f32.mrf.mxu1 }
  0xd8   :  { %v892_v63 = vmax.f32 %v876_v59, 0.0  ;;  %v766_v0 = vadd.f32 %v765_v61, %v717_v60  ;;  %v671_v4 = vadd.f32 %v670_v62, %v621_v37 }
  0xd9   :  { %v817_v1 = vpop.f32.mrf.mxu0 }
  0xda   :  { %908 = vst.msk [vmem:[%s1927_s4] sm:$0xff] %vm582_vm0, %v892_v63  ;;  %v815_v2 = vadd.f32 %v814_v53, %v766_v0 }
  0xdc   :  { %v857_v3 = vmul.f32 %v1811_v52, %v815_v2 }
  0xdd   :  { %v719_v5 = vpop.f32.mrf.mxu2 }
  0xde   :  { %v877_v6 = vadd.f32 %v1813_v55, %v857_v3  ;;  %v720_v7 = vadd.f32 %v719_v5, %v671_v4 }
  0xdf   :  { %v768_v8 = vpop.f32.mrf.mxu3  ;;  %v672_v9 = vpop.f32.mrf.mxu1 }
  0xe0   :  { %v893_v10 = vmax.f32 %v877_v6, 0.0  ;;  %v769_v11 = vadd.f32 %v768_v8, %v720_v7  ;;  %v673_v16 = vadd.f32 %v672_v9, %v623_v41 }
  0xe1   :  { %v819_v12 = vpop.f32.mrf.mxu0 }
  0xe2   :  { %909 = vst.msk [vmem:[%s1927_s4 + $0x8] sm:$0xff] %vm582_vm0, %v893_v10  ;;  %v818_v13 = vadd.f32 %v817_v1, %v769_v11 }
  0xe4   :  { %v858_v15 = vmul.f32 %v1811_v52, %v818_v13 }
  0xe5   :  { %v721_v17 = vpop.f32.mrf.mxu2 }
  0xe6   :  { %v878_v21 = vadd.f32 %v1813_v55, %v858_v15  ;;  %v722_v22 = vadd.f32 %v721_v17, %v673_v16 }
  0xe7   :  { %v770_v23 = vpop.f32.mrf.mxu3  ;;  %v675_v24 = vpop.f32.mrf.mxu1 }
  0xe8   :  { %v894_v25 = vmax.f32 %v878_v21, 0.0  ;;  %v771_v26 = vadd.f32 %v770_v23, %v722_v22  ;;  %v676_v32 = vadd.f32 %v675_v24, %v1761_v14 }
  0xe9   :  { %v822_v27 = vpop.f32.mrf.mxu0 }
  0xea   :  { %910 = vst.msk [vmem:[%s1927_s4 + $0x10] sm:$0xff] %vm582_vm0, %v894_v25  ;;  %v820_v28 = vadd.f32 %v819_v12, %v771_v26 }
  0xec   :  { %v859_v29 = vmul.f32 %v1811_v52, %v820_v28 }
  0xed   :  { %v724_v33 = vpop.f32.mrf.mxu2 }
  0xee   :  { %v879_v35 = vadd.f32 %v1813_v55, %v859_v29  ;;  %v725_v36 = vadd.f32 %v724_v33, %v676_v32 }
  0xef   :  { %v773_v37 = vpop.f32.mrf.mxu3  ;;  %v677_v41 = vpop.f32.mrf.mxu1 }
  0xf0   :  { %v895_v44 = vmax.f32 %v879_v35, 0.0  ;;  %v774_v45 = vadd.f32 %v773_v37, %v725_v36  ;;  %v678_v49 = vadd.f32 %v677_v41, %v1768_v20 }
  0xf1   :  { %v824_v46 = vpop.f32.mrf.mxu0 }
  0xf2   :  { %911 = vst.msk [vmem:[%s1927_s4 + $0x18] sm:$0xff] %vm582_vm0, %v895_v44  ;;  %v823_v47 = vadd.f32 %v822_v27, %v774_v45 }
  0xf4   :  { %v860_v48 = vmul.f32 %v1811_v52, %v823_v47 }
  0xf5   :  { %v726_v14 = vpop.f32.mrf.mxu2 }
  0xf6   :  { %v880_v50 = vadd.f32 %v1813_v55, %v860_v48  ;;  %v727_v51 = vadd.f32 %v726_v14, %v678_v49 }
  0xf7   :  { %v775_v53 = vpop.f32.mrf.mxu3  ;;  %v680_v54 = vpop.f32.mrf.mxu1 }
  0xf8   :  { %v896_v56 = vmax.f32 %v880_v50, 0.0  ;;  %v776_v57 = vadd.f32 %v775_v53, %v727_v51  ;;  %v681_v61 = vadd.f32 %v680_v54, %v1798_v34 }
  0xf9   :  { %v827_v58 = vpop.f32.mrf.mxu0 }
  0xfa   :  { %912 = vst.msk [vmem:[%s1927_s4 + $0x20] sm:$0xff] %vm582_vm0, %v896_v56  ;;  %v825_v59 = vadd.f32 %v824_v46, %v776_v57 }
  0xfc   :  { %v861_v60 = vmul.f32 %v1811_v52, %v825_v59 }
  0xfd   :  { %v729_v20 = vpop.f32.mrf.mxu2 }
  0xfe   :  { %v881_v62 = vadd.f32 %v1813_v55, %v861_v60  ;;  %v730_v63 = vadd.f32 %v729_v20, %v681_v61 }
  0xff   :  { %v778_v0 = vpop.f32.mrf.mxu3  ;;  %v682_v1 = vpop.f32.mrf.mxu1 }
 0x100   :  { %v897_v2 = vmax.f32 %v881_v62, 0.0  ;;  %v779_v3 = vadd.f32 %v778_v0, %v730_v63  ;;  %v683_v7 = vadd.f32 %v682_v1, %v1805_v40 }
 0x101   :  { %v829_v4 = vpop.f32.mrf.mxu0 }
 0x102   :  { %913 = vst.msk [vmem:[%s1927_s4 + $0x28] sm:$0xff] %vm582_vm0, %v897_v2  ;;  %v828_v5 = vadd.f32 %v827_v58, %v779_v3 }
 0x104   :  { %v862_v6 = vmul.f32 %v1811_v52, %v828_v5 }
 0x105   :  { %v731_v34 = vpop.f32.mrf.mxu2 }
 0x106   :  { %v882_v8 = vadd.f32 %v1813_v55, %v862_v6  ;;  %v732_v9 = vadd.f32 %v731_v34, %v683_v7 }
 0x107   :  { %v780_v10 = vpop.f32.mrf.mxu3  ;;  %v685_v11 = vpop.f32.mrf.mxu1 }
 0x108   :  { %v898_v12 = vmax.f32 %v882_v8, 0.0  ;;  %v781_v13 = vadd.f32 %v780_v10, %v732_v9  ;;  %v686_v21 = vadd.f32 %v685_v11, %v1764_v18 }
 0x109   :  { %v832_v15 = vpop.f32.mrf.mxu0 }
 0x10a   :  { %914 = vst.msk [vmem:[%s1927_s4 + $0x30] sm:$0xff] %vm582_vm0, %v898_v12  ;;  %v830_v16 = vadd.f32 %v829_v4, %v781_v13 }
 0x10c   :  { %v863_v17 = vmul.f32 %v1811_v52, %v830_v16 }
 0x10d   :  { %v734_v40 = vpop.f32.mrf.mxu2 }
 0x10e   :  { %v883_v22 = vadd.f32 %v1813_v55, %v863_v17  ;;  %v735_v23 = vadd.f32 %v734_v40, %v686_v21 }
 0x10f   :  { %v783_v24 = vpop.f32.mrf.mxu3  ;;  %v687_v25 = vpop.f32.mrf.mxu1 }
 0x110   :  { %v899_v26 = vmax.f32 %v883_v22, 0.0  ;;  %v784_v27 = vadd.f32 %v783_v24, %v735_v23  ;;  %v688_v33 = vadd.f32 %v687_v25, %v1794_v30 }
 0x111   :  { %v834_v28 = vpop.f32.mrf.mxu0 }
 0x112   :  { %915 = vst.msk [vmem:[%s1927_s4 + $0x38] sm:$0xff] %vm582_vm0, %v899_v26  ;;  %v833_v29 = vadd.f32 %v832_v15, %v784_v27 }
 0x114   :  { %v864_v32 = vmul.f32 %v1811_v52, %v833_v29 }
 0x115   :  { %v736_v18 = vpop.f32.mrf.mxu2 }
 0x116   :  { %v884_v35 = vadd.f32 %v1813_v55, %v864_v32  ;;  %v737_v36 = vadd.f32 %v736_v18, %v688_v33 }
 0x117   :  { %v785_v37 = vpop.f32.mrf.mxu3  ;;  %v690_v41 = vpop.f32.mrf.mxu1 }
 0x118   :  { %v900_v44 = vmax.f32 %v884_v35, 0.0  ;;  %v786_v45 = vadd.f32 %v785_v37, %v737_v36  ;;  %v691_v49 = vadd.f32 %v690_v41, %v1801_v38 }
 0x119   :  { %v837_v46 = vpop.f32.mrf.mxu0 }
 0x11a   :  { %916 = vst.msk [vmem:[%s1927_s4 + $0x40] sm:$0xff] %vm582_vm0, %v900_v44  ;;  %v835_v47 = vadd.f32 %v834_v28, %v786_v45 }
 0x11c   :  { %v865_v48 = vmul.f32 %v1811_v52, %v835_v47 }
 0x11d   :  { %v739_v30 = vpop.f32.mrf.mxu2 }
 0x11e   :  { %v885_v14 = vadd.f32 %v1813_v55, %v865_v48  ;;  %v740_v50 = vadd.f32 %v739_v30, %v691_v49 }
 0x11f   :  { %v788_v51 = vpop.f32.mrf.mxu3  ;;  %v692_v53 = vpop.f32.mrf.mxu1 }
 0x120   :  { %v901_v54 = vmax.f32 %v885_v14, 0.0  ;;  %v789_v56 = vadd.f32 %v788_v51, %v740_v50  ;;  %v693_v60 = vadd.f32 %v692_v53, %v1807_v42 }
 0x121   :  { %v839_v57 = vpop.f32.mrf.mxu0 }
 0x122   :  { %917 = vst.msk [vmem:[%s1927_s4 + $0x48] sm:$0xff] %vm582_vm0, %v901_v54  ;;  %v838_v58 = vadd.f32 %v837_v46, %v789_v56 }
 0x124   :  { %v866_v59 = vmul.f32 %v1811_v52, %v838_v58 }
 0x125   :  { %v741_v38 = vpop.f32.mrf.mxu2 }
 0x126   :  { %v886_v61 = vadd.f32 %v1813_v55, %v866_v59  ;;  %v742_v20 = vadd.f32 %v741_v38, %v693_v60 }
 0x127   :  { %v790_v62 = vpop.f32.mrf.mxu3  ;;  %v695_v63 = vpop.f32.mrf.mxu1 }
 0x128   :  { %v902_v0 = vmax.f32 %v886_v61, 0.0  ;;  %v791_v1 = vadd.f32 %v790_v62, %v742_v20  ;;  %v696_v5 = vadd.f32 %v695_v63, %v1766_v19 }
 0x129   :  { %v842_v3 = vpop.f32.mrf.mxu0 }
 0x12a   :  { %918 = vst.msk [vmem:[%s1927_s4 + $0x50] sm:$0xff] %vm582_vm0, %v902_v0  ;;  %v840_v2 = vadd.f32 %v839_v57, %v791_v1 }
 0x12c   :  { %v867_v4 = vmul.f32 %v1811_v52, %v840_v2 }
 0x12d   :  { %v744_v42 = vpop.f32.mrf.mxu2 }
 0x12e   :  { %v887_v6 = vadd.f32 %v1813_v55, %v867_v4  ;;  %v745_v7 = vadd.f32 %v744_v42, %v696_v5 }
 0x12f   :  { %v793_v34 = vpop.f32.mrf.mxu3  ;;  %v697_v8 = vpop.f32.mrf.mxu1 }
 0x130   :  { %v903_v9 = vmax.f32 %v887_v6, 0.0  ;;  %v794_v10 = vadd.f32 %v793_v34, %v745_v7  ;;  %v698_v13 = vadd.f32 %v697_v8, %v1796_v31 }
 0x131   :  { %v844_v15 = vpop.f32.mrf.mxu0 }
 0x132   :  { %919 = vst.msk [vmem:[%s1927_s4 + $0x58] sm:$0xff] %vm582_vm0, %v903_v9  ;;  %v843_v11 = vadd.f32 %v842_v3, %v794_v10 }
 0x134   :  { %v868_v12 = vmul.f32 %v1811_v52, %v843_v11 }
 0x135   :  { %v746_v19 = vpop.f32.mrf.mxu2 }
 0x136   :  { %v888_v16 = vadd.f32 %v1813_v55, %v868_v12  ;;  %v747_v17 = vadd.f32 %v746_v19, %v698_v13 }
 0x137   :  { %v795_v21 = vpop.f32.mrf.mxu3  ;;  %v700_v40 = vpop.f32.mrf.mxu1 }
 0x138   :  { %v904_v22 = vmax.f32 %v888_v16, 0.0  ;;  %v796_v23 = vadd.f32 %v795_v21, %v747_v17  ;;  %v701_v26 = vadd.f32 %v700_v40, %v1803_v39 }
 0x139   :  { %v847_v32 = vpop.f32.mrf.mxu0 }
 0x13a   :  { %920 = vst.msk [vmem:[%s1927_s4 + $0x60] sm:$0xff] %vm582_vm0, %v904_v22  ;;  %v845_v24 = vadd.f32 %v844_v15, %v796_v23 }
 0x13c   :  { %v869_v25 = vmul.f32 %v1811_v52, %v845_v24 }
 0x13d   :  { %v749_v31 = vpop.f32.mrf.mxu2 }
 0x13e   :  { %v889_v27 = vadd.f32 %v1813_v55, %v869_v25  ;;  %v750_v28 = vadd.f32 %v749_v31, %v701_v26 }
 0x13f   :  { %v798_v29 = vpop.f32.mrf.mxu3  ;;  %v702_v35 = vpop.f32.mrf.mxu1 }
 0x140   :  { %v905_v33 = vmax.f32 %v889_v27, 0.0  ;;  %v799_v18 = vadd.f32 %v798_v29, %v750_v28  ;;  %v703_v41 = vadd.f32 %v702_v35, %v1809_v43 }
 0x141   :  { %v849_v49 = vpop.f32.mrf.mxu0 }
 0x142   :  { %921 = vst.msk [vmem:[%s1927_s4 + $0x68] sm:$0xff] %vm582_vm0, %v905_v33  ;;  %v848_v36 = vadd.f32 %v847_v32, %v799_v18 }
 0x144   :  { %v870_v37 = vmul.f32 %v1811_v52, %v848_v36 }
 0x145   :  { %v751_v39 = vpop.f32.mrf.mxu2 }
 0x146   :  { %v890_v44 = vadd.f32 %v1813_v55, %v870_v37  ;;  %v752_v45 = vadd.f32 %v751_v39, %v703_v41 }
 0x147   :  { %v800_v46 = vpop.f32.mrf.mxu3 }
 0x148   :  { %v906_v47 = vmax.f32 %v890_v44, 0.0  ;;  %v801_v48 = vadd.f32 %v800_v46, %v752_v45 }
 0x14a   :  { %922 = vst.msk [vmem:[%s1927_s4 + $0x70] sm:$0xff] %vm582_vm0, %v906_v47  ;;  %v850_v30 = vadd.f32 %v849_v49, %v801_v48 }
 0x14c   :  { %v871_v14 = vmul.f32 %v1811_v52, %v850_v30 }
 0x14e   :  { %v891_v50 = vadd.f32 %v1813_v55, %v871_v14 }
 0x150   :  { %v907_v51 = vmax.f32 %v891_v50, 0.0 }
 0x152   :  { %923 = vst.msk [vmem:[%s1927_s4 + $0x78] sm:$0xff] %vm582_vm0, %v907_v51 }
 0x153   :  { %928 = vsyncpa [#allocation3], 1 }
 0x154   :  { %929 = vsyncpa [#allocation5], 1 }

// kernel: alzheimer_resnet_forward.24
= control target key start
LH: loop header
LB: loop body
LE: loop exit
PB: predicated region body
PF: predicated region fallthrough
CT: control target
= control target key end

     0   :  { %10 = vsyncpa [#allocation3], 0  ;;  %s2011_s0 = inlined_call_operand.vmem [shape: bf16[128,576], index: 0, kind: input, shape index: {}]   ;;  %s2012_s1 = inlined_call_operand.vmem [shape: bf16[576,64], index: 1, kind: input, shape index: {}]   ;;  %s2013_s2 = inlined_call_operand.hbm [shape: f32[1,64], index: 2, kind: input, shape index: {}]   ;;  %s2014_s3 = inlined_call_operand.hbm [shape: f32[1,64], index: 3, kind: input, shape index: {}]   ;;  %s2015_s4 = inlined_call_operand.vmem [shape: f32[128,64], index: 4, kind: input, shape index: {}]   ;;  %s2016_s5 = inlined_call_operand.vmem [shape: f32[128,64], index: 5, kind: output, shape index: {}]  }
   0x1   :  { %s21_s20 = sshll.u32 %s2013_s2, 4  ;;  %s22_s20 = int_to_ptr.hbm [resolvable:$true] %s21_s20 }
   0x2   :  { %11 = vsyncpa [#allocation5], 0  ;;  %s1433_s21 = smov [#allocation2]   ;;  %s32_s25 = sshll.u32 %s2014_s3, 4  ;;  %s33_s25 = int_to_ptr.hbm [resolvable:$true] %s32_s25 }
   0x3   :  { %s23_s22 = sshll.u32 %s1433_s21, 4  ;;  %s1434_s26 = smov [#allocation4]   ;;  %s24_s22 = int_to_ptr.vmem [resolvable:$true] %s23_s22 }
   0x4   :  { %26 = dma.hbm_to_vmem [thread:$0]  %s22_s20, 16, %s24_s22, [#allocation3]  }
   0x5   :  { %s34_s27 = sshll.u32 %s1434_s26, 4  ;;  %s35_s27 = int_to_ptr.vmem [resolvable:$true] %s34_s27 }
   0x6   :  { %37 = dma.hbm_to_vmem [thread:$0]  %s33_s25, 16, %s35_s27, [#allocation5]  }
   0x7   :  { %1429 = dma.done.wait [#allocation3], 16  }
   0x8   :  { %1430 = vsyncadd [#allocation3], 4294967280 }
   0x9   :  { %1431 = dma.done.wait [#allocation5], 16  }
   0xa   :  { %1432 = vsyncadd [#allocation5], 4294967280  ;;  %v1324_v0 = vld [vmem:[%s2012_s1 + $0x38] sm:$0xff]  ;;  %v1323_v1 = vld [vmem:[%s2012_s1 + $0x30] sm:$0xff]  ;;  %vm585_vm0 = vcmask 523264  }
   0xb   :  { %1353 = vmatpush.bf16.msra.mxu1 %v1324_v0  ;;  %1354 = vmatpush.bf16.msra.mxu2 %v1324_v0  ;;  %v1322_v2 = vld [vmem:[%s2012_s1 + $0x28] sm:$0xff]  ;;  %v1321_v3 = vld [vmem:[%s2012_s1 + $0x20] sm:$0xff]  ;;  %v1320_v4 = vld [vmem:[%s2012_s1 + $0x18] sm:$0xff] }
   0xc   :  { %1355 = vmatpush.bf16.msra.mxu3 %v1324_v0  ;;  %610 = vmatpush.bf16.msra.mxu0 %v1324_v0  ;;  %v1319_v5 = vld [vmem:[%s2012_s1 + $0x10] sm:$0xff]  ;;  %v1318_v6 = vld [vmem:[%s2012_s1 + $0x8] sm:$0xff]  ;;  %v1317_v7 = vld [vmem:[%s2012_s1] sm:$0xff] }
   0xd   :  { %v1007_v8 = vld [vmem:[%s2011_s0 + $0x50] sm:$0xf]  ;;  %v1289_v9 = vld [vmem:[%s2011_s0 + $0x60] sm:$0xf0]  ;;  %v1047_v10 = vld [vmem:[%s2011_s0 + $0xa0] sm:$0xf] }
   0xe   :  { %v1299_v11 = vld [vmem:[%s2011_s0 + $0xb0] sm:$0xf0]  ;;  %v1087_v12 = vld [vmem:[%s2011_s0 + $0xf0] sm:$0xf]  ;;  %v1309_v13 = vld [vmem:[%s2011_s0 + $0x100] sm:$0xf0]  ;;  %v1008_v18 = vor.u32 %v1289_v9, %v1007_v8 }
   0xf   :  { %1356 = vmatpush.bf16.msra.mxu1 %v1323_v1  ;;  %1357 = vmatpush.bf16.msra.mxu2 %v1323_v1  ;;  %v967_v14 = vld [vmem:[%s2011_s0] sm:$0xf]  ;;  %v1279_v15 = vld [vmem:[%s2011_s0 + $0x10] sm:$0xf0]  ;;  %v1340_v16 = vld [vmem:[%s2012_s1 + $0xb8] sm:$0xff]  ;;  %v1048_v19 = vor.u32 %v1299_v11, %v1047_v10  ;;  %v1088_v20 = vor.u32 %v1309_v13, %v1087_v12 }
  0x10   :  { %1358 = vmatpush.bf16.msra.mxu3 %v1323_v1  ;;  %611 = vmatpush.bf16.msra.mxu0 %v1323_v1  ;;  %v1332_v17 = vld [vmem:[%s2012_s1 + $0x78] sm:$0xff]  ;;  %v968_v21 = vor.u32 %v1279_v15, %v967_v14  ;;  %v1339_v24 = vld [vmem:[%s2012_s1 + $0xb0] sm:$0xff]  ;;  %v1338_v28 = vld [vmem:[%s2012_s1 + $0xa8] sm:$0xff] }
  0x11   :  { %v1348_v22 = vld [vmem:[%s2012_s1 + $0xf8] sm:$0xff]  ;;  %v1331_v25 = vld [vmem:[%s2012_s1 + $0x70] sm:$0xff]  ;;  %v1330_v29 = vld [vmem:[%s2012_s1 + $0x68] sm:$0xff] }
  0x12   :  { %v1352_v23 = vld [vmem:[%s2012_s1 + $0x118] sm:$0xff]  ;;  %v1347_v26 = vld [vmem:[%s2012_s1 + $0xf0] sm:$0xff]  ;;  %v1346_v30 = vld [vmem:[%s2012_s1 + $0xe8] sm:$0xff] }
  0x13   :  { %1359 = vmatpush.bf16.msra.mxu1 %v1322_v2  ;;  %1360 = vmatpush.bf16.msra.mxu2 %v1322_v2  ;;  %v1351_v27 = vld [vmem:[%s2012_s1 + $0x110] sm:$0xff]  ;;  %v1350_v31 = vld [vmem:[%s2012_s1 + $0x108] sm:$0xff]  ;;  %v1337_v32 = vld [vmem:[%s2012_s1 + $0xa0] sm:$0xff] }
  0x14   :  { %1361 = vmatpush.bf16.msra.mxu3 %v1322_v2  ;;  %612 = vmatpush.bf16.msra.mxu0 %v1322_v2  ;;  %v1329_v33 = vld [vmem:[%s2012_s1 + $0x60] sm:$0xff]  ;;  %v1027_v35 = vld [vmem:[%s2011_s0 + $0x78] sm:$0xf]  ;;  %v1294_v36 = vld [vmem:[%s2011_s0 + $0x88] sm:$0xf0] }
  0x15   :  { %v1345_v34 = vld [vmem:[%s2012_s1 + $0xe0] sm:$0xff]  ;;  %v1067_v37 = vld [vmem:[%s2011_s0 + $0xc8] sm:$0xf]  ;;  %v1304_v38 = vld [vmem:[%s2011_s0 + $0xd8] sm:$0xf0]  ;;  %v1028_v46 = vor.u32 %v1294_v36, %v1027_v35 }
  0x16   :  { %v1107_v39 = vld [vmem:[%s2011_s0 + $0x118] sm:$0xf]  ;;  %v1314_v40 = vld [vmem:[%s2011_s0 + $0x128] sm:$0xf0]  ;;  %v987_v41 = vld [vmem:[%s2011_s0 + $0x28] sm:$0xf]  ;;  %v1068_v47 = vor.u32 %v1304_v38, %v1067_v37 }
  0x17   :  { %1362 = vmatpush.bf16.msra.mxu1 %v1321_v3  ;;  %1363 = vmatpush.bf16.msra.mxu2 %v1321_v3  ;;  %v1284_v42 = vld [vmem:[%s2011_s0 + $0x38] sm:$0xf0]  ;;  %v1349_v43 = vld [vmem:[%s2012_s1 + $0x100] sm:$0xff]  ;;  %v1108_v48 = vor.u32 %v1314_v40, %v1107_v39  ;;  %v1335_v51 = vld [vmem:[%s2012_s1 + $0x90] sm:$0xff] }
  0x18   :  { %1364 = vmatpush.bf16.msra.mxu3 %v1321_v3  ;;  %613 = vmatpush.bf16.msra.mxu0 %v1321_v3  ;;  %v1336_v44 = vld [vmem:[%s2012_s1 + $0x98] sm:$0xff]  ;;  %v988_v49 = vor.u32 %v1284_v42, %v987_v41  ;;  %v1327_v52 = vld [vmem:[%s2012_s1 + $0x50] sm:$0xff]  ;;  %v1334_v54 = vld [vmem:[%s2012_s1 + $0x88] sm:$0xff] }
  0x19   :  { %v1328_v45 = vld [vmem:[%s2012_s1 + $0x58] sm:$0xff]  ;;  %v1343_v53 = vld [vmem:[%s2012_s1 + $0xd0] sm:$0xff]  ;;  %v1326_v55 = vld [vmem:[%s2012_s1 + $0x48] sm:$0xff] }
  0x1a   :  { %v1344_v50 = vld [vmem:[%s2012_s1 + $0xd8] sm:$0xff]  ;;  %v1342_v56 = vld [vmem:[%s2012_s1 + $0xc8] sm:$0xff]  ;;  %v1333_v57 = vld [vmem:[%s2012_s1 + $0x80] sm:$0xff] }
  0x1b   :  { %1365 = vmatpush.bf16.msra.mxu1 %v1320_v4  ;;  %1366 = vmatpush.bf16.msra.mxu2 %v1320_v4  ;;  %v1325_v58 = vld [vmem:[%s2012_s1 + $0x40] sm:$0xff]  ;;  %v969_v61 = vld [vmem:[%s2011_s0 + $0x14] sm:$0xf0]  ;;  %v975_v62 = vld [vmem:[%s2011_s0 + $0x8] sm:$0xf] }
  0x1c   :  { %1367 = vmatpush.bf16.msra.mxu3 %v1320_v4  ;;  %614 = vmatpush.bf16.msra.mxu0 %v1320_v4  ;;  %v1341_v59 = vld [vmem:[%s2012_s1 + $0xc0] sm:$0xff]  ;;  %v1280_v63 = vld [vmem:[%s2011_s0 + $0x18] sm:$0xf0]  ;;  %v1278_v0 = vld [vmem:[%s2011_s0 + $0xc] sm:$0xf] }
  0x1d   :  { %v1277_v60 = vld [vmem:[%s2011_s0 + $0x4] sm:$0xf]  ;;  %v977_v1 = vld [vmem:[%s2011_s0 + $0x1c] sm:$0xf0]  ;;  %v983_v2 = vld [vmem:[%s2011_s0 + $0x10] sm:$0xf] }
  0x1e   :  { %v1281_v3 = vld [vmem:[%s2011_s0 + $0x20] sm:$0xf0]  ;;  %v972_v4 = vor.u32 %v1277_v60, %v969_v61  ;;  %v1282_v8 = vld [vmem:[%s2011_s0 + $0x2c] sm:$0xf]  ;;  %v989_v9 = vld [vmem:[%s2011_s0 + $0x3c] sm:$0xf0] }
  0x1f   :  { %1368 = vmatpush.bf16.msra.mxu1 %v1319_v5  ;;  %1369 = vmatpush.bf16.msra.mxu2 %v1319_v5  ;;  %v995_v10 = vld [vmem:[%s2011_s0 + $0x30] sm:$0xf]  ;;  %v1285_v11 = vld [vmem:[%s2011_s0 + $0x40] sm:$0xf0]  ;;  %v1283_v12 = vld [vmem:[%s2011_s0 + $0x34] sm:$0xf] }
  0x20   :  { %1370 = vmatpush.bf16.msra.mxu3 %v1319_v5  ;;  %615 = vmatpush.bf16.msra.mxu0 %v1319_v5  ;;  %v976_v5 = vor.u32 %v1280_v63, %v975_v62  ;;  %v997_v13 = vld [vmem:[%s2011_s0 + $0x44] sm:$0xf0]  ;;  %v1003_v14 = vld [vmem:[%s2011_s0 + $0x38] sm:$0xf]  ;;  %v1286_v15 = vld [vmem:[%s2011_s0 + $0x48] sm:$0xf0] }
  0x21   :  { %v1295_v35 = vld [vmem:[%s2011_s0 + $0x90] sm:$0xf0]  ;;  %v1293_v36 = vld [vmem:[%s2011_s0 + $0x84] sm:$0xf]  ;;  %v1037_v37 = vld [vmem:[%s2011_s0 + $0x94] sm:$0xf0] }
  0x22   :  { %v1043_v38 = vld [vmem:[%s2011_s0 + $0x88] sm:$0xf]  ;;  %v1296_v39 = vld [vmem:[%s2011_s0 + $0x98] sm:$0xf0]  ;;  %v1040_v42 = vor.u32 %v1293_v36, %v1037_v37  ;;  %v1303_v60 = vld [vmem:[%s2011_s0 + $0xd4] sm:$0xf] }
  0x23   :  { %1371 = vmatpush.bf16.msra.mxu1 %v1318_v6  ;;  %1372 = vmatpush.bf16.msra.mxu2 %v1318_v6  ;;  %v1077_v61 = vld [vmem:[%s2011_s0 + $0xe4] sm:$0xf0]  ;;  %v1083_v62 = vld [vmem:[%s2011_s0 + $0xd8] sm:$0xf]  ;;  %v1306_v63 = vld [vmem:[%s2011_s0 + $0xe8] sm:$0xf0] }
  0x24   :  { %1373 = vmatpush.bf16.msra.mxu3 %v1318_v6  ;;  %616 = vmatpush.bf16.msra.mxu0 %v1318_v6  ;;  %v980_v6 = vor.u32 %v1278_v0, %v977_v1 }
  0x27   :  { %1374 = vmatpush.bf16.msra.mxu1 %v1317_v7  ;;  %1375 = vmatpush.bf16.msra.mxu2 %v1317_v7 }
  0x28   :  { %1376 = vmatpush.bf16.msra.mxu3 %v1317_v7  ;;  %617 = vmatpush.bf16.msra.mxu0 %v1317_v7  ;;  %v984_v7 = vor.u32 %v1281_v3, %v983_v2  ;;  %v1080_v2 = vor.u32 %v1303_v60, %v1077_v61  ;;  %v1084_v3 = vor.u32 %v1306_v63, %v1083_v62 }
  0x2a   :  { %628 = vmatmul.bf16.vlgmr.msra.gmra.mxu1 %v1008_v18  ;;  %638 = vmatmul.bf16.vlgmr.msra.gmra.mxu2 %v1048_v19  ;;  %v1000_v18 = vor.u32 %v1283_v12, %v997_v13  ;;  %v1004_v19 = vor.u32 %v1286_v15, %v1003_v14 }
  0x2b   :  { %708 = vmatpush.bf16.msrb.mxu2 %v1340_v16  ;;  %659 = vmatpush.bf16.msrb.mxu1 %v1332_v17  ;;  %v992_v16 = vor.u32 %v1282_v8, %v989_v9  ;;  %v996_v17 = vor.u32 %v1285_v11, %v995_v10  ;;  %v1308_v8 = vld [vmem:[%s2011_s0 + $0xfc] sm:$0xf]  ;;  %v1097_v9 = vld [vmem:[%s2011_s0 + $0x10c] sm:$0xf0]  ;;  %v1103_v10 = vld [vmem:[%s2011_s0 + $0x100] sm:$0xf] }
  0x2c   :  { %648 = vmatmul.bf16.vlgmr.msra.gmra.mxu3 %v1088_v20  ;;  %618 = vmatmul.bf16.vlgmr.msra.gmra.mxu0 %v968_v21  ;;  %v1287_v20 = vld [vmem:[%s2011_s0 + $0x54] sm:$0xf]  ;;  %v1009_v21 = vld [vmem:[%s2011_s0 + $0x64] sm:$0xf0]  ;;  %v1100_v15 = vor.u32 %v1308_v8, %v1097_v9 }
  0x2d   :  { %757 = vmatpush.bf16.msrb.mxu3 %v1348_v22  ;;  %810 = vmatpush.bf16.msrb.mxu0 %v1352_v23  ;;  %v1015_v22 = vld [vmem:[%s2011_s0 + $0x58] sm:$0xf]  ;;  %v1290_v23 = vld [vmem:[%s2011_s0 + $0x68] sm:$0xf0]  ;;  %v1311_v11 = vld [vmem:[%s2011_s0 + $0x110] sm:$0xf0] }
  0x2f   :  { %709 = vmatpush.bf16.msrb.mxu2 %v1339_v24  ;;  %660 = vmatpush.bf16.msrb.mxu1 %v1331_v25  ;;  %v1288_v24 = vld [vmem:[%s2011_s0 + $0x5c] sm:$0xf]  ;;  %v1017_v25 = vld [vmem:[%s2011_s0 + $0x6c] sm:$0xf0] }
  0x31   :  { %758 = vmatpush.bf16.msrb.mxu3 %v1347_v26  ;;  %811 = vmatpush.bf16.msrb.mxu0 %v1351_v27  ;;  %v1023_v26 = vld [vmem:[%s2011_s0 + $0x60] sm:$0xf]  ;;  %v1291_v27 = vld [vmem:[%s2011_s0 + $0x70] sm:$0xf0] }
  0x33   :  { %710 = vmatpush.bf16.msrb.mxu2 %v1338_v28  ;;  %661 = vmatpush.bf16.msrb.mxu1 %v1330_v29  ;;  %v1012_v28 = vor.u32 %v1287_v20, %v1009_v21  ;;  %v1016_v29 = vor.u32 %v1290_v23, %v1015_v22  ;;  %v1312_v22 = vld [vmem:[%s2011_s0 + $0x11c] sm:$0xf]  ;;  %v1109_v23 = vld [vmem:[%s2011_s0 + $0x12c] sm:$0xf0] }
  0x35   :  { %759 = vmatpush.bf16.msrb.mxu3 %v1346_v30  ;;  %812 = vmatpush.bf16.msrb.mxu0 %v1350_v31  ;;  %v1020_v30 = vor.u32 %v1288_v24, %v1017_v25  ;;  %v1024_v31 = vor.u32 %v1291_v27, %v1023_v26  ;;  %v1115_v24 = vld [vmem:[%s2011_s0 + $0x120] sm:$0xf]  ;;  %v1315_v25 = vld [vmem:[%s2011_s0 + $0x130] sm:$0xf0]  ;;  %v1313_v26 = vld [vmem:[%s2011_s0 + $0x124] sm:$0xf] }
  0x36   :  { %v1117_v27 = vld [vmem:[%s2011_s0 + $0x134] sm:$0xf0] }
  0x37   :  { %711 = vmatpush.bf16.msrb.mxu2 %v1337_v32  ;;  %662 = vmatpush.bf16.msrb.mxu1 %v1329_v33  ;;  %v1292_v32 = vld [vmem:[%s2011_s0 + $0x7c] sm:$0xf]  ;;  %v1029_v33 = vld [vmem:[%s2011_s0 + $0x8c] sm:$0xf0] }
  0x38   :  { %v1032_v40 = vor.u32 %v1292_v32, %v1029_v33  ;;  %v1112_v32 = vor.u32 %v1312_v22, %v1109_v23  ;;  %v1116_v33 = vor.u32 %v1315_v25, %v1115_v24  ;;  %v897_v24 = vld [vmem:[%s2015_s4 + $0x10] sm:$0xff] }
  0x39   :  { %760 = vmatpush.bf16.msrb.mxu3 %v1345_v34  ;;  %813 = vmatpush.bf16.msrb.mxu0 %v1349_v43  ;;  %v1035_v34 = vld [vmem:[%s2011_s0 + $0x80] sm:$0xf]  ;;  %v1044_v43 = vor.u32 %v1296_v39, %v1043_v38 }
  0x3a   :  { %633 = vmatmul.bf16.gmra.mxu1 %v1028_v46  ;;  %643 = vmatmul.bf16.gmra.mxu2 %v1068_v47  ;;  %v1036_v41 = vor.u32 %v1295_v35, %v1035_v34  ;;  %v1055_v46 = vld [vmem:[%s2011_s0 + $0xa8] sm:$0xf]  ;;  %v1300_v47 = vld [vmem:[%s2011_s0 + $0xb8] sm:$0xf0]  ;;  %v1120_v35 = vor.u32 %v1313_v26, %v1117_v27 }
  0x3b   :  { %712 = vmatpush.bf16.msrb.mxu2 %v1336_v44  ;;  %663 = vmatpush.bf16.msrb.mxu1 %v1328_v45  ;;  %v1297_v44 = vld [vmem:[%s2011_s0 + $0xa4] sm:$0xf]  ;;  %v1049_v45 = vld [vmem:[%s2011_s0 + $0xb4] sm:$0xf0] }
  0x3c   :  { %653 = vmatmul.bf16.gmra.mxu3 %v1108_v48  ;;  %623 = vmatmul.bf16.gmra.mxu0 %v988_v49  ;;  %v1298_v48 = vld [vmem:[%s2011_s0 + $0xac] sm:$0xf]  ;;  %v1057_v49 = vld [vmem:[%s2011_s0 + $0xbc] sm:$0xf0] }
  0x3d   :  { %761 = vmatpush.bf16.msrb.mxu3 %v1344_v50  ;;  %v1063_v50 = vld [vmem:[%s2011_s0 + $0xb0] sm:$0xf] }
  0x3f   :  { %713 = vmatpush.bf16.msrb.mxu2 %v1335_v51  ;;  %664 = vmatpush.bf16.msrb.mxu1 %v1327_v52  ;;  %v1301_v51 = vld [vmem:[%s2011_s0 + $0xc0] sm:$0xf0]  ;;  %v1052_v52 = vor.u32 %v1297_v44, %v1049_v45 }
  0x41   :  { %762 = vmatpush.bf16.msrb.mxu3 %v1343_v53  ;;  %v1056_v53 = vor.u32 %v1300_v47, %v1055_v46 }
  0x43   :  { %714 = vmatpush.bf16.msrb.mxu2 %v1334_v54  ;;  %665 = vmatpush.bf16.msrb.mxu1 %v1326_v55  ;;  %v1060_v54 = vor.u32 %v1298_v48, %v1057_v49  ;;  %v1064_v55 = vor.u32 %v1301_v51, %v1063_v50 }
  0x45   :  { %763 = vmatpush.bf16.msrb.mxu3 %v1342_v56  ;;  %v1302_v56 = vld [vmem:[%s2011_s0 + $0xcc] sm:$0xf] }
  0x47   :  { %715 = vmatpush.bf16.msrb.mxu2 %v1333_v57  ;;  %666 = vmatpush.bf16.msrb.mxu1 %v1325_v58  ;;  %v1069_v57 = vld [vmem:[%s2011_s0 + $0xdc] sm:$0xf0]  ;;  %v1075_v58 = vld [vmem:[%s2011_s0 + $0xd0] sm:$0xf] }
  0x48   :  { %v1072_v0 = vor.u32 %v1302_v56, %v1069_v57 }
  0x49   :  { %764 = vmatpush.bf16.msrb.mxu3 %v1341_v59  ;;  %v1305_v59 = vld [vmem:[%s2011_s0 + $0xe0] sm:$0xf0] }
  0x4a   :  { %667 = vmatmul.bf16.vlgmr.msrb.gmra.mxu1 %v972_v4  ;;  %716 = vmatmul.bf16.vlgmr.msrb.gmra.mxu2 %v976_v5  ;;  %v1076_v1 = vor.u32 %v1305_v59, %v1075_v58  ;;  %v1307_v4 = vld [vmem:[%s2011_s0 + $0xf4] sm:$0xf]  ;;  %v1089_v5 = vld [vmem:[%s2011_s0 + $0x104] sm:$0xf0]  ;;  %v895_v58 = vld [vmem:[%s2015_s4] sm:$0xff] }
  0x4b   :  { %v1092_v12 = vor.u32 %v1307_v4, %v1089_v5 }
  0x4c   :  { %765 = vmatmul.bf16.vlgmr.msrb.gmra.mxu3 %v980_v6  ;;  %1269 = vmatmul.msk.bf16.vlgmr.msrb.gmra.mxu0 %vm585_vm0, %v984_v7  ;;  %v1095_v6 = vld [vmem:[%s2011_s0 + $0xf8] sm:$0xf]  ;;  %v1310_v7 = vld [vmem:[%s2011_s0 + $0x108] sm:$0xf0] }
  0x4d   :  { %v1096_v13 = vor.u32 %v1310_v7, %v1095_v6  ;;  %v896_v7 = vld [vmem:[%s2015_s4 + $0x8] sm:$0xff] }
  0x5a   :  { %672 = vmatmul.bf16.gmra.mxu1 %v992_v16  ;;  %721 = vmatmul.bf16.gmra.mxu2 %v996_v17  ;;  %v1104_v16 = vor.u32 %v1311_v11, %v1103_v10 }
  0x5c   :  { %770 = vmatmul.bf16.gmra.mxu3 %v1000_v18  ;;  %1270 = vmatmul.msk.bf16.gmra.mxu0 %vm585_vm0, %v1004_v19 }
  0x6a   :  { %677 = vmatmul.bf16.gmra.mxu1 %v1012_v28  ;;  %726 = vmatmul.bf16.gmra.mxu2 %v1016_v29  ;;  %v1123_v28 = vld [vmem:[%s2011_s0 + $0x128] sm:$0xf]  ;;  %v1316_v29 = vld [vmem:[%s2011_s0 + $0x138] sm:$0xf0] }
  0x6b   :  { %v1124_v36 = vor.u32 %v1316_v29, %v1123_v28 }
  0x6c   :  { %775 = vmatmul.bf16.gmra.mxu3 %v1020_v30  ;;  %1271 = vmatmul.msk.bf16.gmra.mxu0 %vm585_vm0, %v1024_v31 }
  0x7a   :  { %682 = vmatmul.bf16.gmra.mxu1 %v1032_v40  ;;  %731 = vmatmul.bf16.gmra.mxu2 %v1036_v41 }
  0x7c   :  { %780 = vmatmul.bf16.gmra.mxu3 %v1040_v42  ;;  %1272 = vmatmul.msk.bf16.gmra.mxu0 %vm585_vm0, %v1044_v43 }
  0x8a   :  { %687 = vmatmul.bf16.gmra.mxu1 %v1052_v52  ;;  %736 = vmatmul.bf16.gmra.mxu2 %v1056_v53  ;;  %v1851_v52 = vld [vmem:[#allocation2] ss:$0 sm:$0xff] }
  0x8c   :  { %785 = vmatmul.bf16.gmra.mxu3 %v1060_v54  ;;  %1273 = vmatmul.msk.bf16.gmra.mxu0 %vm585_vm0, %v1064_v55  ;;  %v1853_v55 = vld [vmem:[#allocation4] ss:$0 sm:$0xff] }
  0x9a   :  { %692 = vmatmul.bf16.gmra.mxu1 %v1072_v0  ;;  %741 = vmatmul.bf16.gmra.mxu2 %v1076_v1 }
  0x9c   :  { %790 = vmatmul.bf16.gmra.mxu3 %v1080_v2  ;;  %1274 = vmatmul.msk.bf16.gmra.mxu0 %vm585_vm0, %v1084_v3 }
  0xa7   :  { %v1801_v14 = vpop.f32.mrf.mxu1 }
  0xa9   :  { %v619_v17 = vpop.f32.mrf.mxu0 }
  0xaa   :  { %697 = vmatmul.bf16.gmra.mxu1 %v1092_v12  ;;  %746 = vmatmul.bf16.gmra.mxu2 %v1096_v13 }
  0xac   :  { %795 = vmatmul.bf16.gmra.mxu3 %v1100_v15  ;;  %1275 = vmatmul.msk.bf16.gmra.mxu0 %vm585_vm0, %v1104_v16 }
  0xad   :  { %v1804_v18 = vpop.f32.mrf.mxu2 }
  0xaf   :  { %v1806_v19 = vpop.f32.mrf.mxu3  ;;  %v1808_v20 = vpop.f32.mrf.mxu1 }
  0xb1   :  { %v621_v21 = vpop.f32.mrf.mxu0 }
  0xb5   :  { %v1834_v30 = vpop.f32.mrf.mxu2 }
  0xb7   :  { %v1836_v31 = vpop.f32.mrf.mxu3  ;;  %v1838_v34 = vpop.f32.mrf.mxu1 }
  0xb9   :  { %v624_v37 = vpop.f32.mrf.mxu0 }
  0xba   :  { %702 = vmatmul.bf16.gmra.mxu1 %v1112_v32  ;;  %751 = vmatmul.bf16.gmra.mxu2 %v1116_v33 }
  0xbc   :  { %800 = vmatmul.bf16.gmra.mxu3 %v1120_v35  ;;  %1276 = vmatmul.msk.bf16.gmra.mxu0 %vm585_vm0, %v1124_v36 }
  0xbd   :  { %v1841_v38 = vpop.f32.mrf.mxu2 }
  0xbf   :  { %v1843_v39 = vpop.f32.mrf.mxu3  ;;  %v1845_v40 = vpop.f32.mrf.mxu1 }
  0xc1   :  { %v626_v41 = vpop.f32.mrf.mxu0 }
  0xc5   :  { %v1847_v42 = vpop.f32.mrf.mxu2 }
  0xc7   :  { %v1849_v43 = vpop.f32.mrf.mxu3  ;;  %v668_v44 = vpop.f32.mrf.mxu1 }
  0xc8   :  { %v669_v46 = vadd.f32 %v668_v44, %v619_v17 }
  0xc9   :  { %v815_v45 = vpop.f32.mrf.mxu0 }
  0xcd   :  { %v717_v47 = vpop.f32.mrf.mxu2 }
  0xce   :  { %v718_v48 = vadd.f32 %v717_v47, %v669_v46 }
  0xcf   :  { %v766_v49 = vpop.f32.mrf.mxu3  ;;  %v670_v50 = vpop.f32.mrf.mxu1 }
  0xd0   :  { %v767_v51 = vadd.f32 %v766_v49, %v718_v48  ;;  %v671_v57 = vadd.f32 %v670_v50, %v621_v21 }
  0xd1   :  { %v817_v53 = vpop.f32.mrf.mxu0 }
  0xd2   :  { %v816_v54 = vadd.f32 %v815_v45, %v767_v51  ;;  %v898_v45 = vld [vmem:[%s2015_s4 + $0x18] sm:$0xff] }
  0xd4   :  { %v859_v56 = vmul.f32 %v1851_v52, %v816_v54 }
  0xd5   :  { %v719_v59 = vpop.f32.mrf.mxu2 }
  0xd6   :  { %v879_v60 = vadd.f32 %v1853_v55, %v859_v56  ;;  %v720_v61 = vadd.f32 %v719_v59, %v671_v57  ;;  %v899_v59 = vld [vmem:[%s2015_s4 + $0x20] sm:$0xff] }
  0xd7   :  { %v768_v62 = vpop.f32.mrf.mxu3  ;;  %v673_v63 = vpop.f32.mrf.mxu1 }
  0xd8   :  { %v911_v0 = vadd.f32 %v895_v58, %v879_v60  ;;  %v769_v1 = vadd.f32 %v768_v62, %v720_v61  ;;  %v674_v6 = vadd.f32 %v673_v63, %v624_v37 }
  0xd9   :  { %v820_v2 = vpop.f32.mrf.mxu0 }
  0xda   :  { %v927_v3 = vmax.f32 %v911_v0, 0.0  ;;  %v818_v4 = vadd.f32 %v817_v53, %v769_v1 }
  0xdc   :  { %943 = vst.msk [vmem:[%s2016_s5] sm:$0xff] %vm585_vm0, %v927_v3  ;;  %v860_v5 = vmul.f32 %v1851_v52, %v818_v4 }
  0xdd   :  { %v722_v8 = vpop.f32.mrf.mxu2 }
  0xde   :  { %v880_v9 = vadd.f32 %v1853_v55, %v860_v5  ;;  %v723_v10 = vadd.f32 %v722_v8, %v674_v6 }
  0xdf   :  { %v771_v11 = vpop.f32.mrf.mxu3  ;;  %v675_v12 = vpop.f32.mrf.mxu1 }
  0xe0   :  { %v912_v13 = vadd.f32 %v896_v7, %v880_v9  ;;  %v772_v15 = vadd.f32 %v771_v11, %v723_v10  ;;  %v676_v23 = vadd.f32 %v675_v12, %v626_v41  ;;  %v900_v7 = vld [vmem:[%s2015_s4 + $0x28] sm:$0xff] }
  0xe1   :  { %v822_v16 = vpop.f32.mrf.mxu0 }
  0xe2   :  { %v928_v17 = vmax.f32 %v912_v13, 0.0  ;;  %v821_v21 = vadd.f32 %v820_v2, %v772_v15 }
  0xe4   :  { %944 = vst.msk [vmem:[%s2016_s5 + $0x8] sm:$0xff] %vm585_vm0, %v928_v17  ;;  %v861_v22 = vmul.f32 %v1851_v52, %v821_v21 }
  0xe5   :  { %v724_v25 = vpop.f32.mrf.mxu2 }
  0xe6   :  { %v881_v26 = vadd.f32 %v1853_v55, %v861_v22  ;;  %v725_v27 = vadd.f32 %v724_v25, %v676_v23  ;;  %v901_v23 = vld [vmem:[%s2015_s4 + $0x30] sm:$0xff] }
  0xe7   :  { %v773_v28 = vpop.f32.mrf.mxu3  ;;  %v678_v29 = vpop.f32.mrf.mxu1 }
  0xe8   :  { %v913_v32 = vadd.f32 %v897_v24, %v881_v26  ;;  %v774_v33 = vadd.f32 %v773_v28, %v725_v27  ;;  %v679_v44 = vadd.f32 %v678_v29, %v1801_v14 }
  0xe9   :  { %v825_v35 = vpop.f32.mrf.mxu0 }
  0xea   :  { %v929_v36 = vmax.f32 %v913_v32, 0.0  ;;  %v823_v37 = vadd.f32 %v822_v16, %v774_v33 }
  0xec   :  { %945 = vst.msk [vmem:[%s2016_s5 + $0x10] sm:$0xff] %vm585_vm0, %v929_v36  ;;  %v862_v41 = vmul.f32 %v1851_v52, %v823_v37 }
  0xed   :  { %v727_v46 = vpop.f32.mrf.mxu2 }
  0xee   :  { %v882_v47 = vadd.f32 %v1853_v55, %v862_v41  ;;  %v728_v48 = vadd.f32 %v727_v46, %v679_v44  ;;  %v902_v41 = vld [vmem:[%s2015_s4 + $0x38] sm:$0xff] }
  0xef   :  { %v776_v49 = vpop.f32.mrf.mxu3  ;;  %v680_v50 = vpop.f32.mrf.mxu1 }
  0xf0   :  { %v914_v51 = vadd.f32 %v898_v45, %v882_v47  ;;  %v777_v53 = vadd.f32 %v776_v49, %v728_v48  ;;  %v681_v58 = vadd.f32 %v680_v50, %v1808_v20 }
  0xf1   :  { %v827_v54 = vpop.f32.mrf.mxu0 }
  0xf2   :  { %v930_v56 = vmax.f32 %v914_v51, 0.0  ;;  %v826_v57 = vadd.f32 %v825_v35, %v777_v53 }
  0xf4   :  { %946 = vst.msk [vmem:[%s2016_s5 + $0x18] sm:$0xff] %vm585_vm0, %v930_v56  ;;  %v863_v14 = vmul.f32 %v1851_v52, %v826_v57  ;;  %v903_v57 = vld [vmem:[%s2015_s4 + $0x40] sm:$0xff] }
  0xf5   :  { %v729_v60 = vpop.f32.mrf.mxu2 }
  0xf6   :  { %v883_v61 = vadd.f32 %v1853_v55, %v863_v14  ;;  %v730_v62 = vadd.f32 %v729_v60, %v681_v58 }
  0xf7   :  { %v778_v63 = vpop.f32.mrf.mxu3  ;;  %v683_v0 = vpop.f32.mrf.mxu1 }
  0xf8   :  { %v915_v1 = vadd.f32 %v899_v59, %v883_v61  ;;  %v779_v2 = vadd.f32 %v778_v63, %v730_v62  ;;  %v684_v6 = vadd.f32 %v683_v0, %v1838_v34 }
  0xf9   :  { %v830_v3 = vpop.f32.mrf.mxu0 }
  0xfa   :  { %v931_v4 = vmax.f32 %v915_v1, 0.0  ;;  %v828_v5 = vadd.f32 %v827_v54, %v779_v2 }
  0xfc   :  { %947 = vst.msk [vmem:[%s2016_s5 + $0x20] sm:$0xff] %vm585_vm0, %v931_v4  ;;  %v864_v20 = vmul.f32 %v1851_v52, %v828_v5  ;;  %v904_v4 = vld [vmem:[%s2015_s4 + $0x48] sm:$0xff] }
  0xfd   :  { %v732_v8 = vpop.f32.mrf.mxu2 }
  0xfe   :  { %v884_v9 = vadd.f32 %v1853_v55, %v864_v20  ;;  %v733_v10 = vadd.f32 %v732_v8, %v684_v6 }
  0xff   :  { %v781_v11 = vpop.f32.mrf.mxu3  ;;  %v685_v12 = vpop.f32.mrf.mxu1 }
 0x100   :  { %v916_v13 = vadd.f32 %v900_v7, %v884_v9  ;;  %v782_v15 = vadd.f32 %v781_v11, %v733_v10  ;;  %v686_v22 = vadd.f32 %v685_v12, %v1845_v40 }
 0x101   :  { %v832_v16 = vpop.f32.mrf.mxu0 }
 0x102   :  { %v932_v17 = vmax.f32 %v916_v13, 0.0  ;;  %v831_v21 = vadd.f32 %v830_v3, %v782_v15 }
 0x104   :  { %948 = vst.msk [vmem:[%s2016_s5 + $0x28] sm:$0xff] %vm585_vm0, %v932_v17  ;;  %v865_v34 = vmul.f32 %v1851_v52, %v831_v21 }
 0x105   :  { %v734_v24 = vpop.f32.mrf.mxu2 }
 0x106   :  { %v885_v25 = vadd.f32 %v1853_v55, %v865_v34  ;;  %v735_v26 = vadd.f32 %v734_v24, %v686_v22 }
 0x107   :  { %v783_v27 = vpop.f32.mrf.mxu3  ;;  %v688_v28 = vpop.f32.mrf.mxu1 }
 0x108   :  { %v917_v29 = vadd.f32 %v901_v23, %v885_v25  ;;  %v784_v32 = vadd.f32 %v783_v27, %v735_v26  ;;  %v689_v37 = vadd.f32 %v688_v28, %v1804_v18 }
 0x109   :  { %v835_v33 = vpop.f32.mrf.mxu0 }
 0x10a   :  { %v933_v35 = vmax.f32 %v917_v29, 0.0  ;;  %v833_v36 = vadd.f32 %v832_v16, %v784_v32  ;;  %v905_v16 = vld [vmem:[%s2015_s4 + $0x50] sm:$0xff]  ;;  %v906_v32 = vld [vmem:[%s2015_s4 + $0x58] sm:$0xff] }
 0x10c   :  { %949 = vst.msk [vmem:[%s2016_s5 + $0x30] sm:$0xff] %vm585_vm0, %v933_v35  ;;  %v866_v40 = vmul.f32 %v1851_v52, %v833_v36 }
 0x10d   :  { %v737_v44 = vpop.f32.mrf.mxu2 }
 0x10e   :  { %v886_v45 = vadd.f32 %v1853_v55, %v866_v40  ;;  %v738_v46 = vadd.f32 %v737_v44, %v689_v37 }
 0x10f   :  { %v786_v47 = vpop.f32.mrf.mxu3  ;;  %v690_v48 = vpop.f32.mrf.mxu1 }
 0x110   :  { %v918_v49 = vadd.f32 %v902_v41, %v886_v45  ;;  %v787_v50 = vadd.f32 %v786_v47, %v738_v46  ;;  %v691_v56 = vadd.f32 %v690_v48, %v1834_v30  ;;  %v907_v48 = vld [vmem:[%s2015_s4 + $0x60] sm:$0xff] }
 0x111   :  { %v837_v51 = vpop.f32.mrf.mxu0 }
 0x112   :  { %v934_v53 = vmax.f32 %v918_v49, 0.0  ;;  %v836_v54 = vadd.f32 %v835_v33, %v787_v50 }
 0x114   :  { %950 = vst.msk [vmem:[%s2016_s5 + $0x38] sm:$0xff] %vm585_vm0, %v934_v53  ;;  %v867_v18 = vmul.f32 %v1851_v52, %v836_v54 }
 0x115   :  { %v739_v14 = vpop.f32.mrf.mxu2 }
 0x116   :  { %v887_v58 = vadd.f32 %v1853_v55, %v867_v18  ;;  %v740_v59 = vadd.f32 %v739_v14, %v691_v56 }
 0x117   :  { %v788_v60 = vpop.f32.mrf.mxu3  ;;  %v693_v61 = vpop.f32.mrf.mxu1 }
 0x118   :  { %v919_v62 = vadd.f32 %v903_v57, %v887_v58  ;;  %v789_v63 = vadd.f32 %v788_v60, %v740_v59  ;;  %v694_v3 = vadd.f32 %v693_v61, %v1841_v38  ;;  %v908_v60 = vld [vmem:[%s2015_s4 + $0x68] sm:$0xff] }
 0x119   :  { %v840_v0 = vpop.f32.mrf.mxu0 }
 0x11a   :  { %v935_v1 = vmax.f32 %v919_v62, 0.0  ;;  %v838_v2 = vadd.f32 %v837_v51, %v789_v63 }
 0x11c   :  { %951 = vst.msk [vmem:[%s2016_s5 + $0x40] sm:$0xff] %vm585_vm0, %v935_v1  ;;  %v868_v30 = vmul.f32 %v1851_v52, %v838_v2 }
 0x11d   :  { %v742_v5 = vpop.f32.mrf.mxu2 }
 0x11e   :  { %v888_v20 = vadd.f32 %v1853_v55, %v868_v30  ;;  %v743_v6 = vadd.f32 %v742_v5, %v694_v3 }
 0x11f   :  { %v791_v7 = vpop.f32.mrf.mxu3  ;;  %v695_v8 = vpop.f32.mrf.mxu1 }
 0x120   :  { %v920_v9 = vadd.f32 %v904_v4, %v888_v20  ;;  %v792_v10 = vadd.f32 %v791_v7, %v743_v6  ;;  %v696_v15 = vadd.f32 %v695_v8, %v1847_v42  ;;  %v909_v6 = vld [vmem:[%s2015_s4 + $0x70] sm:$0xff] }
 0x121   :  { %v842_v11 = vpop.f32.mrf.mxu0 }
 0x122   :  { %v936_v12 = vmax.f32 %v920_v9, 0.0  ;;  %v841_v13 = vadd.f32 %v840_v0, %v792_v10 }
 0x124   :  { %952 = vst.msk [vmem:[%s2016_s5 + $0x48] sm:$0xff] %vm585_vm0, %v936_v12  ;;  %v869_v38 = vmul.f32 %v1851_v52, %v841_v13 }
 0x125   :  { %v744_v17 = vpop.f32.mrf.mxu2 }
 0x126   :  { %v889_v21 = vadd.f32 %v1853_v55, %v869_v38  ;;  %v745_v34 = vadd.f32 %v744_v17, %v696_v15 }
 0x127   :  { %v793_v22 = vpop.f32.mrf.mxu3  ;;  %v698_v23 = vpop.f32.mrf.mxu1 }
 0x128   :  { %v921_v24 = vadd.f32 %v905_v16, %v889_v21  ;;  %v794_v25 = vadd.f32 %v793_v22, %v745_v34  ;;  %v699_v29 = vadd.f32 %v698_v23, %v1806_v19  ;;  %v910_v16 = vld [vmem:[%s2015_s4 + $0x78] sm:$0xff] }
 0x129   :  { %v845_v28 = vpop.f32.mrf.mxu0 }
 0x12a   :  { %v937_v26 = vmax.f32 %v921_v24, 0.0  ;;  %v843_v27 = vadd.f32 %v842_v11, %v794_v25 }
 0x12c   :  { %953 = vst.msk [vmem:[%s2016_s5 + $0x50] sm:$0xff] %vm585_vm0, %v937_v26  ;;  %v870_v42 = vmul.f32 %v1851_v52, %v843_v27 }
 0x12d   :  { %v747_v33 = vpop.f32.mrf.mxu2 }
 0x12e   :  { %v890_v35 = vadd.f32 %v1853_v55, %v870_v42  ;;  %v748_v36 = vadd.f32 %v747_v33, %v699_v29 }
 0x12f   :  { %v796_v40 = vpop.f32.mrf.mxu3  ;;  %v700_v37 = vpop.f32.mrf.mxu1 }
 0x130   :  { %v922_v41 = vadd.f32 %v906_v32, %v890_v35  ;;  %v797_v44 = vadd.f32 %v796_v40, %v748_v36  ;;  %v701_v47 = vadd.f32 %v700_v37, %v1836_v31 }
 0x131   :  { %v847_v49 = vpop.f32.mrf.mxu0 }
 0x132   :  { %v938_v45 = vmax.f32 %v922_v41, 0.0  ;;  %v846_v46 = vadd.f32 %v845_v28, %v797_v44 }
 0x134   :  { %954 = vst.msk [vmem:[%s2016_s5 + $0x58] sm:$0xff] %vm585_vm0, %v938_v45  ;;  %v871_v19 = vmul.f32 %v1851_v52, %v846_v46 }
 0x135   :  { %v749_v50 = vpop.f32.mrf.mxu2 }
 0x136   :  { %v891_v51 = vadd.f32 %v1853_v55, %v871_v19  ;;  %v750_v53 = vadd.f32 %v749_v50, %v701_v47 }
 0x137   :  { %v798_v54 = vpop.f32.mrf.mxu3  ;;  %v703_v18 = vpop.f32.mrf.mxu1 }
 0x138   :  { %v923_v56 = vadd.f32 %v907_v48, %v891_v51  ;;  %v799_v57 = vadd.f32 %v798_v54, %v750_v53  ;;  %v704_v59 = vadd.f32 %v703_v18, %v1843_v39 }
 0x139   :  { %v850_v1 = vpop.f32.mrf.mxu0 }
 0x13a   :  { %v939_v14 = vmax.f32 %v923_v56, 0.0  ;;  %v848_v58 = vadd.f32 %v847_v49, %v799_v57 }
 0x13c   :  { %955 = vst.msk [vmem:[%s2016_s5 + $0x60] sm:$0xff] %vm585_vm0, %v939_v14  ;;  %v872_v31 = vmul.f32 %v1851_v52, %v848_v58 }
 0x13d   :  { %v752_v61 = vpop.f32.mrf.mxu2 }
 0x13e   :  { %v892_v62 = vadd.f32 %v1853_v55, %v872_v31  ;;  %v753_v63 = vadd.f32 %v752_v61, %v704_v59 }
 0x13f   :  { %v801_v0 = vpop.f32.mrf.mxu3  ;;  %v705_v3 = vpop.f32.mrf.mxu1 }
 0x140   :  { %v924_v2 = vadd.f32 %v908_v60, %v892_v62  ;;  %v802_v30 = vadd.f32 %v801_v0, %v753_v63  ;;  %v706_v20 = vadd.f32 %v705_v3, %v1849_v43 }
 0x141   :  { %v852_v13 = vpop.f32.mrf.mxu0 }
 0x142   :  { %v940_v4 = vmax.f32 %v924_v2, 0.0  ;;  %v851_v5 = vadd.f32 %v850_v1, %v802_v30 }
 0x144   :  { %956 = vst.msk [vmem:[%s2016_s5 + $0x68] sm:$0xff] %vm585_vm0, %v940_v4  ;;  %v873_v39 = vmul.f32 %v1851_v52, %v851_v5 }
 0x145   :  { %v754_v7 = vpop.f32.mrf.mxu2 }
 0x146   :  { %v893_v8 = vadd.f32 %v1853_v55, %v873_v39  ;;  %v755_v9 = vadd.f32 %v754_v7, %v706_v20 }
 0x147   :  { %v803_v10 = vpop.f32.mrf.mxu3 }
 0x148   :  { %v925_v11 = vadd.f32 %v909_v6, %v893_v8  ;;  %v804_v12 = vadd.f32 %v803_v10, %v755_v9 }
 0x14a   :  { %v941_v38 = vmax.f32 %v925_v11, 0.0  ;;  %v853_v15 = vadd.f32 %v852_v13, %v804_v12 }
 0x14c   :  { %957 = vst.msk [vmem:[%s2016_s5 + $0x70] sm:$0xff] %vm585_vm0, %v941_v38  ;;  %v874_v43 = vmul.f32 %v1851_v52, %v853_v15 }
 0x14e   :  { %v894_v17 = vadd.f32 %v1853_v55, %v874_v43 }
 0x150   :  { %v926_v21 = vadd.f32 %v910_v16, %v894_v17 }
 0x152   :  { %v942_v34 = vmax.f32 %v926_v21, 0.0 }
 0x154   :  { %958 = vst.msk [vmem:[%s2016_s5 + $0x78] sm:$0xff] %vm585_vm0, %v942_v34 }
 0x155   :  { %963 = vsyncpa [#allocation3], 1 }
 0x156   :  { %964 = vsyncpa [#allocation5], 1 }

// kernel: alzheimer_resnet_forward.26
= control target key start
LH: loop header
LB: loop body
LE: loop exit
PB: predicated region body
PF: predicated region fallthrough
CT: control target
= control target key end

     0   :  { %9 = vsyncpa [#allocation3], 0  ;;  %s1033_s0 = inlined_call_operand.vmem [shape: bf16[32,576], index: 0, kind: input, shape index: {}]   ;;  %s1034_s1 = inlined_call_operand.vmem [shape: bf16[576,128], index: 1, kind: input, shape index: {}]   ;;  %s1035_s2 = inlined_call_operand.hbm [shape: f32[1,128], index: 2, kind: input, shape index: {}]   ;;  %s1036_s3 = inlined_call_operand.hbm [shape: f32[1,128], index: 3, kind: input, shape index: {}]   ;;  %s1037_s4 = inlined_call_operand.vmem [shape: f32[32,128], index: 4, kind: output, shape index: {}]  }
   0x1   :  { %s20_s17 = sshll.u32 %s1035_s2, 4  ;;  %s21_s17 = int_to_ptr.hbm [resolvable:$true] %s20_s17 }
   0x2   :  { %10 = vsyncpa [#allocation5], 0  ;;  %s820_s18 = smov [#allocation2]   ;;  %s31_s22 = sshll.u32 %s1036_s3, 4  ;;  %s32_s22 = int_to_ptr.hbm [resolvable:$true] %s31_s22 }
   0x3   :  { %s22_s19 = sshll.u32 %s820_s18, 4  ;;  %s821_s23 = smov [#allocation4]   ;;  %s23_s19 = int_to_ptr.vmem [resolvable:$true] %s22_s19 }
   0x4   :  { %25 = dma.hbm_to_vmem [thread:$0]  %s21_s17, 16, %s23_s19, [#allocation3]  }
   0x5   :  { %s33_s24 = sshll.u32 %s821_s23, 4  ;;  %s34_s24 = int_to_ptr.vmem [resolvable:$true] %s33_s24 }
   0x6   :  { %36 = dma.hbm_to_vmem [thread:$0]  %s32_s22, 16, %s34_s24, [#allocation5]  }
   0x7   :  { %816 = dma.done.wait [#allocation3], 16  }
   0x8   :  { %817 = vsyncadd [#allocation3], 4294967280 }
   0x9   :  { %818 = dma.done.wait [#allocation5], 16  }
   0xa   :  { %819 = vsyncadd [#allocation5], 4294967280  ;;  %v731_v0 = vld [vmem:[%s1034_s1 + $0x38] sm:$0xff]  ;;  %v730_v4 = vld [vmem:[%s1034_s1 + $0x30] sm:$0xff]  ;;  %vm396_vm0 = vcmask 523264  }
   0xb   :  { %v739_v1 = vld [vmem:[%s1034_s1 + $0x78] sm:$0xff]  ;;  %403 = vmatpush.bf16.msra.mxu0 %v731_v0  ;;  %v738_v5 = vld [vmem:[%s1034_s1 + $0x70] sm:$0xff]  ;;  %v729_v8 = vld [vmem:[%s1034_s1 + $0x28] sm:$0xff] }
   0xc   :  { %v747_v2 = vld [vmem:[%s1034_s1 + $0xb8] sm:$0xff]  ;;  %422 = vmatpush.bf16.msra.mxu1 %v739_v1  ;;  %v746_v6 = vld [vmem:[%s1034_s1 + $0xb0] sm:$0xff]  ;;  %v737_v9 = vld [vmem:[%s1034_s1 + $0x68] sm:$0xff] }
   0xd   :  { %v755_v3 = vld [vmem:[%s1034_s1 + $0xf8] sm:$0xff]  ;;  %441 = vmatpush.bf16.msra.mxu2 %v747_v2  ;;  %v754_v7 = vld [vmem:[%s1034_s1 + $0xf0] sm:$0xff]  ;;  %v745_v10 = vld [vmem:[%s1034_s1 + $0xa8] sm:$0xff] }
   0xe   :  { %460 = vmatpush.bf16.msra.mxu3 %v755_v3  ;;  %v753_v11 = vld [vmem:[%s1034_s1 + $0xe8] sm:$0xff]  ;;  %v728_v12 = vld [vmem:[%s1034_s1 + $0x20] sm:$0xff]  ;;  %v727_v16 = vld [vmem:[%s1034_s1 + $0x18] sm:$0xff] }
   0xf   :  { %404 = vmatpush.bf16.msra.mxu0 %v730_v4  ;;  %v736_v13 = vld [vmem:[%s1034_s1 + $0x60] sm:$0xff]  ;;  %v735_v17 = vld [vmem:[%s1034_s1 + $0x58] sm:$0xff]  ;;  %v726_v20 = vld [vmem:[%s1034_s1 + $0x10] sm:$0xff] }
  0x10   :  { %423 = vmatpush.bf16.msra.mxu1 %v738_v5  ;;  %v744_v14 = vld [vmem:[%s1034_s1 + $0xa0] sm:$0xff]  ;;  %v743_v18 = vld [vmem:[%s1034_s1 + $0x98] sm:$0xff]  ;;  %v734_v21 = vld [vmem:[%s1034_s1 + $0x50] sm:$0xff] }
  0x11   :  { %442 = vmatpush.bf16.msra.mxu2 %v746_v6  ;;  %v752_v15 = vld [vmem:[%s1034_s1 + $0xe0] sm:$0xff]  ;;  %v751_v19 = vld [vmem:[%s1034_s1 + $0xd8] sm:$0xff]  ;;  %v742_v22 = vld [vmem:[%s1034_s1 + $0x90] sm:$0xff] }
  0x12   :  { %461 = vmatpush.bf16.msra.mxu3 %v754_v7  ;;  %v750_v23 = vld [vmem:[%s1034_s1 + $0xd0] sm:$0xff]  ;;  %v725_v24 = vld [vmem:[%s1034_s1 + $0x8] sm:$0xff]  ;;  %v724_v28 = vld [vmem:[%s1034_s1] sm:$0xff] }
  0x13   :  { %405 = vmatpush.bf16.msra.mxu0 %v729_v8  ;;  %v733_v25 = vld [vmem:[%s1034_s1 + $0x48] sm:$0xff]  ;;  %v732_v29 = vld [vmem:[%s1034_s1 + $0x40] sm:$0xff]  ;;  %v716_v33 = vld [vmem:[%s1033_s0 + $0x10] sm:$0xf0] }
  0x14   :  { %424 = vmatpush.bf16.msra.mxu1 %v737_v9  ;;  %v741_v26 = vld [vmem:[%s1034_s1 + $0x88] sm:$0xff]  ;;  %v740_v30 = vld [vmem:[%s1034_s1 + $0x80] sm:$0xff]  ;;  %v532_v35 = vld [vmem:[%s1033_s0 + $0x14] sm:$0xf0] }
  0x15   :  { %443 = vmatpush.bf16.msra.mxu2 %v745_v10  ;;  %v749_v27 = vld [vmem:[%s1034_s1 + $0xc8] sm:$0xff]  ;;  %v748_v31 = vld [vmem:[%s1034_s1 + $0xc0] sm:$0xff]  ;;  %v717_v37 = vld [vmem:[%s1033_s0 + $0x18] sm:$0xf0] }
  0x16   :  { %462 = vmatpush.bf16.msra.mxu3 %v753_v11  ;;  %v530_v32 = vld [vmem:[%s1033_s0] sm:$0xf]  ;;  %v714_v34 = vld [vmem:[%s1033_s0 + $0x4] sm:$0xf]  ;;  %v538_v36 = vld [vmem:[%s1033_s0 + $0x8] sm:$0xf] }
  0x17   :  { %406 = vmatpush.bf16.msra.mxu0 %v728_v12  ;;  %v715_v38 = vld [vmem:[%s1033_s0 + $0xc] sm:$0xf]  ;;  %v540_v39 = vld [vmem:[%s1033_s0 + $0x1c] sm:$0xf0]  ;;  %v759_v40 = vld [vmem:[%s1034_s1 + $0x118] sm:$0xff]  ;;  %v531_v41 = vor.u32 %v716_v33, %v530_v32  ;;  %v535_v42 = vor.u32 %v714_v34, %v532_v35  ;;  %v539_v43 = vor.u32 %v717_v37, %v538_v36 }
  0x18   :  { %425 = vmatpush.bf16.msra.mxu1 %v736_v13  ;;  %v543_v44 = vor.u32 %v715_v38, %v540_v39  ;;  %v758_v45 = vld [vmem:[%s1034_s1 + $0x110] sm:$0xff]  ;;  %v757_v46 = vld [vmem:[%s1034_s1 + $0x108] sm:$0xff]  ;;  %v756_v47 = vld [vmem:[%s1034_s1 + $0x100] sm:$0xff] }
  0x19   :  { %444 = vmatpush.bf16.msra.mxu2 %v744_v14  ;;  %v550_v48 = vld [vmem:[%s1033_s0 + $0x28] sm:$0xf]  ;;  %v721_v49 = vld [vmem:[%s1033_s0 + $0x38] sm:$0xf0]  ;;  %v719_v50 = vld [vmem:[%s1033_s0 + $0x2c] sm:$0xf] }
  0x1a   :  { %463 = vmatpush.bf16.msra.mxu3 %v752_v15  ;;  %v552_v51 = vld [vmem:[%s1033_s0 + $0x3c] sm:$0xf0]  ;;  %v558_v52 = vld [vmem:[%s1033_s0 + $0x30] sm:$0xf]  ;;  %v722_v53 = vld [vmem:[%s1033_s0 + $0x40] sm:$0xf0]  ;;  %v551_v56 = vor.u32 %v721_v49, %v550_v48 }
  0x1b   :  { %407 = vmatpush.bf16.msra.mxu0 %v727_v16  ;;  %v720_v54 = vld [vmem:[%s1033_s0 + $0x34] sm:$0xf]  ;;  %v560_v55 = vld [vmem:[%s1033_s0 + $0x44] sm:$0xf0]  ;;  %v555_v57 = vor.u32 %v719_v50, %v552_v51  ;;  %v559_v58 = vor.u32 %v722_v53, %v558_v52  ;;  %v546_v60 = vld [vmem:[%s1033_s0 + $0x10] sm:$0xf] }
  0x1c   :  { %426 = vmatpush.bf16.msra.mxu1 %v735_v17  ;;  %v563_v59 = vor.u32 %v720_v54, %v560_v55  ;;  %v718_v61 = vld [vmem:[%s1033_s0 + $0x20] sm:$0xf0]  ;;  %v566_v62 = vld [vmem:[%s1033_s0 + $0x38] sm:$0xf]  ;;  %v723_v63 = vld [vmem:[%s1033_s0 + $0x48] sm:$0xf0] }
  0x1d   :  { %445 = vmatpush.bf16.msra.mxu2 %v743_v18  ;;  %v547_v0 = vor.u32 %v718_v61, %v546_v60  ;;  %v567_v1 = vor.u32 %v723_v63, %v566_v62 }
  0x1e   :  { %464 = vmatpush.bf16.msra.mxu3 %v751_v19 }
  0x1f   :  { %408 = vmatpush.bf16.msra.mxu0 %v726_v20 }
  0x20   :  { %427 = vmatpush.bf16.msra.mxu1 %v734_v21 }
  0x21   :  { %446 = vmatpush.bf16.msra.mxu2 %v742_v22 }
  0x22   :  { %465 = vmatpush.bf16.msra.mxu3 %v750_v23  ;;  %v766_v23 = vld [vmem:[#allocation2] ss:$0 sm:$0xff] }
  0x23   :  { %409 = vmatpush.bf16.msra.mxu0 %v725_v24 }
  0x24   :  { %428 = vmatpush.bf16.msra.mxu1 %v733_v25 }
  0x25   :  { %447 = vmatpush.bf16.msra.mxu2 %v741_v26 }
  0x26   :  { %466 = vmatpush.bf16.msra.mxu3 %v749_v27 }
  0x27   :  { %410 = vmatpush.bf16.msra.mxu0 %v724_v28 }
  0x28   :  { %429 = vmatpush.bf16.msra.mxu1 %v732_v29  ;;  %v767_v29 = vld [vmem:[#allocation4] ss:$0 sm:$0xff] }
  0x29   :  { %448 = vmatpush.bf16.msra.mxu2 %v740_v30 }
  0x2a   :  { %467 = vmatpush.bf16.msra.mxu3 %v748_v31  ;;  %411 = vmatmul.bf16.vlgmr.msra.gmra.mxu0 %v531_v41 }
  0x2b   :  { %483 = vmatpush.bf16.msrb.mxu0 %v759_v40  ;;  %430 = vmatmul.bf16.vlgmr.msra.gmra.mxu1 %v535_v42 }
  0x2c   :  { %760 = vmatpush.bf16.msrb.mxu1 %v759_v40  ;;  %449 = vmatmul.bf16.vlgmr.msra.gmra.mxu2 %v539_v43 }
  0x2d   :  { %468 = vmatmul.bf16.vlgmr.msra.gmra.mxu3 %v543_v44 }
  0x2f   :  { %484 = vmatpush.bf16.msrb.mxu0 %v758_v45 }
  0x30   :  { %761 = vmatpush.bf16.msrb.mxu1 %v758_v45 }
  0x33   :  { %485 = vmatpush.bf16.msrb.mxu0 %v757_v46 }
  0x34   :  { %762 = vmatpush.bf16.msrb.mxu1 %v757_v46 }
  0x37   :  { %486 = vmatpush.bf16.msrb.mxu0 %v756_v47 }
  0x38   :  { %763 = vmatpush.bf16.msrb.mxu1 %v756_v47 }
  0x3a   :  { %416 = vmatmul.bf16.gmra.mxu0 %v551_v56 }
  0x3b   :  { %435 = vmatmul.bf16.gmra.mxu1 %v555_v57 }
  0x3c   :  { %454 = vmatmul.bf16.gmra.mxu2 %v559_v58 }
  0x3d   :  { %473 = vmatmul.bf16.gmra.mxu3 %v563_v59 }
  0x4a   :  { %712 = vmatmul.msk.bf16.vlgmr.msrb.gmra.mxu0 %vm396_vm0, %v547_v0 }
  0x4b   :  { %713 = vmatmul.msk.bf16.vlgmr.msrb.gmra.mxu1 %vm396_vm0, %v567_v1 }
  0xa7   :  { %v412_v2 = vpop.f32.mrf.mxu0 }
  0xa8   :  { %v431_v3 = vpop.f32.mrf.mxu1 }
  0xa9   :  { %v432_v15 = vadd.f32 %v431_v3, %v412_v2 }
  0xaf   :  { %v450_v4 = vpop.f32.mrf.mxu2  ;;  %v414_v6 = vpop.f32.mrf.mxu0 }
  0xb0   :  { %v469_v5 = vpop.f32.mrf.mxu3  ;;  %v433_v7 = vpop.f32.mrf.mxu1  ;;  %v451_v17 = vadd.f32 %v450_v4, %v432_v15 }
  0xb1   :  { %v434_v26 = vadd.f32 %v433_v7, %v414_v6 }
  0xb2   :  { %v470_v20 = vadd.f32 %v469_v5, %v451_v17 }
  0xb7   :  { %v452_v8 = vpop.f32.mrf.mxu2  ;;  %v417_v9 = vpop.f32.mrf.mxu0 }
  0xb8   :  { %v436_v10 = vpop.f32.mrf.mxu1  ;;  %v471_v11 = vpop.f32.mrf.mxu3  ;;  %v453_v31 = vadd.f32 %v452_v8, %v434_v26 }
  0xb9   :  { %v437_v16 = vadd.f32 %v436_v10, %v417_v9 }
  0xba   :  { %v472_v38 = vadd.f32 %v471_v11, %v453_v31 }
  0xbf   :  { %v455_v12 = vpop.f32.mrf.mxu2  ;;  %v419_v13 = vpop.f32.mrf.mxu0 }
  0xc0   :  { %v438_v14 = vpop.f32.mrf.mxu1  ;;  %v456_v18 = vadd.f32 %v455_v12, %v437_v16  ;;  %v474_v19 = vpop.f32.mrf.mxu3 }
  0xc1   :  { %v439_v27 = vadd.f32 %v438_v14, %v419_v13 }
  0xc2   :  { %v475_v21 = vadd.f32 %v474_v19, %v456_v18 }
  0xc7   :  { %v457_v22 = vpop.f32.mrf.mxu2  ;;  %v488_v24 = vpop.f32.mrf.mxu0 }
  0xc8   :  { %v493_v25 = vpop.f32.mrf.mxu1  ;;  %v489_v28 = vadd.f32 %v488_v24, %v470_v20  ;;  %v458_v32 = vadd.f32 %v457_v22, %v439_v27  ;;  %v476_v37 = vpop.f32.mrf.mxu3 }
  0xc9   :  { %v494_v30 = vadd.f32 %v493_v25, %v475_v21 }
  0xca   :  { %v502_v33 = vmul.f32 %v766_v23, %v489_v28  ;;  %v477_v39 = vadd.f32 %v476_v37, %v458_v32 }
  0xcb   :  { %v504_v34 = vmul.f32 %v766_v23, %v494_v30 }
  0xcc   :  { %v510_v35 = vadd.f32 %v767_v29, %v502_v33 }
  0xcd   :  { %v512_v36 = vadd.f32 %v767_v29, %v504_v34 }
  0xce   :  { %v514_v40 = vmax.f32 %v510_v35, 0.0 }
  0xcf   :  { %v516_v41 = vmax.f32 %v512_v36, 0.0  ;;  %v490_v42 = vpop.f32.mrf.mxu0 }
  0xd0   :  { %v495_v43 = vpop.f32.mrf.mxu1  ;;  %518 = vst [vmem:[%s1037_s4] sm:$0xff] %v514_v40  ;;  %v491_v44 = vadd.f32 %v490_v42, %v472_v38 }
  0xd1   :  { %v496_v45 = vadd.f32 %v495_v43, %v477_v39  ;;  %520 = vst [vmem:[%s1037_s4 + $0x10] sm:$0xff] %v516_v41 }
  0xd2   :  { %v503_v46 = vmul.f32 %v766_v23, %v491_v44 }
  0xd3   :  { %v505_v47 = vmul.f32 %v766_v23, %v496_v45 }
  0xd4   :  { %v511_v48 = vadd.f32 %v767_v29, %v503_v46 }
  0xd5   :  { %v513_v49 = vadd.f32 %v767_v29, %v505_v47 }
  0xd6   :  { %v515_v50 = vmax.f32 %v511_v48, 0.0 }
  0xd7   :  { %v517_v51 = vmax.f32 %v513_v49, 0.0 }
  0xd8   :  { %519 = vst [vmem:[%s1037_s4 + $0x8] sm:$0xff] %v515_v50 }
  0xd9   :  { %521 = vst [vmem:[%s1037_s4 + $0x18] sm:$0xff] %v517_v51 }
  0xda   :  { %526 = vsyncpa [#allocation3], 1 }
  0xdb   :  { %527 = vsyncpa [#allocation5], 1 }

// kernel: alzheimer_resnet_forward.25
= control target key start
LH: loop header
LB: loop body
LE: loop exit
PB: predicated region body
PF: predicated region fallthrough
CT: control target
= control target key end

     0   :  { %9 = vsyncpa [#allocation3], 0  ;;  %s299_s0 = inlined_call_operand.vmem [shape: bf16[32,64], index: 0, kind: input, shape index: {}]   ;;  %s300_s1 = inlined_call_operand.vmem [shape: bf16[64,128], index: 1, kind: input, shape index: {}]   ;;  %s301_s2 = inlined_call_operand.hbm [shape: f32[1,128], index: 2, kind: input, shape index: {}]   ;;  %s302_s3 = inlined_call_operand.hbm [shape: f32[1,128], index: 3, kind: input, shape index: {}]   ;;  %s303_s4 = inlined_call_operand.vmem [shape: f32[32,128], index: 4, kind: output, shape index: {}]  }
   0x1   :  { %s20_s17 = sshll.u32 %s301_s2, 4  ;;  %s21_s17 = int_to_ptr.hbm [resolvable:$true] %s20_s17 }
   0x2   :  { %10 = vsyncpa [#allocation5], 0  ;;  %s236_s18 = smov [#allocation2]   ;;  %s31_s22 = sshll.u32 %s302_s3, 4  ;;  %s32_s22 = int_to_ptr.hbm [resolvable:$true] %s31_s22 }
   0x3   :  { %s22_s19 = sshll.u32 %s236_s18, 4  ;;  %s237_s23 = smov [#allocation4]   ;;  %s23_s19 = int_to_ptr.vmem [resolvable:$true] %s22_s19 }
   0x4   :  { %25 = dma.hbm_to_vmem [thread:$0]  %s21_s17, 16, %s23_s19, [#allocation3]  }
   0x5   :  { %s33_s24 = sshll.u32 %s237_s23, 4  ;;  %s34_s24 = int_to_ptr.vmem [resolvable:$true] %s33_s24 }
   0x6   :  { %36 = dma.hbm_to_vmem [thread:$0]  %s32_s22, 16, %s34_s24, [#allocation5]  }
   0x7   :  { %232 = dma.done.wait [#allocation3], 16  }
   0x8   :  { %233 = vsyncadd [#allocation3], 4294967280 }
   0x9   :  { %234 = dma.done.wait [#allocation5], 16  }
   0xa   :  { %235 = vsyncadd [#allocation5], 4294967280  ;;  %v175_v0 = vld [vmem:[%s300_s1 + $0x18] sm:$0xff]  ;;  %v174_v1 = vld [vmem:[%s300_s1 + $0x10] sm:$0xff]  ;;  %vm92_vm0 = vcmask 523264  }
   0xb   :  { %103 = vmatpush.bf16.msra.mxu0 %v175_v0  ;;  %176 = vmatpush.bf16.msra.mxu1 %v175_v0  ;;  %v173_v2 = vld [vmem:[%s300_s1 + $0x8] sm:$0xff]  ;;  %v172_v3 = vld [vmem:[%s300_s1] sm:$0xff] }
   0xc   :  { %v170_v4 = vld [vmem:[%s299_s0] sm:$0xff]  ;;  %v171_v5 = vld [vmem:[%s299_s0 + $0x8] sm:$0xff] }
   0xd   :  { %v182_v6 = vld [vmem:[#allocation2] ss:$0 sm:$0xff]  ;;  %v183_v7 = vld [vmem:[#allocation4] ss:$0 sm:$0xff] }
   0xf   :  { %104 = vmatpush.bf16.msra.mxu0 %v174_v1  ;;  %177 = vmatpush.bf16.msra.mxu1 %v174_v1 }
  0x13   :  { %105 = vmatpush.bf16.msra.mxu0 %v173_v2  ;;  %178 = vmatpush.bf16.msra.mxu1 %v173_v2 }
  0x17   :  { %106 = vmatpush.bf16.msra.mxu0 %v172_v3  ;;  %179 = vmatpush.bf16.msra.mxu1 %v172_v3 }
  0x1a   :  { %168 = vmatmul.msk.bf16.vlgmr.msra.gmra.mxu0 %vm92_vm0, %v170_v4  ;;  %169 = vmatmul.msk.bf16.vlgmr.msra.gmra.mxu1 %vm92_vm0, %v171_v5 }
  0x97   :  { %v108_v8 = vpop.f32.mrf.mxu0  ;;  %v113_v9 = vpop.f32.mrf.mxu1 }
  0x98   :  { %v122_v10 = vmul.f32 %v182_v6, %v108_v8  ;;  %v124_v11 = vmul.f32 %v182_v6, %v113_v9 }
  0x9a   :  { %v130_v12 = vadd.f32 %v183_v7, %v122_v10  ;;  %v132_v13 = vadd.f32 %v183_v7, %v124_v11 }
  0x9c   :  { %134 = vst [vmem:[%s303_s4] sm:$0xff] %v130_v12 }
  0x9d   :  { %136 = vst [vmem:[%s303_s4 + $0x10] sm:$0xff] %v132_v13 }
  0x9f   :  { %v110_v14 = vpop.f32.mrf.mxu0  ;;  %v115_v15 = vpop.f32.mrf.mxu1 }
  0xa0   :  { %v123_v16 = vmul.f32 %v182_v6, %v110_v14  ;;  %v125_v17 = vmul.f32 %v182_v6, %v115_v15 }
  0xa2   :  { %v131_v18 = vadd.f32 %v183_v7, %v123_v16  ;;  %v133_v19 = vadd.f32 %v183_v7, %v125_v17 }
  0xa4   :  { %135 = vst [vmem:[%s303_s4 + $0x8] sm:$0xff] %v131_v18 }
  0xa5   :  { %137 = vst [vmem:[%s303_s4 + $0x18] sm:$0xff] %v133_v19 }
  0xa6   :  { %142 = vsyncpa [#allocation3], 1 }
  0xa7   :  { %143 = vsyncpa [#allocation5], 1 }

// kernel: alzheimer_resnet_forward.28
= control target key start
LH: loop header
LB: loop body
LE: loop exit
PB: predicated region body
PF: predicated region fallthrough
CT: control target
= control target key end

     0   :  { %9 = vsyncpa [#allocation4], 0  ;;  %s1035_s0 = inlined_call_operand.vmem [shape: bf16[32,1152], index: 0, kind: input, shape index: {}]   ;;  %s1036_s1 = inlined_call_operand.vmem [shape: bf16[1152,128], index: 1, kind: input, shape index: {}]   ;;  %s1037_s2 = inlined_call_operand.hbm [shape: f32[1,128], index: 2, kind: input, shape index: {}]   ;;  %s1038_s3 = inlined_call_operand.hbm [shape: f32[1,128], index: 3, kind: input, shape index: {}]   ;;  %s1039_s4 = inlined_call_operand.vmem [shape: f32[32,128], index: 4, kind: output, shape index: {}]  }
   0x1   :  { %10 = vsyncpa [#allocation6], 0  ;;  %s864_s15 = smov 0   ;;  %s866_s16 = smov 0  }
   0x2   :  { %s868_s17 = smov 0   ;;  %s870_s18 = smov 0  }
   0x3   :  { %s872_s19 = smov 0  }
   0x4 LB: > { %s589_s20 = sadd.s32 4294967295, %s835_s19   ;;  %s25_s21 = sadd.s32 1, %s831_s18  ;;  %s835_s19 = sphi %s872_s19, %s16_s19   ;;  %s831_s18 = sphi %s870_s18, %s1046_s18   ;;  %s827_s17 = sphi %s868_s17, %s1045_s17   ;;  %s823_s16 = sphi %s866_s16, %s1044_s16   ;;  %s819_s15 = sphi %s864_s15, %s1043_s15  }
   0x5   : > { %p26_p0 = scmp.ge.s32.totalorder %s25_s21, 9  ;;  %s37_s22 = sadd.s32 1, %s823_s16 }
   0x6   : > { %p44_p1 = scmp.ne.s32.totalorder %s823_s16, %s819_s15  ;;  %p45_p2 = scmp.eq.s32.totalorder %s835_s19, 0 }
   0x7   : > { %s1048_s21 = smov (%p26_p0, %s25_s21), 0  ;;  %p590_p4 = scmp.ge.s32.totalorder %s835_s19, 1 }
   0x8   : > { %p897_p3 = por %p45_p2, %p44_p1  ;;  %s33_s24 = ssub.s32 %s831_s18, %s1048_s21 }
   0x9   : > { %p155_p5 = scmp.lt.s32.totalorder %s835_s19, 10  ;;  %p35_p6 = scmp.eq.s32.totalorder %s33_s24, 0 }
   0xa   : > { %p909_p8 = scmp.eq.s32.totalorder %s589_s20, 0  ;;  %s167_s30 = sshll.u32 %s1037_s2, 4  ;;  %s168_s30 = int_to_ptr.hbm [resolvable:$true] %s167_s30 }
   0xb   : > { %p905_p7 = pnand %p590_p4, %p155_p5  ;;  %s837_s5 = smov [#allocation3]  }
   0xc   : > { %s914_s27 = scalar_select %p35_p6, %s823_s16, %s37_s22  }
   0xd   : > { %p674_p9 = pneg %p905_p7  ;;  %s169_s6 = sshll.u32 %s837_s5, 4  ;;  %s170_s6 = int_to_ptr.vmem [resolvable:$true] %s169_s6 }
   0xe   : > { %s179_s9 = sshll.u32 %s1038_s3, 4  ;;  %s838_s10 = smov [#allocation5]   ;;  %s180_s9 = int_to_ptr.hbm [resolvable:$true] %s179_s9 }
   0xf   : > { %p675_p10 = pnand %p909_p8, %p674_p9  ;;  %s181_s11 = sshll.u32 %s838_s10, 4  ;;  %s182_s11 = int_to_ptr.vmem [resolvable:$true] %s181_s11 }
  0x10   : > { %p593_p11 = scmp.ge.s32.totalorder %s835_s19, 9 }
  0x11   : > { %677 = dma.hbm_to_vmem [thread:$0]  (!%p675_p10), %s168_s30, 16, %s170_s6, [#allocation4]  }
  0x12   : > { %680 = dma.hbm_to_vmem [thread:$0]  (!%p675_p10), %s180_s9, 16, %s182_s11, [#allocation6]  }
  0x13   : > { %188 = sbr.rel (%p593_p11) target bundleno = 32 (0x20), region = 24 }
  0x18   : > { %191 = sbr.rel (!%p897_p3) target bundleno = 32 (0x20), region = 28  ;;  %s193_s12 = sand.u32 (%p897_p3), 1, %s823_s16  }
  0x19   : > { %s595_s13 = sshll.u32 (%p897_p3), %s831_s18, 2  ;;  %s594_s14 = sshll.u32 (%p897_p3), %s193_s12, 4 }
  0x1a   : > { %s200_s24 = scalar_lea.vmem (%p897_p3), %s1035_s0, %s595_s13  ;;  %s195_s28 = scalar_lea.vmem (%p897_p3), [#allocation2], %s594_s14 }
  0x1b   : > { %v217_v0 = vld [vmem:[%s200_s24] sm:$0xf] (%p897_p3)  ;;  %v219_v1 = vld [vmem:[%s200_s24 + $0x24] sm:$0xf] (%p897_p3)  ;;  %v221_v2 = vld [vmem:[%s200_s24 + $0x48] sm:$0xf] (%p897_p3) }
  0x1c   : > { %218 = vst [vmem:[%s195_s28] sm:$0xf] (%p897_p3), %v217_v0  ;;  %v223_v3 = vld [vmem:[%s200_s24 + $0x6c] sm:$0xf] (%p897_p3) }
  0x1d   : > { %220 = vst [vmem:[%s195_s28 + $0x4] sm:$0xf] %v219_v1 }
  0x1e   : > { %222 = vst [vmem:[%s195_s28 + $0x8] sm:$0xf] %v221_v2 }
  0x1f   : > { %224 = vst [vmem:[%s195_s28 + $0xc] sm:$0xf] %v223_v3 }
  0x20 PF: > { %268 = sbr.rel (%p905_p7) target bundleno = 252 (0xfc), region = 73  ;;  %s271_s23 = sand.u32 (!%p905_p7), 1, %s819_s15  }
  0x21   : > { %s937_s29 = sshll.u32 (!%p905_p7), %s271_s23, 4 }
  0x22   : > { %s273_s30 = scalar_lea.vmem (!%p905_p7), [#allocation2], %s937_s29 }
  0x25   : > { %810 = dma.done.wait (%p909_p8), [#allocation4], 16  }
  0x26   : > { %812 = vsyncadd (%p909_p8), [#allocation4], 4294967280 }
  0x27   : > { %814 = dma.done.wait (%p909_p8), [#allocation6], 16  }
  0x28   : > { %816 = vsyncadd (%p909_p8), [#allocation6], 4294967280  ;;  %s600_s25 = sshll.u32 %s827_s17, 4  ;;  %v648_v12 = vld [vmem:[%s273_s30] sm:$0xff]  ;;  %v649_v13 = vld [vmem:[%s273_s30 + $0x8] sm:$0xff]  ;;  %p642_p13 = scmp.ne.s32.totalorder %s827_s17, 0 }
  0x29   : > { %p313_p12 = scmp.lt.s32.totalorder %s600_s25, 143 }
  0x2b   : > { %s1050_s25 = smov (!%p313_p12, %s600_s25), 143 }
  0x2c   : > { %s601_s15 = sshll.u32 %s1050_s25, 2 }
  0x2d   : > { %s316_s7 = scalar_lea.vmem %s1036_s1, %s601_s15 }
  0x2e   : > { %v657_v4 = vld [vmem:[%s316_s7 + $0x38] sm:$0xff]  ;;  %v656_v5 = vld [vmem:[%s316_s7 + $0x30] sm:$0xff]  ;;  %v655_v6 = vld [vmem:[%s316_s7 + $0x28] sm:$0xff] }
  0x2f   : > { %404 = vmatpush.bf16.msra.mxu0 %v657_v4  ;;  %658 = vmatpush.bf16.msra.mxu1 %v657_v4  ;;  %v654_v7 = vld [vmem:[%s316_s7 + $0x20] sm:$0xff]  ;;  %v653_v8 = vld [vmem:[%s316_s7 + $0x18] sm:$0xff]  ;;  %v652_v9 = vld [vmem:[%s316_s7 + $0x10] sm:$0xff] }
  0x30   : > { %v651_v10 = vld [vmem:[%s316_s7 + $0x8] sm:$0xff]  ;;  %v650_v11 = vld [vmem:[%s316_s7] sm:$0xff] }
  0x33   : > { %405 = vmatpush.bf16.msra.mxu0 %v656_v5  ;;  %659 = vmatpush.bf16.msra.mxu1 %v656_v5 }
  0x37   : > { %406 = vmatpush.bf16.msra.mxu0 %v655_v6  ;;  %660 = vmatpush.bf16.msra.mxu1 %v655_v6 }
  0x3b   : > { %407 = vmatpush.bf16.msra.mxu0 %v654_v7  ;;  %661 = vmatpush.bf16.msra.mxu1 %v654_v7 }
  0x3f   : > { %408 = vmatpush.bf16.msra.mxu0 %v653_v8  ;;  %662 = vmatpush.bf16.msra.mxu1 %v653_v8 }
  0x43   : > { %409 = vmatpush.bf16.msra.mxu0 %v652_v9  ;;  %663 = vmatpush.bf16.msra.mxu1 %v652_v9 }
  0x47   : > { %410 = vmatpush.bf16.msra.mxu0 %v651_v10  ;;  %664 = vmatpush.bf16.msra.mxu1 %v651_v10 }
  0x4b   : > { %411 = vmatpush.bf16.msra.mxu0 %v650_v11  ;;  %665 = vmatpush.bf16.msra.mxu1 %v650_v11 }
  0x4e   : > { %412 = vmatmul.bf16.vlgmr.msra.gmra.mxu0 %v648_v12  ;;  %417 = vmatmul.bf16.vlgmr.msra.gmra.mxu1 %v649_v13 }
  0xcb   : > { %v413_v14 = vpop.f32.mrf.mxu0  ;;  %v418_v15 = vpop.f32.mrf.mxu1 }
  0xcf   : > { %426 = sbr.rel (%p642_p13) target bundleno = 216 (0xd8), region = 89 }
  0xd3   : > { %v415_v16 = vpop.f32.mrf.mxu0  ;;  %v420_v17 = vpop.f32.mrf.mxu1 }
  0xd4   : > { %427 = vst [vmem:[%s1039_s4] sm:$0xff] %v413_v14 }
  0xd5   : > { %428 = vst [vmem:[%s1039_s4 + $0x8] sm:$0xff] %v415_v16 }
  0xd6   : > { %429 = vst [vmem:[%s1039_s4 + $0x10] sm:$0xff] %v418_v15 }
  0xd7   : > { %430 = vst [vmem:[%s1039_s4 + $0x18] sm:$0xff] %v420_v17 }
  0xd8 PF: > { %p431_p0 = scmp.gt.s32.totalorder %s827_s17, 0  ;;  %p432_p1 = scmp.lt.s32.totalorder %s827_s17, 8 }
  0xda   : > { %p433_p2 = pnand %p432_p1, %p431_p0 }
  0xdc   : > { %436 = sbr.rel (%p433_p2) target bundleno = 232 (0xe8), region = 93 }
  0xe1   : > { %v437_v18 = vld [vmem:[%s1039_s4] sm:$0xff]  ;;  %v438_v19 = vld [vmem:[%s1039_s4 + $0x8] sm:$0xff]  ;;  %v439_v20 = vld [vmem:[%s1039_s4 + $0x10] sm:$0xff] }
  0xe2   : > { %v441_v21 = vadd.f32 %v437_v18, %v413_v14  ;;  %v442_v22 = vadd.f32 %v438_v19, %v415_v16  ;;  %v443_v23 = vadd.f32 %v439_v20, %v418_v15  ;;  %v440_v24 = vld [vmem:[%s1039_s4 + $0x18] sm:$0xff] }
  0xe3   : > { %v444_v25 = vadd.f32 %v440_v24, %v420_v17 }
  0xe4   : > { %445 = vst [vmem:[%s1039_s4] sm:$0xff] %v441_v21 }
  0xe5   : > { %446 = vst [vmem:[%s1039_s4 + $0x8] sm:$0xff] %v442_v22 }
  0xe6   : > { %447 = vst [vmem:[%s1039_s4 + $0x10] sm:$0xff] %v443_v23 }
  0xe7   : > { %448 = vst [vmem:[%s1039_s4 + $0x18] sm:$0xff] %v444_v25 }
  0xe8 PF: > { %p643_p3 = scmp.ne.s32.totalorder %s827_s17, 8 }
  0xea   : > { %452 = sbr.rel (%p643_p3) target bundleno = 252 (0xfc), region = 97 }
  0xef   : > { %v453_v26 = vld [vmem:[%s1039_s4] sm:$0xff]  ;;  %v454_v30 = vld [vmem:[%s1039_s4 + $0x8] sm:$0xff]  ;;  %v455_v32 = vld [vmem:[%s1039_s4 + $0x10] sm:$0xff] }
  0xf0   : > { %v727_v27 = vld [vmem:[#allocation3] ss:$0 sm:$0xff]  ;;  %v457_v28 = vadd.f32 %v453_v26, %v413_v14  ;;  %v728_v29 = vld [vmem:[#allocation5] ss:$0 sm:$0xff]  ;;  %v458_v31 = vadd.f32 %v454_v30, %v415_v16  ;;  %v456_v33 = vld [vmem:[%s1039_s4 + $0x18] sm:$0xff]  ;;  %v459_v35 = vadd.f32 %v455_v32, %v418_v15 }
  0xf1   : > { %v460_v36 = vadd.f32 %v456_v33, %v420_v17 }
  0xf2   : > { %v465_v34 = vmul.f32 %v727_v27, %v457_v28  ;;  %v466_v37 = vmul.f32 %v727_v27, %v458_v31  ;;  %v467_v39 = vmul.f32 %v727_v27, %v459_v35 }
  0xf3   : > { %v468_v40 = vmul.f32 %v727_v27, %v460_v36 }
  0xf4   : > { %v473_v38 = vadd.f32 %v728_v29, %v465_v34  ;;  %v474_v41 = vadd.f32 %v728_v29, %v466_v37  ;;  %v475_v43 = vadd.f32 %v728_v29, %v467_v39 }
  0xf5   : > { %v476_v44 = vadd.f32 %v728_v29, %v468_v40 }
  0xf6   : > { %v477_v42 = vmax.f32 %v473_v38, 0.0  ;;  %v478_v45 = vmax.f32 %v474_v41, 0.0  ;;  %v479_v46 = vmax.f32 %v475_v43, 0.0 }
  0xf7   : > { %v480_v47 = vmax.f32 %v476_v44, 0.0 }
  0xf8   : > { %481 = vst [vmem:[%s1039_s4] sm:$0xff] %v477_v42 }
  0xf9   : > { %482 = vst [vmem:[%s1039_s4 + $0x8] sm:$0xff] %v478_v45 }
  0xfa   : > { %483 = vst [vmem:[%s1039_s4 + $0x10] sm:$0xff] %v479_v46 }
  0xfb   : > { %484 = vst [vmem:[%s1039_s4 + $0x18] sm:$0xff] %v480_v47 }
  0xfc PF: > { %s16_s19 = sadd.s32 1, %s835_s19   ;;  %s1043_s15 = smov %s823_s16 }
  0xfd   : > { %p13_p4 = scmp.ge.s32.totalorder %s16_s19, 11   ;;  %s1044_s16 = smov %s914_s27 }
  0xfe   : > { %s1045_s17 = smov %s831_s18  ;;  %s1046_s18 = smov %s1048_s21 }
  0xff   :  { %15 = sbr.rel (!%p13_p4) target bundleno = 4 (0x4), region = 136 }
 0x104   :  { %507 = vsyncpa [#allocation4], 1 }
 0x105   :  { %509 = vsyncpa [#allocation4 + $0x1], 1 }
 0x106   :  { %510 = vsyncpa [#allocation6], 1 }

// kernel: alzheimer_resnet_forward.27
= control target key start
LH: loop header
LB: loop body
LE: loop exit
PB: predicated region body
PF: predicated region fallthrough
CT: control target
= control target key end

     0   :  { %10 = vsyncpa [#allocation4], 0  ;;  %s1125_s0 = inlined_call_operand.vmem [shape: bf16[32,1152], index: 0, kind: input, shape index: {}]   ;;  %s1126_s1 = inlined_call_operand.vmem [shape: bf16[1152,128], index: 1, kind: input, shape index: {}]   ;;  %s1127_s2 = inlined_call_operand.hbm [shape: f32[1,128], index: 2, kind: input, shape index: {}]   ;;  %s1128_s3 = inlined_call_operand.hbm [shape: f32[1,128], index: 3, kind: input, shape index: {}]   ;;  %s1129_s4 = inlined_call_operand.vmem [shape: f32[32,128], index: 4, kind: input, shape index: {}]   ;;  %s1130_s5 = inlined_call_operand.vmem [shape: f32[32,128], index: 5, kind: output, shape index: {}]  }
   0x1   :  { %11 = vsyncpa [#allocation6], 0  ;;  %s942_s18 = smov 0   ;;  %s944_s19 = smov 0  }
   0x2   :  { %s946_s20 = smov 0   ;;  %s948_s21 = smov 0  }
   0x3   :  { %s950_s22 = smov 0  }
   0x4 LB: > { %s661_s23 = sadd.s32 4294967295, %s908_s22   ;;  %s26_s24 = sadd.s32 1, %s904_s21  ;;  %s908_s22 = sphi %s950_s22, %s17_s22   ;;  %s904_s21 = sphi %s948_s21, %s1137_s21   ;;  %s900_s20 = sphi %s946_s20, %s1136_s20   ;;  %s896_s19 = sphi %s944_s19, %s1135_s19   ;;  %s892_s18 = sphi %s942_s18, %s1134_s18  }
   0x5   : > { %p27_p0 = scmp.ge.s32.totalorder %s26_s24, 9  ;;  %s38_s25 = sadd.s32 1, %s896_s19 }
   0x6   : > { %p45_p1 = scmp.ne.s32.totalorder %s896_s19, %s892_s18  ;;  %p46_p2 = scmp.eq.s32.totalorder %s908_s22, 0 }
   0x7   : > { %s1139_s24 = smov (%p27_p0, %s26_s24), 0  ;;  %p662_p4 = scmp.ge.s32.totalorder %s908_s22, 1 }
   0x8   : > { %p975_p3 = por %p46_p2, %p45_p1  ;;  %s34_s27 = ssub.s32 %s904_s21, %s1139_s24 }
   0x9   : > { %p182_p5 = scmp.lt.s32.totalorder %s908_s22, 10  ;;  %p36_p6 = scmp.eq.s32.totalorder %s34_s27, 0 }
   0xa   : > { %p987_p8 = scmp.eq.s32.totalorder %s661_s23, 0  ;;  %s194_s8 = sshll.u32 %s1127_s2, 4  ;;  %s195_s8 = int_to_ptr.hbm [resolvable:$true] %s194_s8 }
   0xb   : > { %p983_p7 = pnand %p662_p4, %p182_p5  ;;  %s910_s9 = smov [#allocation3]  }
   0xc   : > { %s992_s30 = scalar_select %p36_p6, %s896_s19, %s38_s25  }
   0xd   : > { %p747_p9 = pneg %p983_p7  ;;  %s196_s10 = sshll.u32 %s910_s9, 4  ;;  %s197_s10 = int_to_ptr.vmem [resolvable:$true] %s196_s10 }
   0xe   : > { %s206_s13 = sshll.u32 %s1128_s3, 4  ;;  %s911_s14 = smov [#allocation5]   ;;  %s207_s13 = int_to_ptr.hbm [resolvable:$true] %s206_s13 }
   0xf   : > { %p748_p10 = pnand %p987_p8, %p747_p9  ;;  %s208_s15 = sshll.u32 %s911_s14, 4  ;;  %s209_s15 = int_to_ptr.vmem [resolvable:$true] %s208_s15 }
  0x10   : > { %p666_p11 = scmp.ge.s32.totalorder %s908_s22, 9 }
  0x11   : > { %750 = dma.hbm_to_vmem [thread:$0]  (!%p748_p10), %s195_s8, 16, %s197_s10, [#allocation4]  }
  0x12   : > { %753 = dma.hbm_to_vmem [thread:$0]  (!%p748_p10), %s207_s13, 16, %s209_s15, [#allocation6]  }
  0x13   : > { %224 = sbr.rel (%p666_p11) target bundleno = 32 (0x20), region = 28 }
  0x18   : > { %227 = sbr.rel (!%p975_p3) target bundleno = 32 (0x20), region = 32  ;;  %s229_s16 = sand.u32 (%p975_p3), 1, %s896_s19  }
  0x19   : > { %s668_s17 = sshll.u32 (%p975_p3), %s904_s21, 2  ;;  %s667_s23 = sshll.u32 (%p975_p3), %s229_s16, 4 }
  0x1a   : > { %s236_s6 = scalar_lea.vmem (%p975_p3), %s1125_s0, %s668_s17  ;;  %s231_s7 = scalar_lea.vmem (%p975_p3), [#allocation2], %s667_s23 }
  0x1b   : > { %v253_v0 = vld [vmem:[%s236_s6] sm:$0xf] (%p975_p3)  ;;  %v255_v1 = vld [vmem:[%s236_s6 + $0x24] sm:$0xf] (%p975_p3)  ;;  %v257_v2 = vld [vmem:[%s236_s6 + $0x48] sm:$0xf] (%p975_p3) }
  0x1c   : > { %254 = vst [vmem:[%s231_s7] sm:$0xf] (%p975_p3), %v253_v0  ;;  %v259_v3 = vld [vmem:[%s236_s6 + $0x6c] sm:$0xf] (%p975_p3) }
  0x1d   : > { %256 = vst [vmem:[%s231_s7 + $0x4] sm:$0xf] %v255_v1 }
  0x1e   : > { %258 = vst [vmem:[%s231_s7 + $0x8] sm:$0xf] %v257_v2 }
  0x1f   : > { %260 = vst [vmem:[%s231_s7 + $0xc] sm:$0xf] %v259_v3 }
  0x20 PF: > { %304 = sbr.rel (%p983_p7) target bundleno = 254 (0xfe), region = 77  ;;  %s307_s26 = sand.u32 (!%p983_p7), 1, %s892_s18  }
  0x21   : > { %s1015_s8 = sshll.u32 (!%p983_p7), %s307_s26, 4 }
  0x22   : > { %s309_s9 = scalar_lea.vmem (!%p983_p7), [#allocation2], %s1015_s8 }
  0x25   : > { %883 = dma.done.wait (%p987_p8), [#allocation4], 16  }
  0x26   : > { %885 = vsyncadd (%p987_p8), [#allocation4], 4294967280 }
  0x27   : > { %887 = dma.done.wait (%p987_p8), [#allocation6], 16  }
  0x28   : > { %889 = vsyncadd (%p987_p8), [#allocation6], 4294967280  ;;  %s673_s28 = sshll.u32 %s900_s20, 4  ;;  %v721_v12 = vld [vmem:[%s309_s9] sm:$0xff]  ;;  %v722_v13 = vld [vmem:[%s309_s9 + $0x8] sm:$0xff]  ;;  %p715_p13 = scmp.ne.s32.totalorder %s900_s20, 0 }
  0x29   : > { %p356_p12 = scmp.lt.s32.totalorder %s673_s28, 143 }
  0x2b   : > { %s1141_s28 = smov (!%p356_p12, %s673_s28), 143 }
  0x2c   : > { %s674_s18 = sshll.u32 %s1141_s28, 2 }
  0x2d   : > { %s359_s12 = scalar_lea.vmem %s1126_s1, %s674_s18 }
  0x2e   : > { %v730_v4 = vld [vmem:[%s359_s12 + $0x38] sm:$0xff]  ;;  %v729_v5 = vld [vmem:[%s359_s12 + $0x30] sm:$0xff]  ;;  %v728_v6 = vld [vmem:[%s359_s12 + $0x28] sm:$0xff] }
  0x2f   : > { %453 = vmatpush.bf16.msra.mxu0 %v730_v4  ;;  %731 = vmatpush.bf16.msra.mxu1 %v730_v4  ;;  %v727_v7 = vld [vmem:[%s359_s12 + $0x20] sm:$0xff]  ;;  %v726_v8 = vld [vmem:[%s359_s12 + $0x18] sm:$0xff]  ;;  %v725_v9 = vld [vmem:[%s359_s12 + $0x10] sm:$0xff] }
  0x30   : > { %v724_v10 = vld [vmem:[%s359_s12 + $0x8] sm:$0xff]  ;;  %v723_v11 = vld [vmem:[%s359_s12] sm:$0xff] }
  0x33   : > { %454 = vmatpush.bf16.msra.mxu0 %v729_v5  ;;  %732 = vmatpush.bf16.msra.mxu1 %v729_v5 }
  0x37   : > { %455 = vmatpush.bf16.msra.mxu0 %v728_v6  ;;  %733 = vmatpush.bf16.msra.mxu1 %v728_v6 }
  0x3b   : > { %456 = vmatpush.bf16.msra.mxu0 %v727_v7  ;;  %734 = vmatpush.bf16.msra.mxu1 %v727_v7 }
  0x3f   : > { %457 = vmatpush.bf16.msra.mxu0 %v726_v8  ;;  %735 = vmatpush.bf16.msra.mxu1 %v726_v8 }
  0x43   : > { %458 = vmatpush.bf16.msra.mxu0 %v725_v9  ;;  %736 = vmatpush.bf16.msra.mxu1 %v725_v9 }
  0x47   : > { %459 = vmatpush.bf16.msra.mxu0 %v724_v10  ;;  %737 = vmatpush.bf16.msra.mxu1 %v724_v10 }
  0x4b   : > { %460 = vmatpush.bf16.msra.mxu0 %v723_v11  ;;  %738 = vmatpush.bf16.msra.mxu1 %v723_v11 }
  0x4e   : > { %461 = vmatmul.bf16.vlgmr.msra.gmra.mxu0 %v721_v12  ;;  %466 = vmatmul.bf16.vlgmr.msra.gmra.mxu1 %v722_v13 }
  0xcb   : > { %v462_v14 = vpop.f32.mrf.mxu0  ;;  %v467_v15 = vpop.f32.mrf.mxu1 }
  0xcf   : > { %475 = sbr.rel (%p715_p13) target bundleno = 216 (0xd8), region = 93 }
  0xd3   : > { %v464_v16 = vpop.f32.mrf.mxu0  ;;  %v469_v17 = vpop.f32.mrf.mxu1 }
  0xd4   : > { %476 = vst [vmem:[%s1130_s5] sm:$0xff] %v462_v14 }
  0xd5   : > { %477 = vst [vmem:[%s1130_s5 + $0x8] sm:$0xff] %v464_v16 }
  0xd6   : > { %478 = vst [vmem:[%s1130_s5 + $0x10] sm:$0xff] %v467_v15 }
  0xd7   : > { %479 = vst [vmem:[%s1130_s5 + $0x18] sm:$0xff] %v469_v17 }
  0xd8 PF: > { %p480_p0 = scmp.gt.s32.totalorder %s900_s20, 0  ;;  %p481_p1 = scmp.lt.s32.totalorder %s900_s20, 8 }
  0xda   : > { %p482_p2 = pnand %p481_p1, %p480_p0 }
  0xdc   : > { %485 = sbr.rel (%p482_p2) target bundleno = 232 (0xe8), region = 97 }
  0xe1   : > { %v486_v18 = vld [vmem:[%s1130_s5] sm:$0xff]  ;;  %v487_v19 = vld [vmem:[%s1130_s5 + $0x8] sm:$0xff]  ;;  %v488_v20 = vld [vmem:[%s1130_s5 + $0x10] sm:$0xff] }
  0xe2   : > { %v490_v21 = vadd.f32 %v486_v18, %v462_v14  ;;  %v491_v22 = vadd.f32 %v487_v19, %v464_v16  ;;  %v492_v23 = vadd.f32 %v488_v20, %v467_v15  ;;  %v489_v24 = vld [vmem:[%s1130_s5 + $0x18] sm:$0xff] }
  0xe3   : > { %v493_v25 = vadd.f32 %v489_v24, %v469_v17 }
  0xe4   : > { %494 = vst [vmem:[%s1130_s5] sm:$0xff] %v490_v21 }
  0xe5   : > { %495 = vst [vmem:[%s1130_s5 + $0x8] sm:$0xff] %v491_v22 }
  0xe6   : > { %496 = vst [vmem:[%s1130_s5 + $0x10] sm:$0xff] %v492_v23 }
  0xe7   : > { %497 = vst [vmem:[%s1130_s5 + $0x18] sm:$0xff] %v493_v25 }
  0xe8 PF: > { %p716_p3 = scmp.ne.s32.totalorder %s900_s20, 8 }
  0xea   : > { %501 = sbr.rel (%p716_p3) target bundleno = 254 (0xfe), region = 101 }
  0xef   : > { %v502_v26 = vld [vmem:[%s1130_s5] sm:$0xff]  ;;  %v503_v30 = vld [vmem:[%s1130_s5 + $0x8] sm:$0xff]  ;;  %v504_v31 = vld [vmem:[%s1130_s5 + $0x10] sm:$0xff] }
  0xf0   : > { %v800_v27 = vld [vmem:[#allocation3] ss:$0 sm:$0xff]  ;;  %v506_v28 = vadd.f32 %v502_v26, %v462_v14  ;;  %v801_v29 = vld [vmem:[#allocation5] ss:$0 sm:$0xff]  ;;  %v507_v33 = vadd.f32 %v503_v30, %v464_v16  ;;  %v508_v34 = vadd.f32 %v504_v31, %v467_v15  ;;  %v505_v35 = vld [vmem:[%s1130_s5 + $0x18] sm:$0xff] }
  0xf1   : > { %v526_v36 = vld [vmem:[%s1129_s4] sm:$0xff]  ;;  %v509_v37 = vadd.f32 %v505_v35, %v469_v17  ;;  %v527_v41 = vld [vmem:[%s1129_s4 + $0x8] sm:$0xff]  ;;  %v528_v42 = vld [vmem:[%s1129_s4 + $0x10] sm:$0xff] }
  0xf2   : > { %v514_v32 = vmul.f32 %v800_v27, %v506_v28  ;;  %v515_v39 = vmul.f32 %v800_v27, %v507_v33  ;;  %v516_v40 = vmul.f32 %v800_v27, %v508_v34  ;;  %v529_v47 = vld [vmem:[%s1129_s4 + $0x18] sm:$0xff] }
  0xf3   : > { %v517_v43 = vmul.f32 %v800_v27, %v509_v37 }
  0xf4   : > { %v522_v38 = vadd.f32 %v801_v29, %v514_v32  ;;  %v523_v45 = vadd.f32 %v801_v29, %v515_v39  ;;  %v524_v46 = vadd.f32 %v801_v29, %v516_v40 }
  0xf5   : > { %v525_v48 = vadd.f32 %v801_v29, %v517_v43 }
  0xf6   : > { %v530_v44 = vadd.f32 %v526_v36, %v522_v38  ;;  %v531_v50 = vadd.f32 %v527_v41, %v523_v45  ;;  %v532_v51 = vadd.f32 %v528_v42, %v524_v46 }
  0xf7   : > { %v533_v52 = vadd.f32 %v529_v47, %v525_v48 }
  0xf8   : > { %v534_v49 = vmax.f32 %v530_v44, 0.0  ;;  %v535_v53 = vmax.f32 %v531_v50, 0.0  ;;  %v536_v54 = vmax.f32 %v532_v51, 0.0 }
  0xf9   : > { %v537_v55 = vmax.f32 %v533_v52, 0.0 }
  0xfa   : > { %538 = vst [vmem:[%s1130_s5] sm:$0xff] %v534_v49 }
  0xfb   : > { %539 = vst [vmem:[%s1130_s5 + $0x8] sm:$0xff] %v535_v53 }
  0xfc   : > { %540 = vst [vmem:[%s1130_s5 + $0x10] sm:$0xff] %v536_v54 }
  0xfd   : > { %541 = vst [vmem:[%s1130_s5 + $0x18] sm:$0xff] %v537_v55 }
  0xfe PF: > { %s17_s22 = sadd.s32 1, %s908_s22   ;;  %s1134_s18 = smov %s896_s19 }
  0xff   : > { %p14_p4 = scmp.ge.s32.totalorder %s17_s22, 11   ;;  %s1135_s19 = smov %s992_s30 }
 0x100   : > { %s1136_s20 = smov %s904_s21  ;;  %s1137_s21 = smov %s1139_s24 }
 0x101   :  { %16 = sbr.rel (!%p14_p4) target bundleno = 4 (0x4), region = 143 }
 0x106   :  { %564 = vsyncpa [#allocation4], 1 }
 0x107   :  { %566 = vsyncpa [#allocation4 + $0x1], 1 }
 0x108   :  { %567 = vsyncpa [#allocation6], 1 }

// kernel: alzheimer_resnet_forward.31
= control target key start
LH: loop header
LB: loop body
LE: loop exit
PB: predicated region body
PF: predicated region fallthrough
CT: control target
= control target key end

     0   :  { %9 = vsyncpa [#allocation4], 0  ;;  %s1130_s0 = inlined_call_operand.vmem [shape: bf16[16,1152], index: 0, kind: input, shape index: {}]   ;;  %s1131_s1 = inlined_call_operand.vmem [shape: bf16[1152,256], index: 1, kind: input, shape index: {}]   ;;  %s1132_s2 = inlined_call_operand.hbm [shape: f32[1,256], index: 2, kind: input, shape index: {}]   ;;  %s1133_s3 = inlined_call_operand.hbm [shape: f32[1,256], index: 3, kind: input, shape index: {}]   ;;  %s1134_s4 = inlined_call_operand.vmem [shape: f32[16,256], index: 4, kind: output, shape index: {}]  }
   0x1   :  { %10 = vsyncpa [#allocation6], 0  ;;  %s927_s15 = smov 0   ;;  %s929_s16 = smov 0  }
   0x2   :  { %s931_s17 = smov 0   ;;  %s933_s18 = smov 0  }
   0x3   :  { %s935_s19 = smov 0  }
   0x4 LB: > { %s625_s20 = sadd.s32 4294967295, %s898_s19   ;;  %s25_s21 = sadd.s32 1, %s894_s18  ;;  %s898_s19 = sphi %s935_s19, %s16_s19   ;;  %s894_s18 = sphi %s933_s18, %s1141_s18   ;;  %s890_s17 = sphi %s931_s17, %s1140_s17   ;;  %s886_s16 = sphi %s929_s16, %s1139_s16   ;;  %s882_s15 = sphi %s927_s15, %s1138_s15  }
   0x5   : > { %p26_p0 = scmp.ge.s32.totalorder %s25_s21, 9  ;;  %s37_s22 = sadd.s32 1, %s886_s16 }
   0x6   : > { %p44_p1 = scmp.ne.s32.totalorder %s886_s16, %s882_s15  ;;  %p45_p2 = scmp.eq.s32.totalorder %s898_s19, 0 }
   0x7   : > { %s1143_s21 = smov (%p26_p0, %s25_s21), 0  ;;  %p626_p4 = scmp.ge.s32.totalorder %s898_s19, 1 }
   0x8   : > { %p960_p3 = por %p45_p2, %p44_p1  ;;  %s33_s24 = ssub.s32 %s894_s18, %s1143_s21 }
   0x9   : > { %p155_p5 = scmp.lt.s32.totalorder %s898_s19, 10  ;;  %p35_p6 = scmp.eq.s32.totalorder %s33_s24, 0 }
   0xa   : > { %p972_p8 = scmp.eq.s32.totalorder %s625_s20, 0  ;;  %s167_s30 = sshll.u32 %s1132_s2, 4  ;;  %s168_s30 = int_to_ptr.hbm [resolvable:$true] %s167_s30 }
   0xb   : > { %p968_p7 = pnand %p626_p4, %p155_p5  ;;  %s900_s5 = smov [#allocation3]  }
   0xc   : > { %s977_s27 = scalar_select %p35_p6, %s886_s16, %s37_s22  }
   0xd   : > { %p739_p9 = pneg %p968_p7  ;;  %s169_s6 = sshll.u32 %s900_s5, 4  ;;  %s170_s6 = int_to_ptr.vmem [resolvable:$true] %s169_s6 }
   0xe   : > { %s179_s9 = sshll.u32 %s1133_s3, 4  ;;  %s901_s10 = smov [#allocation5]   ;;  %s180_s9 = int_to_ptr.hbm [resolvable:$true] %s179_s9 }
   0xf   : > { %p740_p10 = pnand %p972_p8, %p739_p9  ;;  %s181_s11 = sshll.u32 %s901_s10, 4  ;;  %s182_s11 = int_to_ptr.vmem [resolvable:$true] %s181_s11 }
  0x10   : > { %p629_p11 = scmp.ge.s32.totalorder %s898_s19, 9 }
  0x11   : > { %742 = dma.hbm_to_vmem [thread:$0]  (!%p740_p10), %s168_s30, 32, %s170_s6, [#allocation4]  }
  0x12   : > { %745 = dma.hbm_to_vmem [thread:$0]  (!%p740_p10), %s180_s9, 32, %s182_s11, [#allocation6]  }
  0x13   : > { %188 = sbr.rel (%p629_p11) target bundleno = 30 (0x1e), region = 24 }
  0x18   : > { %191 = sbr.rel (!%p960_p3) target bundleno = 30 (0x1e), region = 28  ;;  %s193_s12 = sand.u32 (%p960_p3), 1, %s886_s16  }
  0x19   : > { %s631_s13 = sshll.u32 (%p960_p3), %s894_s18, 2  ;;  %s630_s14 = sshll.u32 (%p960_p3), %s193_s12, 3 }
  0x1a   : > { %s200_s24 = scalar_lea.vmem (%p960_p3), %s1130_s0, %s631_s13  ;;  %s195_s28 = scalar_lea.vmem (%p960_p3), [#allocation2], %s630_s14 }
  0x1b   : > { %v217_v0 = vld [vmem:[%s200_s24] sm:$0xf] (%p960_p3)  ;;  %v219_v1 = vld [vmem:[%s200_s24 + $0x24] sm:$0xf] (%p960_p3) }
  0x1c   : > { %218 = vst [vmem:[%s195_s28] sm:$0xf] (%p960_p3), %v217_v0 }
  0x1d   : > { %220 = vst [vmem:[%s195_s28 + $0x4] sm:$0xf] %v219_v1 }
  0x1e PF: > { %261 = sbr.rel (%p968_p7) target bundleno = 253 (0xfd), region = 73  ;;  %s264_s23 = sand.u32 (!%p968_p7), 1, %s882_s15  }
  0x1f   : > { %s1000_s29 = sshll.u32 (!%p968_p7), %s264_s23, 3 }
  0x20   : > { %s266_s30 = scalar_lea.vmem (!%p968_p7), [#allocation2], %s1000_s29 }
  0x23   : > { %873 = dma.done.wait (%p972_p8), [#allocation4], 32  }
  0x24   : > { %875 = vsyncadd (%p972_p8), [#allocation4], 4294967264 }
  0x25   : > { %877 = dma.done.wait (%p972_p8), [#allocation6], 32  }
  0x26   : > { %879 = vsyncadd (%p972_p8), [#allocation6], 4294967264  ;;  %s636_s25 = sshll.u32 %s890_s17, 4  ;;  %v714_v50 = vld [vmem:[%s266_s30] sm:$0xff]  ;;  %p707_p13 = scmp.ne.s32.totalorder %s890_s17, 0 }
  0x27   : > { %p308_p12 = scmp.lt.s32.totalorder %s636_s25, 143 }
  0x29   : > { %s1145_s25 = smov (!%p308_p12, %s636_s25), 143 }
  0x2a   : > { %s713_s15 = sshll.u32 %s1145_s25, 3 }
  0x2b   : > { %s1015_s7 = scalar_lea.vmem %s1131_s1, %s713_s15 }
  0x2c   : > { %v701_v2 = vld [vmem:[%s1015_s7 + $0x70] sm:$0xf]  ;;  %v730_v3 = vld [vmem:[%s1015_s7 + $0x74] sm:$0xf0]  ;;  %v729_v4 = vld [vmem:[%s1015_s7 + $0x74] sm:$0xf] }
  0x2d   : > { %v702_v5 = vor.u32 %v730_v3, %v701_v2  ;;  %v703_v6 = vld [vmem:[%s1015_s7 + $0x78] sm:$0xf0]  ;;  %v693_v7 = vld [vmem:[%s1015_s7 + $0x60] sm:$0xf]  ;;  %v728_v8 = vld [vmem:[%s1015_s7 + $0x64] sm:$0xf0] }
  0x2e   : > { %v706_v9 = vor.u32 %v729_v4, %v703_v6  ;;  %v727_v10 = vld [vmem:[%s1015_s7 + $0x64] sm:$0xf]  ;;  %v695_v11 = vld [vmem:[%s1015_s7 + $0x68] sm:$0xf0]  ;;  %v694_v12 = vor.u32 %v728_v8, %v693_v7  ;;  %v685_v14 = vld [vmem:[%s1015_s7 + $0x50] sm:$0xf] }
  0x2f   : > { %425 = vmatpush.bf16.msra.mxu0 %v702_v5  ;;  %v698_v13 = vor.u32 %v727_v10, %v695_v11  ;;  %v726_v15 = vld [vmem:[%s1015_s7 + $0x54] sm:$0xf0]  ;;  %v725_v16 = vld [vmem:[%s1015_s7 + $0x54] sm:$0xf]  ;;  %v687_v17 = vld [vmem:[%s1015_s7 + $0x58] sm:$0xf0] }
  0x30   : > { %439 = vmatpush.bf16.msra.mxu1 %v706_v9  ;;  %v686_v18 = vor.u32 %v726_v15, %v685_v14  ;;  %v690_v19 = vor.u32 %v725_v16, %v687_v17  ;;  %v677_v20 = vld [vmem:[%s1015_s7 + $0x40] sm:$0xf]  ;;  %v724_v21 = vld [vmem:[%s1015_s7 + $0x44] sm:$0xf0]  ;;  %v723_v22 = vld [vmem:[%s1015_s7 + $0x44] sm:$0xf] }
  0x31   : > { %v679_v23 = vld [vmem:[%s1015_s7 + $0x48] sm:$0xf0]  ;;  %v678_v24 = vor.u32 %v724_v21, %v677_v20  ;;  %v669_v26 = vld [vmem:[%s1015_s7 + $0x30] sm:$0xf]  ;;  %v722_v27 = vld [vmem:[%s1015_s7 + $0x34] sm:$0xf0] }
  0x32   : > { %v682_v25 = vor.u32 %v723_v22, %v679_v23  ;;  %v721_v28 = vld [vmem:[%s1015_s7 + $0x34] sm:$0xf]  ;;  %v671_v29 = vld [vmem:[%s1015_s7 + $0x38] sm:$0xf0]  ;;  %v670_v30 = vor.u32 %v722_v27, %v669_v26  ;;  %v661_v32 = vld [vmem:[%s1015_s7 + $0x20] sm:$0xf] }
  0x33   : > { %426 = vmatpush.bf16.msra.mxu0 %v694_v12  ;;  %v674_v31 = vor.u32 %v721_v28, %v671_v29  ;;  %v720_v33 = vld [vmem:[%s1015_s7 + $0x24] sm:$0xf0]  ;;  %v719_v34 = vld [vmem:[%s1015_s7 + $0x24] sm:$0xf]  ;;  %v663_v35 = vld [vmem:[%s1015_s7 + $0x28] sm:$0xf0] }
  0x34   : > { %440 = vmatpush.bf16.msra.mxu1 %v698_v13  ;;  %v662_v36 = vor.u32 %v720_v33, %v661_v32  ;;  %v666_v37 = vor.u32 %v719_v34, %v663_v35  ;;  %v653_v38 = vld [vmem:[%s1015_s7 + $0x10] sm:$0xf]  ;;  %v718_v39 = vld [vmem:[%s1015_s7 + $0x14] sm:$0xf0]  ;;  %v717_v40 = vld [vmem:[%s1015_s7 + $0x14] sm:$0xf] }
  0x35   : > { %v655_v41 = vld [vmem:[%s1015_s7 + $0x18] sm:$0xf0]  ;;  %v654_v42 = vor.u32 %v718_v39, %v653_v38  ;;  %v645_v44 = vld [vmem:[%s1015_s7] sm:$0xf]  ;;  %v716_v45 = vld [vmem:[%s1015_s7 + $0x4] sm:$0xf0] }
  0x36   : > { %v658_v43 = vor.u32 %v717_v40, %v655_v41  ;;  %v715_v46 = vld [vmem:[%s1015_s7 + $0x4] sm:$0xf]  ;;  %v647_v47 = vld [vmem:[%s1015_s7 + $0x8] sm:$0xf0]  ;;  %v646_v48 = vor.u32 %v716_v45, %v645_v44 }
  0x37   : > { %427 = vmatpush.bf16.msra.mxu0 %v686_v18  ;;  %v650_v49 = vor.u32 %v715_v46, %v647_v47 }
  0x38   : > { %441 = vmatpush.bf16.msra.mxu1 %v690_v19 }
  0x3b   : > { %428 = vmatpush.bf16.msra.mxu0 %v678_v24 }
  0x3c   : > { %442 = vmatpush.bf16.msra.mxu1 %v682_v25 }
  0x3f   : > { %429 = vmatpush.bf16.msra.mxu0 %v670_v30 }
  0x40   : > { %443 = vmatpush.bf16.msra.mxu1 %v674_v31 }
  0x43   : > { %430 = vmatpush.bf16.msra.mxu0 %v662_v36 }
  0x44   : > { %444 = vmatpush.bf16.msra.mxu1 %v666_v37 }
  0x47   : > { %431 = vmatpush.bf16.msra.mxu0 %v654_v42 }
  0x48   : > { %445 = vmatpush.bf16.msra.mxu1 %v658_v43 }
  0x4b   : > { %432 = vmatpush.bf16.msra.mxu0 %v646_v48 }
  0x4c   : > { %446 = vmatpush.bf16.msra.mxu1 %v650_v49 }
  0x4e   : > { %433 = vmatmul.bf16.vlgmr.msra.gmra.mxu0 %v714_v50 }
  0x4f   : > { %447 = vmatmul.bf16.vlgmr.msra.gmra.mxu1 %v714_v50 }
  0xcb   : > { %v434_v51 = vpop.f32.mrf.mxu0 }
  0xcc   : > { %v448_v52 = vpop.f32.mrf.mxu1 }
  0xd0   : > { %456 = sbr.rel (%p707_p13) target bundleno = 217 (0xd9), region = 89 }
  0xd3   : > { %v436_v53 = vpop.f32.mrf.mxu0 }
  0xd4   : > { %v450_v54 = vpop.f32.mrf.mxu1 }
  0xd5   : > { %457 = vst [vmem:[%s1134_s4] sm:$0xff] %v434_v51 }
  0xd6   : > { %458 = vst [vmem:[%s1134_s4 + $0x8] sm:$0xff] %v448_v52 }
  0xd7   : > { %459 = vst [vmem:[%s1134_s4 + $0x10] sm:$0xff] %v436_v53 }
  0xd8   : > { %460 = vst [vmem:[%s1134_s4 + $0x18] sm:$0xff] %v450_v54 }
  0xd9 PF: > { %p461_p0 = scmp.gt.s32.totalorder %s890_s17, 0  ;;  %p462_p1 = scmp.lt.s32.totalorder %s890_s17, 8 }
  0xdb   : > { %p463_p2 = pnand %p462_p1, %p461_p0 }
  0xdd   : > { %466 = sbr.rel (%p463_p2) target bundleno = 233 (0xe9), region = 93 }
  0xe2   : > { %v467_v55 = vld [vmem:[%s1134_s4] sm:$0xff]  ;;  %v468_v56 = vld [vmem:[%s1134_s4 + $0x8] sm:$0xff]  ;;  %v469_v57 = vld [vmem:[%s1134_s4 + $0x10] sm:$0xff] }
  0xe3   : > { %v471_v58 = vadd.f32 %v467_v55, %v434_v51  ;;  %v472_v59 = vadd.f32 %v468_v56, %v448_v52  ;;  %v473_v60 = vadd.f32 %v469_v57, %v436_v53  ;;  %v470_v61 = vld [vmem:[%s1134_s4 + $0x18] sm:$0xff] }
  0xe4   : > { %v474_v62 = vadd.f32 %v470_v61, %v450_v54 }
  0xe5   : > { %475 = vst [vmem:[%s1134_s4] sm:$0xff] %v471_v58 }
  0xe6   : > { %476 = vst [vmem:[%s1134_s4 + $0x8] sm:$0xff] %v472_v59 }
  0xe7   : > { %477 = vst [vmem:[%s1134_s4 + $0x10] sm:$0xff] %v473_v60 }
  0xe8   : > { %478 = vst [vmem:[%s1134_s4 + $0x18] sm:$0xff] %v474_v62 }
  0xe9 PF: > { %p708_p3 = scmp.ne.s32.totalorder %s890_s17, 8 }
  0xeb   : > { %482 = sbr.rel (%p708_p3) target bundleno = 253 (0xfd), region = 97 }
  0xf0   : > { %v483_v63 = vld [vmem:[%s1134_s4] sm:$0xff]  ;;  %v491_v0 = vld [vmem:[#allocation3] sm:$0x3]  ;;  %v501_v1 = vld [vmem:[#allocation5] sm:$0x3] }
  0xf1   : > { %v487_v2 = vadd.f32 %v483_v63, %v434_v51  ;;  %v493_v3 = vperm.slane %v491_v0, 0  ;;  %v503_v4 = vperm.slane %v501_v1, 0  ;;  %v484_v5 = vld [vmem:[%s1134_s4 + $0x8] sm:$0xff]  ;;  %v494_v6 = vperm.slane %v491_v0, 1  ;;  %v485_v7 = vld [vmem:[%s1134_s4 + $0x10] sm:$0xff]  ;;  %v486_v8 = vld [vmem:[%s1134_s4 + $0x18] sm:$0xff] }
  0xf2   : > { %v488_v9 = vadd.f32 %v484_v5, %v448_v52  ;;  %v504_v10 = vperm.slane %v501_v1, 1  ;;  %v489_v11 = vadd.f32 %v485_v7, %v436_v53  ;;  %v490_v12 = vadd.f32 %v486_v8, %v450_v54 }
  0xf3   : > { %v497_v13 = vmul.f32 %v493_v3, %v487_v2 }
  0xf4   : > { %v498_v14 = vmul.f32 %v494_v6, %v488_v9  ;;  %v499_v15 = vmul.f32 %v493_v3, %v489_v11  ;;  %v500_v16 = vmul.f32 %v494_v6, %v490_v12 }
  0xf5   : > { %v507_v17 = vadd.f32 %v503_v4, %v497_v13 }
  0xf6   : > { %v508_v18 = vadd.f32 %v504_v10, %v498_v14  ;;  %v509_v19 = vadd.f32 %v503_v4, %v499_v15  ;;  %v510_v20 = vadd.f32 %v504_v10, %v500_v16 }
  0xf7   : > { %v511_v21 = vmax.f32 %v507_v17, 0.0 }
  0xf8   : > { %v512_v22 = vmax.f32 %v508_v18, 0.0  ;;  %v513_v23 = vmax.f32 %v509_v19, 0.0  ;;  %v514_v24 = vmax.f32 %v510_v20, 0.0 }
  0xf9   : > { %515 = vst [vmem:[%s1134_s4] sm:$0xff] %v511_v21 }
  0xfa   : > { %516 = vst [vmem:[%s1134_s4 + $0x8] sm:$0xff] %v512_v22 }
  0xfb   : > { %517 = vst [vmem:[%s1134_s4 + $0x10] sm:$0xff] %v513_v23 }
  0xfc   : > { %518 = vst [vmem:[%s1134_s4 + $0x18] sm:$0xff] %v514_v24 }
  0xfd PF: > { %s16_s19 = sadd.s32 1, %s898_s19   ;;  %s1138_s15 = smov %s886_s16 }
  0xfe   : > { %p13_p4 = scmp.ge.s32.totalorder %s16_s19, 11   ;;  %s1139_s16 = smov %s977_s27 }
  0xff   : > { %s1140_s17 = smov %s894_s18  ;;  %s1141_s18 = smov %s1143_s21 }
 0x100   :  { %15 = sbr.rel (!%p13_p4) target bundleno = 4 (0x4), region = 136 }
 0x105   :  { %543 = vsyncpa [#allocation4], 1 }
 0x106   :  { %545 = vsyncpa [#allocation4 + $0x1], 1 }
 0x107   :  { %546 = vsyncpa [#allocation6], 1 }

// kernel: alzheimer_resnet_forward.30
= control target key start
LH: loop header
LB: loop body
LE: loop exit
PB: predicated region body
PF: predicated region fallthrough
CT: control target
= control target key end

     0   :  { %9 = vsyncpa [#allocation3], 0  ;;  %s490_s0 = inlined_call_operand.vmem [shape: bf16[16,128], index: 0, kind: input, shape index: {}]   ;;  %s491_s1 = inlined_call_operand.vmem [shape: bf16[128,256], index: 1, kind: input, shape index: {}]   ;;  %s492_s2 = inlined_call_operand.hbm [shape: f32[1,256], index: 2, kind: input, shape index: {}]   ;;  %s493_s3 = inlined_call_operand.hbm [shape: f32[1,256], index: 3, kind: input, shape index: {}]   ;;  %s494_s4 = inlined_call_operand.vmem [shape: f32[16,256], index: 4, kind: output, shape index: {}]  }
   0x1   :  { %s20_s17 = sshll.u32 %s492_s2, 4  ;;  %s21_s17 = int_to_ptr.hbm [resolvable:$true] %s20_s17 }
   0x2   :  { %10 = vsyncpa [#allocation5], 0  ;;  %s346_s18 = smov [#allocation2]   ;;  %s31_s22 = sshll.u32 %s493_s3, 4  ;;  %s32_s22 = int_to_ptr.hbm [resolvable:$true] %s31_s22 }
   0x3   :  { %s22_s19 = sshll.u32 %s346_s18, 4  ;;  %s347_s23 = smov [#allocation4]   ;;  %s23_s19 = int_to_ptr.vmem [resolvable:$true] %s22_s19 }
   0x4   :  { %25 = dma.hbm_to_vmem [thread:$0]  %s21_s17, 32, %s23_s19, [#allocation3]  }
   0x5   :  { %s33_s24 = sshll.u32 %s347_s23, 4  ;;  %s34_s24 = int_to_ptr.vmem [resolvable:$true] %s33_s24 }
   0x6   :  { %36 = dma.hbm_to_vmem [thread:$0]  %s32_s22, 32, %s34_s24, [#allocation5]  }
   0x7   :  { %342 = dma.done.wait [#allocation3], 32  }
   0x8   :  { %343 = vsyncadd [#allocation3], 4294967264 }
   0x9   :  { %344 = dma.done.wait [#allocation5], 32  }
   0xa   :  { %345 = vsyncadd [#allocation5], 4294967264  ;;  %v269_v0 = vld [vmem:[%s491_s1 + $0x70] sm:$0xf]  ;;  %v291_v1 = vld [vmem:[%s491_s1 + $0x74] sm:$0xf0] }
   0xb   :  { %v290_v2 = vld [vmem:[%s491_s1 + $0x74] sm:$0xf]  ;;  %v270_v3 = vor.u32 %v291_v1, %v269_v0  ;;  %v271_v4 = vld [vmem:[%s491_s1 + $0x78] sm:$0xf0]  ;;  %v261_v5 = vld [vmem:[%s491_s1 + $0x60] sm:$0xf] }
   0xc   :  { %v289_v6 = vld [vmem:[%s491_s1 + $0x64] sm:$0xf0]  ;;  %v274_v7 = vor.u32 %v290_v2, %v271_v4  ;;  %v288_v8 = vld [vmem:[%s491_s1 + $0x64] sm:$0xf]  ;;  %v263_v9 = vld [vmem:[%s491_s1 + $0x68] sm:$0xf0] }
   0xd   :  { %149 = vmatpush.bf16.msra.mxu0 %v270_v3  ;;  %v262_v10 = vor.u32 %v289_v6, %v261_v5  ;;  %v266_v11 = vor.u32 %v288_v8, %v263_v9  ;;  %v253_v12 = vld [vmem:[%s491_s1 + $0x50] sm:$0xf]  ;;  %v287_v13 = vld [vmem:[%s491_s1 + $0x54] sm:$0xf0]  ;;  %v286_v14 = vld [vmem:[%s491_s1 + $0x54] sm:$0xf] }
   0xe   :  { %163 = vmatpush.bf16.msra.mxu1 %v274_v7  ;;  %v255_v15 = vld [vmem:[%s491_s1 + $0x58] sm:$0xf0]  ;;  %v254_v16 = vor.u32 %v287_v13, %v253_v12  ;;  %v245_v18 = vld [vmem:[%s491_s1 + $0x40] sm:$0xf]  ;;  %v285_v19 = vld [vmem:[%s491_s1 + $0x44] sm:$0xf0] }
   0xf   :  { %v258_v17 = vor.u32 %v286_v14, %v255_v15  ;;  %v284_v20 = vld [vmem:[%s491_s1 + $0x44] sm:$0xf]  ;;  %v247_v21 = vld [vmem:[%s491_s1 + $0x48] sm:$0xf0]  ;;  %v246_v22 = vor.u32 %v285_v19, %v245_v18  ;;  %v237_v24 = vld [vmem:[%s491_s1 + $0x30] sm:$0xf] }
  0x10   :  { %v250_v23 = vor.u32 %v284_v20, %v247_v21  ;;  %v283_v25 = vld [vmem:[%s491_s1 + $0x34] sm:$0xf0]  ;;  %v282_v26 = vld [vmem:[%s491_s1 + $0x34] sm:$0xf]  ;;  %v239_v27 = vld [vmem:[%s491_s1 + $0x38] sm:$0xf0] }
  0x11   :  { %150 = vmatpush.bf16.msra.mxu0 %v262_v10  ;;  %v238_v28 = vor.u32 %v283_v25, %v237_v24  ;;  %v242_v29 = vor.u32 %v282_v26, %v239_v27  ;;  %v229_v30 = vld [vmem:[%s491_s1 + $0x20] sm:$0xf]  ;;  %v281_v31 = vld [vmem:[%s491_s1 + $0x24] sm:$0xf0]  ;;  %v280_v32 = vld [vmem:[%s491_s1 + $0x24] sm:$0xf] }
  0x12   :  { %164 = vmatpush.bf16.msra.mxu1 %v266_v11  ;;  %v231_v33 = vld [vmem:[%s491_s1 + $0x28] sm:$0xf0]  ;;  %v230_v34 = vor.u32 %v281_v31, %v229_v30  ;;  %v221_v36 = vld [vmem:[%s491_s1 + $0x10] sm:$0xf]  ;;  %v279_v37 = vld [vmem:[%s491_s1 + $0x14] sm:$0xf0] }
  0x13   :  { %v234_v35 = vor.u32 %v280_v32, %v231_v33  ;;  %v278_v38 = vld [vmem:[%s491_s1 + $0x14] sm:$0xf]  ;;  %v223_v39 = vld [vmem:[%s491_s1 + $0x18] sm:$0xf0]  ;;  %v222_v40 = vor.u32 %v279_v37, %v221_v36  ;;  %v213_v42 = vld [vmem:[%s491_s1] sm:$0xf] }
  0x14   :  { %v226_v41 = vor.u32 %v278_v38, %v223_v39  ;;  %v277_v43 = vld [vmem:[%s491_s1 + $0x4] sm:$0xf0]  ;;  %v276_v44 = vld [vmem:[%s491_s1 + $0x4] sm:$0xf]  ;;  %v215_v45 = vld [vmem:[%s491_s1 + $0x8] sm:$0xf0] }
  0x15   :  { %151 = vmatpush.bf16.msra.mxu0 %v254_v16  ;;  %v214_v46 = vor.u32 %v277_v43, %v213_v42  ;;  %v218_v47 = vor.u32 %v276_v44, %v215_v45  ;;  %v275_v48 = vld [vmem:[%s490_s0] sm:$0xff] }
  0x16   :  { %165 = vmatpush.bf16.msra.mxu1 %v258_v17  ;;  %v177_v49 = vld [vmem:[#allocation2] sm:$0x3]  ;;  %v187_v50 = vld [vmem:[#allocation4] sm:$0x3] }
  0x17   :  { %v179_v51 = vperm.slane %v177_v49, 0  ;;  %v180_v52 = vperm.slane %v177_v49, 1  ;;  %v189_v53 = vperm.slane %v187_v50, 0  ;;  %v190_v55 = vperm.slane %v187_v50, 1 }
  0x19   :  { %152 = vmatpush.bf16.msra.mxu0 %v246_v22 }
  0x1a   :  { %166 = vmatpush.bf16.msra.mxu1 %v250_v23 }
  0x1d   :  { %153 = vmatpush.bf16.msra.mxu0 %v238_v28 }
  0x1e   :  { %167 = vmatpush.bf16.msra.mxu1 %v242_v29 }
  0x21   :  { %154 = vmatpush.bf16.msra.mxu0 %v230_v34 }
  0x22   :  { %168 = vmatpush.bf16.msra.mxu1 %v234_v35 }
  0x25   :  { %155 = vmatpush.bf16.msra.mxu0 %v222_v40 }
  0x26   :  { %169 = vmatpush.bf16.msra.mxu1 %v226_v41 }
  0x29   :  { %156 = vmatpush.bf16.msra.mxu0 %v214_v46 }
  0x2a   :  { %170 = vmatpush.bf16.msra.mxu1 %v218_v47 }
  0x2c   :  { %157 = vmatmul.bf16.vlgmr.msra.gmra.mxu0 %v275_v48 }
  0x2d   :  { %171 = vmatmul.bf16.vlgmr.msra.gmra.mxu1 %v275_v48 }
  0xa9   :  { %v158_v54 = vpop.f32.mrf.mxu0 }
  0xaa   :  { %v183_v56 = vmul.f32 %v179_v51, %v158_v54  ;;  %v172_v57 = vpop.f32.mrf.mxu1 }
  0xab   :  { %v184_v58 = vmul.f32 %v180_v52, %v172_v57 }
  0xac   :  { %v193_v59 = vadd.f32 %v189_v53, %v183_v56 }
  0xad   :  { %v194_v60 = vadd.f32 %v190_v55, %v184_v58 }
  0xae   :  { %197 = vst [vmem:[%s494_s4] sm:$0xff] %v193_v59 }
  0xaf   :  { %198 = vst [vmem:[%s494_s4 + $0x8] sm:$0xff] %v194_v60 }
  0xb1   :  { %v160_v61 = vpop.f32.mrf.mxu0 }
  0xb2   :  { %v185_v62 = vmul.f32 %v179_v51, %v160_v61  ;;  %v174_v63 = vpop.f32.mrf.mxu1 }
  0xb3   :  { %v186_v0 = vmul.f32 %v180_v52, %v174_v63 }
  0xb4   :  { %v195_v1 = vadd.f32 %v189_v53, %v185_v62 }
  0xb5   :  { %v196_v2 = vadd.f32 %v190_v55, %v186_v0 }
  0xb6   :  { %199 = vst [vmem:[%s494_s4 + $0x10] sm:$0xff] %v195_v1 }
  0xb7   :  { %200 = vst [vmem:[%s494_s4 + $0x18] sm:$0xff] %v196_v2 }
  0xb8   :  { %205 = vsyncpa [#allocation3], 1 }
  0xb9   :  { %206 = vsyncpa [#allocation5], 1 }

// kernel: alzheimer_resnet_forward.32
= control target key start
LH: loop header
LB: loop body
LE: loop exit
PB: predicated region body
PF: predicated region fallthrough
CT: control target
= control target key end

     0   :  { %10 = vsyncpa [#allocation4], 0  ;;  %s1466_s0 = inlined_call_operand.vmem [shape: bf16[16,2304], index: 0, kind: input, shape index: {}]   ;;  %s1467_s1 = inlined_call_operand.vmem [shape: bf16[2304,256], index: 1, kind: input, shape index: {}]   ;;  %s1468_s2 = inlined_call_operand.hbm [shape: f32[1,256], index: 2, kind: input, shape index: {}]   ;;  %s1469_s3 = inlined_call_operand.hbm [shape: f32[1,256], index: 3, kind: input, shape index: {}]   ;;  %s1470_s4 = inlined_call_operand.vmem [shape: f32[16,256], index: 4, kind: input, shape index: {}]   ;;  %s1471_s5 = inlined_call_operand.vmem [shape: f32[16,256], index: 5, kind: output, shape index: {}]  }
   0x1   :  { %11 = vsyncpa [#allocation6], 0  ;;  %s1218_s18 = smov 0   ;;  %s1220_s19 = smov 0  }
   0x2   :  { %s1222_s20 = smov 0   ;;  %s1224_s21 = smov 0  }
   0x3   :  { %s1226_s22 = smov 0  }
   0x4 LB: > { %s823_s23 = sadd.s32 4294967295, %s1184_s22   ;;  %s26_s24 = sadd.s32 1, %s1180_s21  ;;  %s1184_s22 = sphi %s1226_s22, %s17_s22   ;;  %s1180_s21 = sphi %s1224_s21, %s1478_s21   ;;  %s1176_s20 = sphi %s1222_s20, %s1477_s20   ;;  %s1172_s19 = sphi %s1220_s19, %s1476_s19   ;;  %s1168_s18 = sphi %s1218_s18, %s1475_s18  }
   0x5   : > { %p27_p0 = scmp.ge.s32.totalorder %s26_s24, 9  ;;  %s38_s25 = sadd.s32 1, %s1172_s19 }
   0x6   : > { %p45_p1 = scmp.ne.s32.totalorder %s1172_s19, %s1168_s18  ;;  %p46_p2 = scmp.eq.s32.totalorder %s1184_s22, 0 }
   0x7   : > { %s1480_s24 = smov (%p27_p0, %s26_s24), 0  ;;  %p824_p4 = scmp.ge.s32.totalorder %s1184_s22, 1 }
   0x8   : > { %p1251_p3 = por %p46_p2, %p45_p1  ;;  %s34_s27 = ssub.s32 %s1180_s21, %s1480_s24 }
   0x9   : > { %p182_p5 = scmp.lt.s32.totalorder %s1184_s22, 10  ;;  %p36_p6 = scmp.eq.s32.totalorder %s34_s27, 0 }
   0xa   : > { %p1263_p8 = scmp.eq.s32.totalorder %s823_s23, 0  ;;  %s194_s8 = sshll.u32 %s1468_s2, 4  ;;  %s195_s8 = int_to_ptr.hbm [resolvable:$true] %s194_s8 }
   0xb   : > { %p1259_p7 = pnand %p824_p4, %p182_p5  ;;  %s1186_s9 = smov [#allocation3]  }
   0xc   : > { %s1268_s30 = scalar_select %p36_p6, %s1172_s19, %s38_s25  }
   0xd   : > { %p1025_p9 = pneg %p1259_p7  ;;  %s196_s10 = sshll.u32 %s1186_s9, 4  ;;  %s197_s10 = int_to_ptr.vmem [resolvable:$true] %s196_s10 }
   0xe   : > { %s206_s13 = sshll.u32 %s1469_s3, 4  ;;  %s1187_s14 = smov [#allocation5]   ;;  %s207_s13 = int_to_ptr.hbm [resolvable:$true] %s206_s13 }
   0xf   : > { %p1026_p10 = pnand %p1263_p8, %p1025_p9  ;;  %s208_s15 = sshll.u32 %s1187_s14, 4  ;;  %s209_s15 = int_to_ptr.vmem [resolvable:$true] %s208_s15 }
  0x10   : > { %p828_p11 = scmp.ge.s32.totalorder %s1184_s22, 9 }
  0x11   : > { %1028 = dma.hbm_to_vmem [thread:$0]  (!%p1026_p10), %s195_s8, 32, %s197_s10, [#allocation4]  }
  0x12   : > { %1031 = dma.hbm_to_vmem [thread:$0]  (!%p1026_p10), %s207_s13, 32, %s209_s15, [#allocation6]  }
  0x13   : > { %225 = sbr.rel (%p828_p11) target bundleno = 30 (0x1e), region = 28 }
  0x18   : > { %228 = sbr.rel (!%p1251_p3) target bundleno = 30 (0x1e), region = 32  ;;  %s230_s16 = sand.u32 (%p1251_p3), 1, %s1172_s19  }
  0x19   : > { %s981_s17 = sshll.u32 (%p1251_p3), %s1180_s21, 3  ;;  %s829_s23 = sshll.u32 (%p1251_p3), %s230_s16, 4 }
  0x1a   : > { %s238_s6 = scalar_lea.vmem (%p1251_p3), %s1466_s0, %s981_s17  ;;  %s232_s7 = scalar_lea.vmem (%p1251_p3), [#allocation2], %s829_s23 }
  0x1b   : > { %v269_v0 = vld [vmem:[%s238_s6] sm:$0xff] (%p1251_p3)  ;;  %v271_v1 = vld [vmem:[%s238_s6 + $0x48] sm:$0xff] (%p1251_p3) }
  0x1c   : > { %270 = vst [vmem:[%s232_s7] sm:$0xff] (%p1251_p3), %v269_v0 }
  0x1d   : > { %272 = vst [vmem:[%s232_s7 + $0x8] sm:$0xff] %v271_v1 }
  0x1e PF: > { %291 = sbr.rel (%p1259_p7) target bundleno = 264 (0x108), region = 74  ;;  %s294_s26 = sand.u32 (!%p1259_p7), 1, %s1168_s18  }
  0x1f   : > { %s833_s8 = sshll.u32 (!%p1259_p7), %s294_s26, 4 }
  0x20   : > { %s1291_s9 = scalar_lea.vmem (!%p1259_p7), [#allocation2], %s833_s8 }
  0x23   : > { %1159 = dma.done.wait (%p1263_p8), [#allocation4], 32  }
  0x24   : > { %1161 = vsyncadd (%p1263_p8), [#allocation4], 4294967264 }
  0x25   : > { %1163 = dma.done.wait (%p1263_p8), [#allocation6], 32  }
  0x26   : > { %1165 = vsyncadd (%p1263_p8), [#allocation6], 4294967264  ;;  %s836_s28 = sshll.u32 %s1176_s20, 5  ;;  %p975_p13 = scmp.ne.s32.totalorder %s1176_s20, 0 }
  0x27   : > { %p347_p12 = scmp.lt.s32.totalorder %s836_s28, 287 }
  0x29   : > { %s1482_s28 = smov (!%p347_p12, %s836_s28), 287 }
  0x2a   : > { %s982_s10 = sshll.u32 %s1482_s28, 3 }
  0x2b   : > { %s1305_s12 = scalar_lea.vmem %s1467_s1, %s982_s10 }
  0x2c   : > { %v905_v2 = vld [vmem:[%s1305_s12 + $0x70] sm:$0xf]  ;;  %v1000_v3 = vld [vmem:[%s1305_s12 + $0x74] sm:$0xf0]  ;;  %v999_v7 = vld [vmem:[%s1305_s12 + $0x74] sm:$0xf] }
  0x2d   : > { %v969_v4 = vld [vmem:[%s1305_s12 + $0xf0] sm:$0xf]  ;;  %v906_v5 = vor.u32 %v1000_v3, %v905_v2  ;;  %v1016_v6 = vld [vmem:[%s1305_s12 + $0xf4] sm:$0xf0]  ;;  %v907_v8 = vld [vmem:[%s1305_s12 + $0x78] sm:$0xf0] }
  0x2e   : > { %v970_v9 = vor.u32 %v1016_v6, %v969_v4  ;;  %v910_v10 = vor.u32 %v999_v7, %v907_v8  ;;  %v1015_v11 = vld [vmem:[%s1305_s12 + $0xf4] sm:$0xf]  ;;  %v971_v12 = vld [vmem:[%s1305_s12 + $0xf8] sm:$0xf0]  ;;  %v897_v13 = vld [vmem:[%s1305_s12 + $0x60] sm:$0xf] }
  0x2f   : > { %571 = vmatpush.bf16.msra.mxu0 %v906_v5  ;;  %v974_v14 = vor.u32 %v1015_v11, %v971_v12  ;;  %v998_v15 = vld [vmem:[%s1305_s12 + $0x64] sm:$0xf0]  ;;  %v961_v16 = vld [vmem:[%s1305_s12 + $0xe0] sm:$0xf]  ;;  %v997_v20 = vld [vmem:[%s1305_s12 + $0x64] sm:$0xf] }
  0x30   : > { %v1014_v17 = vld [vmem:[%s1305_s12 + $0xe4] sm:$0xf0]  ;;  %585 = vmatpush.bf16.msra.mxu1 %v970_v9  ;;  %599 = vmatpush.bf16.msra.mxu2 %v910_v10  ;;  %v898_v18 = vor.u32 %v998_v15, %v897_v13  ;;  %v899_v21 = vld [vmem:[%s1305_s12 + $0x68] sm:$0xf0]  ;;  %v1013_v22 = vld [vmem:[%s1305_s12 + $0xe4] sm:$0xf] }
  0x31   : > { %v962_v19 = vor.u32 %v1014_v17, %v961_v16  ;;  %613 = vmatpush.bf16.msra.mxu3 %v974_v14  ;;  %v902_v23 = vor.u32 %v997_v20, %v899_v21  ;;  %v963_v24 = vld [vmem:[%s1305_s12 + $0xe8] sm:$0xf0]  ;;  %v889_v25 = vld [vmem:[%s1305_s12 + $0x50] sm:$0xf]  ;;  %v996_v26 = vld [vmem:[%s1305_s12 + $0x54] sm:$0xf0] }
  0x32   : > { %v966_v27 = vor.u32 %v1013_v22, %v963_v24  ;;  %v953_v28 = vld [vmem:[%s1305_s12 + $0xd0] sm:$0xf]  ;;  %v1012_v29 = vld [vmem:[%s1305_s12 + $0xd4] sm:$0xf0]  ;;  %v995_v30 = vld [vmem:[%s1305_s12 + $0x54] sm:$0xf]  ;;  %v890_v31 = vor.u32 %v996_v26, %v889_v25 }
  0x33   : > { %572 = vmatpush.bf16.msra.mxu0 %v898_v18  ;;  %v891_v32 = vld [vmem:[%s1305_s12 + $0x58] sm:$0xf0]  ;;  %v1011_v33 = vld [vmem:[%s1305_s12 + $0xd4] sm:$0xf]  ;;  %v954_v35 = vor.u32 %v1012_v29, %v953_v28  ;;  %v881_v37 = vld [vmem:[%s1305_s12 + $0x40] sm:$0xf] }
  0x34   : > { %v955_v34 = vld [vmem:[%s1305_s12 + $0xd8] sm:$0xf0]  ;;  %586 = vmatpush.bf16.msra.mxu1 %v962_v19  ;;  %600 = vmatpush.bf16.msra.mxu2 %v902_v23  ;;  %v894_v36 = vor.u32 %v995_v30, %v891_v32  ;;  %v994_v38 = vld [vmem:[%s1305_s12 + $0x44] sm:$0xf0]  ;;  %v945_v39 = vld [vmem:[%s1305_s12 + $0xc0] sm:$0xf] }
  0x35   : > { %614 = vmatpush.bf16.msra.mxu3 %v966_v27  ;;  %v958_v40 = vor.u32 %v1011_v33, %v955_v34  ;;  %v1010_v41 = vld [vmem:[%s1305_s12 + $0xc4] sm:$0xf0]  ;;  %v993_v42 = vld [vmem:[%s1305_s12 + $0x44] sm:$0xf]  ;;  %v883_v43 = vld [vmem:[%s1305_s12 + $0x48] sm:$0xf0]  ;;  %v882_v46 = vor.u32 %v994_v38, %v881_v37 }
  0x36   : > { %v1009_v44 = vld [vmem:[%s1305_s12 + $0xc4] sm:$0xf]  ;;  %v947_v45 = vld [vmem:[%s1305_s12 + $0xc8] sm:$0xf0]  ;;  %v946_v47 = vor.u32 %v1010_v41, %v945_v39  ;;  %v886_v48 = vor.u32 %v993_v42, %v883_v43  ;;  %v873_v49 = vld [vmem:[%s1305_s12 + $0x30] sm:$0xf] }
  0x37   : > { %573 = vmatpush.bf16.msra.mxu0 %v890_v31  ;;  %v992_v50 = vld [vmem:[%s1305_s12 + $0x34] sm:$0xf0]  ;;  %v937_v51 = vld [vmem:[%s1305_s12 + $0xb0] sm:$0xf]  ;;  %v950_v52 = vor.u32 %v1009_v44, %v947_v45  ;;  %v991_v54 = vld [vmem:[%s1305_s12 + $0x34] sm:$0xf] }
  0x38   : > { %587 = vmatpush.bf16.msra.mxu1 %v954_v35  ;;  %601 = vmatpush.bf16.msra.mxu2 %v894_v36  ;;  %v1008_v53 = vld [vmem:[%s1305_s12 + $0xb4] sm:$0xf0]  ;;  %v875_v55 = vld [vmem:[%s1305_s12 + $0x38] sm:$0xf0]  ;;  %v1007_v56 = vld [vmem:[%s1305_s12 + $0xb4] sm:$0xf]  ;;  %v874_v58 = vor.u32 %v992_v50, %v873_v49 }
  0x39   : > { %615 = vmatpush.bf16.msra.mxu3 %v958_v40  ;;  %v939_v57 = vld [vmem:[%s1305_s12 + $0xb8] sm:$0xf0]  ;;  %v938_v59 = vor.u32 %v1008_v53, %v937_v51  ;;  %v878_v60 = vor.u32 %v991_v54, %v875_v55  ;;  %v865_v61 = vld [vmem:[%s1305_s12 + $0x20] sm:$0xf]  ;;  %v990_v62 = vld [vmem:[%s1305_s12 + $0x24] sm:$0xf0] }
  0x3a   : > { %v929_v63 = vld [vmem:[%s1305_s12 + $0xa0] sm:$0xf]  ;;  %v942_v0 = vor.u32 %v1007_v56, %v939_v57  ;;  %v1006_v1 = vld [vmem:[%s1305_s12 + $0xa4] sm:$0xf0]  ;;  %v989_v2 = vld [vmem:[%s1305_s12 + $0x24] sm:$0xf]  ;;  %v866_v6 = vor.u32 %v990_v62, %v865_v61 }
  0x3b   : > { %574 = vmatpush.bf16.msra.mxu0 %v882_v46  ;;  %v867_v3 = vld [vmem:[%s1305_s12 + $0x28] sm:$0xf0]  ;;  %v1005_v4 = vld [vmem:[%s1305_s12 + $0xa4] sm:$0xf]  ;;  %v930_v7 = vor.u32 %v1006_v1, %v929_v63  ;;  %v857_v9 = vld [vmem:[%s1305_s12 + $0x10] sm:$0xf] }
  0x3c   : > { %588 = vmatpush.bf16.msra.mxu1 %v946_v47  ;;  %602 = vmatpush.bf16.msra.mxu2 %v886_v48  ;;  %v931_v5 = vld [vmem:[%s1305_s12 + $0xa8] sm:$0xf0]  ;;  %v870_v8 = vor.u32 %v989_v2, %v867_v3  ;;  %v988_v10 = vld [vmem:[%s1305_s12 + $0x14] sm:$0xf0]  ;;  %v921_v11 = vld [vmem:[%s1305_s12 + $0x90] sm:$0xf] }
  0x3d   : > { %616 = vmatpush.bf16.msra.mxu3 %v950_v52  ;;  %v934_v12 = vor.u32 %v1005_v4, %v931_v5  ;;  %v1004_v13 = vld [vmem:[%s1305_s12 + $0x94] sm:$0xf0]  ;;  %v987_v14 = vld [vmem:[%s1305_s12 + $0x14] sm:$0xf]  ;;  %v859_v15 = vld [vmem:[%s1305_s12 + $0x18] sm:$0xf0]  ;;  %v858_v18 = vor.u32 %v988_v10, %v857_v9 }
  0x3e   : > { %v1003_v16 = vld [vmem:[%s1305_s12 + $0x94] sm:$0xf]  ;;  %v923_v17 = vld [vmem:[%s1305_s12 + $0x98] sm:$0xf0]  ;;  %v922_v19 = vor.u32 %v1004_v13, %v921_v11  ;;  %v862_v20 = vor.u32 %v987_v14, %v859_v15  ;;  %v849_v21 = vld [vmem:[%s1305_s12] sm:$0xf] }
  0x3f   : > { %575 = vmatpush.bf16.msra.mxu0 %v874_v58  ;;  %v986_v22 = vld [vmem:[%s1305_s12 + $0x4] sm:$0xf0]  ;;  %v913_v23 = vld [vmem:[%s1305_s12 + $0x80] sm:$0xf]  ;;  %v926_v24 = vor.u32 %v1003_v16, %v923_v17  ;;  %v985_v26 = vld [vmem:[%s1305_s12 + $0x4] sm:$0xf] }
  0x40   : > { %589 = vmatpush.bf16.msra.mxu1 %v938_v59  ;;  %603 = vmatpush.bf16.msra.mxu2 %v878_v60  ;;  %v1002_v25 = vld [vmem:[%s1305_s12 + $0x84] sm:$0xf0]  ;;  %v851_v27 = vld [vmem:[%s1305_s12 + $0x8] sm:$0xf0]  ;;  %v1001_v28 = vld [vmem:[%s1305_s12 + $0x84] sm:$0xf]  ;;  %v850_v30 = vor.u32 %v986_v22, %v849_v21 }
  0x41   : > { %617 = vmatpush.bf16.msra.mxu3 %v942_v0  ;;  %v915_v29 = vld [vmem:[%s1305_s12 + $0x88] sm:$0xf0]  ;;  %v841_v31 = vld [vmem:[%s1291_s9] sm:$0xf]  ;;  %v984_v32 = vld [vmem:[%s1291_s9 + $0x4] sm:$0xf0]  ;;  %v914_v33 = vor.u32 %v1002_v25, %v913_v23  ;;  %v854_v34 = vor.u32 %v985_v26, %v851_v27 }
  0x42   : > { %v983_v35 = vld [vmem:[%s1291_s9 + $0x4] sm:$0xf]  ;;  %v843_v36 = vld [vmem:[%s1291_s9 + $0x8] sm:$0xf0]  ;;  %v918_v37 = vor.u32 %v1001_v28, %v915_v29  ;;  %v842_v38 = vor.u32 %v984_v32, %v841_v31 }
  0x43   : > { %576 = vmatpush.bf16.msra.mxu0 %v866_v6  ;;  %v846_v39 = vor.u32 %v983_v35, %v843_v36 }
  0x44   : > { %590 = vmatpush.bf16.msra.mxu1 %v930_v7  ;;  %604 = vmatpush.bf16.msra.mxu2 %v870_v8 }
  0x45   : > { %618 = vmatpush.bf16.msra.mxu3 %v934_v12 }
  0x47   : > { %577 = vmatpush.bf16.msra.mxu0 %v858_v18 }
  0x48   : > { %591 = vmatpush.bf16.msra.mxu1 %v922_v19  ;;  %605 = vmatpush.bf16.msra.mxu2 %v862_v20 }
  0x49   : > { %619 = vmatpush.bf16.msra.mxu3 %v926_v24 }
  0x4b   : > { %578 = vmatpush.bf16.msra.mxu0 %v850_v30 }
  0x4c   : > { %592 = vmatpush.bf16.msra.mxu1 %v914_v33  ;;  %606 = vmatpush.bf16.msra.mxu2 %v854_v34 }
  0x4d   : > { %620 = vmatpush.bf16.msra.mxu3 %v918_v37 }
  0x4e   : > { %579 = vmatmul.bf16.vlgmr.msra.gmra.mxu0 %v842_v38 }
  0x4f   : > { %593 = vmatmul.bf16.vlgmr.msra.gmra.mxu1 %v846_v39  ;;  %607 = vmatmul.bf16.vlgmr.msra.gmra.mxu2 %v842_v38 }
  0x50   : > { %621 = vmatmul.bf16.vlgmr.msra.gmra.mxu3 %v846_v39 }
  0xcb   : > { %v580_v40 = vpop.f32.mrf.mxu0 }
  0xcc   : > { %v594_v41 = vpop.f32.mrf.mxu1 }
  0xcd   : > { %v595_v42 = vadd.f32 %v594_v41, %v580_v40 }
  0xd2   : > { %v608_v43 = vpop.f32.mrf.mxu2 }
  0xd3   : > { %v622_v44 = vpop.f32.mrf.mxu3  ;;  %v582_v45 = vpop.f32.mrf.mxu0 }
  0xd4   : > { %v623_v46 = vadd.f32 %v622_v44, %v608_v43  ;;  %v596_v47 = vpop.f32.mrf.mxu1 }
  0xd5   : > { %v597_v48 = vadd.f32 %v596_v47, %v582_v45 }
  0xd8   : > { %630 = sbr.rel (%p975_p13) target bundleno = 225 (0xe1), region = 90 }
  0xda   : > { %v610_v49 = vpop.f32.mrf.mxu2 }
  0xdb   : > { %v624_v50 = vpop.f32.mrf.mxu3 }
  0xdc   : > { %v625_v51 = vadd.f32 %v624_v50, %v610_v49 }
  0xdd   : > { %631 = vst [vmem:[%s1471_s5] sm:$0xff] %v595_v42 }
  0xde   : > { %632 = vst [vmem:[%s1471_s5 + $0x8] sm:$0xff] %v623_v46 }
  0xdf   : > { %633 = vst [vmem:[%s1471_s5 + $0x10] sm:$0xff] %v597_v48 }
  0xe0   : > { %634 = vst [vmem:[%s1471_s5 + $0x18] sm:$0xff] %v625_v51 }
  0xe1 PF: > { %p635_p0 = scmp.gt.s32.totalorder %s1176_s20, 0  ;;  %p636_p1 = scmp.lt.s32.totalorder %s1176_s20, 8 }
  0xe3   : > { %p637_p2 = pnand %p636_p1, %p635_p0 }
  0xe5   : > { %640 = sbr.rel (%p637_p2) target bundleno = 241 (0xf1), region = 94 }
  0xea   : > { %v641_v52 = vld [vmem:[%s1471_s5] sm:$0xff]  ;;  %v642_v53 = vld [vmem:[%s1471_s5 + $0x8] sm:$0xff]  ;;  %v643_v54 = vld [vmem:[%s1471_s5 + $0x10] sm:$0xff] }
  0xeb   : > { %v645_v55 = vadd.f32 %v641_v52, %v595_v42  ;;  %v646_v56 = vadd.f32 %v642_v53, %v623_v46  ;;  %v647_v57 = vadd.f32 %v643_v54, %v597_v48  ;;  %v644_v58 = vld [vmem:[%s1471_s5 + $0x18] sm:$0xff] }
  0xec   : > { %v648_v59 = vadd.f32 %v644_v58, %v625_v51 }
  0xed   : > { %649 = vst [vmem:[%s1471_s5] sm:$0xff] %v645_v55 }
  0xee   : > { %650 = vst [vmem:[%s1471_s5 + $0x8] sm:$0xff] %v646_v56 }
  0xef   : > { %651 = vst [vmem:[%s1471_s5 + $0x10] sm:$0xff] %v647_v57 }
  0xf0   : > { %652 = vst [vmem:[%s1471_s5 + $0x18] sm:$0xff] %v648_v59 }
  0xf1 PF: > { %p976_p3 = scmp.ne.s32.totalorder %s1176_s20, 8 }
  0xf3   : > { %656 = sbr.rel (%p976_p3) target bundleno = 264 (0x108), region = 98 }
  0xf8   : > { %v657_v60 = vld [vmem:[%s1471_s5] sm:$0xff]  ;;  %v658_v2 = vld [vmem:[%s1471_s5 + $0x8] sm:$0xff]  ;;  %v659_v6 = vld [vmem:[%s1471_s5 + $0x10] sm:$0xff] }
  0xf9   : > { %v665_v61 = vld [vmem:[#allocation3] sm:$0x3]  ;;  %v675_v62 = vld [vmem:[#allocation5] sm:$0x3]  ;;  %v661_v63 = vadd.f32 %v657_v60, %v595_v42  ;;  %v662_v4 = vadd.f32 %v658_v2, %v623_v46  ;;  %v660_v7 = vld [vmem:[%s1471_s5 + $0x18] sm:$0xff]  ;;  %v663_v9 = vadd.f32 %v659_v6, %v597_v48 }
  0xfa   : > { %v667_v0 = vperm.slane %v665_v61, 0  ;;  %v677_v1 = vperm.slane %v675_v62, 0  ;;  %v668_v3 = vperm.slane %v665_v61, 1  ;;  %v678_v5 = vperm.slane %v675_v62, 1  ;;  %v685_v11 = vld [vmem:[%s1470_s4] sm:$0xff]  ;;  %v686_v14 = vld [vmem:[%s1470_s4 + $0x8] sm:$0xff] }
  0xfb   : > { %v664_v10 = vadd.f32 %v660_v7, %v625_v51  ;;  %v687_v18 = vld [vmem:[%s1470_s4 + $0x10] sm:$0xff]  ;;  %v688_v19 = vld [vmem:[%s1470_s4 + $0x18] sm:$0xff] }
  0xfc   : > { %v671_v8 = vmul.f32 %v667_v0, %v661_v63  ;;  %v672_v12 = vmul.f32 %v668_v3, %v662_v4  ;;  %v673_v15 = vmul.f32 %v667_v0, %v663_v9 }
  0xfd   : > { %v674_v16 = vmul.f32 %v668_v3, %v664_v10 }
  0xfe   : > { %v681_v13 = vadd.f32 %v677_v1, %v671_v8  ;;  %v682_v17 = vadd.f32 %v678_v5, %v672_v12  ;;  %v683_v21 = vadd.f32 %v677_v1, %v673_v15 }
  0xff   : > { %v684_v22 = vadd.f32 %v678_v5, %v674_v16 }
 0x100   : > { %v689_v20 = vadd.f32 %v685_v11, %v681_v13  ;;  %v690_v23 = vadd.f32 %v686_v14, %v682_v17  ;;  %v691_v25 = vadd.f32 %v687_v18, %v683_v21 }
 0x101   : > { %v692_v26 = vadd.f32 %v688_v19, %v684_v22 }
 0x102   : > { %v693_v24 = vmax.f32 %v689_v20, 0.0  ;;  %v694_v27 = vmax.f32 %v690_v23, 0.0  ;;  %v695_v28 = vmax.f32 %v691_v25, 0.0 }
 0x103   : > { %v696_v29 = vmax.f32 %v692_v26, 0.0 }
 0x104   : > { %697 = vst [vmem:[%s1471_s5] sm:$0xff] %v693_v24 }
 0x105   : > { %698 = vst [vmem:[%s1471_s5 + $0x8] sm:$0xff] %v694_v27 }
 0x106   : > { %699 = vst [vmem:[%s1471_s5 + $0x10] sm:$0xff] %v695_v28 }
 0x107   : > { %700 = vst [vmem:[%s1471_s5 + $0x18] sm:$0xff] %v696_v29 }
 0x108 PF: > { %s17_s22 = sadd.s32 1, %s1184_s22   ;;  %s1475_s18 = smov %s1172_s19 }
 0x109   : > { %p14_p4 = scmp.ge.s32.totalorder %s17_s22, 11   ;;  %s1476_s19 = smov %s1268_s30 }
 0x10a   : > { %s1477_s20 = smov %s1180_s21  ;;  %s1478_s21 = smov %s1480_s24 }
 0x10b   :  { %16 = sbr.rel (!%p14_p4) target bundleno = 4 (0x4), region = 140 }
 0x110   :  { %725 = vsyncpa [#allocation4], 1 }
 0x111   :  { %727 = vsyncpa [#allocation4 + $0x1], 1 }
 0x112   :  { %728 = vsyncpa [#allocation6], 1 }

// kernel: alzheimer_resnet_forward.33
= control target key start
LH: loop header
LB: loop body
LE: loop exit
PB: predicated region body
PF: predicated region fallthrough
CT: control target
= control target key end

     0   :  { %9 = vsyncpa [#allocation4], 0  ;;  %s1373_s0 = inlined_call_operand.vmem [shape: bf16[16,2304], index: 0, kind: input, shape index: {}]   ;;  %s1374_s1 = inlined_call_operand.vmem [shape: bf16[2304,256], index: 1, kind: input, shape index: {}]   ;;  %s1375_s2 = inlined_call_operand.hbm [shape: f32[1,256], index: 2, kind: input, shape index: {}]   ;;  %s1376_s3 = inlined_call_operand.hbm [shape: f32[1,256], index: 3, kind: input, shape index: {}]   ;;  %s1377_s4 = inlined_call_operand.vmem [shape: f32[16,256], index: 4, kind: output, shape index: {}]  }
   0x1   :  { %10 = vsyncpa [#allocation6], 0  ;;  %s1137_s15 = smov 0   ;;  %s1139_s16 = smov 0  }
   0x2   :  { %s1141_s17 = smov 0   ;;  %s1143_s18 = smov 0  }
   0x3   :  { %s1145_s19 = smov 0  }
   0x4 LB: > { %s748_s20 = sadd.s32 4294967295, %s1108_s19   ;;  %s25_s21 = sadd.s32 1, %s1104_s18  ;;  %s1108_s19 = sphi %s1145_s19, %s16_s19   ;;  %s1104_s18 = sphi %s1143_s18, %s1384_s18   ;;  %s1100_s17 = sphi %s1141_s17, %s1383_s17   ;;  %s1096_s16 = sphi %s1139_s16, %s1382_s16   ;;  %s1092_s15 = sphi %s1137_s15, %s1381_s15  }
   0x5   : > { %p26_p0 = scmp.ge.s32.totalorder %s25_s21, 9  ;;  %s37_s22 = sadd.s32 1, %s1096_s16 }
   0x6   : > { %p44_p1 = scmp.ne.s32.totalorder %s1096_s16, %s1092_s15  ;;  %p45_p2 = scmp.eq.s32.totalorder %s1108_s19, 0 }
   0x7   : > { %s1386_s21 = smov (%p26_p0, %s25_s21), 0  ;;  %p749_p4 = scmp.ge.s32.totalorder %s1108_s19, 1 }
   0x8   : > { %p1170_p3 = por %p45_p2, %p44_p1  ;;  %s33_s24 = ssub.s32 %s1104_s18, %s1386_s21 }
   0x9   : > { %p155_p5 = scmp.lt.s32.totalorder %s1108_s19, 10  ;;  %p35_p6 = scmp.eq.s32.totalorder %s33_s24, 0 }
   0xa   : > { %p1182_p8 = scmp.eq.s32.totalorder %s748_s20, 0  ;;  %s167_s30 = sshll.u32 %s1375_s2, 4  ;;  %s168_s30 = int_to_ptr.hbm [resolvable:$true] %s167_s30 }
   0xb   : > { %p1178_p7 = pnand %p749_p4, %p155_p5  ;;  %s1110_s5 = smov [#allocation3]  }
   0xc   : > { %s1187_s27 = scalar_select %p35_p6, %s1096_s16, %s37_s22  }
   0xd   : > { %p949_p9 = pneg %p1178_p7  ;;  %s169_s6 = sshll.u32 %s1110_s5, 4  ;;  %s170_s6 = int_to_ptr.vmem [resolvable:$true] %s169_s6 }
   0xe   : > { %s179_s9 = sshll.u32 %s1376_s3, 4  ;;  %s1111_s10 = smov [#allocation5]   ;;  %s180_s9 = int_to_ptr.hbm [resolvable:$true] %s179_s9 }
   0xf   : > { %p950_p10 = pnand %p1182_p8, %p949_p9  ;;  %s181_s11 = sshll.u32 %s1111_s10, 4  ;;  %s182_s11 = int_to_ptr.vmem [resolvable:$true] %s181_s11 }
  0x10   : > { %p752_p11 = scmp.ge.s32.totalorder %s1108_s19, 9 }
  0x11   : > { %952 = dma.hbm_to_vmem [thread:$0]  (!%p950_p10), %s168_s30, 32, %s170_s6, [#allocation4]  }
  0x12   : > { %955 = dma.hbm_to_vmem [thread:$0]  (!%p950_p10), %s180_s9, 32, %s182_s11, [#allocation6]  }
  0x13   : > { %188 = sbr.rel (%p752_p11) target bundleno = 30 (0x1e), region = 24 }
  0x18   : > { %191 = sbr.rel (!%p1170_p3) target bundleno = 30 (0x1e), region = 28  ;;  %s193_s12 = sand.u32 (%p1170_p3), 1, %s1096_s16  }
  0x19   : > { %s905_s13 = sshll.u32 (%p1170_p3), %s1104_s18, 3  ;;  %s753_s14 = sshll.u32 (%p1170_p3), %s193_s12, 4 }
  0x1a   : > { %s201_s24 = scalar_lea.vmem (%p1170_p3), %s1373_s0, %s905_s13  ;;  %s195_s28 = scalar_lea.vmem (%p1170_p3), [#allocation2], %s753_s14 }
  0x1b   : > { %v232_v0 = vld [vmem:[%s201_s24] sm:$0xff] (%p1170_p3)  ;;  %v234_v1 = vld [vmem:[%s201_s24 + $0x48] sm:$0xff] (%p1170_p3) }
  0x1c   : > { %233 = vst [vmem:[%s195_s28] sm:$0xff] (%p1170_p3), %v232_v0 }
  0x1d   : > { %235 = vst [vmem:[%s195_s28 + $0x8] sm:$0xff] %v234_v1 }
  0x1e PF: > { %254 = sbr.rel (%p1178_p7) target bundleno = 262 (0x106), region = 70  ;;  %s257_s23 = sand.u32 (!%p1178_p7), 1, %s1092_s15  }
  0x1f   : > { %s757_s29 = sshll.u32 (!%p1178_p7), %s257_s23, 4 }
  0x20   : > { %s1210_s30 = scalar_lea.vmem (!%p1178_p7), [#allocation2], %s757_s29 }
  0x23   : > { %1083 = dma.done.wait (%p1182_p8), [#allocation4], 32  }
  0x24   : > { %1085 = vsyncadd (%p1182_p8), [#allocation4], 4294967264 }
  0x25   : > { %1087 = dma.done.wait (%p1182_p8), [#allocation6], 32  }
  0x26   : > { %1089 = vsyncadd (%p1182_p8), [#allocation6], 4294967264  ;;  %s760_s25 = sshll.u32 %s1100_s17, 5  ;;  %p899_p13 = scmp.ne.s32.totalorder %s1100_s17, 0 }
  0x27   : > { %p302_p12 = scmp.lt.s32.totalorder %s760_s25, 287 }
  0x29   : > { %s1388_s25 = smov (!%p302_p12, %s760_s25), 287 }
  0x2a   : > { %s906_s5 = sshll.u32 %s1388_s25, 3 }
  0x2b   : > { %s1224_s7 = scalar_lea.vmem %s1374_s1, %s906_s5 }
  0x2c   : > { %v829_v2 = vld [vmem:[%s1224_s7 + $0x70] sm:$0xf]  ;;  %v924_v3 = vld [vmem:[%s1224_s7 + $0x74] sm:$0xf0]  ;;  %v923_v7 = vld [vmem:[%s1224_s7 + $0x74] sm:$0xf] }
  0x2d   : > { %v893_v4 = vld [vmem:[%s1224_s7 + $0xf0] sm:$0xf]  ;;  %v830_v5 = vor.u32 %v924_v3, %v829_v2  ;;  %v940_v6 = vld [vmem:[%s1224_s7 + $0xf4] sm:$0xf0]  ;;  %v831_v8 = vld [vmem:[%s1224_s7 + $0x78] sm:$0xf0] }
  0x2e   : > { %v894_v9 = vor.u32 %v940_v6, %v893_v4  ;;  %v834_v10 = vor.u32 %v923_v7, %v831_v8  ;;  %v939_v11 = vld [vmem:[%s1224_s7 + $0xf4] sm:$0xf]  ;;  %v895_v12 = vld [vmem:[%s1224_s7 + $0xf8] sm:$0xf0]  ;;  %v821_v13 = vld [vmem:[%s1224_s7 + $0x60] sm:$0xf] }
  0x2f   : > { %519 = vmatpush.bf16.msra.mxu0 %v830_v5  ;;  %v898_v14 = vor.u32 %v939_v11, %v895_v12  ;;  %v922_v15 = vld [vmem:[%s1224_s7 + $0x64] sm:$0xf0]  ;;  %v885_v16 = vld [vmem:[%s1224_s7 + $0xe0] sm:$0xf]  ;;  %v921_v20 = vld [vmem:[%s1224_s7 + $0x64] sm:$0xf] }
  0x30   : > { %v938_v17 = vld [vmem:[%s1224_s7 + $0xe4] sm:$0xf0]  ;;  %533 = vmatpush.bf16.msra.mxu1 %v894_v9  ;;  %547 = vmatpush.bf16.msra.mxu2 %v834_v10  ;;  %v822_v18 = vor.u32 %v922_v15, %v821_v13  ;;  %v823_v21 = vld [vmem:[%s1224_s7 + $0x68] sm:$0xf0]  ;;  %v937_v22 = vld [vmem:[%s1224_s7 + $0xe4] sm:$0xf] }
  0x31   : > { %v886_v19 = vor.u32 %v938_v17, %v885_v16  ;;  %561 = vmatpush.bf16.msra.mxu3 %v898_v14  ;;  %v826_v23 = vor.u32 %v921_v20, %v823_v21  ;;  %v887_v24 = vld [vmem:[%s1224_s7 + $0xe8] sm:$0xf0]  ;;  %v813_v25 = vld [vmem:[%s1224_s7 + $0x50] sm:$0xf]  ;;  %v920_v26 = vld [vmem:[%s1224_s7 + $0x54] sm:$0xf0] }
  0x32   : > { %v890_v27 = vor.u32 %v937_v22, %v887_v24  ;;  %v877_v28 = vld [vmem:[%s1224_s7 + $0xd0] sm:$0xf]  ;;  %v936_v29 = vld [vmem:[%s1224_s7 + $0xd4] sm:$0xf0]  ;;  %v919_v30 = vld [vmem:[%s1224_s7 + $0x54] sm:$0xf]  ;;  %v814_v31 = vor.u32 %v920_v26, %v813_v25 }
  0x33   : > { %520 = vmatpush.bf16.msra.mxu0 %v822_v18  ;;  %v815_v32 = vld [vmem:[%s1224_s7 + $0x58] sm:$0xf0]  ;;  %v935_v33 = vld [vmem:[%s1224_s7 + $0xd4] sm:$0xf]  ;;  %v878_v35 = vor.u32 %v936_v29, %v877_v28  ;;  %v805_v37 = vld [vmem:[%s1224_s7 + $0x40] sm:$0xf] }
  0x34   : > { %v879_v34 = vld [vmem:[%s1224_s7 + $0xd8] sm:$0xf0]  ;;  %534 = vmatpush.bf16.msra.mxu1 %v886_v19  ;;  %548 = vmatpush.bf16.msra.mxu2 %v826_v23  ;;  %v818_v36 = vor.u32 %v919_v30, %v815_v32  ;;  %v918_v38 = vld [vmem:[%s1224_s7 + $0x44] sm:$0xf0]  ;;  %v869_v39 = vld [vmem:[%s1224_s7 + $0xc0] sm:$0xf] }
  0x35   : > { %562 = vmatpush.bf16.msra.mxu3 %v890_v27  ;;  %v882_v40 = vor.u32 %v935_v33, %v879_v34  ;;  %v934_v41 = vld [vmem:[%s1224_s7 + $0xc4] sm:$0xf0]  ;;  %v917_v42 = vld [vmem:[%s1224_s7 + $0x44] sm:$0xf]  ;;  %v807_v43 = vld [vmem:[%s1224_s7 + $0x48] sm:$0xf0]  ;;  %v806_v46 = vor.u32 %v918_v38, %v805_v37 }
  0x36   : > { %v933_v44 = vld [vmem:[%s1224_s7 + $0xc4] sm:$0xf]  ;;  %v871_v45 = vld [vmem:[%s1224_s7 + $0xc8] sm:$0xf0]  ;;  %v870_v47 = vor.u32 %v934_v41, %v869_v39  ;;  %v810_v48 = vor.u32 %v917_v42, %v807_v43  ;;  %v797_v49 = vld [vmem:[%s1224_s7 + $0x30] sm:$0xf] }
  0x37   : > { %521 = vmatpush.bf16.msra.mxu0 %v814_v31  ;;  %v916_v50 = vld [vmem:[%s1224_s7 + $0x34] sm:$0xf0]  ;;  %v861_v51 = vld [vmem:[%s1224_s7 + $0xb0] sm:$0xf]  ;;  %v874_v52 = vor.u32 %v933_v44, %v871_v45  ;;  %v915_v54 = vld [vmem:[%s1224_s7 + $0x34] sm:$0xf] }
  0x38   : > { %535 = vmatpush.bf16.msra.mxu1 %v878_v35  ;;  %549 = vmatpush.bf16.msra.mxu2 %v818_v36  ;;  %v932_v53 = vld [vmem:[%s1224_s7 + $0xb4] sm:$0xf0]  ;;  %v799_v55 = vld [vmem:[%s1224_s7 + $0x38] sm:$0xf0]  ;;  %v931_v56 = vld [vmem:[%s1224_s7 + $0xb4] sm:$0xf]  ;;  %v798_v58 = vor.u32 %v916_v50, %v797_v49 }
  0x39   : > { %563 = vmatpush.bf16.msra.mxu3 %v882_v40  ;;  %v863_v57 = vld [vmem:[%s1224_s7 + $0xb8] sm:$0xf0]  ;;  %v862_v59 = vor.u32 %v932_v53, %v861_v51  ;;  %v802_v60 = vor.u32 %v915_v54, %v799_v55  ;;  %v789_v61 = vld [vmem:[%s1224_s7 + $0x20] sm:$0xf]  ;;  %v914_v62 = vld [vmem:[%s1224_s7 + $0x24] sm:$0xf0] }
  0x3a   : > { %v853_v63 = vld [vmem:[%s1224_s7 + $0xa0] sm:$0xf]  ;;  %v866_v0 = vor.u32 %v931_v56, %v863_v57  ;;  %v930_v1 = vld [vmem:[%s1224_s7 + $0xa4] sm:$0xf0]  ;;  %v913_v2 = vld [vmem:[%s1224_s7 + $0x24] sm:$0xf]  ;;  %v790_v6 = vor.u32 %v914_v62, %v789_v61 }
  0x3b   : > { %522 = vmatpush.bf16.msra.mxu0 %v806_v46  ;;  %v791_v3 = vld [vmem:[%s1224_s7 + $0x28] sm:$0xf0]  ;;  %v929_v4 = vld [vmem:[%s1224_s7 + $0xa4] sm:$0xf]  ;;  %v854_v7 = vor.u32 %v930_v1, %v853_v63  ;;  %v781_v9 = vld [vmem:[%s1224_s7 + $0x10] sm:$0xf] }
  0x3c   : > { %536 = vmatpush.bf16.msra.mxu1 %v870_v47  ;;  %550 = vmatpush.bf16.msra.mxu2 %v810_v48  ;;  %v855_v5 = vld [vmem:[%s1224_s7 + $0xa8] sm:$0xf0]  ;;  %v794_v8 = vor.u32 %v913_v2, %v791_v3  ;;  %v912_v10 = vld [vmem:[%s1224_s7 + $0x14] sm:$0xf0]  ;;  %v845_v11 = vld [vmem:[%s1224_s7 + $0x90] sm:$0xf] }
  0x3d   : > { %564 = vmatpush.bf16.msra.mxu3 %v874_v52  ;;  %v858_v12 = vor.u32 %v929_v4, %v855_v5  ;;  %v928_v13 = vld [vmem:[%s1224_s7 + $0x94] sm:$0xf0]  ;;  %v911_v14 = vld [vmem:[%s1224_s7 + $0x14] sm:$0xf]  ;;  %v783_v15 = vld [vmem:[%s1224_s7 + $0x18] sm:$0xf0]  ;;  %v782_v18 = vor.u32 %v912_v10, %v781_v9 }
  0x3e   : > { %v927_v16 = vld [vmem:[%s1224_s7 + $0x94] sm:$0xf]  ;;  %v847_v17 = vld [vmem:[%s1224_s7 + $0x98] sm:$0xf0]  ;;  %v846_v19 = vor.u32 %v928_v13, %v845_v11  ;;  %v786_v20 = vor.u32 %v911_v14, %v783_v15  ;;  %v773_v21 = vld [vmem:[%s1224_s7] sm:$0xf] }
  0x3f   : > { %523 = vmatpush.bf16.msra.mxu0 %v798_v58  ;;  %v910_v22 = vld [vmem:[%s1224_s7 + $0x4] sm:$0xf0]  ;;  %v837_v23 = vld [vmem:[%s1224_s7 + $0x80] sm:$0xf]  ;;  %v850_v24 = vor.u32 %v927_v16, %v847_v17  ;;  %v909_v26 = vld [vmem:[%s1224_s7 + $0x4] sm:$0xf] }
  0x40   : > { %537 = vmatpush.bf16.msra.mxu1 %v862_v59  ;;  %551 = vmatpush.bf16.msra.mxu2 %v802_v60  ;;  %v926_v25 = vld [vmem:[%s1224_s7 + $0x84] sm:$0xf0]  ;;  %v775_v27 = vld [vmem:[%s1224_s7 + $0x8] sm:$0xf0]  ;;  %v925_v28 = vld [vmem:[%s1224_s7 + $0x84] sm:$0xf]  ;;  %v774_v30 = vor.u32 %v910_v22, %v773_v21 }
  0x41   : > { %565 = vmatpush.bf16.msra.mxu3 %v866_v0  ;;  %v839_v29 = vld [vmem:[%s1224_s7 + $0x88] sm:$0xf0]  ;;  %v765_v31 = vld [vmem:[%s1210_s30] sm:$0xf]  ;;  %v908_v32 = vld [vmem:[%s1210_s30 + $0x4] sm:$0xf0]  ;;  %v838_v33 = vor.u32 %v926_v25, %v837_v23  ;;  %v778_v34 = vor.u32 %v909_v26, %v775_v27 }
  0x42   : > { %v907_v35 = vld [vmem:[%s1210_s30 + $0x4] sm:$0xf]  ;;  %v767_v36 = vld [vmem:[%s1210_s30 + $0x8] sm:$0xf0]  ;;  %v842_v37 = vor.u32 %v925_v28, %v839_v29  ;;  %v766_v38 = vor.u32 %v908_v32, %v765_v31 }
  0x43   : > { %524 = vmatpush.bf16.msra.mxu0 %v790_v6  ;;  %v770_v39 = vor.u32 %v907_v35, %v767_v36 }
  0x44   : > { %538 = vmatpush.bf16.msra.mxu1 %v854_v7  ;;  %552 = vmatpush.bf16.msra.mxu2 %v794_v8 }
  0x45   : > { %566 = vmatpush.bf16.msra.mxu3 %v858_v12 }
  0x47   : > { %525 = vmatpush.bf16.msra.mxu0 %v782_v18 }
  0x48   : > { %539 = vmatpush.bf16.msra.mxu1 %v846_v19  ;;  %553 = vmatpush.bf16.msra.mxu2 %v786_v20 }
  0x49   : > { %567 = vmatpush.bf16.msra.mxu3 %v850_v24 }
  0x4b   : > { %526 = vmatpush.bf16.msra.mxu0 %v774_v30 }
  0x4c   : > { %540 = vmatpush.bf16.msra.mxu1 %v838_v33  ;;  %554 = vmatpush.bf16.msra.mxu2 %v778_v34 }
  0x4d   : > { %568 = vmatpush.bf16.msra.mxu3 %v842_v37 }
  0x4e   : > { %527 = vmatmul.bf16.vlgmr.msra.gmra.mxu0 %v766_v38 }
  0x4f   : > { %541 = vmatmul.bf16.vlgmr.msra.gmra.mxu1 %v770_v39  ;;  %555 = vmatmul.bf16.vlgmr.msra.gmra.mxu2 %v766_v38 }
  0x50   : > { %569 = vmatmul.bf16.vlgmr.msra.gmra.mxu3 %v770_v39 }
  0xcb   : > { %v528_v40 = vpop.f32.mrf.mxu0 }
  0xcc   : > { %v542_v41 = vpop.f32.mrf.mxu1 }
  0xcd   : > { %v543_v42 = vadd.f32 %v542_v41, %v528_v40 }
  0xd2   : > { %v556_v43 = vpop.f32.mrf.mxu2 }
  0xd3   : > { %v570_v44 = vpop.f32.mrf.mxu3  ;;  %v530_v45 = vpop.f32.mrf.mxu0 }
  0xd4   : > { %v571_v46 = vadd.f32 %v570_v44, %v556_v43  ;;  %v544_v47 = vpop.f32.mrf.mxu1 }
  0xd5   : > { %v545_v48 = vadd.f32 %v544_v47, %v530_v45 }
  0xd8   : > { %578 = sbr.rel (%p899_p13) target bundleno = 225 (0xe1), region = 86 }
  0xda   : > { %v558_v49 = vpop.f32.mrf.mxu2 }
  0xdb   : > { %v572_v50 = vpop.f32.mrf.mxu3 }
  0xdc   : > { %v573_v51 = vadd.f32 %v572_v50, %v558_v49 }
  0xdd   : > { %579 = vst [vmem:[%s1377_s4] sm:$0xff] %v543_v42 }
  0xde   : > { %580 = vst [vmem:[%s1377_s4 + $0x8] sm:$0xff] %v571_v46 }
  0xdf   : > { %581 = vst [vmem:[%s1377_s4 + $0x10] sm:$0xff] %v545_v48 }
  0xe0   : > { %582 = vst [vmem:[%s1377_s4 + $0x18] sm:$0xff] %v573_v51 }
  0xe1 PF: > { %p583_p0 = scmp.gt.s32.totalorder %s1100_s17, 0  ;;  %p584_p1 = scmp.lt.s32.totalorder %s1100_s17, 8 }
  0xe3   : > { %p585_p2 = pnand %p584_p1, %p583_p0 }
  0xe5   : > { %588 = sbr.rel (%p585_p2) target bundleno = 241 (0xf1), region = 90 }
  0xea   : > { %v589_v52 = vld [vmem:[%s1377_s4] sm:$0xff]  ;;  %v590_v53 = vld [vmem:[%s1377_s4 + $0x8] sm:$0xff]  ;;  %v591_v54 = vld [vmem:[%s1377_s4 + $0x10] sm:$0xff] }
  0xeb   : > { %v593_v55 = vadd.f32 %v589_v52, %v543_v42  ;;  %v594_v56 = vadd.f32 %v590_v53, %v571_v46  ;;  %v595_v57 = vadd.f32 %v591_v54, %v545_v48  ;;  %v592_v58 = vld [vmem:[%s1377_s4 + $0x18] sm:$0xff] }
  0xec   : > { %v596_v59 = vadd.f32 %v592_v58, %v573_v51 }
  0xed   : > { %597 = vst [vmem:[%s1377_s4] sm:$0xff] %v593_v55 }
  0xee   : > { %598 = vst [vmem:[%s1377_s4 + $0x8] sm:$0xff] %v594_v56 }
  0xef   : > { %599 = vst [vmem:[%s1377_s4 + $0x10] sm:$0xff] %v595_v57 }
  0xf0   : > { %600 = vst [vmem:[%s1377_s4 + $0x18] sm:$0xff] %v596_v59 }
  0xf1 PF: > { %p900_p3 = scmp.ne.s32.totalorder %s1100_s17, 8 }
  0xf3   : > { %604 = sbr.rel (%p900_p3) target bundleno = 262 (0x106), region = 94 }
  0xf8   : > { %v605_v60 = vld [vmem:[%s1377_s4] sm:$0xff]  ;;  %v606_v2 = vld [vmem:[%s1377_s4 + $0x8] sm:$0xff]  ;;  %v607_v4 = vld [vmem:[%s1377_s4 + $0x10] sm:$0xff] }
  0xf9   : > { %v613_v61 = vld [vmem:[#allocation3] sm:$0x3]  ;;  %v623_v62 = vld [vmem:[#allocation5] sm:$0x3]  ;;  %v609_v63 = vadd.f32 %v605_v60, %v543_v42  ;;  %v608_v5 = vld [vmem:[%s1377_s4 + $0x18] sm:$0xff]  ;;  %v610_v6 = vadd.f32 %v606_v2, %v571_v46  ;;  %v611_v8 = vadd.f32 %v607_v4, %v545_v48 }
  0xfa   : > { %v615_v0 = vperm.slane %v613_v61, 0  ;;  %v625_v1 = vperm.slane %v623_v62, 0  ;;  %v616_v3 = vperm.slane %v613_v61, 1  ;;  %v626_v7 = vperm.slane %v623_v62, 1 }
  0xfb   : > { %v612_v9 = vadd.f32 %v608_v5, %v573_v51 }
  0xfc   : > { %v619_v10 = vmul.f32 %v615_v0, %v609_v63  ;;  %v620_v11 = vmul.f32 %v616_v3, %v610_v6  ;;  %v621_v12 = vmul.f32 %v615_v0, %v611_v8 }
  0xfd   : > { %v622_v13 = vmul.f32 %v616_v3, %v612_v9 }
  0xfe   : > { %v629_v14 = vadd.f32 %v625_v1, %v619_v10  ;;  %v630_v15 = vadd.f32 %v626_v7, %v620_v11  ;;  %v631_v16 = vadd.f32 %v625_v1, %v621_v12 }
  0xff   : > { %v632_v17 = vadd.f32 %v626_v7, %v622_v13 }
 0x100   : > { %v633_v18 = vmax.f32 %v629_v14, 0.0  ;;  %v634_v19 = vmax.f32 %v630_v15, 0.0  ;;  %v635_v20 = vmax.f32 %v631_v16, 0.0 }
 0x101   : > { %v636_v21 = vmax.f32 %v632_v17, 0.0 }
 0x102   : > { %637 = vst [vmem:[%s1377_s4] sm:$0xff] %v633_v18 }
 0x103   : > { %638 = vst [vmem:[%s1377_s4 + $0x8] sm:$0xff] %v634_v19 }
 0x104   : > { %639 = vst [vmem:[%s1377_s4 + $0x10] sm:$0xff] %v635_v20 }
 0x105   : > { %640 = vst [vmem:[%s1377_s4 + $0x18] sm:$0xff] %v636_v21 }
 0x106 PF: > { %s16_s19 = sadd.s32 1, %s1108_s19   ;;  %s1381_s15 = smov %s1096_s16 }
 0x107   : > { %p13_p4 = scmp.ge.s32.totalorder %s16_s19, 11   ;;  %s1382_s16 = smov %s1187_s27 }
 0x108   : > { %s1383_s17 = smov %s1104_s18  ;;  %s1384_s18 = smov %s1386_s21 }
 0x109   :  { %15 = sbr.rel (!%p13_p4) target bundleno = 4 (0x4), region = 133 }
 0x10e   :  { %665 = vsyncpa [#allocation4], 1 }
 0x10f   :  { %667 = vsyncpa [#allocation4 + $0x1], 1 }
 0x110   :  { %668 = vsyncpa [#allocation6], 1 }

// kernel: alzheimer_resnet_forward.36
= control target key start
LH: loop header
LB: loop body
LE: loop exit
PB: predicated region body
PF: predicated region fallthrough
CT: control target
= control target key end

     0   :  { %s1446_s15 = smov 0   ;;  %s1448_s16 = smov 0   ;;  %s1826_s0 = inlined_call_operand.vmem [shape: bf16[16,2304], index: 0, kind: input, shape index: {}]   ;;  %s1827_s1 = inlined_call_operand.vmem [shape: bf16[2304,512], index: 1, kind: input, shape index: {}]   ;;  %s1828_s2 = inlined_call_operand.vmem [shape: f32[1,512], index: 2, kind: input, shape index: {}]   ;;  %s1829_s3 = inlined_call_operand.vmem [shape: f32[1,512], index: 3, kind: input, shape index: {}]   ;;  %s1830_s4 = inlined_call_operand.vmem [shape: f32[16,512], index: 4, kind: output, shape index: {}]  }
   0x1   :  { %s1450_s17 = smov 0   ;;  %s1452_s18 = smov 0  }
   0x2   :  { %s1454_s19 = smov 0  }
   0x3 LB: > { %s23_s20 = sadd.s32 1, %s1415_s18  ;;  %p42_p1 = scmp.ne.s32.totalorder %s1407_s16, %s1403_s15  ;;  %s1419_s19 = sphi %s1454_s19, %s14_s19   ;;  %s1415_s18 = sphi %s1452_s18, %s1834_s18   ;;  %s1411_s17 = sphi %s1450_s17, %s1833_s17   ;;  %s1407_s16 = sphi %s1448_s16, %s1832_s16   ;;  %s1403_s15 = sphi %s1446_s15, %s1831_s15  }
   0x4   : > { %p24_p0 = scmp.ge.s32.totalorder %s23_s20, 9  ;;  %p43_p2 = scmp.eq.s32.totalorder %s1419_s19, 0 }
   0x5   : > { %s35_s22 = sadd.s32 1, %s1407_s16  ;;  %p994_p5 = scmp.ge.s32.totalorder %s1419_s19, 9 }
   0x6   : > { %s1836_s20 = smov (%p24_p0, %s23_s20), 0  ;;  %p44_p3 = por %p43_p2, %p42_p1 }
   0x7   : > { %s31_s21 = ssub.s32 %s1415_s18, %s1836_s20  ;;  %168 = sbr.rel (%p994_p5) target bundleno = 18 (0x12), region = 24 }
   0x8   : > { %p33_p4 = scmp.eq.s32.totalorder %s31_s21, 0 }
   0xa   : > { %s1481_s23 = scalar_select %p33_p4, %s1407_s16, %s35_s22  }
   0xc   : > { %171 = sbr.rel (!%p44_p3) target bundleno = 18 (0x12), region = 28  ;;  %s173_s24 = sand.u32 (%p44_p3), 1, %s1407_s16  }
   0xd   : > { %s1273_s25 = sshll.u32 (%p44_p3), %s1415_s18, 3  ;;  %s995_s26 = sshll.u32 (%p44_p3), %s173_s24, 4 }
   0xe   : > { %s181_s29 = scalar_lea.vmem (%p44_p3), %s1826_s0, %s1273_s25  ;;  %s175_s30 = scalar_lea.vmem (%p44_p3), [#allocation2], %s995_s26 }
   0xf   : > { %v212_v0 = vld [vmem:[%s181_s29] sm:$0xff] (%p44_p3)  ;;  %v214_v1 = vld [vmem:[%s181_s29 + $0x48] sm:$0xff] (%p44_p3) }
  0x10   : > { %213 = vst [vmem:[%s175_s30] sm:$0xff] (%p44_p3), %v212_v0 }
  0x11   : > { %215 = vst [vmem:[%s175_s30 + $0x8] sm:$0xff] %v214_v1 }
  0x12 PF: > { %p998_p6 = scmp.ge.s32.totalorder %s1419_s19, 1  ;;  %p230_p7 = scmp.lt.s32.totalorder %s1419_s19, 10 }
  0x14   : > { %p231_p8 = pnand %p998_p6, %p230_p7 }
  0x15   : > { %s1000_s5 = sshll.u32 (!%p231_p8), %s1411_s17, 5  ;;  %s237_s10 = sand.u32 (!%p231_p8), 1, %s1403_s15  }
  0x16   : > { %234 = sbr.rel (%p231_p8) target bundleno = 292 (0x124), region = 70  ;;  %p272_p9 = scmp.lt.s32.totalorder (!%p231_p8), %s1000_s5, 287 }
  0x17   : > { %s1546_s11 = sshll.u32 (!%p231_p8), %s237_s10, 4  ;;  %p1267_p10 = scmp.ne.s32.totalorder (!%p231_p8), %s1411_s17, 0 }
  0x18   : > { %s239_s12 = scalar_lea.vmem (!%p231_p8), [#allocation2], %s1546_s11 }
  0x1b   : > { %s1838_s5 = smov (!%p272_p9, %s1000_s5), 287 }
  0x1c   : > { %s1274_s6 = sshll.u32 %s1838_s5, 4 }
  0x1d   : > { %s1495_s9 = scalar_lea.vmem %s1827_s1, %s1274_s6 }
  0x1e   : > { %v1125_v2 = vld [vmem:[%s1495_s9 + $0xe0] sm:$0xf]  ;;  %v1307_v3 = vld [vmem:[%s1495_s9 + $0xec] sm:$0xf0]  ;;  %v1305_v7 = vld [vmem:[%s1495_s9 + $0xe4] sm:$0xf] }
  0x1f   : > { %v1253_v4 = vld [vmem:[%s1495_s9 + $0x1e0] sm:$0xf]  ;;  %v1126_v5 = vor.u32 %v1307_v3, %v1125_v2  ;;  %v1339_v6 = vld [vmem:[%s1495_s9 + $0x1ec] sm:$0xf0]  ;;  %v1127_v8 = vld [vmem:[%s1495_s9 + $0xf0] sm:$0xf0] }
  0x20   : > { %v1254_v9 = vor.u32 %v1339_v6, %v1253_v4  ;;  %v1130_v10 = vor.u32 %v1305_v7, %v1127_v8  ;;  %v1337_v11 = vld [vmem:[%s1495_s9 + $0x1e4] sm:$0xf]  ;;  %v1255_v12 = vld [vmem:[%s1495_s9 + $0x1f0] sm:$0xf0]  ;;  %v1109_v13 = vld [vmem:[%s1495_s9 + $0xc0] sm:$0xf] }
  0x21   : > { %681 = vmatpush.bf16.msra.mxu0 %v1126_v5  ;;  %v1258_v14 = vor.u32 %v1337_v11, %v1255_v12  ;;  %v1303_v15 = vld [vmem:[%s1495_s9 + $0xcc] sm:$0xf0]  ;;  %v1237_v16 = vld [vmem:[%s1495_s9 + $0x1c0] sm:$0xf]  ;;  %v1301_v20 = vld [vmem:[%s1495_s9 + $0xc4] sm:$0xf] }
  0x22   : > { %v1335_v17 = vld [vmem:[%s1495_s9 + $0x1cc] sm:$0xf0]  ;;  %695 = vmatpush.bf16.msra.mxu1 %v1254_v9  ;;  %709 = vmatpush.bf16.msra.mxu2 %v1130_v10  ;;  %v1110_v18 = vor.u32 %v1303_v15, %v1109_v13  ;;  %v1111_v21 = vld [vmem:[%s1495_s9 + $0xd0] sm:$0xf0]  ;;  %v1333_v22 = vld [vmem:[%s1495_s9 + $0x1c4] sm:$0xf] }
  0x23   : > { %v1238_v19 = vor.u32 %v1335_v17, %v1237_v16  ;;  %723 = vmatpush.bf16.msra.mxu3 %v1258_v14  ;;  %v1114_v23 = vor.u32 %v1301_v20, %v1111_v21  ;;  %v1239_v24 = vld [vmem:[%s1495_s9 + $0x1d0] sm:$0xf0]  ;;  %v1093_v25 = vld [vmem:[%s1495_s9 + $0xa0] sm:$0xf]  ;;  %v1299_v26 = vld [vmem:[%s1495_s9 + $0xac] sm:$0xf0] }
  0x24   : > { %v1242_v27 = vor.u32 %v1333_v22, %v1239_v24  ;;  %v1221_v28 = vld [vmem:[%s1495_s9 + $0x1a0] sm:$0xf]  ;;  %v1331_v29 = vld [vmem:[%s1495_s9 + $0x1ac] sm:$0xf0]  ;;  %v1297_v30 = vld [vmem:[%s1495_s9 + $0xa4] sm:$0xf]  ;;  %v1094_v31 = vor.u32 %v1299_v26, %v1093_v25 }
  0x25   : > { %682 = vmatpush.bf16.msra.mxu0 %v1110_v18  ;;  %v1095_v32 = vld [vmem:[%s1495_s9 + $0xb0] sm:$0xf0]  ;;  %v1329_v33 = vld [vmem:[%s1495_s9 + $0x1a4] sm:$0xf]  ;;  %v1222_v35 = vor.u32 %v1331_v29, %v1221_v28  ;;  %v1077_v37 = vld [vmem:[%s1495_s9 + $0x80] sm:$0xf] }
  0x26   : > { %v1223_v34 = vld [vmem:[%s1495_s9 + $0x1b0] sm:$0xf0]  ;;  %696 = vmatpush.bf16.msra.mxu1 %v1238_v19  ;;  %710 = vmatpush.bf16.msra.mxu2 %v1114_v23  ;;  %v1098_v36 = vor.u32 %v1297_v30, %v1095_v32  ;;  %v1295_v38 = vld [vmem:[%s1495_s9 + $0x8c] sm:$0xf0]  ;;  %v1205_v39 = vld [vmem:[%s1495_s9 + $0x180] sm:$0xf] }
  0x27   : > { %724 = vmatpush.bf16.msra.mxu3 %v1242_v27  ;;  %v1226_v40 = vor.u32 %v1329_v33, %v1223_v34  ;;  %v1327_v41 = vld [vmem:[%s1495_s9 + $0x18c] sm:$0xf0]  ;;  %v1293_v42 = vld [vmem:[%s1495_s9 + $0x84] sm:$0xf]  ;;  %v1079_v43 = vld [vmem:[%s1495_s9 + $0x90] sm:$0xf0]  ;;  %v1078_v46 = vor.u32 %v1295_v38, %v1077_v37 }
  0x28   : > { %v1325_v44 = vld [vmem:[%s1495_s9 + $0x184] sm:$0xf]  ;;  %v1207_v45 = vld [vmem:[%s1495_s9 + $0x190] sm:$0xf0]  ;;  %v1206_v47 = vor.u32 %v1327_v41, %v1205_v39  ;;  %v1082_v48 = vor.u32 %v1293_v42, %v1079_v43  ;;  %v1061_v49 = vld [vmem:[%s1495_s9 + $0x60] sm:$0xf] }
  0x29   : > { %683 = vmatpush.bf16.msra.mxu0 %v1094_v31  ;;  %v1291_v50 = vld [vmem:[%s1495_s9 + $0x6c] sm:$0xf0]  ;;  %v1189_v51 = vld [vmem:[%s1495_s9 + $0x160] sm:$0xf]  ;;  %v1210_v52 = vor.u32 %v1325_v44, %v1207_v45  ;;  %v1289_v54 = vld [vmem:[%s1495_s9 + $0x64] sm:$0xf] }
  0x2a   : > { %697 = vmatpush.bf16.msra.mxu1 %v1222_v35  ;;  %711 = vmatpush.bf16.msra.mxu2 %v1098_v36  ;;  %v1323_v53 = vld [vmem:[%s1495_s9 + $0x16c] sm:$0xf0]  ;;  %v1063_v55 = vld [vmem:[%s1495_s9 + $0x70] sm:$0xf0]  ;;  %v1321_v56 = vld [vmem:[%s1495_s9 + $0x164] sm:$0xf]  ;;  %v1062_v58 = vor.u32 %v1291_v50, %v1061_v49 }
  0x2b   : > { %725 = vmatpush.bf16.msra.mxu3 %v1226_v40  ;;  %v1191_v57 = vld [vmem:[%s1495_s9 + $0x170] sm:$0xf0]  ;;  %v1190_v59 = vor.u32 %v1323_v53, %v1189_v51  ;;  %v1066_v60 = vor.u32 %v1289_v54, %v1063_v55  ;;  %v1045_v61 = vld [vmem:[%s1495_s9 + $0x40] sm:$0xf]  ;;  %v1287_v62 = vld [vmem:[%s1495_s9 + $0x4c] sm:$0xf0] }
  0x2c   : > { %v1173_v63 = vld [vmem:[%s1495_s9 + $0x140] sm:$0xf]  ;;  %v1194_v0 = vor.u32 %v1321_v56, %v1191_v57  ;;  %v1319_v1 = vld [vmem:[%s1495_s9 + $0x14c] sm:$0xf0]  ;;  %v1285_v2 = vld [vmem:[%s1495_s9 + $0x44] sm:$0xf]  ;;  %v1046_v6 = vor.u32 %v1287_v62, %v1045_v61 }
  0x2d   : > { %684 = vmatpush.bf16.msra.mxu0 %v1078_v46  ;;  %v1047_v3 = vld [vmem:[%s1495_s9 + $0x50] sm:$0xf0]  ;;  %v1317_v4 = vld [vmem:[%s1495_s9 + $0x144] sm:$0xf]  ;;  %v1174_v7 = vor.u32 %v1319_v1, %v1173_v63  ;;  %v1029_v9 = vld [vmem:[%s1495_s9 + $0x20] sm:$0xf] }
  0x2e   : > { %698 = vmatpush.bf16.msra.mxu1 %v1206_v47  ;;  %712 = vmatpush.bf16.msra.mxu2 %v1082_v48  ;;  %v1175_v5 = vld [vmem:[%s1495_s9 + $0x150] sm:$0xf0]  ;;  %v1050_v8 = vor.u32 %v1285_v2, %v1047_v3  ;;  %v1283_v10 = vld [vmem:[%s1495_s9 + $0x2c] sm:$0xf0]  ;;  %v1157_v11 = vld [vmem:[%s1495_s9 + $0x120] sm:$0xf] }
  0x2f   : > { %726 = vmatpush.bf16.msra.mxu3 %v1210_v52  ;;  %v1178_v12 = vor.u32 %v1317_v4, %v1175_v5  ;;  %v1315_v13 = vld [vmem:[%s1495_s9 + $0x12c] sm:$0xf0]  ;;  %v1281_v14 = vld [vmem:[%s1495_s9 + $0x24] sm:$0xf]  ;;  %v1031_v15 = vld [vmem:[%s1495_s9 + $0x30] sm:$0xf0]  ;;  %v1030_v18 = vor.u32 %v1283_v10, %v1029_v9 }
  0x30   : > { %v1313_v16 = vld [vmem:[%s1495_s9 + $0x124] sm:$0xf]  ;;  %v1159_v17 = vld [vmem:[%s1495_s9 + $0x130] sm:$0xf0]  ;;  %v1013_v19 = vld [vmem:[%s1495_s9] sm:$0xf]  ;;  %v1158_v22 = vor.u32 %v1315_v13, %v1157_v11  ;;  %v1034_v23 = vor.u32 %v1281_v14, %v1031_v15 }
  0x31   : > { %685 = vmatpush.bf16.msra.mxu0 %v1062_v58  ;;  %v1279_v20 = vld [vmem:[%s1495_s9 + $0xc] sm:$0xf0]  ;;  %v1141_v21 = vld [vmem:[%s1495_s9 + $0x100] sm:$0xf]  ;;  %v1277_v25 = vld [vmem:[%s1495_s9 + $0x4] sm:$0xf]  ;;  %v1162_v27 = vor.u32 %v1313_v16, %v1159_v17 }
  0x32   : > { %699 = vmatpush.bf16.msra.mxu1 %v1190_v59  ;;  %713 = vmatpush.bf16.msra.mxu2 %v1066_v60  ;;  %v1311_v24 = vld [vmem:[%s1495_s9 + $0x10c] sm:$0xf0]  ;;  %v1015_v26 = vld [vmem:[%s1495_s9 + $0x10] sm:$0xf0]  ;;  %v1309_v28 = vld [vmem:[%s1495_s9 + $0x104] sm:$0xf]  ;;  %v1014_v34 = vor.u32 %v1279_v20, %v1013_v19 }
  0x33   : > { %727 = vmatpush.bf16.msra.mxu3 %v1194_v0  ;;  %v1143_v29 = vld [vmem:[%s1495_s9 + $0x110] sm:$0xf0]  ;;  %v1133_v30 = vld [vmem:[%s1495_s9 + $0xe8] sm:$0xf]  ;;  %v1308_v31 = vld [vmem:[%s1495_s9 + $0xf4] sm:$0xf0]  ;;  %v1142_v38 = vor.u32 %v1311_v24, %v1141_v21  ;;  %v1018_v39 = vor.u32 %v1277_v25, %v1015_v26 }
  0x34   : > { %v1261_v32 = vld [vmem:[%s1495_s9 + $0x1e8] sm:$0xf]  ;;  %v1340_v33 = vld [vmem:[%s1495_s9 + $0x1f4] sm:$0xf0]  ;;  %v1306_v35 = vld [vmem:[%s1495_s9 + $0xec] sm:$0xf]  ;;  %v1146_v43 = vor.u32 %v1309_v28, %v1143_v29  ;;  %v1134_v44 = vor.u32 %v1308_v31, %v1133_v30 }
  0x35   : > { %686 = vmatpush.bf16.msra.mxu0 %v1046_v6  ;;  %v1135_v36 = vld [vmem:[%s1495_s9 + $0xf8] sm:$0xf0]  ;;  %v1338_v37 = vld [vmem:[%s1495_s9 + $0x1ec] sm:$0xf]  ;;  %v1005_v41 = vld [vmem:[%s239_s12] sm:$0xf]  ;;  %v1262_v47 = vor.u32 %v1340_v33, %v1261_v32 }
  0x36   : > { %700 = vmatpush.bf16.msra.mxu1 %v1174_v7  ;;  %714 = vmatpush.bf16.msra.mxu2 %v1050_v8  ;;  %v1263_v40 = vld [vmem:[%s1495_s9 + $0x1f8] sm:$0xf0]  ;;  %v1276_v42 = vld [vmem:[%s239_s12 + $0x4] sm:$0xf0]  ;;  %v1275_v45 = vld [vmem:[%s239_s12 + $0x4] sm:$0xf]  ;;  %v1138_v48 = vor.u32 %v1306_v35, %v1135_v36 }
  0x37   : > { %728 = vmatpush.bf16.msra.mxu3 %v1178_v12  ;;  %v1007_v46 = vld [vmem:[%s239_s12 + $0x8] sm:$0xf0]  ;;  %v1117_v49 = vld [vmem:[%s1495_s9 + $0xc8] sm:$0xf]  ;;  %v1304_v50 = vld [vmem:[%s1495_s9 + $0xd4] sm:$0xf0]  ;;  %v1266_v52 = vor.u32 %v1338_v37, %v1263_v40  ;;  %v1579_v56 = vor.u32 %v1276_v42, %v1005_v41 }
  0x38   : > { %v1245_v51 = vld [vmem:[%s1495_s9 + $0x1c8] sm:$0xf]  ;;  %v1336_v53 = vld [vmem:[%s1495_s9 + $0x1d4] sm:$0xf0]  ;;  %v1302_v54 = vld [vmem:[%s1495_s9 + $0xcc] sm:$0xf]  ;;  %v1583_v59 = vor.u32 %v1275_v45, %v1007_v46  ;;  %v1118_v60 = vor.u32 %v1304_v50, %v1117_v49 }
  0x39   : > { %687 = vmatpush.bf16.msra.mxu0 %v1030_v18  ;;  %v1119_v55 = vld [vmem:[%s1495_s9 + $0xd8] sm:$0xf0]  ;;  %v1334_v57 = vld [vmem:[%s1495_s9 + $0x1cc] sm:$0xf]  ;;  %v1246_v61 = vor.u32 %v1336_v53, %v1245_v51  ;;  %v1101_v63 = vld [vmem:[%s1495_s9 + $0xa8] sm:$0xf] }
  0x3a   : > { %701 = vmatpush.bf16.msra.mxu1 %v1158_v22  ;;  %715 = vmatpush.bf16.msra.mxu2 %v1034_v23  ;;  %v1247_v58 = vld [vmem:[%s1495_s9 + $0x1d8] sm:$0xf0]  ;;  %v1122_v62 = vor.u32 %v1302_v54, %v1119_v55  ;;  %v1300_v0 = vld [vmem:[%s1495_s9 + $0xb4] sm:$0xf0]  ;;  %v1229_v1 = vld [vmem:[%s1495_s9 + $0x1a8] sm:$0xf] }
  0x3b   : > { %729 = vmatpush.bf16.msra.mxu3 %v1162_v27  ;;  %v1250_v2 = vor.u32 %v1334_v57, %v1247_v58  ;;  %v1332_v3 = vld [vmem:[%s1495_s9 + $0x1b4] sm:$0xf0]  ;;  %v1298_v4 = vld [vmem:[%s1495_s9 + $0xac] sm:$0xf]  ;;  %v1103_v5 = vld [vmem:[%s1495_s9 + $0xb8] sm:$0xf0]  ;;  %v1102_v8 = vor.u32 %v1300_v0, %v1101_v63 }
  0x3c   : > { %v1330_v6 = vld [vmem:[%s1495_s9 + $0x1ac] sm:$0xf]  ;;  %v1231_v7 = vld [vmem:[%s1495_s9 + $0x1b8] sm:$0xf0]  ;;  %v1230_v9 = vor.u32 %v1332_v3, %v1229_v1  ;;  %v1106_v10 = vor.u32 %v1298_v4, %v1103_v5  ;;  %v1085_v11 = vld [vmem:[%s1495_s9 + $0x88] sm:$0xf] }
  0x3d   : > { %688 = vmatpush.bf16.msra.mxu0 %v1014_v34  ;;  %v1296_v12 = vld [vmem:[%s1495_s9 + $0x94] sm:$0xf0]  ;;  %v1213_v13 = vld [vmem:[%s1495_s9 + $0x188] sm:$0xf]  ;;  %v1234_v14 = vor.u32 %v1330_v6, %v1231_v7  ;;  %v1294_v16 = vld [vmem:[%s1495_s9 + $0x8c] sm:$0xf] }
  0x3e   : > { %702 = vmatpush.bf16.msra.mxu1 %v1142_v38  ;;  %716 = vmatpush.bf16.msra.mxu2 %v1018_v39  ;;  %v1328_v15 = vld [vmem:[%s1495_s9 + $0x194] sm:$0xf0]  ;;  %v1087_v17 = vld [vmem:[%s1495_s9 + $0x98] sm:$0xf0]  ;;  %v1326_v18 = vld [vmem:[%s1495_s9 + $0x18c] sm:$0xf]  ;;  %v1086_v20 = vor.u32 %v1296_v12, %v1085_v11 }
  0x3f   : > { %730 = vmatpush.bf16.msra.mxu3 %v1146_v43  ;;  %v1215_v19 = vld [vmem:[%s1495_s9 + $0x198] sm:$0xf0]  ;;  %v1214_v21 = vor.u32 %v1328_v15, %v1213_v13  ;;  %v1090_v22 = vor.u32 %v1294_v16, %v1087_v17  ;;  %v1069_v23 = vld [vmem:[%s1495_s9 + $0x68] sm:$0xf]  ;;  %v1292_v24 = vld [vmem:[%s1495_s9 + $0x74] sm:$0xf0] }
  0x40   : > { %689 = vmatmul.bf16.vlgmr.msra.gmra.mxu0 %v1579_v56  ;;  %v1197_v25 = vld [vmem:[%s1495_s9 + $0x168] sm:$0xf]  ;;  %v1218_v26 = vor.u32 %v1326_v18, %v1215_v19  ;;  %v1324_v27 = vld [vmem:[%s1495_s9 + $0x174] sm:$0xf0]  ;;  %v1290_v28 = vld [vmem:[%s1495_s9 + $0x6c] sm:$0xf]  ;;  %v1070_v32 = vor.u32 %v1292_v24, %v1069_v23 }
  0x41   : > { %737 = vmatpush.bf16.msrb.mxu0 %v1134_v44  ;;  %717 = vmatmul.bf16.vlgmr.msra.gmra.mxu2 %v1579_v56  ;;  %v1071_v29 = vld [vmem:[%s1495_s9 + $0x78] sm:$0xf0]  ;;  %v1322_v30 = vld [vmem:[%s1495_s9 + $0x16c] sm:$0xf]  ;;  %v1198_v33 = vor.u32 %v1324_v27, %v1197_v25  ;;  %v1053_v35 = vld [vmem:[%s1495_s9 + $0x48] sm:$0xf] }
  0x42   : > { %751 = vmatpush.bf16.msrb.mxu1 %v1262_v47  ;;  %765 = vmatpush.bf16.msrb.mxu2 %v1138_v48  ;;  %v1199_v31 = vld [vmem:[%s1495_s9 + $0x178] sm:$0xf0]  ;;  %v1074_v34 = vor.u32 %v1290_v28, %v1071_v29  ;;  %v1288_v36 = vld [vmem:[%s1495_s9 + $0x54] sm:$0xf0]  ;;  %v1181_v37 = vld [vmem:[%s1495_s9 + $0x148] sm:$0xf] }
  0x43   : > { %779 = vmatpush.bf16.msrb.mxu3 %v1266_v52  ;;  %703 = vmatmul.bf16.vlgmr.msra.gmra.mxu1 %v1583_v59  ;;  %v1202_v38 = vor.u32 %v1322_v30, %v1199_v31  ;;  %v1320_v39 = vld [vmem:[%s1495_s9 + $0x154] sm:$0xf0]  ;;  %v1286_v40 = vld [vmem:[%s1495_s9 + $0x4c] sm:$0xf]  ;;  %v1055_v41 = vld [vmem:[%s1495_s9 + $0x58] sm:$0xf0]  ;;  %v1054_v44 = vor.u32 %v1288_v36, %v1053_v35 }
  0x44   : > { %731 = vmatmul.bf16.vlgmr.msra.gmra.mxu3 %v1583_v59  ;;  %v1318_v42 = vld [vmem:[%s1495_s9 + $0x14c] sm:$0xf]  ;;  %v1183_v43 = vld [vmem:[%s1495_s9 + $0x158] sm:$0xf0]  ;;  %v1182_v45 = vor.u32 %v1320_v39, %v1181_v37  ;;  %v1058_v46 = vor.u32 %v1286_v40, %v1055_v41  ;;  %v1037_v47 = vld [vmem:[%s1495_s9 + $0x28] sm:$0xf] }
  0x45   : > { %738 = vmatpush.bf16.msrb.mxu0 %v1118_v60  ;;  %v1284_v48 = vld [vmem:[%s1495_s9 + $0x34] sm:$0xf0]  ;;  %v1165_v49 = vld [vmem:[%s1495_s9 + $0x128] sm:$0xf]  ;;  %v1186_v50 = vor.u32 %v1318_v42, %v1183_v43  ;;  %v1282_v52 = vld [vmem:[%s1495_s9 + $0x2c] sm:$0xf] }
  0x46   : > { %752 = vmatpush.bf16.msrb.mxu1 %v1246_v61  ;;  %766 = vmatpush.bf16.msrb.mxu2 %v1122_v62  ;;  %v1316_v51 = vld [vmem:[%s1495_s9 + $0x134] sm:$0xf0]  ;;  %v1039_v53 = vld [vmem:[%s1495_s9 + $0x38] sm:$0xf0]  ;;  %v1314_v54 = vld [vmem:[%s1495_s9 + $0x12c] sm:$0xf]  ;;  %v1038_v57 = vor.u32 %v1284_v48, %v1037_v47 }
  0x47   : > { %780 = vmatpush.bf16.msrb.mxu3 %v1250_v2  ;;  %v1167_v55 = vld [vmem:[%s1495_s9 + $0x138] sm:$0xf0]  ;;  %v1166_v58 = vor.u32 %v1316_v51, %v1165_v49  ;;  %v1042_v60 = vor.u32 %v1282_v52, %v1039_v53  ;;  %v1021_v61 = vld [vmem:[%s1495_s9 + $0x8] sm:$0xf]  ;;  %v1280_v62 = vld [vmem:[%s1495_s9 + $0x14] sm:$0xf0] }
  0x48   : > { %v1149_v63 = vld [vmem:[%s1495_s9 + $0x108] sm:$0xf]  ;;  %v1170_v0 = vor.u32 %v1314_v54, %v1167_v55  ;;  %v1312_v1 = vld [vmem:[%s1495_s9 + $0x114] sm:$0xf0]  ;;  %v1278_v2 = vld [vmem:[%s1495_s9 + $0xc] sm:$0xf]  ;;  %v1022_v6 = vor.u32 %v1280_v62, %v1021_v61 }
  0x49   : > { %739 = vmatpush.bf16.msrb.mxu0 %v1102_v8  ;;  %v1023_v3 = vld [vmem:[%s1495_s9 + $0x18] sm:$0xf0]  ;;  %v1310_v4 = vld [vmem:[%s1495_s9 + $0x10c] sm:$0xf]  ;;  %v1150_v7 = vor.u32 %v1312_v1, %v1149_v63 }
  0x4a   : > { %753 = vmatpush.bf16.msrb.mxu1 %v1230_v9  ;;  %767 = vmatpush.bf16.msrb.mxu2 %v1106_v10  ;;  %v1151_v5 = vld [vmem:[%s1495_s9 + $0x118] sm:$0xf0]  ;;  %v1026_v8 = vor.u32 %v1278_v2, %v1023_v3 }
  0x4b   : > { %781 = vmatpush.bf16.msrb.mxu3 %v1234_v14  ;;  %v1154_v9 = vor.u32 %v1310_v4, %v1151_v5 }
  0x4d   : > { %740 = vmatpush.bf16.msrb.mxu0 %v1086_v20 }
  0x4e   : > { %754 = vmatpush.bf16.msrb.mxu1 %v1214_v21  ;;  %768 = vmatpush.bf16.msrb.mxu2 %v1090_v22 }
  0x4f   : > { %782 = vmatpush.bf16.msrb.mxu3 %v1218_v26 }
  0x51   : > { %741 = vmatpush.bf16.msrb.mxu0 %v1070_v32 }
  0x52   : > { %755 = vmatpush.bf16.msrb.mxu1 %v1198_v33  ;;  %769 = vmatpush.bf16.msrb.mxu2 %v1074_v34 }
  0x53   : > { %783 = vmatpush.bf16.msrb.mxu3 %v1202_v38 }
  0x55   : > { %742 = vmatpush.bf16.msrb.mxu0 %v1054_v44 }
  0x56   : > { %756 = vmatpush.bf16.msrb.mxu1 %v1182_v45  ;;  %770 = vmatpush.bf16.msrb.mxu2 %v1058_v46 }
  0x57   : > { %784 = vmatpush.bf16.msrb.mxu3 %v1186_v50 }
  0x59   : > { %743 = vmatpush.bf16.msrb.mxu0 %v1038_v57 }
  0x5a   : > { %757 = vmatpush.bf16.msrb.mxu1 %v1166_v58  ;;  %771 = vmatpush.bf16.msrb.mxu2 %v1042_v60 }
  0x5b   : > { %785 = vmatpush.bf16.msrb.mxu3 %v1170_v0 }
  0x5d   : > { %744 = vmatpush.bf16.msrb.mxu0 %v1022_v6 }
  0x5e   : > { %758 = vmatpush.bf16.msrb.mxu1 %v1150_v7  ;;  %772 = vmatpush.bf16.msrb.mxu2 %v1026_v8 }
  0x5f   : > { %786 = vmatpush.bf16.msrb.mxu3 %v1154_v9 }
  0x60   : > { %745 = vmatmul.bf16.vlgmr.msrb.gmra.mxu0 %v1579_v56 }
  0x61   : > { %759 = vmatmul.bf16.vlgmr.msrb.gmra.mxu1 %v1583_v59  ;;  %773 = vmatmul.bf16.vlgmr.msrb.gmra.mxu2 %v1579_v56 }
  0x62   : > { %787 = vmatmul.bf16.vlgmr.msrb.gmra.mxu3 %v1583_v59 }
  0xbd   : > { %v690_v10 = vpop.f32.mrf.mxu0 }
  0xc0   : > { %v704_v11 = vpop.f32.mrf.mxu1 }
  0xc1   : > { %v1641_v12 = vadd.f32 %v704_v11, %v690_v10 }
  0xc4   : > { %v718_v13 = vpop.f32.mrf.mxu2 }
  0xc5   : > { %v692_v16 = vpop.f32.mrf.mxu0 }
  0xc7   : > { %v732_v14 = vpop.f32.mrf.mxu3 }
  0xc8   : > { %v1643_v15 = vadd.f32 %v732_v14, %v718_v13  ;;  %v706_v17 = vpop.f32.mrf.mxu1 }
  0xc9   : > { %v1645_v18 = vadd.f32 %v706_v17, %v692_v16 }
  0xcc   : > { %v720_v19 = vpop.f32.mrf.mxu2 }
  0xcf   : > { %v734_v20 = vpop.f32.mrf.mxu3 }
  0xd0   : > { %v1647_v21 = vadd.f32 %v734_v20, %v720_v19 }
  0xdd   : > { %v746_v22 = vpop.f32.mrf.mxu0 }
  0xde   : > { %v760_v56 = vpop.f32.mrf.mxu1 }
  0xdf   : > { %v1649_v23 = vadd.f32 %v760_v56, %v746_v22 }
  0xe4   : > { %v774_v59 = vpop.f32.mrf.mxu2 }
  0xe5   : > { %v788_v24 = vpop.f32.mrf.mxu3  ;;  %v748_v25 = vpop.f32.mrf.mxu0 }
  0xe6   : > { %v1651_v26 = vadd.f32 %v788_v24, %v774_v59  ;;  %v762_v27 = vpop.f32.mrf.mxu1 }
  0xe7   : > { %v1653_v28 = vadd.f32 %v762_v27, %v748_v25 }
  0xea   : > { %796 = sbr.rel (%p1267_p10) target bundleno = 247 (0xf7), region = 78 }
  0xec   : > { %v776_v29 = vpop.f32.mrf.mxu2 }
  0xed   : > { %v790_v30 = vpop.f32.mrf.mxu3 }
  0xee   : > { %v1655_v31 = vadd.f32 %v790_v30, %v776_v29 }
  0xef   : > { %797 = vst [vmem:[%s1830_s4] sm:$0xff] %v1641_v12 }
  0xf0   : > { %798 = vst [vmem:[%s1830_s4 + $0x8] sm:$0xff] %v1643_v15 }
  0xf1   : > { %799 = vst [vmem:[%s1830_s4 + $0x10] sm:$0xff] %v1649_v23 }
  0xf2   : > { %800 = vst [vmem:[%s1830_s4 + $0x18] sm:$0xff] %v1651_v26 }
  0xf3   : > { %801 = vst [vmem:[%s1830_s4 + $0x20] sm:$0xff] %v1645_v18 }
  0xf4   : > { %802 = vst [vmem:[%s1830_s4 + $0x28] sm:$0xff] %v1647_v21 }
  0xf5   : > { %803 = vst [vmem:[%s1830_s4 + $0x30] sm:$0xff] %v1653_v28 }
  0xf6   : > { %804 = vst [vmem:[%s1830_s4 + $0x38] sm:$0xff] %v1655_v31 }
  0xf7 PF: > { %p805_p11 = scmp.gt.s32.totalorder %s1411_s17, 0  ;;  %p806_p12 = scmp.lt.s32.totalorder %s1411_s17, 8 }
  0xf9   : > { %p807_p13 = pnand %p806_p12, %p805_p11 }
  0xfb   : > { %810 = sbr.rel (%p807_p13) target bundleno = 267 (0x10b), region = 82 }
 0x100   : > { %v811_v32 = vld [vmem:[%s1830_s4] sm:$0xff]  ;;  %v812_v33 = vld [vmem:[%s1830_s4 + $0x8] sm:$0xff]  ;;  %v813_v34 = vld [vmem:[%s1830_s4 + $0x10] sm:$0xff] }
 0x101   : > { %v819_v35 = vadd.f32 %v811_v32, %v1641_v12  ;;  %v820_v36 = vadd.f32 %v812_v33, %v1643_v15  ;;  %v821_v37 = vadd.f32 %v813_v34, %v1649_v23  ;;  %v814_v38 = vld [vmem:[%s1830_s4 + $0x18] sm:$0xff]  ;;  %v815_v39 = vld [vmem:[%s1830_s4 + $0x20] sm:$0xff]  ;;  %v816_v40 = vld [vmem:[%s1830_s4 + $0x28] sm:$0xff] }
 0x102   : > { %v822_v41 = vadd.f32 %v814_v38, %v1651_v26  ;;  %v817_v42 = vld [vmem:[%s1830_s4 + $0x30] sm:$0xff]  ;;  %v823_v43 = vadd.f32 %v815_v39, %v1645_v18  ;;  %v818_v44 = vld [vmem:[%s1830_s4 + $0x38] sm:$0xff]  ;;  %v824_v45 = vadd.f32 %v816_v40, %v1647_v21 }
 0x103   : > { %827 = vst [vmem:[%s1830_s4] sm:$0xff] %v819_v35  ;;  %v825_v46 = vadd.f32 %v817_v42, %v1653_v28  ;;  %v826_v47 = vadd.f32 %v818_v44, %v1655_v31 }
 0x104   : > { %828 = vst [vmem:[%s1830_s4 + $0x8] sm:$0xff] %v820_v36 }
 0x105   : > { %829 = vst [vmem:[%s1830_s4 + $0x10] sm:$0xff] %v821_v37 }
 0x106   : > { %830 = vst [vmem:[%s1830_s4 + $0x18] sm:$0xff] %v822_v41 }
 0x107   : > { %831 = vst [vmem:[%s1830_s4 + $0x20] sm:$0xff] %v823_v43 }
 0x108   : > { %832 = vst [vmem:[%s1830_s4 + $0x28] sm:$0xff] %v824_v45 }
 0x109   : > { %833 = vst [vmem:[%s1830_s4 + $0x30] sm:$0xff] %v825_v46 }
 0x10a   : > { %834 = vst [vmem:[%s1830_s4 + $0x38] sm:$0xff] %v826_v47 }
 0x10b PF: > { %p1268_p0 = scmp.ne.s32.totalorder %s1411_s17, 8 }
 0x10d   : > { %838 = sbr.rel (%p1268_p0) target bundleno = 292 (0x124), region = 86 }
 0x112   : > { %v839_v48 = vld [vmem:[%s1830_s4] sm:$0xff]  ;;  %v840_v54 = vld [vmem:[%s1830_s4 + $0x8] sm:$0xff]  ;;  %v841_v57 = vld [vmem:[%s1830_s4 + $0x10] sm:$0xff] }
 0x113   : > { %v855_v49 = vld [vmem:[%s1828_s2] sm:$0xf]  ;;  %v847_v51 = vadd.f32 %v839_v48, %v1641_v12  ;;  %v842_v58 = vld [vmem:[%s1830_s4 + $0x18] sm:$0xff]  ;;  %v848_v60 = vadd.f32 %v840_v54, %v1643_v15  ;;  %v849_v62 = vadd.f32 %v841_v57, %v1649_v23  ;;  %v844_v1 = vld [vmem:[%s1830_s4 + $0x28] sm:$0xff] }
 0x114   : > { %v873_v50 = vld [vmem:[%s1829_s3] sm:$0xf]  ;;  %v857_v52 = vperm.slane %v855_v49, 0  ;;  %v858_v55 = vperm.slane %v855_v49, 1  ;;  %v859_v63 = vperm.slane %v855_v49, 2  ;;  %v845_v2 = vld [vmem:[%s1830_s4 + $0x30] sm:$0xff]  ;;  %v850_v5 = vadd.f32 %v842_v58, %v1651_v26 }
 0x115   : > { %v875_v53 = vperm.slane %v873_v50, 0  ;;  %v876_v61 = vperm.slane %v873_v50, 1  ;;  %v843_v0 = vld [vmem:[%s1830_s4 + $0x20] sm:$0xff]  ;;  %v877_v4 = vperm.slane %v873_v50, 2  ;;  %v860_v6 = vperm.slane %v855_v49, 3  ;;  %v846_v7 = vld [vmem:[%s1830_s4 + $0x38] sm:$0xff] }
 0x116   : > { %v865_v3 = vmul.f32 %v857_v52, %v847_v51  ;;  %v866_v8 = vmul.f32 %v858_v55, %v848_v60  ;;  %v867_v9 = vmul.f32 %v859_v63, %v849_v62  ;;  %v878_v10 = vperm.slane %v873_v50, 3 }
 0x117   : > { %v851_v11 = vadd.f32 %v843_v0, %v1645_v18  ;;  %v868_v13 = vmul.f32 %v860_v6, %v850_v5  ;;  %v852_v14 = vadd.f32 %v844_v1, %v1647_v21  ;;  %v853_v15 = vadd.f32 %v845_v2, %v1653_v28 }
 0x118   : > { %v883_v12 = vadd.f32 %v875_v53, %v865_v3  ;;  %v884_v16 = vadd.f32 %v876_v61, %v866_v8  ;;  %v885_v17 = vadd.f32 %v877_v4, %v867_v9  ;;  %v854_v20 = vadd.f32 %v846_v7, %v1655_v31 }
 0x119   : > { %v869_v19 = vmul.f32 %v857_v52, %v851_v11  ;;  %v886_v56 = vadd.f32 %v878_v10, %v868_v13  ;;  %v870_v23 = vmul.f32 %v858_v55, %v852_v14  ;;  %v871_v59 = vmul.f32 %v859_v63, %v853_v15 }
 0x11a   : > { %v891_v22 = vmax.f32 %v883_v12, 0.0  ;;  %v892_v24 = vmax.f32 %v884_v16, 0.0  ;;  %v893_v25 = vmax.f32 %v885_v17, 0.0  ;;  %v872_v27 = vmul.f32 %v860_v6, %v854_v20 }
 0x11b   : > { %v887_v26 = vadd.f32 %v875_v53, %v869_v19  ;;  %v894_v18 = vmax.f32 %v886_v56, 0.0  ;;  %v888_v21 = vadd.f32 %v876_v61, %v870_v23  ;;  %v889_v28 = vadd.f32 %v877_v4, %v871_v59 }
 0x11c   : > { %899 = vst [vmem:[%s1830_s4] sm:$0xff] %v891_v22  ;;  %v890_v30 = vadd.f32 %v878_v10, %v872_v27 }
 0x11d   : > { %900 = vst [vmem:[%s1830_s4 + $0x8] sm:$0xff] %v892_v24  ;;  %v895_v29 = vmax.f32 %v887_v26, 0.0  ;;  %v896_v31 = vmax.f32 %v888_v21, 0.0  ;;  %v897_v32 = vmax.f32 %v889_v28, 0.0 }
 0x11e   : > { %901 = vst [vmem:[%s1830_s4 + $0x10] sm:$0xff] %v893_v25  ;;  %v898_v33 = vmax.f32 %v890_v30, 0.0 }
 0x11f   : > { %902 = vst [vmem:[%s1830_s4 + $0x18] sm:$0xff] %v894_v18 }
 0x120   : > { %903 = vst [vmem:[%s1830_s4 + $0x20] sm:$0xff] %v895_v29 }
 0x121   : > { %904 = vst [vmem:[%s1830_s4 + $0x28] sm:$0xff] %v896_v31 }
 0x122   : > { %905 = vst [vmem:[%s1830_s4 + $0x30] sm:$0xff] %v897_v32 }
 0x123   : > { %906 = vst [vmem:[%s1830_s4 + $0x38] sm:$0xff] %v898_v33 }
 0x124 PF: > { %s14_s19 = sadd.s32 1, %s1419_s19   ;;  %s1831_s15 = smov %s1407_s16 }
 0x125   : > { %p11_p1 = scmp.ge.s32.totalorder %s14_s19, 11   ;;  %s1832_s16 = smov %s1481_s23 }
 0x126   : > { %s1833_s17 = smov %s1415_s18  ;;  %s1834_s18 = smov %s1836_s20 }
 0x127   :  { %13 = sbr.rel (!%p11_p1) target bundleno = 3 (0x3), region = 124 }

// kernel: alzheimer_resnet_forward.35
= control target key start
LH: loop header
LB: loop body
LE: loop exit
PB: predicated region body
PF: predicated region fallthrough
CT: control target
= control target key end

     0   :  { %s1366_s1 = inlined_call_operand.vmem [shape: bf16[256,512], index: 1, kind: input, shape index: {}]   ;;  %s1367_s0 = inlined_call_operand.vmem [shape: bf16[16,256], index: 0, kind: input, shape index: {}]   ;;  %s1368_s2 = inlined_call_operand.vmem [shape: f32[1,512], index: 2, kind: input, shape index: {}]   ;;  %s1369_s3 = inlined_call_operand.vmem [shape: f32[1,512], index: 3, kind: input, shape index: {}]   ;;  %s1370_s4 = inlined_call_operand.vmem [shape: f32[16,512], index: 4, kind: output, shape index: {}]  }
   0x1   :  { %v695_v0 = vld [vmem:[%s1366_s1 + $0xe0] sm:$0xf]  ;;  %v869_v1 = vld [vmem:[%s1366_s1 + $0xec] sm:$0xf0]  ;;  %v867_v5 = vld [vmem:[%s1366_s1 + $0xe4] sm:$0xf] }
   0x2   :  { %v823_v2 = vld [vmem:[%s1366_s1 + $0x1e0] sm:$0xf]  ;;  %v696_v3 = vor.u32 %v869_v1, %v695_v0  ;;  %v901_v4 = vld [vmem:[%s1366_s1 + $0x1ec] sm:$0xf0]  ;;  %v697_v6 = vld [vmem:[%s1366_s1 + $0xf0] sm:$0xf0] }
   0x3   :  { %v824_v7 = vor.u32 %v901_v4, %v823_v2  ;;  %v700_v8 = vor.u32 %v867_v5, %v697_v6  ;;  %v899_v9 = vld [vmem:[%s1366_s1 + $0x1e4] sm:$0xf]  ;;  %v825_v10 = vld [vmem:[%s1366_s1 + $0x1f0] sm:$0xf0]  ;;  %v679_v11 = vld [vmem:[%s1366_s1 + $0xc0] sm:$0xf] }
   0x4   :  { %413 = vmatpush.bf16.msra.mxu0 %v696_v3  ;;  %v828_v12 = vor.u32 %v899_v9, %v825_v10  ;;  %v865_v13 = vld [vmem:[%s1366_s1 + $0xcc] sm:$0xf0]  ;;  %v807_v14 = vld [vmem:[%s1366_s1 + $0x1c0] sm:$0xf]  ;;  %v863_v18 = vld [vmem:[%s1366_s1 + $0xc4] sm:$0xf] }
   0x5   :  { %v897_v15 = vld [vmem:[%s1366_s1 + $0x1cc] sm:$0xf0]  ;;  %427 = vmatpush.bf16.msra.mxu1 %v824_v7  ;;  %441 = vmatpush.bf16.msra.mxu2 %v700_v8  ;;  %v680_v16 = vor.u32 %v865_v13, %v679_v11  ;;  %v681_v19 = vld [vmem:[%s1366_s1 + $0xd0] sm:$0xf0]  ;;  %v895_v20 = vld [vmem:[%s1366_s1 + $0x1c4] sm:$0xf] }
   0x6   :  { %v808_v17 = vor.u32 %v897_v15, %v807_v14  ;;  %455 = vmatpush.bf16.msra.mxu3 %v828_v12  ;;  %v684_v21 = vor.u32 %v863_v18, %v681_v19  ;;  %v809_v22 = vld [vmem:[%s1366_s1 + $0x1d0] sm:$0xf0]  ;;  %v663_v23 = vld [vmem:[%s1366_s1 + $0xa0] sm:$0xf]  ;;  %v861_v24 = vld [vmem:[%s1366_s1 + $0xac] sm:$0xf0] }
   0x7   :  { %v812_v25 = vor.u32 %v895_v20, %v809_v22  ;;  %v791_v26 = vld [vmem:[%s1366_s1 + $0x1a0] sm:$0xf]  ;;  %v893_v27 = vld [vmem:[%s1366_s1 + $0x1ac] sm:$0xf0]  ;;  %v859_v28 = vld [vmem:[%s1366_s1 + $0xa4] sm:$0xf]  ;;  %v664_v29 = vor.u32 %v861_v24, %v663_v23 }
   0x8   :  { %414 = vmatpush.bf16.msra.mxu0 %v680_v16  ;;  %v665_v30 = vld [vmem:[%s1366_s1 + $0xb0] sm:$0xf0]  ;;  %v891_v31 = vld [vmem:[%s1366_s1 + $0x1a4] sm:$0xf]  ;;  %v792_v33 = vor.u32 %v893_v27, %v791_v26  ;;  %v647_v35 = vld [vmem:[%s1366_s1 + $0x80] sm:$0xf] }
   0x9   :  { %v793_v32 = vld [vmem:[%s1366_s1 + $0x1b0] sm:$0xf0]  ;;  %428 = vmatpush.bf16.msra.mxu1 %v808_v17  ;;  %442 = vmatpush.bf16.msra.mxu2 %v684_v21  ;;  %v668_v34 = vor.u32 %v859_v28, %v665_v30  ;;  %v857_v36 = vld [vmem:[%s1366_s1 + $0x8c] sm:$0xf0]  ;;  %v775_v37 = vld [vmem:[%s1366_s1 + $0x180] sm:$0xf] }
   0xa   :  { %456 = vmatpush.bf16.msra.mxu3 %v812_v25  ;;  %v796_v38 = vor.u32 %v891_v31, %v793_v32  ;;  %v889_v39 = vld [vmem:[%s1366_s1 + $0x18c] sm:$0xf0]  ;;  %v855_v40 = vld [vmem:[%s1366_s1 + $0x84] sm:$0xf]  ;;  %v649_v41 = vld [vmem:[%s1366_s1 + $0x90] sm:$0xf0]  ;;  %v648_v44 = vor.u32 %v857_v36, %v647_v35 }
   0xb   :  { %v887_v42 = vld [vmem:[%s1366_s1 + $0x184] sm:$0xf]  ;;  %v777_v43 = vld [vmem:[%s1366_s1 + $0x190] sm:$0xf0]  ;;  %v776_v45 = vor.u32 %v889_v39, %v775_v37  ;;  %v652_v46 = vor.u32 %v855_v40, %v649_v41  ;;  %v631_v47 = vld [vmem:[%s1366_s1 + $0x60] sm:$0xf] }
   0xc   :  { %415 = vmatpush.bf16.msra.mxu0 %v664_v29  ;;  %v853_v48 = vld [vmem:[%s1366_s1 + $0x6c] sm:$0xf0]  ;;  %v759_v49 = vld [vmem:[%s1366_s1 + $0x160] sm:$0xf]  ;;  %v780_v50 = vor.u32 %v887_v42, %v777_v43  ;;  %v851_v52 = vld [vmem:[%s1366_s1 + $0x64] sm:$0xf] }
   0xd   :  { %429 = vmatpush.bf16.msra.mxu1 %v792_v33  ;;  %443 = vmatpush.bf16.msra.mxu2 %v668_v34  ;;  %v885_v51 = vld [vmem:[%s1366_s1 + $0x16c] sm:$0xf0]  ;;  %v633_v53 = vld [vmem:[%s1366_s1 + $0x70] sm:$0xf0]  ;;  %v883_v54 = vld [vmem:[%s1366_s1 + $0x164] sm:$0xf]  ;;  %v632_v56 = vor.u32 %v853_v48, %v631_v47 }
   0xe   :  { %457 = vmatpush.bf16.msra.mxu3 %v796_v38  ;;  %v761_v55 = vld [vmem:[%s1366_s1 + $0x170] sm:$0xf0]  ;;  %v760_v57 = vor.u32 %v885_v51, %v759_v49  ;;  %v636_v58 = vor.u32 %v851_v52, %v633_v53  ;;  %v615_v59 = vld [vmem:[%s1366_s1 + $0x40] sm:$0xf]  ;;  %v849_v60 = vld [vmem:[%s1366_s1 + $0x4c] sm:$0xf0] }
   0xf   :  { %v743_v61 = vld [vmem:[%s1366_s1 + $0x140] sm:$0xf]  ;;  %v764_v62 = vor.u32 %v883_v54, %v761_v55  ;;  %v881_v63 = vld [vmem:[%s1366_s1 + $0x14c] sm:$0xf0]  ;;  %v847_v0 = vld [vmem:[%s1366_s1 + $0x44] sm:$0xf]  ;;  %v616_v4 = vor.u32 %v849_v60, %v615_v59 }
  0x10   :  { %416 = vmatpush.bf16.msra.mxu0 %v648_v44  ;;  %v617_v1 = vld [vmem:[%s1366_s1 + $0x50] sm:$0xf0]  ;;  %v879_v2 = vld [vmem:[%s1366_s1 + $0x144] sm:$0xf]  ;;  %v744_v5 = vor.u32 %v881_v63, %v743_v61  ;;  %v599_v7 = vld [vmem:[%s1366_s1 + $0x20] sm:$0xf] }
  0x11   :  { %430 = vmatpush.bf16.msra.mxu1 %v776_v45  ;;  %444 = vmatpush.bf16.msra.mxu2 %v652_v46  ;;  %v745_v3 = vld [vmem:[%s1366_s1 + $0x150] sm:$0xf0]  ;;  %v620_v6 = vor.u32 %v847_v0, %v617_v1  ;;  %v845_v8 = vld [vmem:[%s1366_s1 + $0x2c] sm:$0xf0]  ;;  %v727_v9 = vld [vmem:[%s1366_s1 + $0x120] sm:$0xf] }
  0x12   :  { %458 = vmatpush.bf16.msra.mxu3 %v780_v50  ;;  %v748_v10 = vor.u32 %v879_v2, %v745_v3  ;;  %v877_v11 = vld [vmem:[%s1366_s1 + $0x12c] sm:$0xf0]  ;;  %v843_v12 = vld [vmem:[%s1366_s1 + $0x24] sm:$0xf]  ;;  %v601_v13 = vld [vmem:[%s1366_s1 + $0x30] sm:$0xf0]  ;;  %v600_v16 = vor.u32 %v845_v8, %v599_v7 }
  0x13   :  { %v875_v14 = vld [vmem:[%s1366_s1 + $0x124] sm:$0xf]  ;;  %v729_v15 = vld [vmem:[%s1366_s1 + $0x130] sm:$0xf0]  ;;  %v583_v17 = vld [vmem:[%s1366_s1] sm:$0xf]  ;;  %v728_v20 = vor.u32 %v877_v11, %v727_v9  ;;  %v604_v21 = vor.u32 %v843_v12, %v601_v13 }
  0x14   :  { %417 = vmatpush.bf16.msra.mxu0 %v632_v56  ;;  %v841_v18 = vld [vmem:[%s1366_s1 + $0xc] sm:$0xf0]  ;;  %v711_v19 = vld [vmem:[%s1366_s1 + $0x100] sm:$0xf]  ;;  %v839_v23 = vld [vmem:[%s1366_s1 + $0x4] sm:$0xf]  ;;  %v732_v25 = vor.u32 %v875_v14, %v729_v15 }
  0x15   :  { %431 = vmatpush.bf16.msra.mxu1 %v760_v57  ;;  %445 = vmatpush.bf16.msra.mxu2 %v636_v58  ;;  %v873_v22 = vld [vmem:[%s1366_s1 + $0x10c] sm:$0xf0]  ;;  %v585_v24 = vld [vmem:[%s1366_s1 + $0x10] sm:$0xf0]  ;;  %v871_v26 = vld [vmem:[%s1366_s1 + $0x104] sm:$0xf]  ;;  %v584_v32 = vor.u32 %v841_v18, %v583_v17 }
  0x16   :  { %459 = vmatpush.bf16.msra.mxu3 %v764_v62  ;;  %v713_v27 = vld [vmem:[%s1366_s1 + $0x110] sm:$0xf0]  ;;  %v703_v28 = vld [vmem:[%s1366_s1 + $0xe8] sm:$0xf]  ;;  %v870_v29 = vld [vmem:[%s1366_s1 + $0xf4] sm:$0xf0]  ;;  %v712_v36 = vor.u32 %v873_v22, %v711_v19  ;;  %v588_v37 = vor.u32 %v839_v23, %v585_v24 }
  0x17   :  { %v831_v30 = vld [vmem:[%s1366_s1 + $0x1e8] sm:$0xf]  ;;  %v902_v31 = vld [vmem:[%s1366_s1 + $0x1f4] sm:$0xf0]  ;;  %v868_v33 = vld [vmem:[%s1366_s1 + $0xec] sm:$0xf]  ;;  %v716_v41 = vor.u32 %v871_v26, %v713_v27  ;;  %v704_v42 = vor.u32 %v870_v29, %v703_v28 }
  0x18   :  { %418 = vmatpush.bf16.msra.mxu0 %v616_v4  ;;  %v705_v34 = vld [vmem:[%s1366_s1 + $0xf8] sm:$0xf0]  ;;  %v900_v35 = vld [vmem:[%s1366_s1 + $0x1ec] sm:$0xf]  ;;  %v575_v39 = vld [vmem:[%s1367_s0] sm:$0xf]  ;;  %v832_v45 = vor.u32 %v902_v31, %v831_v30 }
  0x19   :  { %432 = vmatpush.bf16.msra.mxu1 %v744_v5  ;;  %446 = vmatpush.bf16.msra.mxu2 %v620_v6  ;;  %v833_v38 = vld [vmem:[%s1366_s1 + $0x1f8] sm:$0xf0]  ;;  %v838_v40 = vld [vmem:[%s1367_s0 + $0x4] sm:$0xf0]  ;;  %v837_v43 = vld [vmem:[%s1367_s0 + $0x4] sm:$0xf]  ;;  %v708_v46 = vor.u32 %v868_v33, %v705_v34 }
  0x1a   :  { %460 = vmatpush.bf16.msra.mxu3 %v748_v10  ;;  %v577_v44 = vld [vmem:[%s1367_s0 + $0x8] sm:$0xf0]  ;;  %v687_v47 = vld [vmem:[%s1366_s1 + $0xc8] sm:$0xf]  ;;  %v866_v48 = vld [vmem:[%s1366_s1 + $0xd4] sm:$0xf0]  ;;  %v836_v50 = vor.u32 %v900_v35, %v833_v38  ;;  %v1174_v54 = vor.u32 %v838_v40, %v575_v39 }
  0x1b   :  { %v815_v49 = vld [vmem:[%s1366_s1 + $0x1c8] sm:$0xf]  ;;  %v898_v51 = vld [vmem:[%s1366_s1 + $0x1d4] sm:$0xf0]  ;;  %v864_v52 = vld [vmem:[%s1366_s1 + $0xcc] sm:$0xf]  ;;  %v1182_v57 = vor.u32 %v837_v43, %v577_v44  ;;  %v688_v58 = vor.u32 %v866_v48, %v687_v47 }
  0x1c   :  { %419 = vmatpush.bf16.msra.mxu0 %v600_v16  ;;  %v689_v53 = vld [vmem:[%s1366_s1 + $0xd8] sm:$0xf0]  ;;  %v896_v55 = vld [vmem:[%s1366_s1 + $0x1cc] sm:$0xf]  ;;  %v816_v59 = vor.u32 %v898_v51, %v815_v49  ;;  %v671_v61 = vld [vmem:[%s1366_s1 + $0xa8] sm:$0xf] }
  0x1d   :  { %433 = vmatpush.bf16.msra.mxu1 %v728_v20  ;;  %447 = vmatpush.bf16.msra.mxu2 %v604_v21  ;;  %v817_v56 = vld [vmem:[%s1366_s1 + $0x1d8] sm:$0xf0]  ;;  %v692_v60 = vor.u32 %v864_v52, %v689_v53  ;;  %v862_v62 = vld [vmem:[%s1366_s1 + $0xb4] sm:$0xf0]  ;;  %v799_v63 = vld [vmem:[%s1366_s1 + $0x1a8] sm:$0xf] }
  0x1e   :  { %461 = vmatpush.bf16.msra.mxu3 %v732_v25  ;;  %v820_v0 = vor.u32 %v896_v55, %v817_v56  ;;  %v894_v1 = vld [vmem:[%s1366_s1 + $0x1b4] sm:$0xf0]  ;;  %v860_v2 = vld [vmem:[%s1366_s1 + $0xac] sm:$0xf]  ;;  %v673_v3 = vld [vmem:[%s1366_s1 + $0xb8] sm:$0xf0]  ;;  %v672_v6 = vor.u32 %v862_v62, %v671_v61 }
  0x1f   :  { %v892_v4 = vld [vmem:[%s1366_s1 + $0x1ac] sm:$0xf]  ;;  %v801_v5 = vld [vmem:[%s1366_s1 + $0x1b8] sm:$0xf0]  ;;  %v800_v7 = vor.u32 %v894_v1, %v799_v63  ;;  %v676_v8 = vor.u32 %v860_v2, %v673_v3  ;;  %v655_v9 = vld [vmem:[%s1366_s1 + $0x88] sm:$0xf] }
  0x20   :  { %420 = vmatpush.bf16.msra.mxu0 %v584_v32  ;;  %v858_v10 = vld [vmem:[%s1366_s1 + $0x94] sm:$0xf0]  ;;  %v783_v11 = vld [vmem:[%s1366_s1 + $0x188] sm:$0xf]  ;;  %v804_v12 = vor.u32 %v892_v4, %v801_v5  ;;  %v856_v14 = vld [vmem:[%s1366_s1 + $0x8c] sm:$0xf] }
  0x21   :  { %434 = vmatpush.bf16.msra.mxu1 %v712_v36  ;;  %448 = vmatpush.bf16.msra.mxu2 %v588_v37  ;;  %v890_v13 = vld [vmem:[%s1366_s1 + $0x194] sm:$0xf0]  ;;  %v657_v15 = vld [vmem:[%s1366_s1 + $0x98] sm:$0xf0]  ;;  %v888_v16 = vld [vmem:[%s1366_s1 + $0x18c] sm:$0xf]  ;;  %v656_v18 = vor.u32 %v858_v10, %v655_v9 }
  0x22   :  { %462 = vmatpush.bf16.msra.mxu3 %v716_v41  ;;  %v785_v17 = vld [vmem:[%s1366_s1 + $0x198] sm:$0xf0]  ;;  %v784_v19 = vor.u32 %v890_v13, %v783_v11  ;;  %v660_v20 = vor.u32 %v856_v14, %v657_v15  ;;  %v639_v21 = vld [vmem:[%s1366_s1 + $0x68] sm:$0xf]  ;;  %v854_v22 = vld [vmem:[%s1366_s1 + $0x74] sm:$0xf0] }
  0x23   :  { %421 = vmatmul.bf16.vlgmr.msra.gmra.mxu0 %v1174_v54  ;;  %v767_v23 = vld [vmem:[%s1366_s1 + $0x168] sm:$0xf]  ;;  %v788_v24 = vor.u32 %v888_v16, %v785_v17  ;;  %v886_v25 = vld [vmem:[%s1366_s1 + $0x174] sm:$0xf0]  ;;  %v852_v26 = vld [vmem:[%s1366_s1 + $0x6c] sm:$0xf]  ;;  %v640_v30 = vor.u32 %v854_v22, %v639_v21 }
  0x24   :  { %469 = vmatpush.bf16.msrb.mxu0 %v704_v42  ;;  %449 = vmatmul.bf16.vlgmr.msra.gmra.mxu2 %v1174_v54  ;;  %v641_v27 = vld [vmem:[%s1366_s1 + $0x78] sm:$0xf0]  ;;  %v884_v28 = vld [vmem:[%s1366_s1 + $0x16c] sm:$0xf]  ;;  %v768_v31 = vor.u32 %v886_v25, %v767_v23  ;;  %v623_v33 = vld [vmem:[%s1366_s1 + $0x48] sm:$0xf] }
  0x25   :  { %483 = vmatpush.bf16.msrb.mxu1 %v832_v45  ;;  %497 = vmatpush.bf16.msrb.mxu2 %v708_v46  ;;  %v769_v29 = vld [vmem:[%s1366_s1 + $0x178] sm:$0xf0]  ;;  %v644_v32 = vor.u32 %v852_v26, %v641_v27  ;;  %v850_v34 = vld [vmem:[%s1366_s1 + $0x54] sm:$0xf0]  ;;  %v751_v35 = vld [vmem:[%s1366_s1 + $0x148] sm:$0xf] }
  0x26   :  { %511 = vmatpush.bf16.msrb.mxu3 %v836_v50  ;;  %435 = vmatmul.bf16.vlgmr.msra.gmra.mxu1 %v1182_v57  ;;  %v772_v36 = vor.u32 %v884_v28, %v769_v29  ;;  %v882_v37 = vld [vmem:[%s1366_s1 + $0x154] sm:$0xf0]  ;;  %v848_v38 = vld [vmem:[%s1366_s1 + $0x4c] sm:$0xf]  ;;  %v625_v39 = vld [vmem:[%s1366_s1 + $0x58] sm:$0xf0]  ;;  %v624_v42 = vor.u32 %v850_v34, %v623_v33 }
  0x27   :  { %463 = vmatmul.bf16.vlgmr.msra.gmra.mxu3 %v1182_v57  ;;  %v880_v40 = vld [vmem:[%s1366_s1 + $0x14c] sm:$0xf]  ;;  %v753_v41 = vld [vmem:[%s1366_s1 + $0x158] sm:$0xf0]  ;;  %v752_v43 = vor.u32 %v882_v37, %v751_v35  ;;  %v628_v44 = vor.u32 %v848_v38, %v625_v39  ;;  %v607_v45 = vld [vmem:[%s1366_s1 + $0x28] sm:$0xf] }
  0x28   :  { %470 = vmatpush.bf16.msrb.mxu0 %v688_v58  ;;  %v846_v46 = vld [vmem:[%s1366_s1 + $0x34] sm:$0xf0]  ;;  %v735_v47 = vld [vmem:[%s1366_s1 + $0x128] sm:$0xf]  ;;  %v756_v48 = vor.u32 %v880_v40, %v753_v41  ;;  %v844_v50 = vld [vmem:[%s1366_s1 + $0x2c] sm:$0xf] }
  0x29   :  { %484 = vmatpush.bf16.msrb.mxu1 %v816_v59  ;;  %498 = vmatpush.bf16.msrb.mxu2 %v692_v60  ;;  %v878_v49 = vld [vmem:[%s1366_s1 + $0x134] sm:$0xf0]  ;;  %v609_v51 = vld [vmem:[%s1366_s1 + $0x38] sm:$0xf0]  ;;  %v876_v52 = vld [vmem:[%s1366_s1 + $0x12c] sm:$0xf]  ;;  %v608_v55 = vor.u32 %v846_v46, %v607_v45 }
  0x2a   :  { %512 = vmatpush.bf16.msrb.mxu3 %v820_v0  ;;  %v737_v53 = vld [vmem:[%s1366_s1 + $0x138] sm:$0xf0]  ;;  %v736_v56 = vor.u32 %v878_v49, %v735_v47  ;;  %v612_v58 = vor.u32 %v844_v50, %v609_v51  ;;  %v591_v59 = vld [vmem:[%s1366_s1 + $0x8] sm:$0xf]  ;;  %v842_v60 = vld [vmem:[%s1366_s1 + $0x14] sm:$0xf0] }
  0x2b   :  { %v719_v61 = vld [vmem:[%s1366_s1 + $0x108] sm:$0xf]  ;;  %v740_v62 = vor.u32 %v876_v52, %v737_v53  ;;  %v874_v63 = vld [vmem:[%s1366_s1 + $0x114] sm:$0xf0]  ;;  %v840_v0 = vld [vmem:[%s1366_s1 + $0xc] sm:$0xf]  ;;  %v592_v4 = vor.u32 %v842_v60, %v591_v59 }
  0x2c   :  { %471 = vmatpush.bf16.msrb.mxu0 %v672_v6  ;;  %v593_v1 = vld [vmem:[%s1366_s1 + $0x18] sm:$0xf0]  ;;  %v872_v2 = vld [vmem:[%s1366_s1 + $0x10c] sm:$0xf]  ;;  %v720_v5 = vor.u32 %v874_v63, %v719_v61  ;;  %v543_v9 = vld [vmem:[%s1369_s3] sm:$0xf] }
  0x2d   :  { %485 = vmatpush.bf16.msrb.mxu1 %v800_v7  ;;  %499 = vmatpush.bf16.msrb.mxu2 %v676_v8  ;;  %v721_v3 = vld [vmem:[%s1366_s1 + $0x118] sm:$0xf0]  ;;  %v596_v6 = vor.u32 %v840_v0, %v593_v1  ;;  %v525_v8 = vld [vmem:[%s1368_s2] sm:$0xf]  ;;  %v545_v14 = vperm.slane %v543_v9, 0 }
  0x2e   :  { %513 = vmatpush.bf16.msrb.mxu3 %v804_v12  ;;  %v724_v7 = vor.u32 %v872_v2, %v721_v3  ;;  %v527_v11 = vperm.slane %v525_v8, 0  ;;  %v528_v17 = vperm.slane %v525_v8, 1  ;;  %v529_v33 = vperm.slane %v525_v8, 2 }
  0x2f   :  { %v530_v40 = vperm.slane %v525_v8, 3 }
  0x30   :  { %472 = vmatpush.bf16.msrb.mxu0 %v656_v18 }
  0x31   :  { %486 = vmatpush.bf16.msrb.mxu1 %v784_v19  ;;  %500 = vmatpush.bf16.msrb.mxu2 %v660_v20 }
  0x32   :  { %514 = vmatpush.bf16.msrb.mxu3 %v788_v24 }
  0x34   :  { %473 = vmatpush.bf16.msrb.mxu0 %v640_v30 }
  0x35   :  { %487 = vmatpush.bf16.msrb.mxu1 %v768_v31  ;;  %501 = vmatpush.bf16.msrb.mxu2 %v644_v32 }
  0x36   :  { %515 = vmatpush.bf16.msrb.mxu3 %v772_v36  ;;  %v547_v36 = vperm.slane %v543_v9, 2 }
  0x38   :  { %474 = vmatpush.bf16.msrb.mxu0 %v624_v42 }
  0x39   :  { %488 = vmatpush.bf16.msrb.mxu1 %v752_v43  ;;  %502 = vmatpush.bf16.msrb.mxu2 %v628_v44  ;;  %v548_v44 = vperm.slane %v543_v9, 3 }
  0x3a   :  { %516 = vmatpush.bf16.msrb.mxu3 %v756_v48 }
  0x3c   :  { %475 = vmatpush.bf16.msrb.mxu0 %v608_v55 }
  0x3d   :  { %489 = vmatpush.bf16.msrb.mxu1 %v736_v56  ;;  %503 = vmatpush.bf16.msrb.mxu2 %v612_v58 }
  0x3e   :  { %517 = vmatpush.bf16.msrb.mxu3 %v740_v62 }
  0x40   :  { %476 = vmatpush.bf16.msrb.mxu0 %v592_v4 }
  0x41   :  { %490 = vmatpush.bf16.msrb.mxu1 %v720_v5  ;;  %504 = vmatpush.bf16.msrb.mxu2 %v596_v6 }
  0x42   :  { %518 = vmatpush.bf16.msrb.mxu3 %v724_v7 }
  0x43   :  { %477 = vmatmul.bf16.vlgmr.msrb.gmra.mxu0 %v1174_v54 }
  0x44   :  { %491 = vmatmul.bf16.vlgmr.msrb.gmra.mxu1 %v1182_v57  ;;  %505 = vmatmul.bf16.vlgmr.msrb.gmra.mxu2 %v1174_v54 }
  0x45   :  { %519 = vmatmul.bf16.vlgmr.msrb.gmra.mxu3 %v1182_v57  ;;  %v546_v57 = vperm.slane %v543_v9, 1 }
  0xa0   :  { %v422_v10 = vpop.f32.mrf.mxu0 }
  0xa3   :  { %v436_v12 = vpop.f32.mrf.mxu1 }
  0xa4   :  { %v437_v13 = vadd.f32 %v436_v12, %v422_v10 }
  0xa6   :  { %v535_v15 = vmul.f32 %v527_v11, %v437_v13 }
  0xa7   :  { %v450_v16 = vpop.f32.mrf.mxu2 }
  0xa8   :  { %v553_v18 = vadd.f32 %v545_v14, %v535_v15  ;;  %v424_v20 = vpop.f32.mrf.mxu0 }
  0xaa   :  { %v464_v54 = vpop.f32.mrf.mxu3  ;;  %561 = vst [vmem:[%s1370_s4] sm:$0xff] %v553_v18 }
  0xab   :  { %v465_v19 = vadd.f32 %v464_v54, %v450_v16  ;;  %v438_v22 = vpop.f32.mrf.mxu1 }
  0xac   :  { %v439_v23 = vadd.f32 %v438_v22, %v424_v20 }
  0xad   :  { %v536_v21 = vmul.f32 %v528_v17, %v465_v19 }
  0xae   :  { %v539_v25 = vmul.f32 %v527_v11, %v439_v23 }
  0xaf   :  { %v554_v24 = vadd.f32 %v546_v57, %v536_v21  ;;  %v452_v26 = vpop.f32.mrf.mxu2 }
  0xb0   :  { %v557_v27 = vadd.f32 %v545_v14, %v539_v25 }
  0xb1   :  { %562 = vst [vmem:[%s1370_s4 + $0x8] sm:$0xff] %v554_v24 }
  0xb2   :  { %v466_v28 = vpop.f32.mrf.mxu3  ;;  %565 = vst [vmem:[%s1370_s4 + $0x20] sm:$0xff] %v557_v27 }
  0xb3   :  { %v467_v29 = vadd.f32 %v466_v28, %v452_v26 }
  0xb5   :  { %v540_v30 = vmul.f32 %v528_v17, %v467_v29 }
  0xb7   :  { %v558_v31 = vadd.f32 %v546_v57, %v540_v30 }
  0xb9   :  { %566 = vst [vmem:[%s1370_s4 + $0x28] sm:$0xff] %v558_v31 }
  0xc0   :  { %v478_v32 = vpop.f32.mrf.mxu0 }
  0xc1   :  { %v492_v34 = vpop.f32.mrf.mxu1 }
  0xc2   :  { %v493_v35 = vadd.f32 %v492_v34, %v478_v32 }
  0xc4   :  { %v537_v37 = vmul.f32 %v529_v33, %v493_v35 }
  0xc6   :  { %v555_v38 = vadd.f32 %v547_v36, %v537_v37 }
  0xc7   :  { %v506_v39 = vpop.f32.mrf.mxu2 }
  0xc8   :  { %563 = vst [vmem:[%s1370_s4 + $0x10] sm:$0xff] %v555_v38  ;;  %v520_v41 = vpop.f32.mrf.mxu3  ;;  %v480_v42 = vpop.f32.mrf.mxu0 }
  0xc9   :  { %v521_v43 = vadd.f32 %v520_v41, %v506_v39  ;;  %v494_v45 = vpop.f32.mrf.mxu1 }
  0xca   :  { %v495_v46 = vadd.f32 %v494_v45, %v480_v42 }
  0xcb   :  { %v538_v47 = vmul.f32 %v530_v40, %v521_v43 }
  0xcc   :  { %v541_v48 = vmul.f32 %v529_v33, %v495_v46 }
  0xcd   :  { %v556_v49 = vadd.f32 %v548_v44, %v538_v47 }
  0xce   :  { %v559_v50 = vadd.f32 %v547_v36, %v541_v48 }
  0xcf   :  { %564 = vst [vmem:[%s1370_s4 + $0x18] sm:$0xff] %v556_v49  ;;  %v508_v51 = vpop.f32.mrf.mxu2 }
  0xd0   :  { %567 = vst [vmem:[%s1370_s4 + $0x30] sm:$0xff] %v559_v50  ;;  %v522_v52 = vpop.f32.mrf.mxu3 }
  0xd1   :  { %v523_v53 = vadd.f32 %v522_v52, %v508_v51 }
  0xd3   :  { %v542_v55 = vmul.f32 %v530_v40, %v523_v53 }
  0xd5   :  { %v560_v56 = vadd.f32 %v548_v44, %v542_v55 }
  0xd7   :  { %568 = vst [vmem:[%s1370_s4 + $0x38] sm:$0xff] %v560_v56 }

// kernel: alzheimer_resnet_forward.37
= control target key start
LH: loop header
LB: loop body
LE: loop exit
PB: predicated region body
PF: predicated region fallthrough
CT: control target
= control target key end

     0   :  { %10 = vsyncpa [#allocation4], 0  ;;  %s1610_s18 = smov 0   ;;  %s1612_s19 = smov 0   ;;  %s2042_s0 = inlined_call_operand.vmem [shape: bf16[16,4608], index: 0, kind: input, shape index: {}]   ;;  %s2043_s1 = inlined_call_operand.vmem [shape: bf16[4608,512], index: 1, kind: input, shape index: {}]   ;;  %s2044_s2 = inlined_call_operand.vmem [shape: f32[1,512], index: 2, kind: input, shape index: {}]   ;;  %s2045_s3 = inlined_call_operand.hbm [shape: f32[1,512], index: 3, kind: input, shape index: {}]   ;;  %s2046_s4 = inlined_call_operand.vmem [shape: f32[16,512], index: 4, kind: input, shape index: {}]   ;;  %s2047_s5 = inlined_call_operand.vmem [shape: f32[16,512], index: 5, kind: output, shape index: {}]  }
   0x1   :  { %s1614_s20 = smov 0   ;;  %s1616_s21 = smov 0  }
   0x2   :  { %s1618_s22 = smov 0  }
   0x3 LB: > { %s1102_s23 = sadd.s32 4294967295, %s1577_s22   ;;  %s25_s24 = sadd.s32 1, %s1573_s21  ;;  %s1577_s22 = sphi %s1618_s22, %s16_s22   ;;  %s1573_s21 = sphi %s1616_s21, %s2054_s21   ;;  %s1569_s20 = sphi %s1614_s20, %s2053_s20   ;;  %s1565_s19 = sphi %s1612_s19, %s2052_s19   ;;  %s1561_s18 = sphi %s1610_s18, %s2051_s18  }
   0x4   : > { %p26_p0 = scmp.ge.s32.totalorder %s25_s24, 18  ;;  %s37_s25 = sadd.s32 1, %s1565_s19 }
   0x5   : > { %p44_p1 = scmp.ne.s32.totalorder %s1565_s19, %s1561_s18  ;;  %p45_p2 = scmp.eq.s32.totalorder %s1577_s22, 0 }
   0x6   : > { %s2056_s24 = smov (%p26_p0, %s25_s24), 0  ;;  %p1103_p4 = scmp.ge.s32.totalorder %s1577_s22, 1 }
   0x7   : > { %p1643_p3 = por %p45_p2, %p44_p1  ;;  %s33_s27 = ssub.s32 %s1573_s21, %s2056_s24 }
   0x8   : > { %p181_p5 = scmp.lt.s32.totalorder %s1577_s22, 19  ;;  %p35_p6 = scmp.eq.s32.totalorder %s33_s27, 0 }
   0x9   : > { %p1655_p8 = scmp.eq.s32.totalorder %s1102_s23, 0  ;;  %s196_s8 = sshll.u32 %s2045_s3, 4  ;;  %s197_s8 = int_to_ptr.hbm [resolvable:$true] %s196_s8 }
   0xa   : > { %p1651_p7 = pnand %p1103_p4, %p181_p5  ;;  %s1579_s9 = smov [#allocation3]  }
   0xb   : > { %s1660_s30 = scalar_select %p35_p6, %s1565_s19, %s37_s25  }
   0xc   : > { %p1458_p9 = pneg %p1651_p7  ;;  %s198_s10 = sshll.u32 %s1579_s9, 4  ;;  %s199_s10 = int_to_ptr.vmem [resolvable:$true] %s198_s10 }
   0xd   : > { %p1106_p11 = scmp.ge.s32.totalorder %s1577_s22, 18 }
   0xe   : > { %p1459_p10 = pnand %p1655_p8, %p1458_p9 }
   0xf   : > { %215 = sbr.rel (%p1106_p11) target bundleno = 26 (0x1a), region = 28 }
  0x10   : > { %1461 = dma.hbm_to_vmem [thread:$0]  (!%p1459_p10), %s197_s8, 64, %s199_s10, [#allocation4]  }
  0x14   : > { %218 = sbr.rel (!%p1643_p3) target bundleno = 26 (0x1a), region = 32  ;;  %s220_s11 = sand.u32 (%p1643_p3), 1, %s1565_s19  }
  0x15   : > { %s1386_s12 = sshll.u32 (%p1643_p3), %s1573_s21, 3  ;;  %s1107_s13 = sshll.u32 (%p1643_p3), %s220_s11, 4 }
  0x16   : > { %s228_s16 = scalar_lea.vmem (%p1643_p3), %s2042_s0, %s1386_s12  ;;  %s222_s17 = scalar_lea.vmem (%p1643_p3), [#allocation2], %s1107_s13 }
  0x17   : > { %v259_v0 = vld [vmem:[%s228_s16] sm:$0xff] (%p1643_p3)  ;;  %v261_v1 = vld [vmem:[%s228_s16 + $0x90] sm:$0xff] (%p1643_p3) }
  0x18   : > { %260 = vst [vmem:[%s222_s17] sm:$0xff] (%p1643_p3), %v259_v0 }
  0x19   : > { %262 = vst [vmem:[%s222_s17 + $0x8] sm:$0xff] %v261_v1 }
  0x1a PF: > { %281 = sbr.rel (%p1651_p7) target bundleno = 302 (0x12e), region = 74  ;;  %s284_s23 = sand.u32 (!%p1651_p7), 1, %s1561_s18  }
  0x1b   : > { %s1111_s25 = sshll.u32 (!%p1651_p7), %s284_s23, 4 }
  0x1c   : > { %s1680_s26 = scalar_lea.vmem (!%p1651_p7), [#allocation2], %s1111_s25 }
  0x1f   : > { %1556 = dma.done.wait (%p1655_p8), [#allocation4], 64  }
  0x20   : > { %1558 = vsyncadd (%p1655_p8), [#allocation4], 4294967232  ;;  %s1113_s27 = sshll.u32 %s1569_s20, 5  ;;  %p1380_p13 = scmp.ne.s32.totalorder %s1569_s20, 0 }
  0x21   : > { %p332_p12 = scmp.lt.s32.totalorder %s1113_s27, 575 }
  0x23   : > { %s2058_s27 = smov (!%p332_p12, %s1113_s27), 575 }
  0x24   : > { %s1387_s6 = sshll.u32 %s2058_s27, 4 }
  0x25   : > { %s1690_s28 = scalar_lea.vmem %s2043_s1, %s1387_s6 }
  0x26   : > { %v1238_v2 = vld [vmem:[%s1690_s28 + $0xe0] sm:$0xf]  ;;  %v1420_v3 = vld [vmem:[%s1690_s28 + $0xec] sm:$0xf0]  ;;  %v1418_v7 = vld [vmem:[%s1690_s28 + $0xe4] sm:$0xf] }
  0x27   : > { %v1366_v4 = vld [vmem:[%s1690_s28 + $0x1e0] sm:$0xf]  ;;  %v1239_v5 = vor.u32 %v1420_v3, %v1238_v2  ;;  %v1452_v6 = vld [vmem:[%s1690_s28 + $0x1ec] sm:$0xf0]  ;;  %v1240_v8 = vld [vmem:[%s1690_s28 + $0xf0] sm:$0xf0] }
  0x28   : > { %v1367_v9 = vor.u32 %v1452_v6, %v1366_v4  ;;  %v1243_v10 = vor.u32 %v1418_v7, %v1240_v8  ;;  %v1450_v11 = vld [vmem:[%s1690_s28 + $0x1e4] sm:$0xf]  ;;  %v1368_v12 = vld [vmem:[%s1690_s28 + $0x1f0] sm:$0xf0]  ;;  %v1222_v13 = vld [vmem:[%s1690_s28 + $0xc0] sm:$0xf] }
  0x29   : > { %748 = vmatpush.bf16.msra.mxu0 %v1239_v5  ;;  %v1371_v14 = vor.u32 %v1450_v11, %v1368_v12  ;;  %v1416_v15 = vld [vmem:[%s1690_s28 + $0xcc] sm:$0xf0]  ;;  %v1350_v16 = vld [vmem:[%s1690_s28 + $0x1c0] sm:$0xf]  ;;  %v1414_v20 = vld [vmem:[%s1690_s28 + $0xc4] sm:$0xf] }
  0x2a   : > { %v1448_v17 = vld [vmem:[%s1690_s28 + $0x1cc] sm:$0xf0]  ;;  %762 = vmatpush.bf16.msra.mxu1 %v1367_v9  ;;  %776 = vmatpush.bf16.msra.mxu2 %v1243_v10  ;;  %v1223_v18 = vor.u32 %v1416_v15, %v1222_v13  ;;  %v1224_v21 = vld [vmem:[%s1690_s28 + $0xd0] sm:$0xf0]  ;;  %v1446_v22 = vld [vmem:[%s1690_s28 + $0x1c4] sm:$0xf] }
  0x2b   : > { %v1351_v19 = vor.u32 %v1448_v17, %v1350_v16  ;;  %790 = vmatpush.bf16.msra.mxu3 %v1371_v14  ;;  %v1227_v23 = vor.u32 %v1414_v20, %v1224_v21  ;;  %v1352_v24 = vld [vmem:[%s1690_s28 + $0x1d0] sm:$0xf0]  ;;  %v1206_v25 = vld [vmem:[%s1690_s28 + $0xa0] sm:$0xf]  ;;  %v1412_v26 = vld [vmem:[%s1690_s28 + $0xac] sm:$0xf0] }
  0x2c   : > { %v1355_v27 = vor.u32 %v1446_v22, %v1352_v24  ;;  %v1334_v28 = vld [vmem:[%s1690_s28 + $0x1a0] sm:$0xf]  ;;  %v1444_v29 = vld [vmem:[%s1690_s28 + $0x1ac] sm:$0xf0]  ;;  %v1410_v30 = vld [vmem:[%s1690_s28 + $0xa4] sm:$0xf]  ;;  %v1207_v31 = vor.u32 %v1412_v26, %v1206_v25 }
  0x2d   : > { %749 = vmatpush.bf16.msra.mxu0 %v1223_v18  ;;  %v1208_v32 = vld [vmem:[%s1690_s28 + $0xb0] sm:$0xf0]  ;;  %v1442_v33 = vld [vmem:[%s1690_s28 + $0x1a4] sm:$0xf]  ;;  %v1335_v35 = vor.u32 %v1444_v29, %v1334_v28  ;;  %v1190_v37 = vld [vmem:[%s1690_s28 + $0x80] sm:$0xf] }
  0x2e   : > { %v1336_v34 = vld [vmem:[%s1690_s28 + $0x1b0] sm:$0xf0]  ;;  %763 = vmatpush.bf16.msra.mxu1 %v1351_v19  ;;  %777 = vmatpush.bf16.msra.mxu2 %v1227_v23  ;;  %v1211_v36 = vor.u32 %v1410_v30, %v1208_v32  ;;  %v1408_v38 = vld [vmem:[%s1690_s28 + $0x8c] sm:$0xf0]  ;;  %v1318_v39 = vld [vmem:[%s1690_s28 + $0x180] sm:$0xf] }
  0x2f   : > { %791 = vmatpush.bf16.msra.mxu3 %v1355_v27  ;;  %v1339_v40 = vor.u32 %v1442_v33, %v1336_v34  ;;  %v1440_v41 = vld [vmem:[%s1690_s28 + $0x18c] sm:$0xf0]  ;;  %v1406_v42 = vld [vmem:[%s1690_s28 + $0x84] sm:$0xf]  ;;  %v1192_v43 = vld [vmem:[%s1690_s28 + $0x90] sm:$0xf0]  ;;  %v1191_v46 = vor.u32 %v1408_v38, %v1190_v37 }
  0x30   : > { %v1438_v44 = vld [vmem:[%s1690_s28 + $0x184] sm:$0xf]  ;;  %v1320_v45 = vld [vmem:[%s1690_s28 + $0x190] sm:$0xf0]  ;;  %v1319_v47 = vor.u32 %v1440_v41, %v1318_v39  ;;  %v1195_v48 = vor.u32 %v1406_v42, %v1192_v43  ;;  %v1174_v49 = vld [vmem:[%s1690_s28 + $0x60] sm:$0xf] }
  0x31   : > { %750 = vmatpush.bf16.msra.mxu0 %v1207_v31  ;;  %v1404_v50 = vld [vmem:[%s1690_s28 + $0x6c] sm:$0xf0]  ;;  %v1302_v51 = vld [vmem:[%s1690_s28 + $0x160] sm:$0xf]  ;;  %v1323_v52 = vor.u32 %v1438_v44, %v1320_v45  ;;  %v1402_v54 = vld [vmem:[%s1690_s28 + $0x64] sm:$0xf] }
  0x32   : > { %764 = vmatpush.bf16.msra.mxu1 %v1335_v35  ;;  %778 = vmatpush.bf16.msra.mxu2 %v1211_v36  ;;  %v1436_v53 = vld [vmem:[%s1690_s28 + $0x16c] sm:$0xf0]  ;;  %v1176_v55 = vld [vmem:[%s1690_s28 + $0x70] sm:$0xf0]  ;;  %v1434_v56 = vld [vmem:[%s1690_s28 + $0x164] sm:$0xf]  ;;  %v1175_v58 = vor.u32 %v1404_v50, %v1174_v49 }
  0x33   : > { %792 = vmatpush.bf16.msra.mxu3 %v1339_v40  ;;  %v1304_v57 = vld [vmem:[%s1690_s28 + $0x170] sm:$0xf0]  ;;  %v1303_v59 = vor.u32 %v1436_v53, %v1302_v51  ;;  %v1179_v60 = vor.u32 %v1402_v54, %v1176_v55  ;;  %v1158_v61 = vld [vmem:[%s1690_s28 + $0x40] sm:$0xf]  ;;  %v1400_v62 = vld [vmem:[%s1690_s28 + $0x4c] sm:$0xf0] }
  0x34   : > { %v1286_v63 = vld [vmem:[%s1690_s28 + $0x140] sm:$0xf]  ;;  %v1307_v0 = vor.u32 %v1434_v56, %v1304_v57  ;;  %v1432_v1 = vld [vmem:[%s1690_s28 + $0x14c] sm:$0xf0]  ;;  %v1398_v2 = vld [vmem:[%s1690_s28 + $0x44] sm:$0xf]  ;;  %v1159_v6 = vor.u32 %v1400_v62, %v1158_v61 }
  0x35   : > { %751 = vmatpush.bf16.msra.mxu0 %v1191_v46  ;;  %v1160_v3 = vld [vmem:[%s1690_s28 + $0x50] sm:$0xf0]  ;;  %v1430_v4 = vld [vmem:[%s1690_s28 + $0x144] sm:$0xf]  ;;  %v1287_v7 = vor.u32 %v1432_v1, %v1286_v63  ;;  %v1142_v9 = vld [vmem:[%s1690_s28 + $0x20] sm:$0xf] }
  0x36   : > { %765 = vmatpush.bf16.msra.mxu1 %v1319_v47  ;;  %779 = vmatpush.bf16.msra.mxu2 %v1195_v48  ;;  %v1288_v5 = vld [vmem:[%s1690_s28 + $0x150] sm:$0xf0]  ;;  %v1163_v8 = vor.u32 %v1398_v2, %v1160_v3  ;;  %v1396_v10 = vld [vmem:[%s1690_s28 + $0x2c] sm:$0xf0]  ;;  %v1270_v11 = vld [vmem:[%s1690_s28 + $0x120] sm:$0xf] }
  0x37   : > { %793 = vmatpush.bf16.msra.mxu3 %v1323_v52  ;;  %v1291_v12 = vor.u32 %v1430_v4, %v1288_v5  ;;  %v1428_v13 = vld [vmem:[%s1690_s28 + $0x12c] sm:$0xf0]  ;;  %v1394_v14 = vld [vmem:[%s1690_s28 + $0x24] sm:$0xf]  ;;  %v1144_v15 = vld [vmem:[%s1690_s28 + $0x30] sm:$0xf0]  ;;  %v1143_v18 = vor.u32 %v1396_v10, %v1142_v9 }
  0x38   : > { %v1426_v16 = vld [vmem:[%s1690_s28 + $0x124] sm:$0xf]  ;;  %v1272_v17 = vld [vmem:[%s1690_s28 + $0x130] sm:$0xf0]  ;;  %v1126_v19 = vld [vmem:[%s1690_s28] sm:$0xf]  ;;  %v1271_v22 = vor.u32 %v1428_v13, %v1270_v11  ;;  %v1147_v23 = vor.u32 %v1394_v14, %v1144_v15 }
  0x39   : > { %752 = vmatpush.bf16.msra.mxu0 %v1175_v58  ;;  %v1392_v20 = vld [vmem:[%s1690_s28 + $0xc] sm:$0xf0]  ;;  %v1254_v21 = vld [vmem:[%s1690_s28 + $0x100] sm:$0xf]  ;;  %v1390_v25 = vld [vmem:[%s1690_s28 + $0x4] sm:$0xf]  ;;  %v1275_v27 = vor.u32 %v1426_v16, %v1272_v17 }
  0x3a   : > { %766 = vmatpush.bf16.msra.mxu1 %v1303_v59  ;;  %780 = vmatpush.bf16.msra.mxu2 %v1179_v60  ;;  %v1424_v24 = vld [vmem:[%s1690_s28 + $0x10c] sm:$0xf0]  ;;  %v1128_v26 = vld [vmem:[%s1690_s28 + $0x10] sm:$0xf0]  ;;  %v1422_v28 = vld [vmem:[%s1690_s28 + $0x104] sm:$0xf]  ;;  %v1127_v34 = vor.u32 %v1392_v20, %v1126_v19 }
  0x3b   : > { %794 = vmatpush.bf16.msra.mxu3 %v1307_v0  ;;  %v1256_v29 = vld [vmem:[%s1690_s28 + $0x110] sm:$0xf0]  ;;  %v1246_v30 = vld [vmem:[%s1690_s28 + $0xe8] sm:$0xf]  ;;  %v1421_v31 = vld [vmem:[%s1690_s28 + $0xf4] sm:$0xf0]  ;;  %v1255_v38 = vor.u32 %v1424_v24, %v1254_v21  ;;  %v1131_v39 = vor.u32 %v1390_v25, %v1128_v26 }
  0x3c   : > { %v1374_v32 = vld [vmem:[%s1690_s28 + $0x1e8] sm:$0xf]  ;;  %v1453_v33 = vld [vmem:[%s1690_s28 + $0x1f4] sm:$0xf0]  ;;  %v1419_v35 = vld [vmem:[%s1690_s28 + $0xec] sm:$0xf]  ;;  %v1259_v43 = vor.u32 %v1422_v28, %v1256_v29  ;;  %v1247_v44 = vor.u32 %v1421_v31, %v1246_v30 }
  0x3d   : > { %753 = vmatpush.bf16.msra.mxu0 %v1159_v6  ;;  %v1248_v36 = vld [vmem:[%s1690_s28 + $0xf8] sm:$0xf0]  ;;  %v1451_v37 = vld [vmem:[%s1690_s28 + $0x1ec] sm:$0xf]  ;;  %v1118_v41 = vld [vmem:[%s1680_s26] sm:$0xf]  ;;  %v1375_v47 = vor.u32 %v1453_v33, %v1374_v32 }
  0x3e   : > { %767 = vmatpush.bf16.msra.mxu1 %v1287_v7  ;;  %781 = vmatpush.bf16.msra.mxu2 %v1163_v8  ;;  %v1376_v40 = vld [vmem:[%s1690_s28 + $0x1f8] sm:$0xf0]  ;;  %v1389_v42 = vld [vmem:[%s1680_s26 + $0x4] sm:$0xf0]  ;;  %v1388_v45 = vld [vmem:[%s1680_s26 + $0x4] sm:$0xf]  ;;  %v1251_v48 = vor.u32 %v1419_v35, %v1248_v36 }
  0x3f   : > { %795 = vmatpush.bf16.msra.mxu3 %v1291_v12  ;;  %v1120_v46 = vld [vmem:[%s1680_s26 + $0x8] sm:$0xf0]  ;;  %v1230_v49 = vld [vmem:[%s1690_s28 + $0xc8] sm:$0xf]  ;;  %v1417_v50 = vld [vmem:[%s1690_s28 + $0xd4] sm:$0xf0]  ;;  %v1379_v52 = vor.u32 %v1451_v37, %v1376_v40  ;;  %v1774_v56 = vor.u32 %v1389_v42, %v1118_v41 }
  0x40   : > { %v1358_v51 = vld [vmem:[%s1690_s28 + $0x1c8] sm:$0xf]  ;;  %v1449_v53 = vld [vmem:[%s1690_s28 + $0x1d4] sm:$0xf0]  ;;  %v1415_v54 = vld [vmem:[%s1690_s28 + $0xcc] sm:$0xf]  ;;  %v1778_v59 = vor.u32 %v1388_v45, %v1120_v46  ;;  %v1231_v60 = vor.u32 %v1417_v50, %v1230_v49 }
  0x41   : > { %754 = vmatpush.bf16.msra.mxu0 %v1143_v18  ;;  %v1232_v55 = vld [vmem:[%s1690_s28 + $0xd8] sm:$0xf0]  ;;  %v1447_v57 = vld [vmem:[%s1690_s28 + $0x1cc] sm:$0xf]  ;;  %v1359_v61 = vor.u32 %v1449_v53, %v1358_v51  ;;  %v1214_v63 = vld [vmem:[%s1690_s28 + $0xa8] sm:$0xf] }
  0x42   : > { %768 = vmatpush.bf16.msra.mxu1 %v1271_v22  ;;  %782 = vmatpush.bf16.msra.mxu2 %v1147_v23  ;;  %v1360_v58 = vld [vmem:[%s1690_s28 + $0x1d8] sm:$0xf0]  ;;  %v1235_v62 = vor.u32 %v1415_v54, %v1232_v55  ;;  %v1413_v0 = vld [vmem:[%s1690_s28 + $0xb4] sm:$0xf0]  ;;  %v1342_v1 = vld [vmem:[%s1690_s28 + $0x1a8] sm:$0xf] }
  0x43   : > { %796 = vmatpush.bf16.msra.mxu3 %v1275_v27  ;;  %v1363_v2 = vor.u32 %v1447_v57, %v1360_v58  ;;  %v1445_v3 = vld [vmem:[%s1690_s28 + $0x1b4] sm:$0xf0]  ;;  %v1411_v4 = vld [vmem:[%s1690_s28 + $0xac] sm:$0xf]  ;;  %v1216_v5 = vld [vmem:[%s1690_s28 + $0xb8] sm:$0xf0]  ;;  %v1215_v8 = vor.u32 %v1413_v0, %v1214_v63 }
  0x44   : > { %v1443_v6 = vld [vmem:[%s1690_s28 + $0x1ac] sm:$0xf]  ;;  %v1344_v7 = vld [vmem:[%s1690_s28 + $0x1b8] sm:$0xf0]  ;;  %v1343_v9 = vor.u32 %v1445_v3, %v1342_v1  ;;  %v1219_v10 = vor.u32 %v1411_v4, %v1216_v5  ;;  %v1198_v11 = vld [vmem:[%s1690_s28 + $0x88] sm:$0xf] }
  0x45   : > { %755 = vmatpush.bf16.msra.mxu0 %v1127_v34  ;;  %v1409_v12 = vld [vmem:[%s1690_s28 + $0x94] sm:$0xf0]  ;;  %v1326_v13 = vld [vmem:[%s1690_s28 + $0x188] sm:$0xf]  ;;  %v1347_v14 = vor.u32 %v1443_v6, %v1344_v7  ;;  %v1407_v16 = vld [vmem:[%s1690_s28 + $0x8c] sm:$0xf] }
  0x46   : > { %769 = vmatpush.bf16.msra.mxu1 %v1255_v38  ;;  %783 = vmatpush.bf16.msra.mxu2 %v1131_v39  ;;  %v1441_v15 = vld [vmem:[%s1690_s28 + $0x194] sm:$0xf0]  ;;  %v1200_v17 = vld [vmem:[%s1690_s28 + $0x98] sm:$0xf0]  ;;  %v1439_v18 = vld [vmem:[%s1690_s28 + $0x18c] sm:$0xf]  ;;  %v1199_v20 = vor.u32 %v1409_v12, %v1198_v11 }
  0x47   : > { %797 = vmatpush.bf16.msra.mxu3 %v1259_v43  ;;  %v1328_v19 = vld [vmem:[%s1690_s28 + $0x198] sm:$0xf0]  ;;  %v1327_v21 = vor.u32 %v1441_v15, %v1326_v13  ;;  %v1203_v22 = vor.u32 %v1407_v16, %v1200_v17  ;;  %v1182_v23 = vld [vmem:[%s1690_s28 + $0x68] sm:$0xf]  ;;  %v1405_v24 = vld [vmem:[%s1690_s28 + $0x74] sm:$0xf0] }
  0x48   : > { %756 = vmatmul.bf16.vlgmr.msra.gmra.mxu0 %v1774_v56  ;;  %v1310_v25 = vld [vmem:[%s1690_s28 + $0x168] sm:$0xf]  ;;  %v1331_v26 = vor.u32 %v1439_v18, %v1328_v19  ;;  %v1437_v27 = vld [vmem:[%s1690_s28 + $0x174] sm:$0xf0]  ;;  %v1403_v28 = vld [vmem:[%s1690_s28 + $0x6c] sm:$0xf]  ;;  %v1183_v32 = vor.u32 %v1405_v24, %v1182_v23 }
  0x49   : > { %804 = vmatpush.bf16.msrb.mxu0 %v1247_v44  ;;  %784 = vmatmul.bf16.vlgmr.msra.gmra.mxu2 %v1774_v56  ;;  %v1184_v29 = vld [vmem:[%s1690_s28 + $0x78] sm:$0xf0]  ;;  %v1435_v30 = vld [vmem:[%s1690_s28 + $0x16c] sm:$0xf]  ;;  %v1311_v33 = vor.u32 %v1437_v27, %v1310_v25  ;;  %v1166_v35 = vld [vmem:[%s1690_s28 + $0x48] sm:$0xf] }
  0x4a   : > { %818 = vmatpush.bf16.msrb.mxu1 %v1375_v47  ;;  %832 = vmatpush.bf16.msrb.mxu2 %v1251_v48  ;;  %v1312_v31 = vld [vmem:[%s1690_s28 + $0x178] sm:$0xf0]  ;;  %v1187_v34 = vor.u32 %v1403_v28, %v1184_v29  ;;  %v1401_v36 = vld [vmem:[%s1690_s28 + $0x54] sm:$0xf0]  ;;  %v1294_v37 = vld [vmem:[%s1690_s28 + $0x148] sm:$0xf] }
  0x4b   : > { %846 = vmatpush.bf16.msrb.mxu3 %v1379_v52  ;;  %770 = vmatmul.bf16.vlgmr.msra.gmra.mxu1 %v1778_v59  ;;  %v1315_v38 = vor.u32 %v1435_v30, %v1312_v31  ;;  %v1433_v39 = vld [vmem:[%s1690_s28 + $0x154] sm:$0xf0]  ;;  %v1399_v40 = vld [vmem:[%s1690_s28 + $0x4c] sm:$0xf]  ;;  %v1168_v41 = vld [vmem:[%s1690_s28 + $0x58] sm:$0xf0]  ;;  %v1167_v44 = vor.u32 %v1401_v36, %v1166_v35 }
  0x4c   : > { %798 = vmatmul.bf16.vlgmr.msra.gmra.mxu3 %v1778_v59  ;;  %v1431_v42 = vld [vmem:[%s1690_s28 + $0x14c] sm:$0xf]  ;;  %v1296_v43 = vld [vmem:[%s1690_s28 + $0x158] sm:$0xf0]  ;;  %v1295_v45 = vor.u32 %v1433_v39, %v1294_v37  ;;  %v1171_v46 = vor.u32 %v1399_v40, %v1168_v41  ;;  %v1150_v47 = vld [vmem:[%s1690_s28 + $0x28] sm:$0xf] }
  0x4d   : > { %805 = vmatpush.bf16.msrb.mxu0 %v1231_v60  ;;  %v1397_v48 = vld [vmem:[%s1690_s28 + $0x34] sm:$0xf0]  ;;  %v1278_v49 = vld [vmem:[%s1690_s28 + $0x128] sm:$0xf]  ;;  %v1299_v50 = vor.u32 %v1431_v42, %v1296_v43  ;;  %v1395_v52 = vld [vmem:[%s1690_s28 + $0x2c] sm:$0xf] }
  0x4e   : > { %819 = vmatpush.bf16.msrb.mxu1 %v1359_v61  ;;  %833 = vmatpush.bf16.msrb.mxu2 %v1235_v62  ;;  %v1429_v51 = vld [vmem:[%s1690_s28 + $0x134] sm:$0xf0]  ;;  %v1152_v53 = vld [vmem:[%s1690_s28 + $0x38] sm:$0xf0]  ;;  %v1427_v54 = vld [vmem:[%s1690_s28 + $0x12c] sm:$0xf]  ;;  %v1151_v57 = vor.u32 %v1397_v48, %v1150_v47 }
  0x4f   : > { %847 = vmatpush.bf16.msrb.mxu3 %v1363_v2  ;;  %v1280_v55 = vld [vmem:[%s1690_s28 + $0x138] sm:$0xf0]  ;;  %v1279_v58 = vor.u32 %v1429_v51, %v1278_v49  ;;  %v1155_v60 = vor.u32 %v1395_v52, %v1152_v53  ;;  %v1134_v61 = vld [vmem:[%s1690_s28 + $0x8] sm:$0xf]  ;;  %v1393_v62 = vld [vmem:[%s1690_s28 + $0x14] sm:$0xf0] }
  0x50   : > { %v1262_v63 = vld [vmem:[%s1690_s28 + $0x108] sm:$0xf]  ;;  %v1283_v0 = vor.u32 %v1427_v54, %v1280_v55  ;;  %v1425_v1 = vld [vmem:[%s1690_s28 + $0x114] sm:$0xf0]  ;;  %v1391_v2 = vld [vmem:[%s1690_s28 + $0xc] sm:$0xf]  ;;  %v1135_v6 = vor.u32 %v1393_v62, %v1134_v61 }
  0x51   : > { %806 = vmatpush.bf16.msrb.mxu0 %v1215_v8  ;;  %v1136_v3 = vld [vmem:[%s1690_s28 + $0x18] sm:$0xf0]  ;;  %v1423_v4 = vld [vmem:[%s1690_s28 + $0x10c] sm:$0xf]  ;;  %v1263_v7 = vor.u32 %v1425_v1, %v1262_v63 }
  0x52   : > { %820 = vmatpush.bf16.msrb.mxu1 %v1343_v9  ;;  %834 = vmatpush.bf16.msrb.mxu2 %v1219_v10  ;;  %v1264_v5 = vld [vmem:[%s1690_s28 + $0x118] sm:$0xf0]  ;;  %v1139_v8 = vor.u32 %v1391_v2, %v1136_v3 }
  0x53   : > { %848 = vmatpush.bf16.msrb.mxu3 %v1347_v14  ;;  %v1267_v9 = vor.u32 %v1423_v4, %v1264_v5 }
  0x55   : > { %807 = vmatpush.bf16.msrb.mxu0 %v1199_v20 }
  0x56   : > { %821 = vmatpush.bf16.msrb.mxu1 %v1327_v21  ;;  %835 = vmatpush.bf16.msrb.mxu2 %v1203_v22 }
  0x57   : > { %849 = vmatpush.bf16.msrb.mxu3 %v1331_v26 }
  0x59   : > { %808 = vmatpush.bf16.msrb.mxu0 %v1183_v32 }
  0x5a   : > { %822 = vmatpush.bf16.msrb.mxu1 %v1311_v33  ;;  %836 = vmatpush.bf16.msrb.mxu2 %v1187_v34 }
  0x5b   : > { %850 = vmatpush.bf16.msrb.mxu3 %v1315_v38 }
  0x5d   : > { %809 = vmatpush.bf16.msrb.mxu0 %v1167_v44 }
  0x5e   : > { %823 = vmatpush.bf16.msrb.mxu1 %v1295_v45  ;;  %837 = vmatpush.bf16.msrb.mxu2 %v1171_v46 }
  0x5f   : > { %851 = vmatpush.bf16.msrb.mxu3 %v1299_v50 }
  0x61   : > { %810 = vmatpush.bf16.msrb.mxu0 %v1151_v57 }
  0x62   : > { %824 = vmatpush.bf16.msrb.mxu1 %v1279_v58  ;;  %838 = vmatpush.bf16.msrb.mxu2 %v1155_v60 }
  0x63   : > { %852 = vmatpush.bf16.msrb.mxu3 %v1283_v0 }
  0x65   : > { %811 = vmatpush.bf16.msrb.mxu0 %v1135_v6 }
  0x66   : > { %825 = vmatpush.bf16.msrb.mxu1 %v1263_v7  ;;  %839 = vmatpush.bf16.msrb.mxu2 %v1139_v8 }
  0x67   : > { %853 = vmatpush.bf16.msrb.mxu3 %v1267_v9 }
  0x68   : > { %812 = vmatmul.bf16.vlgmr.msrb.gmra.mxu0 %v1774_v56 }
  0x69   : > { %826 = vmatmul.bf16.vlgmr.msrb.gmra.mxu1 %v1778_v59  ;;  %840 = vmatmul.bf16.vlgmr.msrb.gmra.mxu2 %v1774_v56 }
  0x6a   : > { %854 = vmatmul.bf16.vlgmr.msrb.gmra.mxu3 %v1778_v59 }
  0xc5   : > { %v757_v10 = vpop.f32.mrf.mxu0 }
  0xc8   : > { %v771_v11 = vpop.f32.mrf.mxu1 }
  0xc9   : > { %v1836_v12 = vadd.f32 %v771_v11, %v757_v10 }
  0xcc   : > { %v785_v13 = vpop.f32.mrf.mxu2 }
  0xcd   : > { %v759_v16 = vpop.f32.mrf.mxu0 }
  0xcf   : > { %v799_v14 = vpop.f32.mrf.mxu3 }
  0xd0   : > { %v1838_v15 = vadd.f32 %v799_v14, %v785_v13  ;;  %v773_v17 = vpop.f32.mrf.mxu1 }
  0xd1   : > { %v1840_v18 = vadd.f32 %v773_v17, %v759_v16 }
  0xd4   : > { %v787_v19 = vpop.f32.mrf.mxu2 }
  0xd7   : > { %v801_v20 = vpop.f32.mrf.mxu3 }
  0xd8   : > { %v1842_v21 = vadd.f32 %v801_v20, %v787_v19 }
  0xe5   : > { %v813_v22 = vpop.f32.mrf.mxu0 }
  0xe6   : > { %v827_v56 = vpop.f32.mrf.mxu1 }
  0xe7   : > { %v1844_v23 = vadd.f32 %v827_v56, %v813_v22 }
  0xec   : > { %v841_v59 = vpop.f32.mrf.mxu2 }
  0xed   : > { %v855_v24 = vpop.f32.mrf.mxu3  ;;  %v815_v25 = vpop.f32.mrf.mxu0 }
  0xee   : > { %v1846_v26 = vadd.f32 %v855_v24, %v841_v59  ;;  %v829_v27 = vpop.f32.mrf.mxu1 }
  0xef   : > { %v1848_v28 = vadd.f32 %v829_v27, %v815_v25 }
  0xf2   : > { %863 = sbr.rel (%p1380_p13) target bundleno = 255 (0xff), region = 86 }
  0xf4   : > { %v843_v29 = vpop.f32.mrf.mxu2 }
  0xf5   : > { %v857_v30 = vpop.f32.mrf.mxu3 }
  0xf6   : > { %v1850_v31 = vadd.f32 %v857_v30, %v843_v29 }
  0xf7   : > { %864 = vst [vmem:[%s2047_s5] sm:$0xff] %v1836_v12 }
  0xf8   : > { %865 = vst [vmem:[%s2047_s5 + $0x8] sm:$0xff] %v1838_v15 }
  0xf9   : > { %866 = vst [vmem:[%s2047_s5 + $0x10] sm:$0xff] %v1844_v23 }
  0xfa   : > { %867 = vst [vmem:[%s2047_s5 + $0x18] sm:$0xff] %v1846_v26 }
  0xfb   : > { %868 = vst [vmem:[%s2047_s5 + $0x20] sm:$0xff] %v1840_v18 }
  0xfc   : > { %869 = vst [vmem:[%s2047_s5 + $0x28] sm:$0xff] %v1842_v21 }
  0xfd   : > { %870 = vst [vmem:[%s2047_s5 + $0x30] sm:$0xff] %v1848_v28 }
  0xfe   : > { %871 = vst [vmem:[%s2047_s5 + $0x38] sm:$0xff] %v1850_v31 }
  0xff PF: > { %p872_p0 = scmp.gt.s32.totalorder %s1569_s20, 0  ;;  %p873_p1 = scmp.lt.s32.totalorder %s1569_s20, 17 }
 0x101   : > { %p874_p2 = pnand %p873_p1, %p872_p0 }
 0x103   : > { %877 = sbr.rel (%p874_p2) target bundleno = 275 (0x113), region = 90 }
 0x108   : > { %v878_v32 = vld [vmem:[%s2047_s5] sm:$0xff]  ;;  %v879_v33 = vld [vmem:[%s2047_s5 + $0x8] sm:$0xff]  ;;  %v880_v34 = vld [vmem:[%s2047_s5 + $0x10] sm:$0xff] }
 0x109   : > { %v886_v35 = vadd.f32 %v878_v32, %v1836_v12  ;;  %v887_v36 = vadd.f32 %v879_v33, %v1838_v15  ;;  %v888_v37 = vadd.f32 %v880_v34, %v1844_v23  ;;  %v881_v38 = vld [vmem:[%s2047_s5 + $0x18] sm:$0xff]  ;;  %v882_v39 = vld [vmem:[%s2047_s5 + $0x20] sm:$0xff]  ;;  %v883_v40 = vld [vmem:[%s2047_s5 + $0x28] sm:$0xff] }
 0x10a   : > { %v889_v41 = vadd.f32 %v881_v38, %v1846_v26  ;;  %v884_v42 = vld [vmem:[%s2047_s5 + $0x30] sm:$0xff]  ;;  %v890_v43 = vadd.f32 %v882_v39, %v1840_v18  ;;  %v885_v44 = vld [vmem:[%s2047_s5 + $0x38] sm:$0xff]  ;;  %v891_v45 = vadd.f32 %v883_v40, %v1842_v21 }
 0x10b   : > { %894 = vst [vmem:[%s2047_s5] sm:$0xff] %v886_v35  ;;  %v892_v46 = vadd.f32 %v884_v42, %v1848_v28  ;;  %v893_v47 = vadd.f32 %v885_v44, %v1850_v31 }
 0x10c   : > { %895 = vst [vmem:[%s2047_s5 + $0x8] sm:$0xff] %v887_v36 }
 0x10d   : > { %896 = vst [vmem:[%s2047_s5 + $0x10] sm:$0xff] %v888_v37 }
 0x10e   : > { %897 = vst [vmem:[%s2047_s5 + $0x18] sm:$0xff] %v889_v41 }
 0x10f   : > { %898 = vst [vmem:[%s2047_s5 + $0x20] sm:$0xff] %v890_v43 }
 0x110   : > { %899 = vst [vmem:[%s2047_s5 + $0x28] sm:$0xff] %v891_v45 }
 0x111   : > { %900 = vst [vmem:[%s2047_s5 + $0x30] sm:$0xff] %v892_v46 }
 0x112   : > { %901 = vst [vmem:[%s2047_s5 + $0x38] sm:$0xff] %v893_v47 }
 0x113 PF: > { %p1381_p3 = scmp.ne.s32.totalorder %s1569_s20, 17 }
 0x115   : > { %905 = sbr.rel (%p1381_p3) target bundleno = 302 (0x12e), region = 94 }
 0x11a   : > { %v906_v48 = vld [vmem:[%s2047_s5] sm:$0xff]  ;;  %v907_v54 = vld [vmem:[%s2047_s5 + $0x8] sm:$0xff]  ;;  %v908_v60 = vld [vmem:[%s2047_s5 + $0x10] sm:$0xff] }
 0x11b   : > { %v922_v49 = vld [vmem:[%s2044_s2] sm:$0xf]  ;;  %v914_v51 = vadd.f32 %v906_v48, %v1836_v12  ;;  %v915_v57 = vadd.f32 %v907_v54, %v1838_v15  ;;  %v909_v63 = vld [vmem:[%s2047_s5 + $0x18] sm:$0xff]  ;;  %v916_v1 = vadd.f32 %v908_v60, %v1844_v23  ;;  %v911_v9 = vld [vmem:[%s2047_s5 + $0x28] sm:$0xff] }
 0x11c   : > { %v940_v50 = vld [vmem:[#allocation3] sm:$0xf]  ;;  %v924_v52 = vperm.slane %v922_v49, 0  ;;  %v925_v55 = vperm.slane %v922_v49, 1  ;;  %v926_v61 = vperm.slane %v922_v49, 2  ;;  %v917_v2 = vadd.f32 %v909_v63, %v1846_v26  ;;  %v912_v10 = vld [vmem:[%s2047_s5 + $0x30] sm:$0xff] }
 0x11d   : > { %v942_v53 = vperm.slane %v940_v50, 0  ;;  %v943_v58 = vperm.slane %v940_v50, 1  ;;  %v944_v62 = vperm.slane %v940_v50, 2  ;;  %v927_v3 = vperm.slane %v922_v49, 3  ;;  %v910_v4 = vld [vmem:[%s2047_s5 + $0x20] sm:$0xff]  ;;  %v959_v12 = vld [vmem:[%s2046_s4 + $0x8] sm:$0xff] }
 0x11e   : > { %v932_v0 = vmul.f32 %v924_v52, %v914_v51  ;;  %v958_v5 = vld [vmem:[%s2046_s4] sm:$0xff]  ;;  %v933_v6 = vmul.f32 %v925_v55, %v915_v57  ;;  %v945_v7 = vperm.slane %v940_v50, 3  ;;  %v918_v8 = vadd.f32 %v910_v4, %v1840_v18  ;;  %v913_v16 = vld [vmem:[%s2047_s5 + $0x38] sm:$0xff]  ;;  %v960_v18 = vld [vmem:[%s2046_s4 + $0x10] sm:$0xff] }
 0x11f   : > { %v934_v13 = vmul.f32 %v926_v61, %v916_v1  ;;  %v935_v14 = vmul.f32 %v927_v3, %v917_v2  ;;  %v919_v15 = vadd.f32 %v911_v9, %v1842_v21  ;;  %v961_v19 = vld [vmem:[%s2046_s4 + $0x18] sm:$0xff]  ;;  %v920_v22 = vadd.f32 %v912_v10, %v1848_v28  ;;  %v962_v24 = vld [vmem:[%s2046_s4 + $0x20] sm:$0xff]  ;;  %v963_v29 = vld [vmem:[%s2046_s4 + $0x28] sm:$0xff] }
 0x120   : > { %v950_v11 = vadd.f32 %v942_v53, %v932_v0  ;;  %v951_v17 = vadd.f32 %v943_v58, %v933_v6  ;;  %v936_v20 = vmul.f32 %v924_v52, %v918_v8  ;;  %v921_v56 = vadd.f32 %v913_v16, %v1850_v31  ;;  %v964_v35 = vld [vmem:[%s2046_s4 + $0x30] sm:$0xff]  ;;  %v965_v36 = vld [vmem:[%s2046_s4 + $0x38] sm:$0xff] }
 0x121   : > { %v952_v21 = vadd.f32 %v944_v62, %v934_v13  ;;  %v953_v59 = vadd.f32 %v945_v7, %v935_v14  ;;  %v937_v25 = vmul.f32 %v925_v55, %v919_v15  ;;  %v938_v30 = vmul.f32 %v926_v61, %v920_v22 }
 0x122   : > { %v966_v23 = vadd.f32 %v958_v5, %v950_v11  ;;  %v967_v26 = vadd.f32 %v959_v12, %v951_v17  ;;  %v954_v27 = vadd.f32 %v942_v53, %v936_v20  ;;  %v939_v32 = vmul.f32 %v927_v3, %v921_v56 }
 0x123   : > { %v968_v28 = vadd.f32 %v960_v18, %v952_v21  ;;  %v969_v34 = vadd.f32 %v961_v19, %v953_v59  ;;  %v955_v31 = vadd.f32 %v943_v58, %v937_v25  ;;  %v956_v39 = vadd.f32 %v944_v62, %v938_v30 }
 0x124   : > { %v974_v33 = vmax.f32 %v966_v23, 0.0  ;;  %v975_v37 = vmax.f32 %v967_v26, 0.0  ;;  %v970_v38 = vadd.f32 %v962_v24, %v954_v27  ;;  %v957_v40 = vadd.f32 %v945_v7, %v939_v32 }
 0x125   : > { %v976_v41 = vmax.f32 %v968_v28, 0.0  ;;  %v977_v42 = vmax.f32 %v969_v34, 0.0  ;;  %v971_v43 = vadd.f32 %v963_v29, %v955_v31  ;;  %v972_v45 = vadd.f32 %v964_v35, %v956_v39 }
 0x126   : > { %982 = vst [vmem:[%s2047_s5] sm:$0xff] %v974_v33  ;;  %v978_v44 = vmax.f32 %v970_v38, 0.0  ;;  %v973_v46 = vadd.f32 %v965_v36, %v957_v40 }
 0x127   : > { %983 = vst [vmem:[%s2047_s5 + $0x8] sm:$0xff] %v975_v37  ;;  %v979_v47 = vmax.f32 %v971_v43, 0.0  ;;  %v980_v48 = vmax.f32 %v972_v45, 0.0 }
 0x128   : > { %984 = vst [vmem:[%s2047_s5 + $0x10] sm:$0xff] %v976_v41  ;;  %v981_v49 = vmax.f32 %v973_v46, 0.0 }
 0x129   : > { %985 = vst [vmem:[%s2047_s5 + $0x18] sm:$0xff] %v977_v42 }
 0x12a   : > { %986 = vst [vmem:[%s2047_s5 + $0x20] sm:$0xff] %v978_v44 }
 0x12b   : > { %987 = vst [vmem:[%s2047_s5 + $0x28] sm:$0xff] %v979_v47 }
 0x12c   : > { %988 = vst [vmem:[%s2047_s5 + $0x30] sm:$0xff] %v980_v48 }
 0x12d   : > { %989 = vst [vmem:[%s2047_s5 + $0x38] sm:$0xff] %v981_v49 }
 0x12e PF: > { %s16_s22 = sadd.s32 1, %s1577_s22   ;;  %s2051_s18 = smov %s1565_s19 }
 0x12f   : > { %p13_p4 = scmp.ge.s32.totalorder %s16_s22, 20   ;;  %s2052_s19 = smov %s1660_s30 }
 0x130   : > { %s2053_s20 = smov %s1573_s21  ;;  %s2054_s21 = smov %s2056_s24 }
 0x131   :  { %15 = sbr.rel (!%p13_p4) target bundleno = 3 (0x3), region = 136 }
 0x136   :  { %1014 = vsyncpa [#allocation4], 1 }
 0x137   :  { %1016 = vsyncpa [#allocation4 + $0x1], 1 }

// kernel: alzheimer_resnet_forward.38
= control target key start
LH: loop header
LB: loop body
LE: loop exit
PB: predicated region body
PF: predicated region fallthrough
CT: control target
= control target key end

     0   :  { %s1446_s15 = smov 0   ;;  %s1448_s16 = smov 0   ;;  %s1826_s0 = inlined_call_operand.vmem [shape: bf16[16,4608], index: 0, kind: input, shape index: {}]   ;;  %s1827_s1 = inlined_call_operand.vmem [shape: bf16[4608,512], index: 1, kind: input, shape index: {}]   ;;  %s1828_s2 = inlined_call_operand.vmem [shape: f32[1,512], index: 2, kind: input, shape index: {}]   ;;  %s1829_s3 = inlined_call_operand.vmem [shape: f32[1,512], index: 3, kind: input, shape index: {}]   ;;  %s1830_s4 = inlined_call_operand.vmem [shape: f32[16,512], index: 4, kind: output, shape index: {}]  }
   0x1   :  { %s1450_s17 = smov 0   ;;  %s1452_s18 = smov 0  }
   0x2   :  { %s1454_s19 = smov 0  }
   0x3 LB: > { %s23_s20 = sadd.s32 1, %s1415_s18  ;;  %p42_p1 = scmp.ne.s32.totalorder %s1407_s16, %s1403_s15  ;;  %s1419_s19 = sphi %s1454_s19, %s14_s19   ;;  %s1415_s18 = sphi %s1452_s18, %s1834_s18   ;;  %s1411_s17 = sphi %s1450_s17, %s1833_s17   ;;  %s1407_s16 = sphi %s1448_s16, %s1832_s16   ;;  %s1403_s15 = sphi %s1446_s15, %s1831_s15  }
   0x4   : > { %p24_p0 = scmp.ge.s32.totalorder %s23_s20, 18  ;;  %p43_p2 = scmp.eq.s32.totalorder %s1419_s19, 0 }
   0x5   : > { %s35_s22 = sadd.s32 1, %s1407_s16  ;;  %p994_p5 = scmp.ge.s32.totalorder %s1419_s19, 18 }
   0x6   : > { %s1836_s20 = smov (%p24_p0, %s23_s20), 0  ;;  %p44_p3 = por %p43_p2, %p42_p1 }
   0x7   : > { %s31_s21 = ssub.s32 %s1415_s18, %s1836_s20  ;;  %168 = sbr.rel (%p994_p5) target bundleno = 18 (0x12), region = 24 }
   0x8   : > { %p33_p4 = scmp.eq.s32.totalorder %s31_s21, 0 }
   0xa   : > { %s1481_s23 = scalar_select %p33_p4, %s1407_s16, %s35_s22  }
   0xc   : > { %171 = sbr.rel (!%p44_p3) target bundleno = 18 (0x12), region = 28  ;;  %s173_s24 = sand.u32 (%p44_p3), 1, %s1407_s16  }
   0xd   : > { %s1273_s25 = sshll.u32 (%p44_p3), %s1415_s18, 3  ;;  %s995_s26 = sshll.u32 (%p44_p3), %s173_s24, 4 }
   0xe   : > { %s181_s29 = scalar_lea.vmem (%p44_p3), %s1826_s0, %s1273_s25  ;;  %s175_s30 = scalar_lea.vmem (%p44_p3), [#allocation2], %s995_s26 }
   0xf   : > { %v212_v0 = vld [vmem:[%s181_s29] sm:$0xff] (%p44_p3)  ;;  %v214_v1 = vld [vmem:[%s181_s29 + $0x90] sm:$0xff] (%p44_p3) }
  0x10   : > { %213 = vst [vmem:[%s175_s30] sm:$0xff] (%p44_p3), %v212_v0 }
  0x11   : > { %215 = vst [vmem:[%s175_s30 + $0x8] sm:$0xff] %v214_v1 }
  0x12 PF: > { %p998_p6 = scmp.ge.s32.totalorder %s1419_s19, 1  ;;  %p230_p7 = scmp.lt.s32.totalorder %s1419_s19, 19 }
  0x14   : > { %p231_p8 = pnand %p998_p6, %p230_p7 }
  0x15   : > { %s1000_s5 = sshll.u32 (!%p231_p8), %s1411_s17, 5  ;;  %s237_s10 = sand.u32 (!%p231_p8), 1, %s1403_s15  }
  0x16   : > { %234 = sbr.rel (%p231_p8) target bundleno = 292 (0x124), region = 70  ;;  %p272_p9 = scmp.lt.s32.totalorder (!%p231_p8), %s1000_s5, 575 }
  0x17   : > { %s1546_s11 = sshll.u32 (!%p231_p8), %s237_s10, 4  ;;  %p1267_p10 = scmp.ne.s32.totalorder (!%p231_p8), %s1411_s17, 0 }
  0x18   : > { %s239_s12 = scalar_lea.vmem (!%p231_p8), [#allocation2], %s1546_s11 }
  0x1b   : > { %s1838_s5 = smov (!%p272_p9, %s1000_s5), 575 }
  0x1c   : > { %s1274_s6 = sshll.u32 %s1838_s5, 4 }
  0x1d   : > { %s1495_s9 = scalar_lea.vmem %s1827_s1, %s1274_s6 }
  0x1e   : > { %v1125_v2 = vld [vmem:[%s1495_s9 + $0xe0] sm:$0xf]  ;;  %v1307_v3 = vld [vmem:[%s1495_s9 + $0xec] sm:$0xf0]  ;;  %v1305_v7 = vld [vmem:[%s1495_s9 + $0xe4] sm:$0xf] }
  0x1f   : > { %v1253_v4 = vld [vmem:[%s1495_s9 + $0x1e0] sm:$0xf]  ;;  %v1126_v5 = vor.u32 %v1307_v3, %v1125_v2  ;;  %v1339_v6 = vld [vmem:[%s1495_s9 + $0x1ec] sm:$0xf0]  ;;  %v1127_v8 = vld [vmem:[%s1495_s9 + $0xf0] sm:$0xf0] }
  0x20   : > { %v1254_v9 = vor.u32 %v1339_v6, %v1253_v4  ;;  %v1130_v10 = vor.u32 %v1305_v7, %v1127_v8  ;;  %v1337_v11 = vld [vmem:[%s1495_s9 + $0x1e4] sm:$0xf]  ;;  %v1255_v12 = vld [vmem:[%s1495_s9 + $0x1f0] sm:$0xf0]  ;;  %v1109_v13 = vld [vmem:[%s1495_s9 + $0xc0] sm:$0xf] }
  0x21   : > { %681 = vmatpush.bf16.msra.mxu0 %v1126_v5  ;;  %v1258_v14 = vor.u32 %v1337_v11, %v1255_v12  ;;  %v1303_v15 = vld [vmem:[%s1495_s9 + $0xcc] sm:$0xf0]  ;;  %v1237_v16 = vld [vmem:[%s1495_s9 + $0x1c0] sm:$0xf]  ;;  %v1301_v20 = vld [vmem:[%s1495_s9 + $0xc4] sm:$0xf] }
  0x22   : > { %v1335_v17 = vld [vmem:[%s1495_s9 + $0x1cc] sm:$0xf0]  ;;  %695 = vmatpush.bf16.msra.mxu1 %v1254_v9  ;;  %709 = vmatpush.bf16.msra.mxu2 %v1130_v10  ;;  %v1110_v18 = vor.u32 %v1303_v15, %v1109_v13  ;;  %v1111_v21 = vld [vmem:[%s1495_s9 + $0xd0] sm:$0xf0]  ;;  %v1333_v22 = vld [vmem:[%s1495_s9 + $0x1c4] sm:$0xf] }
  0x23   : > { %v1238_v19 = vor.u32 %v1335_v17, %v1237_v16  ;;  %723 = vmatpush.bf16.msra.mxu3 %v1258_v14  ;;  %v1114_v23 = vor.u32 %v1301_v20, %v1111_v21  ;;  %v1239_v24 = vld [vmem:[%s1495_s9 + $0x1d0] sm:$0xf0]  ;;  %v1093_v25 = vld [vmem:[%s1495_s9 + $0xa0] sm:$0xf]  ;;  %v1299_v26 = vld [vmem:[%s1495_s9 + $0xac] sm:$0xf0] }
  0x24   : > { %v1242_v27 = vor.u32 %v1333_v22, %v1239_v24  ;;  %v1221_v28 = vld [vmem:[%s1495_s9 + $0x1a0] sm:$0xf]  ;;  %v1331_v29 = vld [vmem:[%s1495_s9 + $0x1ac] sm:$0xf0]  ;;  %v1297_v30 = vld [vmem:[%s1495_s9 + $0xa4] sm:$0xf]  ;;  %v1094_v31 = vor.u32 %v1299_v26, %v1093_v25 }
  0x25   : > { %682 = vmatpush.bf16.msra.mxu0 %v1110_v18  ;;  %v1095_v32 = vld [vmem:[%s1495_s9 + $0xb0] sm:$0xf0]  ;;  %v1329_v33 = vld [vmem:[%s1495_s9 + $0x1a4] sm:$0xf]  ;;  %v1222_v35 = vor.u32 %v1331_v29, %v1221_v28  ;;  %v1077_v37 = vld [vmem:[%s1495_s9 + $0x80] sm:$0xf] }
  0x26   : > { %v1223_v34 = vld [vmem:[%s1495_s9 + $0x1b0] sm:$0xf0]  ;;  %696 = vmatpush.bf16.msra.mxu1 %v1238_v19  ;;  %710 = vmatpush.bf16.msra.mxu2 %v1114_v23  ;;  %v1098_v36 = vor.u32 %v1297_v30, %v1095_v32  ;;  %v1295_v38 = vld [vmem:[%s1495_s9 + $0x8c] sm:$0xf0]  ;;  %v1205_v39 = vld [vmem:[%s1495_s9 + $0x180] sm:$0xf] }
  0x27   : > { %724 = vmatpush.bf16.msra.mxu3 %v1242_v27  ;;  %v1226_v40 = vor.u32 %v1329_v33, %v1223_v34  ;;  %v1327_v41 = vld [vmem:[%s1495_s9 + $0x18c] sm:$0xf0]  ;;  %v1293_v42 = vld [vmem:[%s1495_s9 + $0x84] sm:$0xf]  ;;  %v1079_v43 = vld [vmem:[%s1495_s9 + $0x90] sm:$0xf0]  ;;  %v1078_v46 = vor.u32 %v1295_v38, %v1077_v37 }
  0x28   : > { %v1325_v44 = vld [vmem:[%s1495_s9 + $0x184] sm:$0xf]  ;;  %v1207_v45 = vld [vmem:[%s1495_s9 + $0x190] sm:$0xf0]  ;;  %v1206_v47 = vor.u32 %v1327_v41, %v1205_v39  ;;  %v1082_v48 = vor.u32 %v1293_v42, %v1079_v43  ;;  %v1061_v49 = vld [vmem:[%s1495_s9 + $0x60] sm:$0xf] }
  0x29   : > { %683 = vmatpush.bf16.msra.mxu0 %v1094_v31  ;;  %v1291_v50 = vld [vmem:[%s1495_s9 + $0x6c] sm:$0xf0]  ;;  %v1189_v51 = vld [vmem:[%s1495_s9 + $0x160] sm:$0xf]  ;;  %v1210_v52 = vor.u32 %v1325_v44, %v1207_v45  ;;  %v1289_v54 = vld [vmem:[%s1495_s9 + $0x64] sm:$0xf] }
  0x2a   : > { %697 = vmatpush.bf16.msra.mxu1 %v1222_v35  ;;  %711 = vmatpush.bf16.msra.mxu2 %v1098_v36  ;;  %v1323_v53 = vld [vmem:[%s1495_s9 + $0x16c] sm:$0xf0]  ;;  %v1063_v55 = vld [vmem:[%s1495_s9 + $0x70] sm:$0xf0]  ;;  %v1321_v56 = vld [vmem:[%s1495_s9 + $0x164] sm:$0xf]  ;;  %v1062_v58 = vor.u32 %v1291_v50, %v1061_v49 }
  0x2b   : > { %725 = vmatpush.bf16.msra.mxu3 %v1226_v40  ;;  %v1191_v57 = vld [vmem:[%s1495_s9 + $0x170] sm:$0xf0]  ;;  %v1190_v59 = vor.u32 %v1323_v53, %v1189_v51  ;;  %v1066_v60 = vor.u32 %v1289_v54, %v1063_v55  ;;  %v1045_v61 = vld [vmem:[%s1495_s9 + $0x40] sm:$0xf]  ;;  %v1287_v62 = vld [vmem:[%s1495_s9 + $0x4c] sm:$0xf0] }
  0x2c   : > { %v1173_v63 = vld [vmem:[%s1495_s9 + $0x140] sm:$0xf]  ;;  %v1194_v0 = vor.u32 %v1321_v56, %v1191_v57  ;;  %v1319_v1 = vld [vmem:[%s1495_s9 + $0x14c] sm:$0xf0]  ;;  %v1285_v2 = vld [vmem:[%s1495_s9 + $0x44] sm:$0xf]  ;;  %v1046_v6 = vor.u32 %v1287_v62, %v1045_v61 }
  0x2d   : > { %684 = vmatpush.bf16.msra.mxu0 %v1078_v46  ;;  %v1047_v3 = vld [vmem:[%s1495_s9 + $0x50] sm:$0xf0]  ;;  %v1317_v4 = vld [vmem:[%s1495_s9 + $0x144] sm:$0xf]  ;;  %v1174_v7 = vor.u32 %v1319_v1, %v1173_v63  ;;  %v1029_v9 = vld [vmem:[%s1495_s9 + $0x20] sm:$0xf] }
  0x2e   : > { %698 = vmatpush.bf16.msra.mxu1 %v1206_v47  ;;  %712 = vmatpush.bf16.msra.mxu2 %v1082_v48  ;;  %v1175_v5 = vld [vmem:[%s1495_s9 + $0x150] sm:$0xf0]  ;;  %v1050_v8 = vor.u32 %v1285_v2, %v1047_v3  ;;  %v1283_v10 = vld [vmem:[%s1495_s9 + $0x2c] sm:$0xf0]  ;;  %v1157_v11 = vld [vmem:[%s1495_s9 + $0x120] sm:$0xf] }
  0x2f   : > { %726 = vmatpush.bf16.msra.mxu3 %v1210_v52  ;;  %v1178_v12 = vor.u32 %v1317_v4, %v1175_v5  ;;  %v1315_v13 = vld [vmem:[%s1495_s9 + $0x12c] sm:$0xf0]  ;;  %v1281_v14 = vld [vmem:[%s1495_s9 + $0x24] sm:$0xf]  ;;  %v1031_v15 = vld [vmem:[%s1495_s9 + $0x30] sm:$0xf0]  ;;  %v1030_v18 = vor.u32 %v1283_v10, %v1029_v9 }
  0x30   : > { %v1313_v16 = vld [vmem:[%s1495_s9 + $0x124] sm:$0xf]  ;;  %v1159_v17 = vld [vmem:[%s1495_s9 + $0x130] sm:$0xf0]  ;;  %v1013_v19 = vld [vmem:[%s1495_s9] sm:$0xf]  ;;  %v1158_v22 = vor.u32 %v1315_v13, %v1157_v11  ;;  %v1034_v23 = vor.u32 %v1281_v14, %v1031_v15 }
  0x31   : > { %685 = vmatpush.bf16.msra.mxu0 %v1062_v58  ;;  %v1279_v20 = vld [vmem:[%s1495_s9 + $0xc] sm:$0xf0]  ;;  %v1141_v21 = vld [vmem:[%s1495_s9 + $0x100] sm:$0xf]  ;;  %v1277_v25 = vld [vmem:[%s1495_s9 + $0x4] sm:$0xf]  ;;  %v1162_v27 = vor.u32 %v1313_v16, %v1159_v17 }
  0x32   : > { %699 = vmatpush.bf16.msra.mxu1 %v1190_v59  ;;  %713 = vmatpush.bf16.msra.mxu2 %v1066_v60  ;;  %v1311_v24 = vld [vmem:[%s1495_s9 + $0x10c] sm:$0xf0]  ;;  %v1015_v26 = vld [vmem:[%s1495_s9 + $0x10] sm:$0xf0]  ;;  %v1309_v28 = vld [vmem:[%s1495_s9 + $0x104] sm:$0xf]  ;;  %v1014_v34 = vor.u32 %v1279_v20, %v1013_v19 }
  0x33   : > { %727 = vmatpush.bf16.msra.mxu3 %v1194_v0  ;;  %v1143_v29 = vld [vmem:[%s1495_s9 + $0x110] sm:$0xf0]  ;;  %v1133_v30 = vld [vmem:[%s1495_s9 + $0xe8] sm:$0xf]  ;;  %v1308_v31 = vld [vmem:[%s1495_s9 + $0xf4] sm:$0xf0]  ;;  %v1142_v38 = vor.u32 %v1311_v24, %v1141_v21  ;;  %v1018_v39 = vor.u32 %v1277_v25, %v1015_v26 }
  0x34   : > { %v1261_v32 = vld [vmem:[%s1495_s9 + $0x1e8] sm:$0xf]  ;;  %v1340_v33 = vld [vmem:[%s1495_s9 + $0x1f4] sm:$0xf0]  ;;  %v1306_v35 = vld [vmem:[%s1495_s9 + $0xec] sm:$0xf]  ;;  %v1146_v43 = vor.u32 %v1309_v28, %v1143_v29  ;;  %v1134_v44 = vor.u32 %v1308_v31, %v1133_v30 }
  0x35   : > { %686 = vmatpush.bf16.msra.mxu0 %v1046_v6  ;;  %v1135_v36 = vld [vmem:[%s1495_s9 + $0xf8] sm:$0xf0]  ;;  %v1338_v37 = vld [vmem:[%s1495_s9 + $0x1ec] sm:$0xf]  ;;  %v1005_v41 = vld [vmem:[%s239_s12] sm:$0xf]  ;;  %v1262_v47 = vor.u32 %v1340_v33, %v1261_v32 }
  0x36   : > { %700 = vmatpush.bf16.msra.mxu1 %v1174_v7  ;;  %714 = vmatpush.bf16.msra.mxu2 %v1050_v8  ;;  %v1263_v40 = vld [vmem:[%s1495_s9 + $0x1f8] sm:$0xf0]  ;;  %v1276_v42 = vld [vmem:[%s239_s12 + $0x4] sm:$0xf0]  ;;  %v1275_v45 = vld [vmem:[%s239_s12 + $0x4] sm:$0xf]  ;;  %v1138_v48 = vor.u32 %v1306_v35, %v1135_v36 }
  0x37   : > { %728 = vmatpush.bf16.msra.mxu3 %v1178_v12  ;;  %v1007_v46 = vld [vmem:[%s239_s12 + $0x8] sm:$0xf0]  ;;  %v1117_v49 = vld [vmem:[%s1495_s9 + $0xc8] sm:$0xf]  ;;  %v1304_v50 = vld [vmem:[%s1495_s9 + $0xd4] sm:$0xf0]  ;;  %v1266_v52 = vor.u32 %v1338_v37, %v1263_v40  ;;  %v1579_v56 = vor.u32 %v1276_v42, %v1005_v41 }
  0x38   : > { %v1245_v51 = vld [vmem:[%s1495_s9 + $0x1c8] sm:$0xf]  ;;  %v1336_v53 = vld [vmem:[%s1495_s9 + $0x1d4] sm:$0xf0]  ;;  %v1302_v54 = vld [vmem:[%s1495_s9 + $0xcc] sm:$0xf]  ;;  %v1583_v59 = vor.u32 %v1275_v45, %v1007_v46  ;;  %v1118_v60 = vor.u32 %v1304_v50, %v1117_v49 }
  0x39   : > { %687 = vmatpush.bf16.msra.mxu0 %v1030_v18  ;;  %v1119_v55 = vld [vmem:[%s1495_s9 + $0xd8] sm:$0xf0]  ;;  %v1334_v57 = vld [vmem:[%s1495_s9 + $0x1cc] sm:$0xf]  ;;  %v1246_v61 = vor.u32 %v1336_v53, %v1245_v51  ;;  %v1101_v63 = vld [vmem:[%s1495_s9 + $0xa8] sm:$0xf] }
  0x3a   : > { %701 = vmatpush.bf16.msra.mxu1 %v1158_v22  ;;  %715 = vmatpush.bf16.msra.mxu2 %v1034_v23  ;;  %v1247_v58 = vld [vmem:[%s1495_s9 + $0x1d8] sm:$0xf0]  ;;  %v1122_v62 = vor.u32 %v1302_v54, %v1119_v55  ;;  %v1300_v0 = vld [vmem:[%s1495_s9 + $0xb4] sm:$0xf0]  ;;  %v1229_v1 = vld [vmem:[%s1495_s9 + $0x1a8] sm:$0xf] }
  0x3b   : > { %729 = vmatpush.bf16.msra.mxu3 %v1162_v27  ;;  %v1250_v2 = vor.u32 %v1334_v57, %v1247_v58  ;;  %v1332_v3 = vld [vmem:[%s1495_s9 + $0x1b4] sm:$0xf0]  ;;  %v1298_v4 = vld [vmem:[%s1495_s9 + $0xac] sm:$0xf]  ;;  %v1103_v5 = vld [vmem:[%s1495_s9 + $0xb8] sm:$0xf0]  ;;  %v1102_v8 = vor.u32 %v1300_v0, %v1101_v63 }
  0x3c   : > { %v1330_v6 = vld [vmem:[%s1495_s9 + $0x1ac] sm:$0xf]  ;;  %v1231_v7 = vld [vmem:[%s1495_s9 + $0x1b8] sm:$0xf0]  ;;  %v1230_v9 = vor.u32 %v1332_v3, %v1229_v1  ;;  %v1106_v10 = vor.u32 %v1298_v4, %v1103_v5  ;;  %v1085_v11 = vld [vmem:[%s1495_s9 + $0x88] sm:$0xf] }
  0x3d   : > { %688 = vmatpush.bf16.msra.mxu0 %v1014_v34  ;;  %v1296_v12 = vld [vmem:[%s1495_s9 + $0x94] sm:$0xf0]  ;;  %v1213_v13 = vld [vmem:[%s1495_s9 + $0x188] sm:$0xf]  ;;  %v1234_v14 = vor.u32 %v1330_v6, %v1231_v7  ;;  %v1294_v16 = vld [vmem:[%s1495_s9 + $0x8c] sm:$0xf] }
  0x3e   : > { %702 = vmatpush.bf16.msra.mxu1 %v1142_v38  ;;  %716 = vmatpush.bf16.msra.mxu2 %v1018_v39  ;;  %v1328_v15 = vld [vmem:[%s1495_s9 + $0x194] sm:$0xf0]  ;;  %v1087_v17 = vld [vmem:[%s1495_s9 + $0x98] sm:$0xf0]  ;;  %v1326_v18 = vld [vmem:[%s1495_s9 + $0x18c] sm:$0xf]  ;;  %v1086_v20 = vor.u32 %v1296_v12, %v1085_v11 }
  0x3f   : > { %730 = vmatpush.bf16.msra.mxu3 %v1146_v43  ;;  %v1215_v19 = vld [vmem:[%s1495_s9 + $0x198] sm:$0xf0]  ;;  %v1214_v21 = vor.u32 %v1328_v15, %v1213_v13  ;;  %v1090_v22 = vor.u32 %v1294_v16, %v1087_v17  ;;  %v1069_v23 = vld [vmem:[%s1495_s9 + $0x68] sm:$0xf]  ;;  %v1292_v24 = vld [vmem:[%s1495_s9 + $0x74] sm:$0xf0] }
  0x40   : > { %689 = vmatmul.bf16.vlgmr.msra.gmra.mxu0 %v1579_v56  ;;  %v1197_v25 = vld [vmem:[%s1495_s9 + $0x168] sm:$0xf]  ;;  %v1218_v26 = vor.u32 %v1326_v18, %v1215_v19  ;;  %v1324_v27 = vld [vmem:[%s1495_s9 + $0x174] sm:$0xf0]  ;;  %v1290_v28 = vld [vmem:[%s1495_s9 + $0x6c] sm:$0xf]  ;;  %v1070_v32 = vor.u32 %v1292_v24, %v1069_v23 }
  0x41   : > { %737 = vmatpush.bf16.msrb.mxu0 %v1134_v44  ;;  %717 = vmatmul.bf16.vlgmr.msra.gmra.mxu2 %v1579_v56  ;;  %v1071_v29 = vld [vmem:[%s1495_s9 + $0x78] sm:$0xf0]  ;;  %v1322_v30 = vld [vmem:[%s1495_s9 + $0x16c] sm:$0xf]  ;;  %v1198_v33 = vor.u32 %v1324_v27, %v1197_v25  ;;  %v1053_v35 = vld [vmem:[%s1495_s9 + $0x48] sm:$0xf] }
  0x42   : > { %751 = vmatpush.bf16.msrb.mxu1 %v1262_v47  ;;  %765 = vmatpush.bf16.msrb.mxu2 %v1138_v48  ;;  %v1199_v31 = vld [vmem:[%s1495_s9 + $0x178] sm:$0xf0]  ;;  %v1074_v34 = vor.u32 %v1290_v28, %v1071_v29  ;;  %v1288_v36 = vld [vmem:[%s1495_s9 + $0x54] sm:$0xf0]  ;;  %v1181_v37 = vld [vmem:[%s1495_s9 + $0x148] sm:$0xf] }
  0x43   : > { %779 = vmatpush.bf16.msrb.mxu3 %v1266_v52  ;;  %703 = vmatmul.bf16.vlgmr.msra.gmra.mxu1 %v1583_v59  ;;  %v1202_v38 = vor.u32 %v1322_v30, %v1199_v31  ;;  %v1320_v39 = vld [vmem:[%s1495_s9 + $0x154] sm:$0xf0]  ;;  %v1286_v40 = vld [vmem:[%s1495_s9 + $0x4c] sm:$0xf]  ;;  %v1055_v41 = vld [vmem:[%s1495_s9 + $0x58] sm:$0xf0]  ;;  %v1054_v44 = vor.u32 %v1288_v36, %v1053_v35 }
  0x44   : > { %731 = vmatmul.bf16.vlgmr.msra.gmra.mxu3 %v1583_v59  ;;  %v1318_v42 = vld [vmem:[%s1495_s9 + $0x14c] sm:$0xf]  ;;  %v1183_v43 = vld [vmem:[%s1495_s9 + $0x158] sm:$0xf0]  ;;  %v1182_v45 = vor.u32 %v1320_v39, %v1181_v37  ;;  %v1058_v46 = vor.u32 %v1286_v40, %v1055_v41  ;;  %v1037_v47 = vld [vmem:[%s1495_s9 + $0x28] sm:$0xf] }
  0x45   : > { %738 = vmatpush.bf16.msrb.mxu0 %v1118_v60  ;;  %v1284_v48 = vld [vmem:[%s1495_s9 + $0x34] sm:$0xf0]  ;;  %v1165_v49 = vld [vmem:[%s1495_s9 + $0x128] sm:$0xf]  ;;  %v1186_v50 = vor.u32 %v1318_v42, %v1183_v43  ;;  %v1282_v52 = vld [vmem:[%s1495_s9 + $0x2c] sm:$0xf] }
  0x46   : > { %752 = vmatpush.bf16.msrb.mxu1 %v1246_v61  ;;  %766 = vmatpush.bf16.msrb.mxu2 %v1122_v62  ;;  %v1316_v51 = vld [vmem:[%s1495_s9 + $0x134] sm:$0xf0]  ;;  %v1039_v53 = vld [vmem:[%s1495_s9 + $0x38] sm:$0xf0]  ;;  %v1314_v54 = vld [vmem:[%s1495_s9 + $0x12c] sm:$0xf]  ;;  %v1038_v57 = vor.u32 %v1284_v48, %v1037_v47 }
  0x47   : > { %780 = vmatpush.bf16.msrb.mxu3 %v1250_v2  ;;  %v1167_v55 = vld [vmem:[%s1495_s9 + $0x138] sm:$0xf0]  ;;  %v1166_v58 = vor.u32 %v1316_v51, %v1165_v49  ;;  %v1042_v60 = vor.u32 %v1282_v52, %v1039_v53  ;;  %v1021_v61 = vld [vmem:[%s1495_s9 + $0x8] sm:$0xf]  ;;  %v1280_v62 = vld [vmem:[%s1495_s9 + $0x14] sm:$0xf0] }
  0x48   : > { %v1149_v63 = vld [vmem:[%s1495_s9 + $0x108] sm:$0xf]  ;;  %v1170_v0 = vor.u32 %v1314_v54, %v1167_v55  ;;  %v1312_v1 = vld [vmem:[%s1495_s9 + $0x114] sm:$0xf0]  ;;  %v1278_v2 = vld [vmem:[%s1495_s9 + $0xc] sm:$0xf]  ;;  %v1022_v6 = vor.u32 %v1280_v62, %v1021_v61 }
  0x49   : > { %739 = vmatpush.bf16.msrb.mxu0 %v1102_v8  ;;  %v1023_v3 = vld [vmem:[%s1495_s9 + $0x18] sm:$0xf0]  ;;  %v1310_v4 = vld [vmem:[%s1495_s9 + $0x10c] sm:$0xf]  ;;  %v1150_v7 = vor.u32 %v1312_v1, %v1149_v63 }
  0x4a   : > { %753 = vmatpush.bf16.msrb.mxu1 %v1230_v9  ;;  %767 = vmatpush.bf16.msrb.mxu2 %v1106_v10  ;;  %v1151_v5 = vld [vmem:[%s1495_s9 + $0x118] sm:$0xf0]  ;;  %v1026_v8 = vor.u32 %v1278_v2, %v1023_v3 }
  0x4b   : > { %781 = vmatpush.bf16.msrb.mxu3 %v1234_v14  ;;  %v1154_v9 = vor.u32 %v1310_v4, %v1151_v5 }
  0x4d   : > { %740 = vmatpush.bf16.msrb.mxu0 %v1086_v20 }
  0x4e   : > { %754 = vmatpush.bf16.msrb.mxu1 %v1214_v21  ;;  %768 = vmatpush.bf16.msrb.mxu2 %v1090_v22 }
  0x4f   : > { %782 = vmatpush.bf16.msrb.mxu3 %v1218_v26 }
  0x51   : > { %741 = vmatpush.bf16.msrb.mxu0 %v1070_v32 }
  0x52   : > { %755 = vmatpush.bf16.msrb.mxu1 %v1198_v33  ;;  %769 = vmatpush.bf16.msrb.mxu2 %v1074_v34 }
  0x53   : > { %783 = vmatpush.bf16.msrb.mxu3 %v1202_v38 }
  0x55   : > { %742 = vmatpush.bf16.msrb.mxu0 %v1054_v44 }
  0x56   : > { %756 = vmatpush.bf16.msrb.mxu1 %v1182_v45  ;;  %770 = vmatpush.bf16.msrb.mxu2 %v1058_v46 }
  0x57   : > { %784 = vmatpush.bf16.msrb.mxu3 %v1186_v50 }
  0x59   : > { %743 = vmatpush.bf16.msrb.mxu0 %v1038_v57 }
  0x5a   : > { %757 = vmatpush.bf16.msrb.mxu1 %v1166_v58  ;;  %771 = vmatpush.bf16.msrb.mxu2 %v1042_v60 }
  0x5b   : > { %785 = vmatpush.bf16.msrb.mxu3 %v1170_v0 }
  0x5d   : > { %744 = vmatpush.bf16.msrb.mxu0 %v1022_v6 }
  0x5e   : > { %758 = vmatpush.bf16.msrb.mxu1 %v1150_v7  ;;  %772 = vmatpush.bf16.msrb.mxu2 %v1026_v8 }
  0x5f   : > { %786 = vmatpush.bf16.msrb.mxu3 %v1154_v9 }
  0x60   : > { %745 = vmatmul.bf16.vlgmr.msrb.gmra.mxu0 %v1579_v56 }
  0x61   : > { %759 = vmatmul.bf16.vlgmr.msrb.gmra.mxu1 %v1583_v59  ;;  %773 = vmatmul.bf16.vlgmr.msrb.gmra.mxu2 %v1579_v56 }
  0x62   : > { %787 = vmatmul.bf16.vlgmr.msrb.gmra.mxu3 %v1583_v59 }
  0xbd   : > { %v690_v10 = vpop.f32.mrf.mxu0 }
  0xc0   : > { %v704_v11 = vpop.f32.mrf.mxu1 }
  0xc1   : > { %v1641_v12 = vadd.f32 %v704_v11, %v690_v10 }
  0xc4   : > { %v718_v13 = vpop.f32.mrf.mxu2 }
  0xc5   : > { %v692_v16 = vpop.f32.mrf.mxu0 }
  0xc7   : > { %v732_v14 = vpop.f32.mrf.mxu3 }
  0xc8   : > { %v1643_v15 = vadd.f32 %v732_v14, %v718_v13  ;;  %v706_v17 = vpop.f32.mrf.mxu1 }
  0xc9   : > { %v1645_v18 = vadd.f32 %v706_v17, %v692_v16 }
  0xcc   : > { %v720_v19 = vpop.f32.mrf.mxu2 }
  0xcf   : > { %v734_v20 = vpop.f32.mrf.mxu3 }
  0xd0   : > { %v1647_v21 = vadd.f32 %v734_v20, %v720_v19 }
  0xdd   : > { %v746_v22 = vpop.f32.mrf.mxu0 }
  0xde   : > { %v760_v56 = vpop.f32.mrf.mxu1 }
  0xdf   : > { %v1649_v23 = vadd.f32 %v760_v56, %v746_v22 }
  0xe4   : > { %v774_v59 = vpop.f32.mrf.mxu2 }
  0xe5   : > { %v788_v24 = vpop.f32.mrf.mxu3  ;;  %v748_v25 = vpop.f32.mrf.mxu0 }
  0xe6   : > { %v1651_v26 = vadd.f32 %v788_v24, %v774_v59  ;;  %v762_v27 = vpop.f32.mrf.mxu1 }
  0xe7   : > { %v1653_v28 = vadd.f32 %v762_v27, %v748_v25 }
  0xea   : > { %796 = sbr.rel (%p1267_p10) target bundleno = 247 (0xf7), region = 78 }
  0xec   : > { %v776_v29 = vpop.f32.mrf.mxu2 }
  0xed   : > { %v790_v30 = vpop.f32.mrf.mxu3 }
  0xee   : > { %v1655_v31 = vadd.f32 %v790_v30, %v776_v29 }
  0xef   : > { %797 = vst [vmem:[%s1830_s4] sm:$0xff] %v1641_v12 }
  0xf0   : > { %798 = vst [vmem:[%s1830_s4 + $0x8] sm:$0xff] %v1643_v15 }
  0xf1   : > { %799 = vst [vmem:[%s1830_s4 + $0x10] sm:$0xff] %v1649_v23 }
  0xf2   : > { %800 = vst [vmem:[%s1830_s4 + $0x18] sm:$0xff] %v1651_v26 }
  0xf3   : > { %801 = vst [vmem:[%s1830_s4 + $0x20] sm:$0xff] %v1645_v18 }
  0xf4   : > { %802 = vst [vmem:[%s1830_s4 + $0x28] sm:$0xff] %v1647_v21 }
  0xf5   : > { %803 = vst [vmem:[%s1830_s4 + $0x30] sm:$0xff] %v1653_v28 }
  0xf6   : > { %804 = vst [vmem:[%s1830_s4 + $0x38] sm:$0xff] %v1655_v31 }
  0xf7 PF: > { %p805_p11 = scmp.gt.s32.totalorder %s1411_s17, 0  ;;  %p806_p12 = scmp.lt.s32.totalorder %s1411_s17, 17 }
  0xf9   : > { %p807_p13 = pnand %p806_p12, %p805_p11 }
  0xfb   : > { %810 = sbr.rel (%p807_p13) target bundleno = 267 (0x10b), region = 82 }
 0x100   : > { %v811_v32 = vld [vmem:[%s1830_s4] sm:$0xff]  ;;  %v812_v33 = vld [vmem:[%s1830_s4 + $0x8] sm:$0xff]  ;;  %v813_v34 = vld [vmem:[%s1830_s4 + $0x10] sm:$0xff] }
 0x101   : > { %v819_v35 = vadd.f32 %v811_v32, %v1641_v12  ;;  %v820_v36 = vadd.f32 %v812_v33, %v1643_v15  ;;  %v821_v37 = vadd.f32 %v813_v34, %v1649_v23  ;;  %v814_v38 = vld [vmem:[%s1830_s4 + $0x18] sm:$0xff]  ;;  %v815_v39 = vld [vmem:[%s1830_s4 + $0x20] sm:$0xff]  ;;  %v816_v40 = vld [vmem:[%s1830_s4 + $0x28] sm:$0xff] }
 0x102   : > { %v822_v41 = vadd.f32 %v814_v38, %v1651_v26  ;;  %v817_v42 = vld [vmem:[%s1830_s4 + $0x30] sm:$0xff]  ;;  %v823_v43 = vadd.f32 %v815_v39, %v1645_v18  ;;  %v818_v44 = vld [vmem:[%s1830_s4 + $0x38] sm:$0xff]  ;;  %v824_v45 = vadd.f32 %v816_v40, %v1647_v21 }
 0x103   : > { %827 = vst [vmem:[%s1830_s4] sm:$0xff] %v819_v35  ;;  %v825_v46 = vadd.f32 %v817_v42, %v1653_v28  ;;  %v826_v47 = vadd.f32 %v818_v44, %v1655_v31 }
 0x104   : > { %828 = vst [vmem:[%s1830_s4 + $0x8] sm:$0xff] %v820_v36 }
 0x105   : > { %829 = vst [vmem:[%s1830_s4 + $0x10] sm:$0xff] %v821_v37 }
 0x106   : > { %830 = vst [vmem:[%s1830_s4 + $0x18] sm:$0xff] %v822_v41 }
 0x107   : > { %831 = vst [vmem:[%s1830_s4 + $0x20] sm:$0xff] %v823_v43 }
 0x108   : > { %832 = vst [vmem:[%s1830_s4 + $0x28] sm:$0xff] %v824_v45 }
 0x109   : > { %833 = vst [vmem:[%s1830_s4 + $0x30] sm:$0xff] %v825_v46 }
 0x10a   : > { %834 = vst [vmem:[%s1830_s4 + $0x38] sm:$0xff] %v826_v47 }
 0x10b PF: > { %p1268_p0 = scmp.ne.s32.totalorder %s1411_s17, 17 }
 0x10d   : > { %838 = sbr.rel (%p1268_p0) target bundleno = 292 (0x124), region = 86 }
 0x112   : > { %v839_v48 = vld [vmem:[%s1830_s4] sm:$0xff]  ;;  %v840_v54 = vld [vmem:[%s1830_s4 + $0x8] sm:$0xff]  ;;  %v841_v57 = vld [vmem:[%s1830_s4 + $0x10] sm:$0xff] }
 0x113   : > { %v855_v49 = vld [vmem:[%s1828_s2] sm:$0xf]  ;;  %v847_v51 = vadd.f32 %v839_v48, %v1641_v12  ;;  %v842_v58 = vld [vmem:[%s1830_s4 + $0x18] sm:$0xff]  ;;  %v848_v60 = vadd.f32 %v840_v54, %v1643_v15  ;;  %v849_v62 = vadd.f32 %v841_v57, %v1649_v23  ;;  %v844_v1 = vld [vmem:[%s1830_s4 + $0x28] sm:$0xff] }
 0x114   : > { %v873_v50 = vld [vmem:[%s1829_s3] sm:$0xf]  ;;  %v857_v52 = vperm.slane %v855_v49, 0  ;;  %v858_v55 = vperm.slane %v855_v49, 1  ;;  %v859_v63 = vperm.slane %v855_v49, 2  ;;  %v845_v2 = vld [vmem:[%s1830_s4 + $0x30] sm:$0xff]  ;;  %v850_v5 = vadd.f32 %v842_v58, %v1651_v26 }
 0x115   : > { %v875_v53 = vperm.slane %v873_v50, 0  ;;  %v876_v61 = vperm.slane %v873_v50, 1  ;;  %v843_v0 = vld [vmem:[%s1830_s4 + $0x20] sm:$0xff]  ;;  %v877_v4 = vperm.slane %v873_v50, 2  ;;  %v860_v6 = vperm.slane %v855_v49, 3  ;;  %v846_v7 = vld [vmem:[%s1830_s4 + $0x38] sm:$0xff] }
 0x116   : > { %v865_v3 = vmul.f32 %v857_v52, %v847_v51  ;;  %v866_v8 = vmul.f32 %v858_v55, %v848_v60  ;;  %v867_v9 = vmul.f32 %v859_v63, %v849_v62  ;;  %v878_v10 = vperm.slane %v873_v50, 3 }
 0x117   : > { %v851_v11 = vadd.f32 %v843_v0, %v1645_v18  ;;  %v868_v13 = vmul.f32 %v860_v6, %v850_v5  ;;  %v852_v14 = vadd.f32 %v844_v1, %v1647_v21  ;;  %v853_v15 = vadd.f32 %v845_v2, %v1653_v28 }
 0x118   : > { %v883_v12 = vadd.f32 %v875_v53, %v865_v3  ;;  %v884_v16 = vadd.f32 %v876_v61, %v866_v8  ;;  %v885_v17 = vadd.f32 %v877_v4, %v867_v9  ;;  %v854_v20 = vadd.f32 %v846_v7, %v1655_v31 }
 0x119   : > { %v869_v19 = vmul.f32 %v857_v52, %v851_v11  ;;  %v886_v56 = vadd.f32 %v878_v10, %v868_v13  ;;  %v870_v23 = vmul.f32 %v858_v55, %v852_v14  ;;  %v871_v59 = vmul.f32 %v859_v63, %v853_v15 }
 0x11a   : > { %v891_v22 = vmax.f32 %v883_v12, 0.0  ;;  %v892_v24 = vmax.f32 %v884_v16, 0.0  ;;  %v893_v25 = vmax.f32 %v885_v17, 0.0  ;;  %v872_v27 = vmul.f32 %v860_v6, %v854_v20 }
 0x11b   : > { %v887_v26 = vadd.f32 %v875_v53, %v869_v19  ;;  %v894_v18 = vmax.f32 %v886_v56, 0.0  ;;  %v888_v21 = vadd.f32 %v876_v61, %v870_v23  ;;  %v889_v28 = vadd.f32 %v877_v4, %v871_v59 }
 0x11c   : > { %899 = vst [vmem:[%s1830_s4] sm:$0xff] %v891_v22  ;;  %v890_v30 = vadd.f32 %v878_v10, %v872_v27 }
 0x11d   : > { %900 = vst [vmem:[%s1830_s4 + $0x8] sm:$0xff] %v892_v24  ;;  %v895_v29 = vmax.f32 %v887_v26, 0.0  ;;  %v896_v31 = vmax.f32 %v888_v21, 0.0  ;;  %v897_v32 = vmax.f32 %v889_v28, 0.0 }
 0x11e   : > { %901 = vst [vmem:[%s1830_s4 + $0x10] sm:$0xff] %v893_v25  ;;  %v898_v33 = vmax.f32 %v890_v30, 0.0 }
 0x11f   : > { %902 = vst [vmem:[%s1830_s4 + $0x18] sm:$0xff] %v894_v18 }
 0x120   : > { %903 = vst [vmem:[%s1830_s4 + $0x20] sm:$0xff] %v895_v29 }
 0x121   : > { %904 = vst [vmem:[%s1830_s4 + $0x28] sm:$0xff] %v896_v31 }
 0x122   : > { %905 = vst [vmem:[%s1830_s4 + $0x30] sm:$0xff] %v897_v32 }
 0x123   : > { %906 = vst [vmem:[%s1830_s4 + $0x38] sm:$0xff] %v898_v33 }
 0x124 PF: > { %s14_s19 = sadd.s32 1, %s1419_s19   ;;  %s1831_s15 = smov %s1407_s16 }
 0x125   : > { %p11_p1 = scmp.ge.s32.totalorder %s14_s19, 20   ;;  %s1832_s16 = smov %s1481_s23 }
 0x126   : > { %s1833_s17 = smov %s1415_s18  ;;  %s1834_s18 = smov %s1836_s20 }
 0x127   :  { %13 = sbr.rel (!%p11_p1) target bundleno = 3 (0x3), region = 124 }

// kernel: alzheimer_resnet_forward.39
= control target key start
LH: loop header
LB: loop body
LE: loop exit
PB: predicated region body
PF: predicated region fallthrough
CT: control target
= control target key end

     0   :  { %s1535_s18 = smov 0   ;;  %s1537_s19 = smov 0   ;;  %s1939_s0 = inlined_call_operand.vmem [shape: bf16[16,4608], index: 0, kind: input, shape index: {}]   ;;  %s1940_s1 = inlined_call_operand.vmem [shape: bf16[4608,512], index: 1, kind: input, shape index: {}]   ;;  %s1941_s2 = inlined_call_operand.vmem [shape: f32[1,512], index: 2, kind: input, shape index: {}]   ;;  %s1942_s3 = inlined_call_operand.vmem [shape: f32[1,512], index: 3, kind: input, shape index: {}]   ;;  %s1943_s4 = inlined_call_operand.vmem [shape: f32[16,512], index: 4, kind: input, shape index: {}]   ;;  %s1944_s5 = inlined_call_operand.vmem [shape: f32[16,512], index: 5, kind: output, shape index: {}]  }
   0x1   :  { %s1539_s20 = smov 0   ;;  %s1541_s21 = smov 0  }
   0x2   :  { %s1543_s22 = smov 0  }
   0x3 LB: > { %s24_s23 = sadd.s32 1, %s1499_s21  ;;  %p43_p1 = scmp.ne.s32.totalorder %s1491_s19, %s1487_s18  ;;  %s1503_s22 = sphi %s1543_s22, %s15_s22   ;;  %s1499_s21 = sphi %s1541_s21, %s1948_s21   ;;  %s1495_s20 = sphi %s1539_s20, %s1947_s20   ;;  %s1491_s19 = sphi %s1537_s19, %s1946_s19   ;;  %s1487_s18 = sphi %s1535_s18, %s1945_s18  }
   0x4   : > { %p25_p0 = scmp.ge.s32.totalorder %s24_s23, 18  ;;  %p44_p2 = scmp.eq.s32.totalorder %s1503_s22, 0 }
   0x5   : > { %s36_s25 = sadd.s32 1, %s1491_s19  ;;  %p1078_p5 = scmp.ge.s32.totalorder %s1503_s22, 18 }
   0x6   : > { %s1950_s23 = smov (%p25_p0, %s24_s23), 0  ;;  %p45_p3 = por %p44_p2, %p43_p1 }
   0x7   : > { %s32_s24 = ssub.s32 %s1499_s21, %s1950_s23  ;;  %205 = sbr.rel (%p1078_p5) target bundleno = 18 (0x12), region = 28 }
   0x8   : > { %p34_p4 = scmp.eq.s32.totalorder %s32_s24, 0 }
   0xa   : > { %s1570_s26 = scalar_select %p34_p4, %s1491_s19, %s36_s25  }
   0xc   : > { %208 = sbr.rel (!%p45_p3) target bundleno = 18 (0x12), region = 32  ;;  %s210_s27 = sand.u32 (%p45_p3), 1, %s1491_s19  }
   0xd   : > { %s1357_s28 = sshll.u32 (%p45_p3), %s1499_s21, 3  ;;  %s1079_s29 = sshll.u32 (%p45_p3), %s210_s27, 4 }
   0xe   : > { %s218_s7 = scalar_lea.vmem (%p45_p3), %s1939_s0, %s1357_s28  ;;  %s212_s8 = scalar_lea.vmem (%p45_p3), [#allocation2], %s1079_s29 }
   0xf   : > { %v249_v0 = vld [vmem:[%s218_s7] sm:$0xff] (%p45_p3)  ;;  %v251_v1 = vld [vmem:[%s218_s7 + $0x90] sm:$0xff] (%p45_p3) }
  0x10   : > { %250 = vst [vmem:[%s212_s8] sm:$0xff] (%p45_p3), %v249_v0 }
  0x11   : > { %252 = vst [vmem:[%s212_s8 + $0x8] sm:$0xff] %v251_v1 }
  0x12 PF: > { %p1082_p6 = scmp.ge.s32.totalorder %s1503_s22, 1  ;;  %p267_p7 = scmp.lt.s32.totalorder %s1503_s22, 19 }
  0x14   : > { %p268_p8 = pnand %p1082_p6, %p267_p7 }
  0x15   : > { %s1084_s9 = sshll.u32 (!%p268_p8), %s1495_s20, 5  ;;  %s274_s14 = sand.u32 (!%p268_p8), 1, %s1487_s18  }
  0x16   : > { %271 = sbr.rel (%p268_p8) target bundleno = 294 (0x126), region = 74  ;;  %p317_p9 = scmp.lt.s32.totalorder (!%p268_p8), %s1084_s9, 575 }
  0x17   : > { %s1635_s15 = sshll.u32 (!%p268_p8), %s274_s14, 4  ;;  %p1351_p10 = scmp.ne.s32.totalorder (!%p268_p8), %s1495_s20, 0 }
  0x18   : > { %s276_s16 = scalar_lea.vmem (!%p268_p8), [#allocation2], %s1635_s15 }
  0x1b   : > { %s1952_s9 = smov (!%p317_p9, %s1084_s9), 575 }
  0x1c   : > { %s1358_s10 = sshll.u32 %s1952_s9, 4 }
  0x1d   : > { %s1584_s13 = scalar_lea.vmem %s1940_s1, %s1358_s10 }
  0x1e   : > { %v1209_v2 = vld [vmem:[%s1584_s13 + $0xe0] sm:$0xf]  ;;  %v1391_v3 = vld [vmem:[%s1584_s13 + $0xec] sm:$0xf0]  ;;  %v1389_v7 = vld [vmem:[%s1584_s13 + $0xe4] sm:$0xf] }
  0x1f   : > { %v1337_v4 = vld [vmem:[%s1584_s13 + $0x1e0] sm:$0xf]  ;;  %v1210_v5 = vor.u32 %v1391_v3, %v1209_v2  ;;  %v1423_v6 = vld [vmem:[%s1584_s13 + $0x1ec] sm:$0xf0]  ;;  %v1211_v8 = vld [vmem:[%s1584_s13 + $0xf0] sm:$0xf0] }
  0x20   : > { %v1338_v9 = vor.u32 %v1423_v6, %v1337_v4  ;;  %v1214_v10 = vor.u32 %v1389_v7, %v1211_v8  ;;  %v1421_v11 = vld [vmem:[%s1584_s13 + $0x1e4] sm:$0xf]  ;;  %v1339_v12 = vld [vmem:[%s1584_s13 + $0x1f0] sm:$0xf0]  ;;  %v1193_v13 = vld [vmem:[%s1584_s13 + $0xc0] sm:$0xf] }
  0x21   : > { %733 = vmatpush.bf16.msra.mxu0 %v1210_v5  ;;  %v1342_v14 = vor.u32 %v1421_v11, %v1339_v12  ;;  %v1387_v15 = vld [vmem:[%s1584_s13 + $0xcc] sm:$0xf0]  ;;  %v1321_v16 = vld [vmem:[%s1584_s13 + $0x1c0] sm:$0xf]  ;;  %v1385_v20 = vld [vmem:[%s1584_s13 + $0xc4] sm:$0xf] }
  0x22   : > { %v1419_v17 = vld [vmem:[%s1584_s13 + $0x1cc] sm:$0xf0]  ;;  %747 = vmatpush.bf16.msra.mxu1 %v1338_v9  ;;  %761 = vmatpush.bf16.msra.mxu2 %v1214_v10  ;;  %v1194_v18 = vor.u32 %v1387_v15, %v1193_v13  ;;  %v1195_v21 = vld [vmem:[%s1584_s13 + $0xd0] sm:$0xf0]  ;;  %v1417_v22 = vld [vmem:[%s1584_s13 + $0x1c4] sm:$0xf] }
  0x23   : > { %v1322_v19 = vor.u32 %v1419_v17, %v1321_v16  ;;  %775 = vmatpush.bf16.msra.mxu3 %v1342_v14  ;;  %v1198_v23 = vor.u32 %v1385_v20, %v1195_v21  ;;  %v1323_v24 = vld [vmem:[%s1584_s13 + $0x1d0] sm:$0xf0]  ;;  %v1177_v25 = vld [vmem:[%s1584_s13 + $0xa0] sm:$0xf]  ;;  %v1383_v26 = vld [vmem:[%s1584_s13 + $0xac] sm:$0xf0] }
  0x24   : > { %v1326_v27 = vor.u32 %v1417_v22, %v1323_v24  ;;  %v1305_v28 = vld [vmem:[%s1584_s13 + $0x1a0] sm:$0xf]  ;;  %v1415_v29 = vld [vmem:[%s1584_s13 + $0x1ac] sm:$0xf0]  ;;  %v1381_v30 = vld [vmem:[%s1584_s13 + $0xa4] sm:$0xf]  ;;  %v1178_v31 = vor.u32 %v1383_v26, %v1177_v25 }
  0x25   : > { %734 = vmatpush.bf16.msra.mxu0 %v1194_v18  ;;  %v1179_v32 = vld [vmem:[%s1584_s13 + $0xb0] sm:$0xf0]  ;;  %v1413_v33 = vld [vmem:[%s1584_s13 + $0x1a4] sm:$0xf]  ;;  %v1306_v35 = vor.u32 %v1415_v29, %v1305_v28  ;;  %v1161_v37 = vld [vmem:[%s1584_s13 + $0x80] sm:$0xf] }
  0x26   : > { %v1307_v34 = vld [vmem:[%s1584_s13 + $0x1b0] sm:$0xf0]  ;;  %748 = vmatpush.bf16.msra.mxu1 %v1322_v19  ;;  %762 = vmatpush.bf16.msra.mxu2 %v1198_v23  ;;  %v1182_v36 = vor.u32 %v1381_v30, %v1179_v32  ;;  %v1379_v38 = vld [vmem:[%s1584_s13 + $0x8c] sm:$0xf0]  ;;  %v1289_v39 = vld [vmem:[%s1584_s13 + $0x180] sm:$0xf] }
  0x27   : > { %776 = vmatpush.bf16.msra.mxu3 %v1326_v27  ;;  %v1310_v40 = vor.u32 %v1413_v33, %v1307_v34  ;;  %v1411_v41 = vld [vmem:[%s1584_s13 + $0x18c] sm:$0xf0]  ;;  %v1377_v42 = vld [vmem:[%s1584_s13 + $0x84] sm:$0xf]  ;;  %v1163_v43 = vld [vmem:[%s1584_s13 + $0x90] sm:$0xf0]  ;;  %v1162_v46 = vor.u32 %v1379_v38, %v1161_v37 }
  0x28   : > { %v1409_v44 = vld [vmem:[%s1584_s13 + $0x184] sm:$0xf]  ;;  %v1291_v45 = vld [vmem:[%s1584_s13 + $0x190] sm:$0xf0]  ;;  %v1290_v47 = vor.u32 %v1411_v41, %v1289_v39  ;;  %v1166_v48 = vor.u32 %v1377_v42, %v1163_v43  ;;  %v1145_v49 = vld [vmem:[%s1584_s13 + $0x60] sm:$0xf] }
  0x29   : > { %735 = vmatpush.bf16.msra.mxu0 %v1178_v31  ;;  %v1375_v50 = vld [vmem:[%s1584_s13 + $0x6c] sm:$0xf0]  ;;  %v1273_v51 = vld [vmem:[%s1584_s13 + $0x160] sm:$0xf]  ;;  %v1294_v52 = vor.u32 %v1409_v44, %v1291_v45  ;;  %v1373_v54 = vld [vmem:[%s1584_s13 + $0x64] sm:$0xf] }
  0x2a   : > { %749 = vmatpush.bf16.msra.mxu1 %v1306_v35  ;;  %763 = vmatpush.bf16.msra.mxu2 %v1182_v36  ;;  %v1407_v53 = vld [vmem:[%s1584_s13 + $0x16c] sm:$0xf0]  ;;  %v1147_v55 = vld [vmem:[%s1584_s13 + $0x70] sm:$0xf0]  ;;  %v1405_v56 = vld [vmem:[%s1584_s13 + $0x164] sm:$0xf]  ;;  %v1146_v58 = vor.u32 %v1375_v50, %v1145_v49 }
  0x2b   : > { %777 = vmatpush.bf16.msra.mxu3 %v1310_v40  ;;  %v1275_v57 = vld [vmem:[%s1584_s13 + $0x170] sm:$0xf0]  ;;  %v1274_v59 = vor.u32 %v1407_v53, %v1273_v51  ;;  %v1150_v60 = vor.u32 %v1373_v54, %v1147_v55  ;;  %v1129_v61 = vld [vmem:[%s1584_s13 + $0x40] sm:$0xf]  ;;  %v1371_v62 = vld [vmem:[%s1584_s13 + $0x4c] sm:$0xf0] }
  0x2c   : > { %v1257_v63 = vld [vmem:[%s1584_s13 + $0x140] sm:$0xf]  ;;  %v1278_v0 = vor.u32 %v1405_v56, %v1275_v57  ;;  %v1403_v1 = vld [vmem:[%s1584_s13 + $0x14c] sm:$0xf0]  ;;  %v1369_v2 = vld [vmem:[%s1584_s13 + $0x44] sm:$0xf]  ;;  %v1130_v6 = vor.u32 %v1371_v62, %v1129_v61 }
  0x2d   : > { %736 = vmatpush.bf16.msra.mxu0 %v1162_v46  ;;  %v1131_v3 = vld [vmem:[%s1584_s13 + $0x50] sm:$0xf0]  ;;  %v1401_v4 = vld [vmem:[%s1584_s13 + $0x144] sm:$0xf]  ;;  %v1258_v7 = vor.u32 %v1403_v1, %v1257_v63  ;;  %v1113_v9 = vld [vmem:[%s1584_s13 + $0x20] sm:$0xf] }
  0x2e   : > { %750 = vmatpush.bf16.msra.mxu1 %v1290_v47  ;;  %764 = vmatpush.bf16.msra.mxu2 %v1166_v48  ;;  %v1259_v5 = vld [vmem:[%s1584_s13 + $0x150] sm:$0xf0]  ;;  %v1134_v8 = vor.u32 %v1369_v2, %v1131_v3  ;;  %v1367_v10 = vld [vmem:[%s1584_s13 + $0x2c] sm:$0xf0]  ;;  %v1241_v11 = vld [vmem:[%s1584_s13 + $0x120] sm:$0xf] }
  0x2f   : > { %778 = vmatpush.bf16.msra.mxu3 %v1294_v52  ;;  %v1262_v12 = vor.u32 %v1401_v4, %v1259_v5  ;;  %v1399_v13 = vld [vmem:[%s1584_s13 + $0x12c] sm:$0xf0]  ;;  %v1365_v14 = vld [vmem:[%s1584_s13 + $0x24] sm:$0xf]  ;;  %v1115_v15 = vld [vmem:[%s1584_s13 + $0x30] sm:$0xf0]  ;;  %v1114_v18 = vor.u32 %v1367_v10, %v1113_v9 }
  0x30   : > { %v1397_v16 = vld [vmem:[%s1584_s13 + $0x124] sm:$0xf]  ;;  %v1243_v17 = vld [vmem:[%s1584_s13 + $0x130] sm:$0xf0]  ;;  %v1097_v19 = vld [vmem:[%s1584_s13] sm:$0xf]  ;;  %v1242_v22 = vor.u32 %v1399_v13, %v1241_v11  ;;  %v1118_v23 = vor.u32 %v1365_v14, %v1115_v15 }
  0x31   : > { %737 = vmatpush.bf16.msra.mxu0 %v1146_v58  ;;  %v1363_v20 = vld [vmem:[%s1584_s13 + $0xc] sm:$0xf0]  ;;  %v1225_v21 = vld [vmem:[%s1584_s13 + $0x100] sm:$0xf]  ;;  %v1361_v25 = vld [vmem:[%s1584_s13 + $0x4] sm:$0xf]  ;;  %v1246_v27 = vor.u32 %v1397_v16, %v1243_v17 }
  0x32   : > { %751 = vmatpush.bf16.msra.mxu1 %v1274_v59  ;;  %765 = vmatpush.bf16.msra.mxu2 %v1150_v60  ;;  %v1395_v24 = vld [vmem:[%s1584_s13 + $0x10c] sm:$0xf0]  ;;  %v1099_v26 = vld [vmem:[%s1584_s13 + $0x10] sm:$0xf0]  ;;  %v1393_v28 = vld [vmem:[%s1584_s13 + $0x104] sm:$0xf]  ;;  %v1098_v34 = vor.u32 %v1363_v20, %v1097_v19 }
  0x33   : > { %779 = vmatpush.bf16.msra.mxu3 %v1278_v0  ;;  %v1227_v29 = vld [vmem:[%s1584_s13 + $0x110] sm:$0xf0]  ;;  %v1217_v30 = vld [vmem:[%s1584_s13 + $0xe8] sm:$0xf]  ;;  %v1392_v31 = vld [vmem:[%s1584_s13 + $0xf4] sm:$0xf0]  ;;  %v1226_v38 = vor.u32 %v1395_v24, %v1225_v21  ;;  %v1102_v39 = vor.u32 %v1361_v25, %v1099_v26 }
  0x34   : > { %v1345_v32 = vld [vmem:[%s1584_s13 + $0x1e8] sm:$0xf]  ;;  %v1424_v33 = vld [vmem:[%s1584_s13 + $0x1f4] sm:$0xf0]  ;;  %v1390_v35 = vld [vmem:[%s1584_s13 + $0xec] sm:$0xf]  ;;  %v1230_v43 = vor.u32 %v1393_v28, %v1227_v29  ;;  %v1218_v44 = vor.u32 %v1392_v31, %v1217_v30 }
  0x35   : > { %738 = vmatpush.bf16.msra.mxu0 %v1130_v6  ;;  %v1219_v36 = vld [vmem:[%s1584_s13 + $0xf8] sm:$0xf0]  ;;  %v1422_v37 = vld [vmem:[%s1584_s13 + $0x1ec] sm:$0xf]  ;;  %v1089_v41 = vld [vmem:[%s276_s16] sm:$0xf]  ;;  %v1346_v47 = vor.u32 %v1424_v33, %v1345_v32 }
  0x36   : > { %752 = vmatpush.bf16.msra.mxu1 %v1258_v7  ;;  %766 = vmatpush.bf16.msra.mxu2 %v1134_v8  ;;  %v1347_v40 = vld [vmem:[%s1584_s13 + $0x1f8] sm:$0xf0]  ;;  %v1360_v42 = vld [vmem:[%s276_s16 + $0x4] sm:$0xf0]  ;;  %v1359_v45 = vld [vmem:[%s276_s16 + $0x4] sm:$0xf]  ;;  %v1222_v48 = vor.u32 %v1390_v35, %v1219_v36 }
  0x37   : > { %780 = vmatpush.bf16.msra.mxu3 %v1262_v12  ;;  %v1091_v46 = vld [vmem:[%s276_s16 + $0x8] sm:$0xf0]  ;;  %v1201_v49 = vld [vmem:[%s1584_s13 + $0xc8] sm:$0xf]  ;;  %v1388_v50 = vld [vmem:[%s1584_s13 + $0xd4] sm:$0xf0]  ;;  %v1350_v52 = vor.u32 %v1422_v37, %v1347_v40  ;;  %v1668_v56 = vor.u32 %v1360_v42, %v1089_v41 }
  0x38   : > { %v1329_v51 = vld [vmem:[%s1584_s13 + $0x1c8] sm:$0xf]  ;;  %v1420_v53 = vld [vmem:[%s1584_s13 + $0x1d4] sm:$0xf0]  ;;  %v1386_v54 = vld [vmem:[%s1584_s13 + $0xcc] sm:$0xf]  ;;  %v1672_v59 = vor.u32 %v1359_v45, %v1091_v46  ;;  %v1202_v60 = vor.u32 %v1388_v50, %v1201_v49 }
  0x39   : > { %739 = vmatpush.bf16.msra.mxu0 %v1114_v18  ;;  %v1203_v55 = vld [vmem:[%s1584_s13 + $0xd8] sm:$0xf0]  ;;  %v1418_v57 = vld [vmem:[%s1584_s13 + $0x1cc] sm:$0xf]  ;;  %v1330_v61 = vor.u32 %v1420_v53, %v1329_v51  ;;  %v1185_v63 = vld [vmem:[%s1584_s13 + $0xa8] sm:$0xf] }
  0x3a   : > { %753 = vmatpush.bf16.msra.mxu1 %v1242_v22  ;;  %767 = vmatpush.bf16.msra.mxu2 %v1118_v23  ;;  %v1331_v58 = vld [vmem:[%s1584_s13 + $0x1d8] sm:$0xf0]  ;;  %v1206_v62 = vor.u32 %v1386_v54, %v1203_v55  ;;  %v1384_v0 = vld [vmem:[%s1584_s13 + $0xb4] sm:$0xf0]  ;;  %v1313_v1 = vld [vmem:[%s1584_s13 + $0x1a8] sm:$0xf] }
  0x3b   : > { %781 = vmatpush.bf16.msra.mxu3 %v1246_v27  ;;  %v1334_v2 = vor.u32 %v1418_v57, %v1331_v58  ;;  %v1416_v3 = vld [vmem:[%s1584_s13 + $0x1b4] sm:$0xf0]  ;;  %v1382_v4 = vld [vmem:[%s1584_s13 + $0xac] sm:$0xf]  ;;  %v1187_v5 = vld [vmem:[%s1584_s13 + $0xb8] sm:$0xf0]  ;;  %v1186_v8 = vor.u32 %v1384_v0, %v1185_v63 }
  0x3c   : > { %v1414_v6 = vld [vmem:[%s1584_s13 + $0x1ac] sm:$0xf]  ;;  %v1315_v7 = vld [vmem:[%s1584_s13 + $0x1b8] sm:$0xf0]  ;;  %v1314_v9 = vor.u32 %v1416_v3, %v1313_v1  ;;  %v1190_v10 = vor.u32 %v1382_v4, %v1187_v5  ;;  %v1169_v11 = vld [vmem:[%s1584_s13 + $0x88] sm:$0xf] }
  0x3d   : > { %740 = vmatpush.bf16.msra.mxu0 %v1098_v34  ;;  %v1380_v12 = vld [vmem:[%s1584_s13 + $0x94] sm:$0xf0]  ;;  %v1297_v13 = vld [vmem:[%s1584_s13 + $0x188] sm:$0xf]  ;;  %v1318_v14 = vor.u32 %v1414_v6, %v1315_v7  ;;  %v1378_v16 = vld [vmem:[%s1584_s13 + $0x8c] sm:$0xf] }
  0x3e   : > { %754 = vmatpush.bf16.msra.mxu1 %v1226_v38  ;;  %768 = vmatpush.bf16.msra.mxu2 %v1102_v39  ;;  %v1412_v15 = vld [vmem:[%s1584_s13 + $0x194] sm:$0xf0]  ;;  %v1171_v17 = vld [vmem:[%s1584_s13 + $0x98] sm:$0xf0]  ;;  %v1410_v18 = vld [vmem:[%s1584_s13 + $0x18c] sm:$0xf]  ;;  %v1170_v20 = vor.u32 %v1380_v12, %v1169_v11 }
  0x3f   : > { %782 = vmatpush.bf16.msra.mxu3 %v1230_v43  ;;  %v1299_v19 = vld [vmem:[%s1584_s13 + $0x198] sm:$0xf0]  ;;  %v1298_v21 = vor.u32 %v1412_v15, %v1297_v13  ;;  %v1174_v22 = vor.u32 %v1378_v16, %v1171_v17  ;;  %v1153_v23 = vld [vmem:[%s1584_s13 + $0x68] sm:$0xf]  ;;  %v1376_v24 = vld [vmem:[%s1584_s13 + $0x74] sm:$0xf0] }
  0x40   : > { %741 = vmatmul.bf16.vlgmr.msra.gmra.mxu0 %v1668_v56  ;;  %v1281_v25 = vld [vmem:[%s1584_s13 + $0x168] sm:$0xf]  ;;  %v1302_v26 = vor.u32 %v1410_v18, %v1299_v19  ;;  %v1408_v27 = vld [vmem:[%s1584_s13 + $0x174] sm:$0xf0]  ;;  %v1374_v28 = vld [vmem:[%s1584_s13 + $0x6c] sm:$0xf]  ;;  %v1154_v32 = vor.u32 %v1376_v24, %v1153_v23 }
  0x41   : > { %789 = vmatpush.bf16.msrb.mxu0 %v1218_v44  ;;  %769 = vmatmul.bf16.vlgmr.msra.gmra.mxu2 %v1668_v56  ;;  %v1155_v29 = vld [vmem:[%s1584_s13 + $0x78] sm:$0xf0]  ;;  %v1406_v30 = vld [vmem:[%s1584_s13 + $0x16c] sm:$0xf]  ;;  %v1282_v33 = vor.u32 %v1408_v27, %v1281_v25  ;;  %v1137_v35 = vld [vmem:[%s1584_s13 + $0x48] sm:$0xf] }
  0x42   : > { %803 = vmatpush.bf16.msrb.mxu1 %v1346_v47  ;;  %817 = vmatpush.bf16.msrb.mxu2 %v1222_v48  ;;  %v1283_v31 = vld [vmem:[%s1584_s13 + $0x178] sm:$0xf0]  ;;  %v1158_v34 = vor.u32 %v1374_v28, %v1155_v29  ;;  %v1372_v36 = vld [vmem:[%s1584_s13 + $0x54] sm:$0xf0]  ;;  %v1265_v37 = vld [vmem:[%s1584_s13 + $0x148] sm:$0xf] }
  0x43   : > { %831 = vmatpush.bf16.msrb.mxu3 %v1350_v52  ;;  %755 = vmatmul.bf16.vlgmr.msra.gmra.mxu1 %v1672_v59  ;;  %v1286_v38 = vor.u32 %v1406_v30, %v1283_v31  ;;  %v1404_v39 = vld [vmem:[%s1584_s13 + $0x154] sm:$0xf0]  ;;  %v1370_v40 = vld [vmem:[%s1584_s13 + $0x4c] sm:$0xf]  ;;  %v1139_v41 = vld [vmem:[%s1584_s13 + $0x58] sm:$0xf0]  ;;  %v1138_v44 = vor.u32 %v1372_v36, %v1137_v35 }
  0x44   : > { %783 = vmatmul.bf16.vlgmr.msra.gmra.mxu3 %v1672_v59  ;;  %v1402_v42 = vld [vmem:[%s1584_s13 + $0x14c] sm:$0xf]  ;;  %v1267_v43 = vld [vmem:[%s1584_s13 + $0x158] sm:$0xf0]  ;;  %v1266_v45 = vor.u32 %v1404_v39, %v1265_v37  ;;  %v1142_v46 = vor.u32 %v1370_v40, %v1139_v41  ;;  %v1121_v47 = vld [vmem:[%s1584_s13 + $0x28] sm:$0xf] }
  0x45   : > { %790 = vmatpush.bf16.msrb.mxu0 %v1202_v60  ;;  %v1368_v48 = vld [vmem:[%s1584_s13 + $0x34] sm:$0xf0]  ;;  %v1249_v49 = vld [vmem:[%s1584_s13 + $0x128] sm:$0xf]  ;;  %v1270_v50 = vor.u32 %v1402_v42, %v1267_v43  ;;  %v1366_v52 = vld [vmem:[%s1584_s13 + $0x2c] sm:$0xf] }
  0x46   : > { %804 = vmatpush.bf16.msrb.mxu1 %v1330_v61  ;;  %818 = vmatpush.bf16.msrb.mxu2 %v1206_v62  ;;  %v1400_v51 = vld [vmem:[%s1584_s13 + $0x134] sm:$0xf0]  ;;  %v1123_v53 = vld [vmem:[%s1584_s13 + $0x38] sm:$0xf0]  ;;  %v1398_v54 = vld [vmem:[%s1584_s13 + $0x12c] sm:$0xf]  ;;  %v1122_v57 = vor.u32 %v1368_v48, %v1121_v47 }
  0x47   : > { %832 = vmatpush.bf16.msrb.mxu3 %v1334_v2  ;;  %v1251_v55 = vld [vmem:[%s1584_s13 + $0x138] sm:$0xf0]  ;;  %v1250_v58 = vor.u32 %v1400_v51, %v1249_v49  ;;  %v1126_v60 = vor.u32 %v1366_v52, %v1123_v53  ;;  %v1105_v61 = vld [vmem:[%s1584_s13 + $0x8] sm:$0xf]  ;;  %v1364_v62 = vld [vmem:[%s1584_s13 + $0x14] sm:$0xf0] }
  0x48   : > { %v1233_v63 = vld [vmem:[%s1584_s13 + $0x108] sm:$0xf]  ;;  %v1254_v0 = vor.u32 %v1398_v54, %v1251_v55  ;;  %v1396_v1 = vld [vmem:[%s1584_s13 + $0x114] sm:$0xf0]  ;;  %v1362_v2 = vld [vmem:[%s1584_s13 + $0xc] sm:$0xf]  ;;  %v1106_v6 = vor.u32 %v1364_v62, %v1105_v61 }
  0x49   : > { %791 = vmatpush.bf16.msrb.mxu0 %v1186_v8  ;;  %v1107_v3 = vld [vmem:[%s1584_s13 + $0x18] sm:$0xf0]  ;;  %v1394_v4 = vld [vmem:[%s1584_s13 + $0x10c] sm:$0xf]  ;;  %v1234_v7 = vor.u32 %v1396_v1, %v1233_v63 }
  0x4a   : > { %805 = vmatpush.bf16.msrb.mxu1 %v1314_v9  ;;  %819 = vmatpush.bf16.msrb.mxu2 %v1190_v10  ;;  %v1235_v5 = vld [vmem:[%s1584_s13 + $0x118] sm:$0xf0]  ;;  %v1110_v8 = vor.u32 %v1362_v2, %v1107_v3 }
  0x4b   : > { %833 = vmatpush.bf16.msrb.mxu3 %v1318_v14  ;;  %v1238_v9 = vor.u32 %v1394_v4, %v1235_v5 }
  0x4d   : > { %792 = vmatpush.bf16.msrb.mxu0 %v1170_v20 }
  0x4e   : > { %806 = vmatpush.bf16.msrb.mxu1 %v1298_v21  ;;  %820 = vmatpush.bf16.msrb.mxu2 %v1174_v22 }
  0x4f   : > { %834 = vmatpush.bf16.msrb.mxu3 %v1302_v26 }
  0x51   : > { %793 = vmatpush.bf16.msrb.mxu0 %v1154_v32 }
  0x52   : > { %807 = vmatpush.bf16.msrb.mxu1 %v1282_v33  ;;  %821 = vmatpush.bf16.msrb.mxu2 %v1158_v34 }
  0x53   : > { %835 = vmatpush.bf16.msrb.mxu3 %v1286_v38 }
  0x55   : > { %794 = vmatpush.bf16.msrb.mxu0 %v1138_v44 }
  0x56   : > { %808 = vmatpush.bf16.msrb.mxu1 %v1266_v45  ;;  %822 = vmatpush.bf16.msrb.mxu2 %v1142_v46 }
  0x57   : > { %836 = vmatpush.bf16.msrb.mxu3 %v1270_v50 }
  0x59   : > { %795 = vmatpush.bf16.msrb.mxu0 %v1122_v57 }
  0x5a   : > { %809 = vmatpush.bf16.msrb.mxu1 %v1250_v58  ;;  %823 = vmatpush.bf16.msrb.mxu2 %v1126_v60 }
  0x5b   : > { %837 = vmatpush.bf16.msrb.mxu3 %v1254_v0 }
  0x5d   : > { %796 = vmatpush.bf16.msrb.mxu0 %v1106_v6 }
  0x5e   : > { %810 = vmatpush.bf16.msrb.mxu1 %v1234_v7  ;;  %824 = vmatpush.bf16.msrb.mxu2 %v1110_v8 }
  0x5f   : > { %838 = vmatpush.bf16.msrb.mxu3 %v1238_v9 }
  0x60   : > { %797 = vmatmul.bf16.vlgmr.msrb.gmra.mxu0 %v1668_v56 }
  0x61   : > { %811 = vmatmul.bf16.vlgmr.msrb.gmra.mxu1 %v1672_v59  ;;  %825 = vmatmul.bf16.vlgmr.msrb.gmra.mxu2 %v1668_v56 }
  0x62   : > { %839 = vmatmul.bf16.vlgmr.msrb.gmra.mxu3 %v1672_v59 }
  0xbd   : > { %v742_v10 = vpop.f32.mrf.mxu0 }
  0xc0   : > { %v756_v11 = vpop.f32.mrf.mxu1 }
  0xc1   : > { %v1730_v12 = vadd.f32 %v756_v11, %v742_v10 }
  0xc4   : > { %v770_v13 = vpop.f32.mrf.mxu2 }
  0xc5   : > { %v744_v16 = vpop.f32.mrf.mxu0 }
  0xc7   : > { %v784_v14 = vpop.f32.mrf.mxu3 }
  0xc8   : > { %v1732_v15 = vadd.f32 %v784_v14, %v770_v13  ;;  %v758_v17 = vpop.f32.mrf.mxu1 }
  0xc9   : > { %v1734_v18 = vadd.f32 %v758_v17, %v744_v16 }
  0xcc   : > { %v772_v19 = vpop.f32.mrf.mxu2 }
  0xcf   : > { %v786_v20 = vpop.f32.mrf.mxu3 }
  0xd0   : > { %v1736_v21 = vadd.f32 %v786_v20, %v772_v19 }
  0xdd   : > { %v798_v22 = vpop.f32.mrf.mxu0 }
  0xde   : > { %v812_v56 = vpop.f32.mrf.mxu1 }
  0xdf   : > { %v1738_v23 = vadd.f32 %v812_v56, %v798_v22 }
  0xe4   : > { %v826_v59 = vpop.f32.mrf.mxu2 }
  0xe5   : > { %v840_v24 = vpop.f32.mrf.mxu3  ;;  %v800_v25 = vpop.f32.mrf.mxu0 }
  0xe6   : > { %v1740_v26 = vadd.f32 %v840_v24, %v826_v59  ;;  %v814_v27 = vpop.f32.mrf.mxu1 }
  0xe7   : > { %v1742_v28 = vadd.f32 %v814_v27, %v800_v25 }
  0xea   : > { %848 = sbr.rel (%p1351_p10) target bundleno = 247 (0xf7), region = 82 }
  0xec   : > { %v828_v29 = vpop.f32.mrf.mxu2 }
  0xed   : > { %v842_v30 = vpop.f32.mrf.mxu3 }
  0xee   : > { %v1744_v31 = vadd.f32 %v842_v30, %v828_v29 }
  0xef   : > { %849 = vst [vmem:[%s1944_s5] sm:$0xff] %v1730_v12 }
  0xf0   : > { %850 = vst [vmem:[%s1944_s5 + $0x8] sm:$0xff] %v1732_v15 }
  0xf1   : > { %851 = vst [vmem:[%s1944_s5 + $0x10] sm:$0xff] %v1738_v23 }
  0xf2   : > { %852 = vst [vmem:[%s1944_s5 + $0x18] sm:$0xff] %v1740_v26 }
  0xf3   : > { %853 = vst [vmem:[%s1944_s5 + $0x20] sm:$0xff] %v1734_v18 }
  0xf4   : > { %854 = vst [vmem:[%s1944_s5 + $0x28] sm:$0xff] %v1736_v21 }
  0xf5   : > { %855 = vst [vmem:[%s1944_s5 + $0x30] sm:$0xff] %v1742_v28 }
  0xf6   : > { %856 = vst [vmem:[%s1944_s5 + $0x38] sm:$0xff] %v1744_v31 }
  0xf7 PF: > { %p857_p11 = scmp.gt.s32.totalorder %s1495_s20, 0  ;;  %p858_p12 = scmp.lt.s32.totalorder %s1495_s20, 17 }
  0xf9   : > { %p859_p13 = pnand %p858_p12, %p857_p11 }
  0xfb   : > { %862 = sbr.rel (%p859_p13) target bundleno = 267 (0x10b), region = 86 }
 0x100   : > { %v863_v32 = vld [vmem:[%s1944_s5] sm:$0xff]  ;;  %v864_v33 = vld [vmem:[%s1944_s5 + $0x8] sm:$0xff]  ;;  %v865_v34 = vld [vmem:[%s1944_s5 + $0x10] sm:$0xff] }
 0x101   : > { %v871_v35 = vadd.f32 %v863_v32, %v1730_v12  ;;  %v872_v36 = vadd.f32 %v864_v33, %v1732_v15  ;;  %v873_v37 = vadd.f32 %v865_v34, %v1738_v23  ;;  %v866_v38 = vld [vmem:[%s1944_s5 + $0x18] sm:$0xff]  ;;  %v867_v39 = vld [vmem:[%s1944_s5 + $0x20] sm:$0xff]  ;;  %v868_v40 = vld [vmem:[%s1944_s5 + $0x28] sm:$0xff] }
 0x102   : > { %v874_v41 = vadd.f32 %v866_v38, %v1740_v26  ;;  %v869_v42 = vld [vmem:[%s1944_s5 + $0x30] sm:$0xff]  ;;  %v875_v43 = vadd.f32 %v867_v39, %v1734_v18  ;;  %v870_v44 = vld [vmem:[%s1944_s5 + $0x38] sm:$0xff]  ;;  %v876_v45 = vadd.f32 %v868_v40, %v1736_v21 }
 0x103   : > { %879 = vst [vmem:[%s1944_s5] sm:$0xff] %v871_v35  ;;  %v877_v46 = vadd.f32 %v869_v42, %v1742_v28  ;;  %v878_v47 = vadd.f32 %v870_v44, %v1744_v31 }
 0x104   : > { %880 = vst [vmem:[%s1944_s5 + $0x8] sm:$0xff] %v872_v36 }
 0x105   : > { %881 = vst [vmem:[%s1944_s5 + $0x10] sm:$0xff] %v873_v37 }
 0x106   : > { %882 = vst [vmem:[%s1944_s5 + $0x18] sm:$0xff] %v874_v41 }
 0x107   : > { %883 = vst [vmem:[%s1944_s5 + $0x20] sm:$0xff] %v875_v43 }
 0x108   : > { %884 = vst [vmem:[%s1944_s5 + $0x28] sm:$0xff] %v876_v45 }
 0x109   : > { %885 = vst [vmem:[%s1944_s5 + $0x30] sm:$0xff] %v877_v46 }
 0x10a   : > { %886 = vst [vmem:[%s1944_s5 + $0x38] sm:$0xff] %v878_v47 }
 0x10b PF: > { %p1352_p0 = scmp.ne.s32.totalorder %s1495_s20, 17 }
 0x10d   : > { %890 = sbr.rel (%p1352_p0) target bundleno = 294 (0x126), region = 90 }
 0x112   : > { %v891_v48 = vld [vmem:[%s1944_s5] sm:$0xff]  ;;  %v892_v54 = vld [vmem:[%s1944_s5 + $0x8] sm:$0xff]  ;;  %v893_v60 = vld [vmem:[%s1944_s5 + $0x10] sm:$0xff] }
 0x113   : > { %v907_v49 = vld [vmem:[%s1941_s2] sm:$0xf]  ;;  %v899_v51 = vadd.f32 %v891_v48, %v1730_v12  ;;  %v900_v57 = vadd.f32 %v892_v54, %v1732_v15  ;;  %v894_v63 = vld [vmem:[%s1944_s5 + $0x18] sm:$0xff]  ;;  %v901_v1 = vadd.f32 %v893_v60, %v1738_v23  ;;  %v896_v9 = vld [vmem:[%s1944_s5 + $0x28] sm:$0xff] }
 0x114   : > { %v925_v50 = vld [vmem:[%s1942_s3] sm:$0xf]  ;;  %v909_v52 = vperm.slane %v907_v49, 0  ;;  %v910_v55 = vperm.slane %v907_v49, 1  ;;  %v911_v61 = vperm.slane %v907_v49, 2  ;;  %v902_v2 = vadd.f32 %v894_v63, %v1740_v26  ;;  %v897_v10 = vld [vmem:[%s1944_s5 + $0x30] sm:$0xff] }
 0x115   : > { %v927_v53 = vperm.slane %v925_v50, 0  ;;  %v928_v58 = vperm.slane %v925_v50, 1  ;;  %v929_v62 = vperm.slane %v925_v50, 2  ;;  %v912_v3 = vperm.slane %v907_v49, 3  ;;  %v895_v4 = vld [vmem:[%s1944_s5 + $0x20] sm:$0xff]  ;;  %v944_v12 = vld [vmem:[%s1943_s4 + $0x8] sm:$0xff] }
 0x116   : > { %v917_v0 = vmul.f32 %v909_v52, %v899_v51  ;;  %v943_v5 = vld [vmem:[%s1943_s4] sm:$0xff]  ;;  %v918_v6 = vmul.f32 %v910_v55, %v900_v57  ;;  %v930_v7 = vperm.slane %v925_v50, 3  ;;  %v903_v8 = vadd.f32 %v895_v4, %v1734_v18  ;;  %v898_v16 = vld [vmem:[%s1944_s5 + $0x38] sm:$0xff]  ;;  %v945_v18 = vld [vmem:[%s1943_s4 + $0x10] sm:$0xff] }
 0x117   : > { %v919_v13 = vmul.f32 %v911_v61, %v901_v1  ;;  %v920_v14 = vmul.f32 %v912_v3, %v902_v2  ;;  %v904_v15 = vadd.f32 %v896_v9, %v1736_v21  ;;  %v946_v19 = vld [vmem:[%s1943_s4 + $0x18] sm:$0xff]  ;;  %v905_v22 = vadd.f32 %v897_v10, %v1742_v28  ;;  %v947_v24 = vld [vmem:[%s1943_s4 + $0x20] sm:$0xff]  ;;  %v948_v29 = vld [vmem:[%s1943_s4 + $0x28] sm:$0xff] }
 0x118   : > { %v935_v11 = vadd.f32 %v927_v53, %v917_v0  ;;  %v936_v17 = vadd.f32 %v928_v58, %v918_v6  ;;  %v921_v20 = vmul.f32 %v909_v52, %v903_v8  ;;  %v906_v56 = vadd.f32 %v898_v16, %v1744_v31  ;;  %v949_v35 = vld [vmem:[%s1943_s4 + $0x30] sm:$0xff]  ;;  %v950_v36 = vld [vmem:[%s1943_s4 + $0x38] sm:$0xff] }
 0x119   : > { %v937_v21 = vadd.f32 %v929_v62, %v919_v13  ;;  %v938_v59 = vadd.f32 %v930_v7, %v920_v14  ;;  %v922_v25 = vmul.f32 %v910_v55, %v904_v15  ;;  %v923_v30 = vmul.f32 %v911_v61, %v905_v22 }
 0x11a   : > { %v951_v23 = vadd.f32 %v943_v5, %v935_v11  ;;  %v952_v26 = vadd.f32 %v944_v12, %v936_v17  ;;  %v939_v27 = vadd.f32 %v927_v53, %v921_v20  ;;  %v924_v32 = vmul.f32 %v912_v3, %v906_v56 }
 0x11b   : > { %v953_v28 = vadd.f32 %v945_v18, %v937_v21  ;;  %v954_v34 = vadd.f32 %v946_v19, %v938_v59  ;;  %v940_v31 = vadd.f32 %v928_v58, %v922_v25  ;;  %v941_v39 = vadd.f32 %v929_v62, %v923_v30 }
 0x11c   : > { %v959_v33 = vmax.f32 %v951_v23, 0.0  ;;  %v960_v37 = vmax.f32 %v952_v26, 0.0  ;;  %v955_v38 = vadd.f32 %v947_v24, %v939_v27  ;;  %v942_v40 = vadd.f32 %v930_v7, %v924_v32 }
 0x11d   : > { %v961_v41 = vmax.f32 %v953_v28, 0.0  ;;  %v962_v42 = vmax.f32 %v954_v34, 0.0  ;;  %v956_v43 = vadd.f32 %v948_v29, %v940_v31  ;;  %v957_v45 = vadd.f32 %v949_v35, %v941_v39 }
 0x11e   : > { %967 = vst [vmem:[%s1944_s5] sm:$0xff] %v959_v33  ;;  %v963_v44 = vmax.f32 %v955_v38, 0.0  ;;  %v958_v46 = vadd.f32 %v950_v36, %v942_v40 }
 0x11f   : > { %968 = vst [vmem:[%s1944_s5 + $0x8] sm:$0xff] %v960_v37  ;;  %v964_v47 = vmax.f32 %v956_v43, 0.0  ;;  %v965_v48 = vmax.f32 %v957_v45, 0.0 }
 0x120   : > { %969 = vst [vmem:[%s1944_s5 + $0x10] sm:$0xff] %v961_v41  ;;  %v966_v49 = vmax.f32 %v958_v46, 0.0 }
 0x121   : > { %970 = vst [vmem:[%s1944_s5 + $0x18] sm:$0xff] %v962_v42 }
 0x122   : > { %971 = vst [vmem:[%s1944_s5 + $0x20] sm:$0xff] %v963_v44 }
 0x123   : > { %972 = vst [vmem:[%s1944_s5 + $0x28] sm:$0xff] %v964_v47 }
 0x124   : > { %973 = vst [vmem:[%s1944_s5 + $0x30] sm:$0xff] %v965_v48 }
 0x125   : > { %974 = vst [vmem:[%s1944_s5 + $0x38] sm:$0xff] %v966_v49 }
 0x126 PF: > { %s15_s22 = sadd.s32 1, %s1503_s22   ;;  %s1945_s18 = smov %s1491_s19 }
 0x127   : > { %p12_p1 = scmp.ge.s32.totalorder %s15_s22, 20   ;;  %s1946_s19 = smov %s1570_s26 }
 0x128   : > { %s1947_s20 = smov %s1499_s21  ;;  %s1948_s21 = smov %s1950_s23 }
 0x129   :  { %14 = sbr.rel (!%p12_p1) target bundleno = 3 (0x3), region = 131 }

</bundles_post_ra>
